<compile_context>
chip_gen: v7x
topology: tpu7x:2x2x1
jax: 0.10.0
libtpu: 0.0.40
codegen_flags: <defaults>
</compile_context>

<pallas_src>
import functools

import jax
import jax.numpy as jnp
from jax.experimental import pallas as pl
from jax.experimental.pallas import tpu as pltpu

BN_EPS = 1e-5

LIN_ARC = [2000, 1500, 1000, 500, 1]
RES_ARC = [128, 32, 8, 2]
IN_CHANNELS = 20

L_TILE = 512                       # lane tile for the conv stack
K1_TILE = 512                      # streamed K-row tile of the first Linear
VMEM_LIMIT = 32 * 1024 * 1024      # safe on v5e/v6e (128 MiB) and v7x (64 MiB)


def _round_up(x, m):
    return ((x + m - 1) // m) * m


# ----------------------------------------------------------------------------
# Pallas kernel: fused channels-first 1x1-conv ResNet stack
# ----------------------------------------------------------------------------
def _conv_stack_kernel(*refs, has_proj):
    """One (batch, L-tile) block of the fused res-block chain.

    refs = (x_ref, <per-block params...>, o_ref); x block (1, C_in, TL).
    Per block: h <- relu(W2 @ relu(W1 @ h + b1) + b2 + shortcut(h)).
    Dots in bf16, accumulation / residual add in f32; everything stays in VMEM.
    """
    x_ref = refs[0]
    o_ref = refs[-1]
    params = refs[1:-1]

    h = x_ref[0]                                        # (C_in, TL) f32
    i = 0
    for proj in has_proj:
        w1, b1, w2, b2 = params[i:i + 4]
        i += 4
        hb = h.astype(jnp.bfloat16)
        y = jnp.dot(w1[...], hb, preferred_element_type=jnp.float32) + b1[...]
        yb = jnp.maximum(y, 0.0).astype(jnp.bfloat16)
        y = jnp.dot(w2[...], yb, preferred_element_type=jnp.float32) + b2[...]
        if proj:
            ws, bs = params[i:i + 2]
            i += 2
            r = jnp.dot(ws[...], hb, preferred_element_type=jnp.float32) + bs[...]
        else:
            r = h
        h = jnp.maximum(y + r, 0.0)                     # f32
    o_ref[0] = h.astype(o_ref.dtype)


def conv_stack(x, blocks):
    """x: (N, C_in, LP) f32 with LP % 128 == 0  ->  (N, C_out, LP) f32."""
    n, cin, lp = x.shape
    tl = min(L_TILE, lp)
    assert lp % tl == 0

    args = [x]
    in_specs = [pl.BlockSpec((1, cin, tl), lambda b, t: (b, 0, t))]
    has_proj = []
    for p in blocks:
        proj = "ws" in p
        has_proj.append(proj)
        names = ("w1", "b1", "w2", "b2") + (("ws", "bs") if proj else ())
        for name in names:
            a = p[name]
            args.append(a)
            in_specs.append(pl.BlockSpec(a.shape, lambda b, t: (0, 0)))
    cout = blocks[-1]["w2"].shape[0]

    kernel = functools.partial(_conv_stack_kernel, has_proj=tuple(has_proj))
    return pl.pallas_call(
        kernel,
        out_shape=jax.ShapeDtypeStruct((n, cout, lp), jnp.float32),
        grid_spec=pltpu.PrefetchScalarGridSpec(
            num_scalar_prefetch=0,
            grid=(n, lp // tl),
            in_specs=in_specs,
            out_specs=pl.BlockSpec((1, cout, tl), lambda b, t: (b, 0, t)),
        ),
        compiler_params=pltpu.CompilerParams(
            dimension_semantics=("parallel", "parallel"),
            vmem_limit_bytes=VMEM_LIMIT,
        ),
    )(*args)


# ----------------------------------------------------------------------------
# Pallas kernel: fused Linear chain (2000->1500->1000->500->1, padded to 128s)
# ----------------------------------------------------------------------------
def _linear_stack_kernel(*refs, n_rest):
    """Whole Linear stack in one kernel.

    Grid streams K-row tiles of the first (largest) weight and reduces
    y1 = x @ W1 into a VMEM scratch; the remaining small layers run once in a
    pl.when finalize on the last grid step with their weights held resident.
    refs = (x_tile, w1_tile, b1, <w,b>*n_rest, o_ref, y1_scratch).
    """
    x_ref, w1_ref, b1_ref = refs[0], refs[1], refs[2]
    rest = refs[3:3 + 2 * n_rest]
    o_ref = refs[3 + 2 * n_rest]
    y1_ref = refs[3 + 2 * n_rest + 1]

    j = pl.program_id(0)

    @pl.when(j == 0)
    def _():
        y1_ref[...] = jnp.zeros_like(y1_ref)

    xb = x_ref[...].astype(jnp.bfloat16)
    y1_ref[...] += jnp.dot(xb, w1_ref[...], preferred_element_type=jnp.float32)

    @pl.when(j == pl.num_programs(0) - 1)
    def _():
        h = y1_ref[...] + b1_ref[...]
        for k in range(n_rest):
            w, b = rest[2 * k], rest[2 * k + 1]
            h = jnp.dot(h.astype(jnp.bfloat16), w[...],
                        preferred_element_type=jnp.float32) + b[...]
        o_ref[...] = h.astype(o_ref.dtype)


def linear_stack(x, layers):
    """x: (M, K1) f32; layers: [(w bf16 (K, N), b f32 (1, N)), ...] padded so
    every K and N is a multiple of 128.  Single pallas_call for the chain."""
    m, k1 = x.shape
    (w1, b1), *rest = layers
    n1 = w1.shape[1]
    assert k1 == w1.shape[0]
    tk = min(K1_TILE, k1)
    assert k1 % tk == 0
    n_out = rest[-1][0].shape[1] if rest else n1

    args = [x, w1, b1]
    in_specs = [
        pl.BlockSpec((m, tk), lambda j: (0, j)),      # streamed activation tile
        pl.BlockSpec((tk, n1), lambda j: (j, 0)),     # streamed W1 row tile
        pl.BlockSpec((1, n1), lambda j: (0, 0)),      # resident bias
    ]
    for w, b in rest:
        args += [w, b]
        in_specs.append(pl.BlockSpec(w.shape, lambda j: (0, 0)))   # resident
        in_specs.append(pl.BlockSpec(b.shape, lambda j: (0, 0)))

    kernel = functools.partial(_linear_stack_kernel, n_rest=len(rest))
    return pl.pallas_call(
        kernel,
        out_shape=jax.ShapeDtypeStruct((m, n_out), jnp.float32),
        grid_spec=pltpu.PrefetchScalarGridSpec(
            num_scalar_prefetch=0,
            grid=(k1 // tk,),
            in_specs=in_specs,
            out_specs=pl.BlockSpec((m, n_out), lambda j: (0, 0)),
            scratch_shapes=[pltpu.VMEM((m, n1), jnp.float32)],
        ),
        compiler_params=pltpu.CompilerParams(
            dimension_semantics=("arbitrary",),       # K reduction is carried
            vmem_limit_bytes=VMEM_LIMIT,
        ),
    )(*args)


# ----------------------------------------------------------------------------
# deterministic parameter initialization (synthetic; no checkpoint load)
# ----------------------------------------------------------------------------
def _init_linear_padded(key, fan_in, fan_out):
    kw, kb = jax.random.split(key)
    bound = 1.0 / jnp.sqrt(jnp.float32(fan_in))
    w = jax.random.uniform(kw, (fan_in, fan_out), jnp.float32, -bound, bound)
    b = jax.random.uniform(kb, (fan_out,), jnp.float32, -bound, bound)
    kp, npad = _round_up(fan_in, 128), _round_up(fan_out, 128)
    # zero-pad K and N to multiples of 128: exact (zero rows/cols contribute 0)
    w = jnp.pad(w, ((0, kp - fan_in), (0, npad - fan_out)))
    b = jnp.pad(b, (0, npad - fan_out)).reshape(1, npad)
    return w.astype(jnp.bfloat16), b                   # bf16 weight, f32 bias


def _init_conv1x1(key, cin, cout):
    bound = 1.0 / jnp.sqrt(jnp.float32(cin))
    # channels-first orientation: (cout, cin) so the kernel does w @ x
    return jax.random.uniform(key, (cout, cin), jnp.float32, -bound, bound)


def _fold_conv_bn(w):
    # eval-mode BN with PyTorch-default running stats (mean=0, var=1, affine
    # identity): y = x / sqrt(1 + eps); bias = 0.  Folded into the conv.
    # TODO(synk): training-mode (batch-statistics) BatchNorm not implemented.
    scale = 1.0 / jnp.sqrt(1.0 + BN_EPS)
    return (w * scale).astype(jnp.bfloat16), jnp.zeros((w.shape[0], 1), jnp.float32)


def _init_resblock(key, cin, cout):
    k1, k2, ks = jax.random.split(key, 3)
    w1, b1 = _fold_conv_bn(_init_conv1x1(k1, cin, cout))
    w2, b2 = _fold_conv_bn(_init_conv1x1(k2, cout, cout))
    p = dict(w1=w1, b1=b1, w2=w2, b2=b2)
    if cin != cout:                                   # projection shortcut
        ws, bs = _fold_conv_bn(_init_conv1x1(ks, cin, cout))
        p.update(ws=ws, bs=bs)
    return p


def init_params(key):
    keys = iter(jax.random.split(key, 16))
    params = {}
    enc_chs = [IN_CHANNELS] + RES_ARC                  # 20->128->32->8->2
    params["conv"] = [_init_resblock(next(keys), ci, co)
                      for ci, co in zip(enc_chs, enc_chs[1:])]
    params["linear"] = [_init_linear_padded(next(keys), i, o)
                        for i, o in zip(LIN_ARC, LIN_ARC[1:])]
    return params


# ----------------------------------------------------------------------------
# encoder forward (glue around the two Pallas kernels)
# ----------------------------------------------------------------------------
def encoder_forward(params, x):
    """x: (N, 20, 2000) f32  ->  (mu, logvar), each (N, 1, 1) f32."""
    n, c, l = x.shape
    lp = _round_up(l, 128)                             # 2000 -> 2048
    x = jnp.pad(x, ((0, 0), (0, 0), (0, lp - l)))      # lane-dense stores;
                                                       # exact (zero-padded W1 rows)

    h = conv_stack(x, params["conv"])                  # (N, 2, 2048), one call
    c_lat = h.shape[1]

    h = h.reshape(n * c_lat, lp)                       # (2N, 2048), free reshape
    y = linear_stack(h, params["linear"])              # (2N, 128); col 0 is real
    y = y[:, :1].reshape(n, c_lat, 1)                  # (N, 2, 1)

    mu, logvar = y[:, :1, :], y[:, 1:, :]              # torch.chunk(x, 2, dim=1)
    return mu, logvar


# ----------------------------------------------------------------------------
if __name__ == "__main__":
    key = jax.random.PRNGKey(0)
    pkey, xkey = jax.random.split(key)

    params = init_params(pkey)

    batch = 2
    x = jax.random.normal(xkey, (batch, IN_CHANNELS, LIN_ARC[0]), jnp.float32)

    fwd = jax.jit(encoder_forward)
    mu, logvar = jax.block_until_ready(fwd(params, x))

    assert mu.shape == (batch, 1, 1), mu.shape
    assert logvar.shape == (batch, 1, 1), logvar.shape
    assert bool(jnp.all(jnp.isfinite(mu)))
    assert bool(jnp.all(jnp.isfinite(logvar)))

    print("KERNEL_OK")
</pallas_src>

<mosaic_0001>
module attributes {stable_mosaic.version = 11 : i64} {
  func.func @_linear_stack_kernel(%arg0: i32, %arg1: memref<4x512xf32, #tpu.memory_space<vmem>>, %arg2: memref<512x1536xbf16, #tpu.memory_space<vmem>>, %arg3: memref<1x1536xf32, #tpu.memory_space<vmem>>, %arg4: memref<1536x1024xbf16, #tpu.memory_space<vmem>>, %arg5: memref<1x1024xf32, #tpu.memory_space<vmem>>, %arg6: memref<1024x512xbf16, #tpu.memory_space<vmem>>, %arg7: memref<1x512xf32, #tpu.memory_space<vmem>>, %arg8: memref<512x128xbf16, #tpu.memory_space<vmem>>, %arg9: memref<1x128xf32, #tpu.memory_space<vmem>>, %arg10: memref<4x128xf32, #tpu.memory_space<vmem>>, %arg11: memref<4x1536xf32, #tpu.memory_space<vmem>>) attributes {dimension_semantics = [#tpu.dimension_semantics<arbitrary>], iteration_bounds = array<i64: 4>, scalar_prefetch = 0 : i64, scratch_operands = 1 : i64, tpu.core_type = #tpu.core_type<tc>, window_params = [{transform_indices = @transform_0, window_bounds = array<i64: 4, 512>}, {transform_indices = @transform_1, window_bounds = array<i64: 512, 1536>}, {pipeline_mode = #tpu.pipeline_mode<synchronous>, transform_indices = @transform_2, window_bounds = array<i64: 1, 1536>}, {pipeline_mode = #tpu.pipeline_mode<synchronous>, transform_indices = @transform_3, window_bounds = array<i64: 1536, 1024>}, {pipeline_mode = #tpu.pipeline_mode<synchronous>, transform_indices = @transform_4, window_bounds = array<i64: 1, 1024>}, {pipeline_mode = #tpu.pipeline_mode<synchronous>, transform_indices = @transform_5, window_bounds = array<i64: 1024, 512>}, {pipeline_mode = #tpu.pipeline_mode<synchronous>, transform_indices = @transform_6, window_bounds = array<i64: 1, 512>}, {pipeline_mode = #tpu.pipeline_mode<synchronous>, transform_indices = @transform_7, window_bounds = array<i64: 512, 128>}, {pipeline_mode = #tpu.pipeline_mode<synchronous>, transform_indices = @transform_8, window_bounds = array<i64: 1, 128>}, {pipeline_mode = #tpu.pipeline_mode<synchronous>, transform_indices = @transform_9, window_bounds = array<i64: 4, 128>}]} {
    %c0_i32 = arith.constant 0 : i32
    %0 = arith.cmpi eq, %arg0, %c0_i32 : i32
    %1 = arith.extui %0 : i1 to i32
    %c0_i32_0 = arith.constant 0 : i32
    %2 = arith.cmpi ne, %1, %c0_i32_0 : i32
    scf.if %2 {
      %cst_9 = arith.constant 0.000000e+00 : f32
      %13 = vector.broadcast %cst_9 : f32 to vector<4x1536xf32>
      %c0_10 = arith.constant 0 : index
      %c0_11 = arith.constant 0 : index
      %14 = vector.load %arg11[%c0_10, %c0_11] : memref<4x1536xf32, #tpu.memory_space<vmem>>, vector<4x1536xf32>
      tpu.vector_store %arg11[%c0_10, %c0_11], %13 {strides = array<i32>} : memref<4x1536xf32, #tpu.memory_space<vmem>>, vector<4x1536xf32>,
    } else {
    }
    %c0 = arith.constant 0 : index
    %c0_1 = arith.constant 0 : index
    %3 = vector.load %arg1[%c0, %c0_1] : memref<4x512xf32, #tpu.memory_space<vmem>>, vector<4x512xf32>
    %4 = arith.truncf %3 : vector<4x512xf32> to vector<4x512xbf16>
    %c0_2 = arith.constant 0 : index
    %c0_3 = arith.constant 0 : index
    %5 = vector.load %arg11[%c0_2, %c0_3] : memref<4x1536xf32, #tpu.memory_space<vmem>>, vector<4x1536xf32>
    %c0_4 = arith.constant 0 : index
    %c0_5 = arith.constant 0 : index
    %6 = vector.load %arg2[%c0_4, %c0_5] : memref<512x1536xbf16, #tpu.memory_space<vmem>>, vector<512x1536xbf16>
    %cst = arith.constant dense<0.000000e+00> : vector<4x1536xf32>
    %7 = tpu.matmul %4, %6, %cst {dimension_numbers = #tpu.dot_dimension_numbers<[1], [0], [0], [1], [0, 0, 1, 1], [], []>} : vector<4x512xbf16>, vector<512x1536xbf16>, vector<4x1536xf32> -> vector<4x1536xf32>
    %8 = arith.addf %5, %7 : vector<4x1536xf32>
    %c0_6 = arith.constant 0 : index
    %c0_7 = arith.constant 0 : index
    %9 = vector.load %arg11[%c0_6, %c0_7] : memref<4x1536xf32, #tpu.memory_space<vmem>>, vector<4x1536xf32>
    tpu.vector_store %arg11[%c0_6, %c0_7], %8 {strides = array<i32>} : memref<4x1536xf32, #tpu.memory_space<vmem>>, vector<4x1536xf32>,
    %c3_i32 = arith.constant 3 : i32
    %10 = arith.cmpi eq, %arg0, %c3_i32 : i32
    %11 = arith.extui %10 : i1 to i32
    %c0_i32_8 = arith.constant 0 : i32
    %12 = arith.cmpi ne, %11, %c0_i32_8 : i32
    scf.if %12 {
      %c0_9 = arith.constant 0 : index
      %c0_10 = arith.constant 0 : index
      %13 = vector.load %arg11[%c0_9, %c0_10] : memref<4x1536xf32, #tpu.memory_space<vmem>>, vector<4x1536xf32>
      %c0_11 = arith.constant 0 : index
      %c0_12 = arith.constant 0 : index
      %14 = vector.load %arg3[%c0_11, %c0_12] : memref<1x1536xf32, #tpu.memory_space<vmem>>, vector<1x1536xf32>
      %15 = vector.broadcast %14 : vector<1x1536xf32> to vector<4x1536xf32>
      %16 = arith.addf %13, %15 : vector<4x1536xf32>
      %17 = arith.truncf %16 : vector<4x1536xf32> to vector<4x1536xbf16>
      %c0_13 = arith.constant 0 : index
      %c0_14 = arith.constant 0 : index
      %18 = vector.load %arg4[%c0_13, %c0_14] : memref<1536x1024xbf16, #tpu.memory_space<vmem>>, vector<1536x1024xbf16>
      %cst_15 = arith.constant dense<0.000000e+00> : vector<4x1024xf32>
      %19 = tpu.matmul %17, %18, %cst_15 {dimension_numbers = #tpu.dot_dimension_numbers<[1], [0], [0], [1], [0, 0, 1, 1], [], []>} : vector<4x1536xbf16>, vector<1536x1024xbf16>, vector<4x1024xf32> -> vector<4x1024xf32>
      %c0_16 = arith.constant 0 : index
      %c0_17 = arith.constant 0 : index
      %20 = vector.load %arg5[%c0_16, %c0_17] : memref<1x1024xf32, #tpu.memory_space<vmem>>, vector<1x1024xf32>
      %21 = vector.broadcast %20 : vector<1x1024xf32> to vector<4x1024xf32>
      %22 = arith.addf %19, %21 : vector<4x1024xf32>
      %23 = arith.truncf %22 : vector<4x1024xf32> to vector<4x1024xbf16>
      %c0_18 = arith.constant 0 : index
      %c0_19 = arith.constant 0 : index
      %24 = vector.load %arg6[%c0_18, %c0_19] : memref<1024x512xbf16, #tpu.memory_space<vmem>>, vector<1024x512xbf16>
      %cst_20 = arith.constant dense<0.000000e+00> : vector<4x512xf32>
      %25 = tpu.matmul %23, %24, %cst_20 {dimension_numbers = #tpu.dot_dimension_numbers<[1], [0], [0], [1], [0, 0, 1, 1], [], []>} : vector<4x1024xbf16>, vector<1024x512xbf16>, vector<4x512xf32> -> vector<4x512xf32>
      %c0_21 = arith.constant 0 : index
      %c0_22 = arith.constant 0 : index
      %26 = vector.load %arg7[%c0_21, %c0_22] : memref<1x512xf32, #tpu.memory_space<vmem>>, vector<1x512xf32>
      %27 = vector.broadcast %26 : vector<1x512xf32> to vector<4x512xf32>
      %28 = arith.addf %25, %27 : vector<4x512xf32>
      %29 = arith.truncf %28 : vector<4x512xf32> to vector<4x512xbf16>
      %c0_23 = arith.constant 0 : index
      %c0_24 = arith.constant 0 : index
      %30 = vector.load %arg8[%c0_23, %c0_24] : memref<512x128xbf16, #tpu.memory_space<vmem>>, vector<512x128xbf16>
      %cst_25 = arith.constant dense<0.000000e+00> : vector<4x128xf32>
      %31 = tpu.matmul %29, %30, %cst_25 {dimension_numbers = #tpu.dot_dimension_numbers<[1], [0], [0], [1], [0, 0, 1, 1], [], []>} : vector<4x512xbf16>, vector<512x128xbf16>, vector<4x128xf32> -> vector<4x128xf32>
      %c0_26 = arith.constant 0 : index
      %c0_27 = arith.constant 0 : index
      %32 = vector.load %arg9[%c0_26, %c0_27] : memref<1x128xf32, #tpu.memory_space<vmem>>, vector<1x128xf32>
      %33 = vector.broadcast %32 : vector<1x128xf32> to vector<4x128xf32>
      %34 = arith.addf %31, %33 : vector<4x128xf32>
      %c0_28 = arith.constant 0 : index
      %c0_29 = arith.constant 0 : index
      %35 = vector.load %arg10[%c0_28, %c0_29] : memref<4x128xf32, #tpu.memory_space<vmem>>, vector<4x128xf32>
      tpu.vector_store %arg10[%c0_28, %c0_29], %34 {strides = array<i32>} : memref<4x128xf32, #tpu.memory_space<vmem>>, vector<4x128xf32>,
    } else {
    }
    return
  }
  func.func @transform_0(%arg0: i32) -> (i32, i32) {
    %c0_i32 = arith.constant 0 : i32
    %c0_i32_0 = arith.constant 0 : i32
    return %c0_i32, %arg0 : i32, i32
  }
  func.func @transform_1(%arg0: i32) -> (i32, i32) {
    %c0_i32 = arith.constant 0 : i32
    %c0_i32_0 = arith.constant 0 : i32
    return %arg0, %c0_i32 : i32, i32
  }
  func.func @transform_2(%arg0: i32) -> (i32, i32) {
    %c0_i32 = arith.constant 0 : i32
    %c0_i32_0 = arith.constant 0 : i32
    %c0_i32_1 = arith.constant 0 : i32
    return %c0_i32, %c0_i32_0 : i32, i32
  }
  func.func @transform_3(%arg0: i32) -> (i32, i32) {
    %c0_i32 = arith.constant 0 : i32
    %c0_i32_0 = arith.constant 0 : i32
    %c0_i32_1 = arith.constant 0 : i32
    return %c0_i32, %c0_i32_0 : i32, i32
  }
  func.func @transform_4(%arg0: i32) -> (i32, i32) {
    %c0_i32 = arith.constant 0 : i32
    %c0_i32_0 = arith.constant 0 : i32
    %c0_i32_1 = arith.constant 0 : i32
    return %c0_i32, %c0_i32_0 : i32, i32
  }
  func.func @transform_5(%arg0: i32) -> (i32, i32) {
    %c0_i32 = arith.constant 0 : i32
    %c0_i32_0 = arith.constant 0 : i32
    %c0_i32_1 = arith.constant 0 : i32
    return %c0_i32, %c0_i32_0 : i32, i32
  }
  func.func @transform_6(%arg0: i32) -> (i32, i32) {
    %c0_i32 = arith.constant 0 : i32
    %c0_i32_0 = arith.constant 0 : i32
    %c0_i32_1 = arith.constant 0 : i32
    return %c0_i32, %c0_i32_0 : i32, i32
  }
  func.func @transform_7(%arg0: i32) -> (i32, i32) {
    %c0_i32 = arith.constant 0 : i32
    %c0_i32_0 = arith.constant 0 : i32
    %c0_i32_1 = arith.constant 0 : i32
    return %c0_i32, %c0_i32_0 : i32, i32
  }
  func.func @transform_8(%arg0: i32) -> (i32, i32) {
    %c0_i32 = arith.constant 0 : i32
    %c0_i32_0 = arith.constant 0 : i32
    %c0_i32_1 = arith.constant 0 : i32
    return %c0_i32, %c0_i32_0 : i32, i32
  }
  func.func @transform_9(%arg0: i32) -> (i32, i32) {
    %c0_i32 = arith.constant 0 : i32
    %c0_i32_0 = arith.constant 0 : i32
    %c0_i32_1 = arith.constant 0 : i32
    return %c0_i32, %c0_i32_0 : i32, i32
  }
}

module attributes {stable_mosaic.version = 11 : i64} {
  func.func @_conv_stack_kernel(%arg0: i32, %arg1: i32, %arg2: memref<1x20x512xf32, #tpu.memory_space<vmem>>, %arg3: memref<128x20xbf16, #tpu.memory_space<vmem>>, %arg4: memref<128x1xf32, #tpu.memory_space<vmem>>, %arg5: memref<128x128xbf16, #tpu.memory_space<vmem>>, %arg6: memref<128x1xf32, #tpu.memory_space<vmem>>, %arg7: memref<128x20xbf16, #tpu.memory_space<vmem>>, %arg8: memref<128x1xf32, #tpu.memory_space<vmem>>, %arg9: memref<32x128xbf16, #tpu.memory_space<vmem>>, %arg10: memref<32x1xf32, #tpu.memory_space<vmem>>, %arg11: memref<32x32xbf16, #tpu.memory_space<vmem>>, %arg12: memref<32x1xf32, #tpu.memory_space<vmem>>, %arg13: memref<32x128xbf16, #tpu.memory_space<vmem>>, %arg14: memref<32x1xf32, #tpu.memory_space<vmem>>, %arg15: memref<8x32xbf16, #tpu.memory_space<vmem>>, %arg16: memref<8x1xf32, #tpu.memory_space<vmem>>, %arg17: memref<8x8xbf16, #tpu.memory_space<vmem>>, %arg18: memref<8x1xf32, #tpu.memory_space<vmem>>, %arg19: memref<8x32xbf16, #tpu.memory_space<vmem>>, %arg20: memref<8x1xf32, #tpu.memory_space<vmem>>, %arg21: memref<2x8xbf16, #tpu.memory_space<vmem>>, %arg22: memref<2x1xf32, #tpu.memory_space<vmem>>, %arg23: memref<2x2xbf16, #tpu.memory_space<vmem>>, %arg24: memref<2x1xf32, #tpu.memory_space<vmem>>, %arg25: memref<2x8xbf16, #tpu.memory_space<vmem>>, %arg26: memref<2x1xf32, #tpu.memory_space<vmem>>, %arg27: memref<1x2x512xf32, #tpu.memory_space<vmem>>) attributes {dimension_semantics = [#tpu.dimension_semantics<parallel>, #tpu.dimension_semantics<parallel>], iteration_bounds = array<i64: 2, 4>, scalar_prefetch = 0 : i64, scratch_operands = 0 : i64, tpu.core_type = #tpu.core_type<tc>, window_params = [{transform_indices = @transform_0, window_bounds = array<i64: 1, 20, 512>}, {pipeline_mode = #tpu.pipeline_mode<synchronous>, transform_indices = @transform_1, window_bounds = array<i64: 128, 20>}, {pipeline_mode = #tpu.pipeline_mode<synchronous>, transform_indices = @transform_2, window_bounds = array<i64: 128, 1>}, {pipeline_mode = #tpu.pipeline_mode<synchronous>, transform_indices = @transform_3, window_bounds = array<i64: 128, 128>}, {pipeline_mode = #tpu.pipeline_mode<synchronous>, transform_indices = @transform_4, window_bounds = array<i64: 128, 1>}, {pipeline_mode = #tpu.pipeline_mode<synchronous>, transform_indices = @transform_5, window_bounds = array<i64: 128, 20>}, {pipeline_mode = #tpu.pipeline_mode<synchronous>, transform_indices = @transform_6, window_bounds = array<i64: 128, 1>}, {pipeline_mode = #tpu.pipeline_mode<synchronous>, transform_indices = @transform_7, window_bounds = array<i64: 32, 128>}, {pipeline_mode = #tpu.pipeline_mode<synchronous>, transform_indices = @transform_8, window_bounds = array<i64: 32, 1>}, {pipeline_mode = #tpu.pipeline_mode<synchronous>, transform_indices = @transform_9, window_bounds = array<i64: 32, 32>}, {pipeline_mode = #tpu.pipeline_mode<synchronous>, transform_indices = @transform_10, window_bounds = array<i64: 32, 1>}, {pipeline_mode = #tpu.pipeline_mode<synchronous>, transform_indices = @transform_11, window_bounds = array<i64: 32, 128>}, {pipeline_mode = #tpu.pipeline_mode<synchronous>, transform_indices = @transform_12, window_bounds = array<i64: 32, 1>}, {pipeline_mode = #tpu.pipeline_mode<synchronous>, transform_indices = @transform_13, window_bounds = array<i64: 8, 32>}, {pipeline_mode = #tpu.pipeline_mode<synchronous>, transform_indices = @transform_14, window_bounds = array<i64: 8, 1>}, {pipeline_mode = #tpu.pipeline_mode<synchronous>, transform_indices = @transform_15, window_bounds = array<i64: 8, 8>}, {pipeline_mode = #tpu.pipeline_mode<synchronous>, transform_indices = @transform_16, window_bounds = array<i64: 8, 1>}, {pipeline_mode = #tpu.pipeline_mode<synchronous>, transform_indices = @transform_17, window_bounds = array<i64: 8, 32>}, {pipeline_mode = #tpu.pipeline_mode<synchronous>, transform_indices = @transform_18, window_bounds = array<i64: 8, 1>}, {pipeline_mode = #tpu.pipeline_mode<synchronous>, transform_indices = @transform_19, window_bounds = array<i64: 2, 8>}, {pipeline_mode = #tpu.pipeline_mode<synchronous>, transform_indices = @transform_20, window_bounds = array<i64: 2, 1>}, {pipeline_mode = #tpu.pipeline_mode<synchronous>, transform_indices = @transform_21, window_bounds = array<i64: 2, 2>}, {pipeline_mode = #tpu.pipeline_mode<synchronous>, transform_indices = @transform_22, window_bounds = array<i64: 2, 1>}, {pipeline_mode = #tpu.pipeline_mode<synchronous>, transform_indices = @transform_23, window_bounds = array<i64: 2, 8>}, {pipeline_mode = #tpu.pipeline_mode<synchronous>, transform_indices = @transform_24, window_bounds = array<i64: 2, 1>}, {transform_indices = @transform_25, window_bounds = array<i64: 1, 2, 512>}]} {
    %c0 = arith.constant 0 : index
    %c0_0 = arith.constant 0 : index
    %c0_1 = arith.constant 0 : index
    %0 = vector.load %arg2[%c0, %c0_0, %c0_1] : memref<1x20x512xf32, #tpu.memory_space<vmem>>, vector<1x20x512xf32>
    %1 = vector.shape_cast %0 : vector<1x20x512xf32> to vector<20x512xf32>
    %2 = arith.truncf %1 : vector<20x512xf32> to vector<20x512xbf16>
    %c0_2 = arith.constant 0 : index
    %c0_3 = arith.constant 0 : index
    %3 = vector.load %arg3[%c0_2, %c0_3] : memref<128x20xbf16, #tpu.memory_space<vmem>>, vector<128x20xbf16>
    %cst = arith.constant dense<0.000000e+00> : vector<128x512xf32>
    %4 = tpu.matmul %3, %2, %cst {dimension_numbers = #tpu.dot_dimension_numbers<[1], [0], [0], [1], [0, 0, 1, 1], [], []>} : vector<128x20xbf16>, vector<20x512xbf16>, vector<128x512xf32> -> vector<128x512xf32>
    %c0_4 = arith.constant 0 : index
    %c0_5 = arith.constant 0 : index
    %5 = vector.load %arg4[%c0_4, %c0_5] : memref<128x1xf32, #tpu.memory_space<vmem>>, vector<128x1xf32>
    %6 = vector.broadcast %5 : vector<128x1xf32> to vector<128x512xf32>
    %7 = arith.addf %4, %6 : vector<128x512xf32>
    %cst_6 = arith.constant 0.000000e+00 : f32
    %8 = vector.broadcast %cst_6 : f32 to vector<128x512xf32>
    %9 = arith.maximumf %7, %8 : vector<128x512xf32>
    %10 = arith.truncf %9 : vector<128x512xf32> to vector<128x512xbf16>
    %c0_7 = arith.constant 0 : index
    %c0_8 = arith.constant 0 : index
    %11 = vector.load %arg5[%c0_7, %c0_8] : memref<128x128xbf16, #tpu.memory_space<vmem>>, vector<128x128xbf16>
    %cst_9 = arith.constant dense<0.000000e+00> : vector<128x512xf32>
    %12 = tpu.matmul %11, %10, %cst_9 {dimension_numbers = #tpu.dot_dimension_numbers<[1], [0], [0], [1], [0, 0, 1, 1], [], []>} : vector<128x128xbf16>, vector<128x512xbf16>, vector<128x512xf32> -> vector<128x512xf32>
    %c0_10 = arith.constant 0 : index
    %c0_11 = arith.constant 0 : index
    %13 = vector.load %arg6[%c0_10, %c0_11] : memref<128x1xf32, #tpu.memory_space<vmem>>, vector<128x1xf32>
    %14 = vector.broadcast %13 : vector<128x1xf32> to vector<128x512xf32>
    %15 = arith.addf %12, %14 : vector<128x512xf32>
    %c0_12 = arith.constant 0 : index
    %c0_13 = arith.constant 0 : index
    %16 = vector.load %arg7[%c0_12, %c0_13] : memref<128x20xbf16, #tpu.memory_space<vmem>>, vector<128x20xbf16>
    %cst_14 = arith.constant dense<0.000000e+00> : vector<128x512xf32>
    %17 = tpu.matmul %16, %2, %cst_14 {dimension_numbers = #tpu.dot_dimension_numbers<[1], [0], [0], [1], [0, 0, 1, 1], [], []>} : vector<128x20xbf16>, vector<20x512xbf16>, vector<128x512xf32> -> vector<128x512xf32>
    %c0_15 = arith.constant 0 : index
    %c0_16 = arith.constant 0 : index
    %18 = vector.load %arg8[%c0_15, %c0_16] : memref<128x1xf32, #tpu.memory_space<vmem>>, vector<128x1xf32>
    %19 = vector.broadcast %18 : vector<128x1xf32> to vector<128x512xf32>
    %20 = arith.addf %17, %19 : vector<128x512xf32>
    %21 = arith.addf %15, %20 : vector<128x512xf32>
    %cst_17 = arith.constant 0.000000e+00 : f32
    %22 = vector.broadcast %cst_17 : f32 to vector<128x512xf32>
    %23 = arith.maximumf %21, %22 : vector<128x512xf32>
    %24 = arith.truncf %23 : vector<128x512xf32> to vector<128x512xbf16>
    %c0_18 = arith.constant 0 : index
    %c0_19 = arith.constant 0 : index
    %25 = vector.load %arg9[%c0_18, %c0_19] : memref<32x128xbf16, #tpu.memory_space<vmem>>, vector<32x128xbf16>
    %cst_20 = arith.constant dense<0.000000e+00> : vector<32x512xf32>
    %26 = tpu.matmul %25, %24, %cst_20 {dimension_numbers = #tpu.dot_dimension_numbers<[1], [0], [0], [1], [0, 0, 1, 1], [], []>} : vector<32x128xbf16>, vector<128x512xbf16>, vector<32x512xf32> -> vector<32x512xf32>
    %c0_21 = arith.constant 0 : index
    %c0_22 = arith.constant 0 : index
    %27 = vector.load %arg10[%c0_21, %c0_22] : memref<32x1xf32, #tpu.memory_space<vmem>>, vector<32x1xf32>
    %28 = vector.broadcast %27 : vector<32x1xf32> to vector<32x512xf32>
    %29 = arith.addf %26, %28 : vector<32x512xf32>
    %cst_23 = arith.constant 0.000000e+00 : f32
    %30 = vector.broadcast %cst_23 : f32 to vector<32x512xf32>
    %31 = arith.maximumf %29, %30 : vector<32x512xf32>
    %32 = arith.truncf %31 : vector<32x512xf32> to vector<32x512xbf16>
    %c0_24 = arith.constant 0 : index
    %c0_25 = arith.constant 0 : index
    %33 = vector.load %arg11[%c0_24, %c0_25] : memref<32x32xbf16, #tpu.memory_space<vmem>>, vector<32x32xbf16>
    %cst_26 = arith.constant dense<0.000000e+00> : vector<32x512xf32>
    %34 = tpu.matmul %33, %32, %cst_26 {dimension_numbers = #tpu.dot_dimension_numbers<[1], [0], [0], [1], [0, 0, 1, 1], [], []>} : vector<32x32xbf16>, vector<32x512xbf16>, vector<32x512xf32> -> vector<32x512xf32>
    %c0_27 = arith.constant 0 : index
    %c0_28 = arith.constant 0 : index
    %35 = vector.load %arg12[%c0_27, %c0_28] : memref<32x1xf32, #tpu.memory_space<vmem>>, vector<32x1xf32>
    %36 = vector.broadcast %35 : vector<32x1xf32> to vector<32x512xf32>
    %37 = arith.addf %34, %36 : vector<32x512xf32>
    %c0_29 = arith.constant 0 : index
    %c0_30 = arith.constant 0 : index
    %38 = vector.load %arg13[%c0_29, %c0_30] : memref<32x128xbf16, #tpu.memory_space<vmem>>, vector<32x128xbf16>
    %cst_31 = arith.constant dense<0.000000e+00> : vector<32x512xf32>
    %39 = tpu.matmul %38, %24, %cst_31 {dimension_numbers = #tpu.dot_dimension_numbers<[1], [0], [0], [1], [0, 0, 1, 1], [], []>} : vector<32x128xbf16>, vector<128x512xbf16>, vector<32x512xf32> -> vector<32x512xf32>
    %c0_32 = arith.constant 0 : index
    %c0_33 = arith.constant 0 : index
    %40 = vector.load %arg14[%c0_32, %c0_33] : memref<32x1xf32, #tpu.memory_space<vmem>>, vector<32x1xf32>
    %41 = vector.broadcast %40 : vector<32x1xf32> to vector<32x512xf32>
    %42 = arith.addf %39, %41 : vector<32x512xf32>
    %43 = arith.addf %37, %42 : vector<32x512xf32>
    %cst_34 = arith.constant 0.000000e+00 : f32
    %44 = vector.broadcast %cst_34 : f32 to vector<32x512xf32>
    %45 = arith.maximumf %43, %44 : vector<32x512xf32>
    %46 = arith.truncf %45 : vector<32x512xf32> to vector<32x512xbf16>
    %c0_35 = arith.constant 0 : index
    %c0_36 = arith.constant 0 : index
    %47 = vector.load %arg15[%c0_35, %c0_36] : memref<8x32xbf16, #tpu.memory_space<vmem>>, vector<8x32xbf16>
    %cst_37 = arith.constant dense<0.000000e+00> : vector<8x512xf32>
    %48 = tpu.matmul %47, %46, %cst_37 {dimension_numbers = #tpu.dot_dimension_numbers<[1], [0], [0], [1], [0, 0, 1, 1], [], []>} : vector<8x32xbf16>, vector<32x512xbf16>, vector<8x512xf32> -> vector<8x512xf32>
    %c0_38 = arith.constant 0 : index
    %c0_39 = arith.constant 0 : index
    %49 = vector.load %arg16[%c0_38, %c0_39] : memref<8x1xf32, #tpu.memory_space<vmem>>, vector<8x1xf32>
    %50 = vector.broadcast %49 : vector<8x1xf32> to vector<8x512xf32>
    %51 = arith.addf %48, %50 : vector<8x512xf32>
    %cst_40 = arith.constant 0.000000e+00 : f32
    %52 = vector.broadcast %cst_40 : f32 to vector<8x512xf32>
    %53 = arith.maximumf %51, %52 : vector<8x512xf32>
    %54 = arith.truncf %53 : vector<8x512xf32> to vector<8x512xbf16>
    %c0_41 = arith.constant 0 : index
    %c0_42 = arith.constant 0 : index
    %55 = vector.load %arg17[%c0_41, %c0_42] : memref<8x8xbf16, #tpu.memory_space<vmem>>, vector<8x8xbf16>
    %cst_43 = arith.constant dense<0.000000e+00> : vector<8x512xf32>
    %56 = tpu.matmul %55, %54, %cst_43 {dimension_numbers = #tpu.dot_dimension_numbers<[1], [0], [0], [1], [0, 0, 1, 1], [], []>} : vector<8x8xbf16>, vector<8x512xbf16>, vector<8x512xf32> -> vector<8x512xf32>
    %c0_44 = arith.constant 0 : index
    %c0_45 = arith.constant 0 : index
    %57 = vector.load %arg18[%c0_44, %c0_45] : memref<8x1xf32, #tpu.memory_space<vmem>>, vector<8x1xf32>
    %58 = vector.broadcast %57 : vector<8x1xf32> to vector<8x512xf32>
    %59 = arith.addf %56, %58 : vector<8x512xf32>
    %c0_46 = arith.constant 0 : index
    %c0_47 = arith.constant 0 : index
    %60 = vector.load %arg19[%c0_46, %c0_47] : memref<8x32xbf16, #tpu.memory_space<vmem>>, vector<8x32xbf16>
    %cst_48 = arith.constant dense<0.000000e+00> : vector<8x512xf32>
    %61 = tpu.matmul %60, %46, %cst_48 {dimension_numbers = #tpu.dot_dimension_numbers<[1], [0], [0], [1], [0, 0, 1, 1], [], []>} : vector<8x32xbf16>, vector<32x512xbf16>, vector<8x512xf32> -> vector<8x512xf32>
    %c0_49 = arith.constant 0 : index
    %c0_50 = arith.constant 0 : index
    %62 = vector.load %arg20[%c0_49, %c0_50] : memref<8x1xf32, #tpu.memory_space<vmem>>, vector<8x1xf32>
    %63 = vector.broadcast %62 : vector<8x1xf32> to vector<8x512xf32>
    %64 = arith.addf %61, %63 : vector<8x512xf32>
    %65 = arith.addf %59, %64 : vector<8x512xf32>
    %cst_51 = arith.constant 0.000000e+00 : f32
    %66 = vector.broadcast %cst_51 : f32 to vector<8x512xf32>
    %67 = arith.maximumf %65, %66 : vector<8x512xf32>
    %68 = arith.truncf %67 : vector<8x512xf32> to vector<8x512xbf16>
    %c0_52 = arith.constant 0 : index
    %c0_53 = arith.constant 0 : index
    %69 = vector.load %arg21[%c0_52, %c0_53] : memref<2x8xbf16, #tpu.memory_space<vmem>>, vector<2x8xbf16>
    %cst_54 = arith.constant dense<0.000000e+00> : vector<2x512xf32>
    %70 = tpu.matmul %69, %68, %cst_54 {dimension_numbers = #tpu.dot_dimension_numbers<[1], [0], [0], [1], [0, 0, 1, 1], [], []>} : vector<2x8xbf16>, vector<8x512xbf16>, vector<2x512xf32> -> vector<2x512xf32>
    %c0_55 = arith.constant 0 : index
    %c0_56 = arith.constant 0 : index
    %71 = vector.load %arg22[%c0_55, %c0_56] : memref<2x1xf32, #tpu.memory_space<vmem>>, vector<2x1xf32>
    %72 = vector.broadcast %71 : vector<2x1xf32> to vector<2x512xf32>
    %73 = arith.addf %70, %72 : vector<2x512xf32>
    %cst_57 = arith.constant 0.000000e+00 : f32
    %74 = vector.broadcast %cst_57 : f32 to vector<2x512xf32>
    %75 = arith.maximumf %73, %74 : vector<2x512xf32>
    %76 = arith.truncf %75 : vector<2x512xf32> to vector<2x512xbf16>
    %c0_58 = arith.constant 0 : index
    %c0_59 = arith.constant 0 : index
    %77 = vector.load %arg23[%c0_58, %c0_59] : memref<2x2xbf16, #tpu.memory_space<vmem>>, vector<2x2xbf16>
    %cst_60 = arith.constant dense<0.000000e+00> : vector<2x512xf32>
    %78 = tpu.matmul %77, %76, %cst_60 {dimension_numbers = #tpu.dot_dimension_numbers<[1], [0], [0], [1], [0, 0, 1, 1], [], []>} : vector<2x2xbf16>, vector<2x512xbf16>, vector<2x512xf32> -> vector<2x512xf32>
    %c0_61 = arith.constant 0 : index
    %c0_62 = arith.constant 0 : index
    %79 = vector.load %arg24[%c0_61, %c0_62] : memref<2x1xf32, #tpu.memory_space<vmem>>, vector<2x1xf32>
    %80 = vector.broadcast %79 : vector<2x1xf32> to vector<2x512xf32>
    %81 = arith.addf %78, %80 : vector<2x512xf32>
    %c0_63 = arith.constant 0 : index
    %c0_64 = arith.constant 0 : index
    %82 = vector.load %arg25[%c0_63, %c0_64] : memref<2x8xbf16, #tpu.memory_space<vmem>>, vector<2x8xbf16>
    %cst_65 = arith.constant dense<0.000000e+00> : vector<2x512xf32>
    %83 = tpu.matmul %82, %68, %cst_65 {dimension_numbers = #tpu.dot_dimension_numbers<[1], [0], [0], [1], [0, 0, 1, 1], [], []>} : vector<2x8xbf16>, vector<8x512xbf16>, vector<2x512xf32> -> vector<2x512xf32>
    %c0_66 = arith.constant 0 : index
    %c0_67 = arith.constant 0 : index
    %84 = vector.load %arg26[%c0_66, %c0_67] : memref<2x1xf32, #tpu.memory_space<vmem>>, vector<2x1xf32>
    %85 = vector.broadcast %84 : vector<2x1xf32> to vector<2x512xf32>
    %86 = arith.addf %83, %85 : vector<2x512xf32>
    %87 = arith.addf %81, %86 : vector<2x512xf32>
    %cst_68 = arith.constant 0.000000e+00 : f32
    %88 = vector.broadcast %cst_68 : f32 to vector<2x512xf32>
    %89 = arith.maximumf %87, %88 : vector<2x512xf32>
    %c0_69 = arith.constant 0 : index
    %c0_70 = arith.constant 0 : index
    %c0_71 = arith.constant 0 : index
    %90 = vector.load %arg27[%c0_69, %c0_70, %c0_71] : memref<1x2x512xf32, #tpu.memory_space<vmem>>, vector<1x2x512xf32>
    %91 = vector.shape_cast %90 : vector<1x2x512xf32> to vector<2x512xf32>
    %92 = vector.shape_cast %89 : vector<2x512xf32> to vector<1x2x512xf32>
    tpu.vector_store %arg27[%c0_69, %c0_70, %c0_71], %92 {strides = array<i32>} : memref<1x2x512xf32, #tpu.memory_space<vmem>>, vector<1x2x512xf32>,
    return
  }
  func.func @transform_0(%arg0: i32, %arg1: i32) -> (i32, i32, i32) {
    %c0_i32 = arith.constant 0 : i32
    %c0_i32_0 = arith.constant 0 : i32
    return %arg0, %c0_i32, %arg1 : i32, i32, i32
  }
  func.func @transform_1(%arg0: i32, %arg1: i32) -> (i32, i32) {
    %c0_i32 = arith.constant 0 : i32
    %c0_i32_0 = arith.constant 0 : i32
    %c0_i32_1 = arith.constant 0 : i32
    return %c0_i32, %c0_i32_0 : i32, i32
  }
  func.func @transform_2(%arg0: i32, %arg1: i32) -> (i32, i32) {
    %c0_i32 = arith.constant 0 : i32
    %c0_i32_0 = arith.constant 0 : i32
    %c0_i32_1 = arith.constant 0 : i32
    return %c0_i32, %c0_i32_0 : i32, i32
  }
  func.func @transform_3(%arg0: i32, %arg1: i32) -> (i32, i32) {
    %c0_i32 = arith.constant 0 : i32
    %c0_i32_0 = arith.constant 0 : i32
    %c0_i32_1 = arith.constant 0 : i32
    return %c0_i32, %c0_i32_0 : i32, i32
  }
  func.func @transform_4(%arg0: i32, %arg1: i32) -> (i32, i32) {
    %c0_i32 = arith.constant 0 : i32
    %c0_i32_0 = arith.constant 0 : i32
    %c0_i32_1 = arith.constant 0 : i32
    return %c0_i32, %c0_i32_0 : i32, i32
  }
  func.func @transform_5(%arg0: i32, %arg1: i32) -> (i32, i32) {
    %c0_i32 = arith.constant 0 : i32
    %c0_i32_0 = arith.constant 0 : i32
    %c0_i32_1 = arith.constant 0 : i32
    return %c0_i32, %c0_i32_0 : i32, i32
  }
  func.func @transform_6(%arg0: i32, %arg1: i32) -> (i32, i32) {
    %c0_i32 = arith.constant 0 : i32
    %c0_i32_0 = arith.constant 0 : i32
    %c0_i32_1 = arith.constant 0 : i32
    return %c0_i32, %c0_i32_0 : i32, i32
  }
  func.func @transform_7(%arg0: i32, %arg1: i32) -> (i32, i32) {
    %c0_i32 = arith.constant 0 : i32
    %c0_i32_0 = arith.constant 0 : i32
    %c0_i32_1 = arith.constant 0 : i32
    return %c0_i32, %c0_i32_0 : i32, i32
  }
  func.func @transform_8(%arg0: i32, %arg1: i32) -> (i32, i32) {
    %c0_i32 = arith.constant 0 : i32
    %c0_i32_0 = arith.constant 0 : i32
    %c0_i32_1 = arith.constant 0 : i32
    return %c0_i32, %c0_i32_0 : i32, i32
  }
  func.func @transform_9(%arg0: i32, %arg1: i32) -> (i32, i32) {
    %c0_i32 = arith.constant 0 : i32
    %c0_i32_0 = arith.constant 0 : i32
    %c0_i32_1 = arith.constant 0 : i32
    return %c0_i32, %c0_i32_0 : i32, i32
  }
  func.func @transform_10(%arg0: i32, %arg1: i32) -> (i32, i32) {
    %c0_i32 = arith.constant 0 : i32
    %c0_i32_0 = arith.constant 0 : i32
    %c0_i32_1 = arith.constant 0 : i32
    return %c0_i32, %c0_i32_0 : i32, i32
  }
  func.func @transform_11(%arg0: i32, %arg1: i32) -> (i32, i32) {
    %c0_i32 = arith.constant 0 : i32
    %c0_i32_0 = arith.constant 0 : i32
    %c0_i32_1 = arith.constant 0 : i32
    return %c0_i32, %c0_i32_0 : i32, i32
  }
  func.func @transform_12(%arg0: i32, %arg1: i32) -> (i32, i32) {
    %c0_i32 = arith.constant 0 : i32
    %c0_i32_0 = arith.constant 0 : i32
    %c0_i32_1 = arith.constant 0 : i32
    return %c0_i32, %c0_i32_0 : i32, i32
  }
  func.func @transform_13(%arg0: i32, %arg1: i32) -> (i32, i32) {
    %c0_i32 = arith.constant 0 : i32
    %c0_i32_0 = arith.constant 0 : i32
    %c0_i32_1 = arith.constant 0 : i32
    return %c0_i32, %c0_i32_0 : i32, i32
  }
  func.func @transform_14(%arg0: i32, %arg1: i32) -> (i32, i32) {
    %c0_i32 = arith.constant 0 : i32
    %c0_i32_0 = arith.constant 0 : i32
    %c0_i32_1 = arith.constant 0 : i32
    return %c0_i32, %c0_i32_0 : i32, i32
  }
  func.func @transform_15(%arg0: i32, %arg1: i32) -> (i32, i32) {
    %c0_i32 = arith.constant 0 : i32
    %c0_i32_0 = arith.constant 0 : i32
    %c0_i32_1 = arith.constant 0 : i32
    return %c0_i32, %c0_i32_0 : i32, i32
  }
  func.func @transform_16(%arg0: i32, %arg1: i32) -> (i32, i32) {
    %c0_i32 = arith.constant 0 : i32
    %c0_i32_0 = arith.constant 0 : i32
    %c0_i32_1 = arith.constant 0 : i32
    return %c0_i32, %c0_i32_0 : i32, i32
  }
  func.func @transform_17(%arg0: i32, %arg1: i32) -> (i32, i32) {
    %c0_i32 = arith.constant 0 : i32
    %c0_i32_0 = arith.constant 0 : i32
    %c0_i32_1 = arith.constant 0 : i32
    return %c0_i32, %c0_i32_0 : i32, i32
  }
  func.func @transform_18(%arg0: i32, %arg1: i32) -> (i32, i32) {
    %c0_i32 = arith.constant 0 : i32
    %c0_i32_0 = arith.constant 0 : i32
    %c0_i32_1 = arith.constant 0 : i32
    return %c0_i32, %c0_i32_0 : i32, i32
  }
  func.func @transform_19(%arg0: i32, %arg1: i32) -> (i32, i32) {
    %c0_i32 = arith.constant 0 : i32
    %c0_i32_0 = arith.constant 0 : i32
    %c0_i32_1 = arith.constant 0 : i32
    return %c0_i32, %c0_i32_0 : i32, i32
  }
  func.func @transform_20(%arg0: i32, %arg1: i32) -> (i32, i32) {
    %c0_i32 = arith.constant 0 : i32
    %c0_i32_0 = arith.constant 0 : i32
    %c0_i32_1 = arith.constant 0 : i32
    return %c0_i32, %c0_i32_0 : i32, i32
  }
  func.func @transform_21(%arg0: i32, %arg1: i32) -> (i32, i32) {
    %c0_i32 = arith.constant 0 : i32
    %c0_i32_0 = arith.constant 0 : i32
    %c0_i32_1 = arith.constant 0 : i32
    return %c0_i32, %c0_i32_0 : i32, i32
  }
  func.func @transform_22(%arg0: i32, %arg1: i32) -> (i32, i32) {
    %c0_i32 = arith.constant 0 : i32
    %c0_i32_0 = arith.constant 0 : i32
    %c0_i32_1 = arith.constant 0 : i32
    return %c0_i32, %c0_i32_0 : i32, i32
  }
  func.func @transform_23(%arg0: i32, %arg1: i32) -> (i32, i32) {
    %c0_i32 = arith.constant 0 : i32
    %c0_i32_0 = arith.constant 0 : i32
    %c0_i32_1 = arith.constant 0 : i32
    return %c0_i32, %c0_i32_0 : i32, i32
  }
  func.func @transform_24(%arg0: i32, %arg1: i32) -> (i32, i32) {
    %c0_i32 = arith.constant 0 : i32
    %c0_i32_0 = arith.constant 0 : i32
    %c0_i32_1 = arith.constant 0 : i32
    return %c0_i32, %c0_i32_0 : i32, i32
  }
  func.func @transform_25(%arg0: i32, %arg1: i32) -> (i32, i32, i32) {
    %c0_i32 = arith.constant 0 : i32
    %c0_i32_0 = arith.constant 0 : i32
    return %arg0, %c0_i32, %arg1 : i32, i32, i32
  }
}

</mosaic_0001>

<bundles_post_ra>
// kernel: encoder_forward.2
= control target key start
LH: loop header
LB: loop body
LE: loop exit
PB: predicated region body
PF: predicated region fallthrough
CT: control target
= control target key end

     0   :  { %s5856_s0 = inlined_call_operand.vmem [shape: f32[2,20,2048], index: 0, kind: input, shape index: {}]   ;;  %s5857_s1 = inlined_call_operand.vmem [shape: bf16[128,20], index: 1, kind: input, shape index: {}]   ;;  %s5858_s2 = inlined_call_operand.vmem [shape: f32[128,1], index: 2, kind: input, shape index: {}]   ;;  %s5859_s3 = inlined_call_operand.hbm [shape: bf16[128,128], index: 3, kind: input, shape index: {}]   ;;  %s5860_s4 = inlined_call_operand.vmem [shape: f32[128,1], index: 4, kind: input, shape index: {}]   ;;  %s5861_s5 = inlined_call_operand.vmem [shape: bf16[128,20], index: 5, kind: input, shape index: {}]   ;;  %s5862_s6 = inlined_call_operand.vmem [shape: f32[128,1], index: 6, kind: input, shape index: {}]   ;;  %s5863_s7 = inlined_call_operand.hbm [shape: bf16[32,128], index: 7, kind: input, shape index: {}]   ;;  %s5864_s8 = inlined_call_operand.vmem [shape: f32[32,1], index: 8, kind: input, shape index: {}]   ;;  %s5865_s9 = inlined_call_operand.hbm [shape: bf16[32,32], index: 9, kind: input, shape index: {}]   ;;  %s5866_s10 = inlined_call_operand.vmem [shape: f32[32,1], index: 10, kind: input, shape index: {}]   ;;  %s5867_s11 = inlined_call_operand.hbm [shape: bf16[32,128], index: 11, kind: input, shape index: {}]   ;;  %s5868_s12 = inlined_call_operand.vmem [shape: f32[32,1], index: 12, kind: input, shape index: {}]   ;;  %s5869_s13 = inlined_call_operand.hbm [shape: bf16[8,32], index: 13, kind: input, shape index: {}]   ;;  %s5870_s14 = inlined_call_operand.vmem [shape: f32[8,1], index: 14, kind: input, shape index: {}]   ;;  %s5871_s15 = inlined_call_operand.hbm [shape: bf16[8,8], index: 15, kind: input, shape index: {}]   ;;  %s5872_s16 = inlined_call_operand.vmem [shape: f32[8,1], index: 16, kind: input, shape index: {}]   ;;  %s5873_s17 = inlined_call_operand.hbm [shape: bf16[8,32], index: 17, kind: input, shape index: {}]   ;;  %s5874_s18 = inlined_call_operand.vmem [shape: f32[8,1], index: 18, kind: input, shape index: {}]   ;;  %s5875_s19 = inlined_call_operand.hbm [shape: bf16[2,8], index: 19, kind: input, shape index: {}]   ;;  %s5876_s20 = inlined_call_operand.vmem [shape: f32[2,1], index: 20, kind: input, shape index: {}]   ;;  %s5877_s21 = inlined_call_operand.hbm [shape: bf16[2,2], index: 21, kind: input, shape index: {}]   ;;  %s5878_s22 = inlined_call_operand.vmem [shape: f32[2,1], index: 22, kind: input, shape index: {}]   ;;  %s5879_s23 = inlined_call_operand.hbm [shape: bf16[2,8], index: 23, kind: input, shape index: {}]   ;;  %s5880_s24 = inlined_call_operand.vmem [shape: f32[2,1], index: 24, kind: input, shape index: {}]   ;;  %s5881_s25 = inlined_call_operand.vmem [shape: f32[2,2,2048], index: 25, kind: output, shape index: {}]  }
   0x1   :  { %5905 = sst [smem:[#allocation31_spill]] %s5856_s0 }
   0x2   :  { %5906 = sst [smem:[#allocation32_spill]] %s5857_s1 }
   0x3   :  { %5907 = sst [smem:[#allocation33_spill]] %s5858_s2 }
   0x4   :  { %5908 = sst [smem:[#allocation34_spill]] %s5859_s3 }
   0x5   :  { %5909 = sst [smem:[#allocation35_spill]] %s5860_s4 }
   0x6   :  { %5910 = sst [smem:[#allocation36_spill]] %s5861_s5 }
   0x7   :  { %5911 = sst [smem:[#allocation37_spill]] %s5862_s6 }
   0x8   :  { %5912 = sst [smem:[#allocation38_spill]] %s5863_s7 }
   0x9   :  { %5913 = sst [smem:[#allocation39_spill]] %s5864_s8 }
   0xa   :  { %5914 = sst [smem:[#allocation40_spill]] %s5865_s9 }
   0xb   :  { %5915 = sst [smem:[#allocation41_spill]] %s5866_s10 }
   0xc   :  { %5916 = sst [smem:[#allocation42_spill]] %s5867_s11 }
   0xd   :  { %5917 = sst [smem:[#allocation43_spill]] %s5868_s12 }
   0xe   :  { %5918 = sst [smem:[#allocation44_spill]] %s5870_s14 }
   0xf   :  { %5919 = sst [smem:[#allocation45_spill]] %s5871_s15 }
  0x10   :  { %5920 = sst [smem:[#allocation46_spill]] %s5872_s16 }
  0x11   :  { %5921 = sst [smem:[#allocation47_spill]] %s5874_s18 }
  0x12   :  { %5922 = sst [smem:[#allocation48_spill]] %s5876_s20 }
  0x13   :  { %5923 = sst [smem:[#allocation49_spill]] %s5878_s22 }
  0x14   :  { %5924 = sst [smem:[#allocation50_spill]] %s5880_s24 }
  0x15   :  { %5925 = sst [smem:[#allocation51_spill]] %s5881_s25 }
  0x16   :  { %30 = vsyncpa [#allocation4], 0 }
  0x17   :  { %31 = vsyncpa [#allocation6], 0 }
  0x18   :  { %32 = vsyncpa [#allocation9], 0 }
  0x19   :  { %33 = vsyncpa [#allocation12], 0 }
  0x1a   :  { %34 = vsyncpa [#allocation15], 0 }
  0x1b   :  { %35 = vsyncpa [#allocation18], 0  ;;  %s4893_s29 = smov 0   ;;  %s4895_s2 = smov 0  }
  0x1c   :  { %s4897_s6 = smov 0   ;;  %s4899_s30 = smov 0  }
  0x1d   :  { %s4901_s7 = smov 0   ;;  %s4903_s3 = smov 0  }
  0x1e   :  { %s4905_s26 = smov 0  }
  0x1f LB: > { %5926 = sst [smem:[#allocation25_spill]] %s4731_s6  ;;  %s3799_s1 = sadd.s32 4294967295, %s4747_s26   ;;  %s4747_s26 = sphi %s4905_s26, %s41_s26   ;;  %s4743_s3 = sphi %s4903_s3, %s5974_s3   ;;  %s4739_s7 = sphi %s4901_s7, %s5973_s7   ;;  %s4735_s30 = sphi %s4899_s30, %s5972_s30   ;;  %s4731_s6 = sphi %s4897_s6, %s5971_s6   ;;  %s4727_s2 = sphi %s4895_s2, %s5970_s2   ;;  %s4723_s29 = sphi %s4893_s29, %s5969_s29  }
  0x20   : > { %5927 = sst [smem:[#allocation26_spill]] %s4735_s30  ;;  %s50_s8 = sadd.s32 1, %s4739_s7 }
  0x21   : > { %p51_p0 = scmp.ge.s32.totalorder %s50_s8, 4  ;;  %s53_s27 = sadd.s32 1, %s4743_s3 }
  0x22   : > { %s62_s4 = sadd.s32 1, %s4727_s2  ;;  %p69_p1 = scmp.ne.s32.totalorder %s4727_s2, %s4723_s29 }
  0x23   : > { %s5976_s8 = smov (%p51_p0, %s50_s8), 0  ;;  %s5978_s27 = smov (!%p51_p0, %s53_s27), %s4743_s3 }
  0x24   : > { %5928 = sst [smem:[#allocation27_spill]] %s5976_s8  ;;  %s58_s28 = ssub.s32 %s4739_s7, %s5976_s8 }
  0x25   : > { %p70_p2 = scmp.eq.s32.totalorder %s4747_s26, 0  ;;  %p55_p3 = scmp.ge.s32.totalorder %s5978_s27, 2 }
  0x26   : > { %p3801_p4 = scmp.ge.s32.totalorder %s4747_s26, 1  ;;  %p618_p6 = scmp.lt.s32.totalorder %s4747_s26, 9 }
  0x27   : > { %p4941_p5 = por %p70_p2, %p69_p1  ;;  %s5980_s27 = smov (%p55_p3, %s5978_s27), 0 }
  0x28   : > { %5930 = sst [smem:[#allocation28_spill]] %s5980_s27  ;;  %p4948_p7 = pnand %p3801_p4, %p618_p6 }
  0x29   : > { %s5929_s9 = scalar_select %p4941_p5, 1, 0 }
  0x2a   : > { %s5931_s5 = scalar_select %p4948_p7, 1, 0 }
  0x2b   : > { %s57_s0 = ssub.s32 %s4743_s3, %s5980_s27  ;;  %p4954_p8 = scmp.eq.s32.totalorder %s3799_s1, 0 }
  0x2c   : > { %s59_s8 = sor.u32 %s58_s28, %s57_s0  ;;  %p4236_p9 = pneg %p4948_p7 }
  0x2d   : > { %s5932_s25 = scalar_select %p4954_p8, 1, 0 }
  0x2e   : > { %p60_p10 = scmp.eq.s32.totalorder %s59_s8, 0  ;;  %p4962_p11 = pnand %p4954_p8, %p4236_p9 }
  0x2f   : > { %5933 = sst [smem:[#allocation29_spill]] %s5932_s25  ;;  %s4749_s22 = smov [#allocation5]  }
  0x30   : > { %s4967_s6 = scalar_select %p60_p10, %s4727_s2, %s62_s4  }
  0x31   : > { %s658_s24 = sshll.u32 %s4749_s22, 4  ;;  %s4750_s1 = smov [#allocation8]   ;;  %s659_s24 = int_to_ptr.vmem [resolvable:$true] %s658_s24 }
  0x32   : > { %5935 = sst [smem:[#allocation30_spill]] %s4967_s6  ;;  %s690_s27 = sshll.u32 %s4750_s1, 4  ;;  %s691_s27 = int_to_ptr.vmem [resolvable:$true] %s690_s27 }
  0x33   : > { %s5936_s14 = sld [smem:[#allocation38_spill]]  ;;  %p4977_p13 = pneg %p4962_p11 }
  0x39   : > { %s4389_s28 = scalar_lea.hbm %s5936_s14, 256 }
  0x3a   : > { %p4390_p12 = scmp.ne.s32.totalorder %s5936_s14, %s4389_s28  ;;  %p4396_p2 = scmp.lt.u32.totalorder %s4389_s28, %s5936_s14 }
  0x3c   : > { %p4392_p0 = pnand %p4977_p13, %p4390_p12 }
  0x3e   : > { %p4393_p1 = pneg %p4392_p0 }
  0x40   : > { %p4398_p3 = pnand %p4396_p2, %p4393_p1 }
  0x42   : > { %4401 = shalt.err (!%p4398_p3)
}
  0x43   : > { %s4402_s18 = scalar_lea.vmem %s659_s24, 256  ;;  %p4410_p10 = scmp.lt.s32.totalorder %s659_s24, %s659_s24 }
  0x44   : > { %p4403_p4 = scmp.ne.s32.totalorder %s659_s24, %s4402_s18  ;;  %p4411_p8 = scmp.lt.s32.totalorder %s4402_s18, %s4402_s18 }
  0x46   : > { %p4405_p6 = pnand %p4403_p4, %p4977_p13  ;;  %p4412_p7 = por %p4411_p8, %p4410_p10 }
  0x48   : > { %p4406_p9 = pneg %p4405_p6 }
  0x4a   : > { %p4413_p5 = pnand %p4412_p7, %p4406_p9 }
  0x4c   : > { %4416 = shalt.err (!%p4413_p5)
}
  0x4d   : > { %s5902_s16 = smov 64   ;;  %s4752_s20 = smov 4  }
  0x4e   : > { %4242 = dma.hbm_to_vmem [thread:$0]  (!%p4962_p11), %s5936_s14, 256, %s659_s24, [#allocation6], %s5902_s16, %s5902_s16, %s4752_s20  }
  0x4f   : > { %s5938_s11 = sld [smem:[#allocation42_spill]] }
  0x55   : > { %s4417_s4 = scalar_lea.hbm %s5938_s11, 256 }
  0x56   : > { %p4418_p5 = scmp.ne.s32.totalorder %s5938_s11, %s4417_s4  ;;  %p4424_p12 = scmp.lt.u32.totalorder %s4417_s4, %s5938_s11 }
  0x58   : > { %p4420_p7 = pnand %p4418_p5, %p4977_p13 }
  0x5a   : > { %p4421_p8 = pneg %p4420_p7 }
  0x5c   : > { %p4426_p0 = pnand %p4424_p12, %p4421_p8 }
  0x5e   : > { %4429 = shalt.err (!%p4426_p0)
}
  0x5f   : > { %s4430_s1 = scalar_lea.vmem %s691_s27, 256  ;;  %p4438_p4 = scmp.lt.s32.totalorder %s691_s27, %s691_s27 }
  0x60   : > { %p4431_p1 = scmp.ne.s32.totalorder %s691_s27, %s4430_s1  ;;  %p4439_p6 = scmp.lt.s32.totalorder %s4430_s1, %s4430_s1 }
  0x62   : > { %p4433_p2 = pnand %p4431_p1, %p4977_p13  ;;  %p4440_p9 = por %p4439_p6, %p4438_p4 }
  0x64   : > { %p4434_p3 = pneg %p4433_p2 }
  0x66   : > { %p4441_p10 = pnand %p4440_p9, %p4434_p3 }
  0x68   : > { %4444 = shalt.err (!%p4441_p10)
}
  0x69   : > { %4248 = dma.hbm_to_vmem [thread:$0]  (!%p4962_p11), %s5938_s11, 256, %s691_s27, [#allocation9], %s5902_s16, %s5902_s16, %s4752_s20  }
  0x6a   : > { %s4753_s24 = smov [#allocation11]   ;;  %s4754_s28 = smov [#allocation14]  }
  0x6b   : > { %s721_s6 = sshll.u32 %s4753_s24, 4  ;;  %s749_s0 = sshll.u32 %s4754_s28, 4  ;;  %s722_s6 = int_to_ptr.vmem [resolvable:$true] %s721_s6  ;;  %s750_s0 = int_to_ptr.vmem [resolvable:$true] %s749_s0 }
  0x6c   : > { %s5939_s15 = sld [smem:[#allocation45_spill]] }
  0x72   : > { %s4445_s18 = scalar_lea.hbm %s5939_s15, 64 }
  0x73   : > { %p4446_p5 = scmp.ne.s32.totalorder %s5939_s15, %s4445_s18  ;;  %p4452_p12 = scmp.lt.u32.totalorder %s4445_s18, %s5939_s15 }
  0x75   : > { %p4448_p7 = pnand %p4446_p5, %p4977_p13 }
  0x77   : > { %p4449_p8 = pneg %p4448_p7 }
  0x79   : > { %p4454_p0 = pnand %p4452_p12, %p4449_p8 }
  0x7b   : > { %4457 = shalt.err (!%p4454_p0)
}
  0x7c   : > { %s4458_s27 = scalar_lea.vmem %s722_s6, 64  ;;  %p4466_p4 = scmp.lt.s32.totalorder %s722_s6, %s722_s6 }
  0x7d   : > { %p4459_p1 = scmp.ne.s32.totalorder %s722_s6, %s4458_s27  ;;  %p4467_p6 = scmp.lt.s32.totalorder %s4458_s27, %s4458_s27 }
  0x7f   : > { %p4461_p2 = pnand %p4459_p1, %p4977_p13  ;;  %p4468_p9 = por %p4467_p6, %p4466_p4 }
  0x81   : > { %p4462_p3 = pneg %p4461_p2 }
  0x83   : > { %p4469_p10 = pnand %p4468_p9, %p4462_p3 }
  0x85   : > { %4472 = shalt.err (!%p4469_p10)
}
  0x86   : > { %4254 = dma.hbm_to_vmem [thread:$0]  (!%p4962_p11), %s5939_s15, 64, %s722_s6, [#allocation12]  }
  0x87   : > { %s4473_s28 = scalar_lea.hbm %s5875_s19, 16 }
  0x88   : > { %p4474_p5 = scmp.ne.s32.totalorder %s5875_s19, %s4473_s28  ;;  %p4480_p12 = scmp.lt.u32.totalorder %s4473_s28, %s5875_s19 }
  0x8a   : > { %p4476_p7 = pnand %p4474_p5, %p4977_p13 }
  0x8c   : > { %p4477_p8 = pneg %p4476_p7 }
  0x8e   : > { %p4482_p0 = pnand %p4480_p12, %p4477_p8 }
  0x90   : > { %4485 = shalt.err (!%p4482_p0)
}
  0x91   : > { %s4486_s10 = scalar_lea.vmem %s750_s0, 16  ;;  %s4493_s6 = scalar_lea.vmem %s750_s0, 32 }
  0x92   : > { %p4487_p1 = scmp.ne.s32.totalorder %s750_s0, %s4486_s10  ;;  %p4494_p4 = scmp.lt.s32.totalorder %s750_s0, %s750_s0 }
  0x93   : > { %p4495_p6 = scmp.lt.s32.totalorder %s4493_s6, %s4486_s10 }
  0x94   : > { %p4489_p2 = pnand %p4487_p1, %p4977_p13 }
  0x95   : > { %p4496_p9 = por %p4495_p6, %p4494_p4 }
  0x96   : > { %p4490_p3 = pneg %p4489_p2 }
  0x98   : > { %p4497_p10 = pnand %p4496_p9, %p4490_p3 }
  0x9a   : > { %4500 = shalt.err (!%p4497_p10)
}
  0x9b   : > { %4260 = dma.hbm_to_vmem [thread:$0]  (!%p4962_p11), %s5875_s19, 16, %s750_s0, [#allocation15]  }
  0x9c   : > { %s4755_s12 = smov [#allocation3]   ;;  %s4756_s24 = smov [#allocation7]  }
  0x9d   : > { %s636_s25 = sshll.u32 %s4755_s12, 4  ;;  %s674_s28 = sshll.u32 %s4756_s24, 4  ;;  %s637_s25 = int_to_ptr.vmem [resolvable:$true] %s636_s25  ;;  %s675_s28 = int_to_ptr.vmem [resolvable:$true] %s674_s28 }
  0x9e   : > { %s5940_s18 = sld [smem:[#allocation34_spill]] }
  0xa4   : > { %s4501_s1 = scalar_lea.hbm %s5940_s18, 1024 }
  0xa5   : > { %p4502_p5 = scmp.ne.s32.totalorder %s5940_s18, %s4501_s1  ;;  %p4508_p12 = scmp.lt.u32.totalorder %s4501_s1, %s5940_s18 }
  0xa7   : > { %p4504_p7 = pnand %p4502_p5, %p4977_p13 }
  0xa9   : > { %p4505_p8 = pneg %p4504_p7 }
  0xab   : > { %p4510_p0 = pnand %p4508_p12, %p4505_p8 }
  0xad   : > { %4513 = shalt.err (!%p4510_p0)
}
  0xae   : > { %s4514_s0 = scalar_lea.vmem %s637_s25, 1024  ;;  %p4522_p4 = scmp.lt.s32.totalorder %s637_s25, %s637_s25 }
  0xaf   : > { %p4515_p1 = scmp.ne.s32.totalorder %s637_s25, %s4514_s0  ;;  %p4523_p6 = scmp.lt.s32.totalorder %s4514_s0, %s4514_s0 }
  0xb1   : > { %p4517_p2 = pnand %p4515_p1, %p4977_p13  ;;  %p4524_p9 = por %p4523_p6, %p4522_p4 }
  0xb3   : > { %p4518_p3 = pneg %p4517_p2 }
  0xb5   : > { %p4525_p10 = pnand %p4524_p9, %p4518_p3 }
  0xb7   : > { %4528 = shalt.err (!%p4525_p10)
}
  0xb8   : > { %s5941_s14 = smov 64   ;;  %s5942_s4 = sld [smem:[#allocation40_spill]] }
  0xb9   : > { %4239 = dma.hbm_to_vmem [thread:$0]  (!%p4962_p11), %s5940_s18, 1024, %s637_s25, [#allocation4], %s5941_s14, %s5941_s14, %s4752_s20  }
  0xbe   : > { %s4529_s1 = scalar_lea.hbm %s5942_s4, 256 }
  0xbf   : > { %p4530_p5 = scmp.ne.s32.totalorder %s5942_s4, %s4529_s1  ;;  %p4536_p12 = scmp.lt.u32.totalorder %s4529_s1, %s5942_s4 }
  0xc1   : > { %p4532_p7 = pnand %p4530_p5, %p4977_p13 }
  0xc3   : > { %p4533_p8 = pneg %p4532_p7 }
  0xc5   : > { %p4538_p0 = pnand %p4536_p12, %p4533_p8 }
  0xc7   : > { %4541 = shalt.err (!%p4538_p0)
}
  0xc8   : > { %s4542_s16 = scalar_lea.vmem %s675_s28, 256  ;;  %p4550_p4 = scmp.lt.s32.totalorder %s675_s28, %s675_s28 }
  0xc9   : > { %p4543_p1 = scmp.ne.s32.totalorder %s675_s28, %s4542_s16  ;;  %p4551_p6 = scmp.lt.s32.totalorder %s4542_s16, %s4542_s16 }
  0xcb   : > { %p4545_p2 = pnand %p4543_p1, %p4977_p13  ;;  %p4552_p9 = por %p4551_p6, %p4550_p4 }
  0xcd   : > { %p4546_p3 = pneg %p4545_p2 }
  0xcf   : > { %p4553_p10 = pnand %p4552_p9, %p4546_p3 }
  0xd1   : > { %4556 = shalt.err (!%p4553_p10)
}
  0xd2   : > { %4245 = dma.hbm_to_vmem [thread:$0]  (!%p4962_p11), %s5942_s4, 256, %s675_s28, [#allocation6], %s5941_s14, %s5941_s14, %s4752_s20  }
  0xd3   : > { %s4757_s24 = smov [#allocation10]   ;;  %s4758_s1 = smov [#allocation13]  }
  0xd4   : > { %s707_s22 = sshll.u32 %s4757_s24, 4  ;;  %s735_s10 = sshll.u32 %s4758_s1, 4  ;;  %s708_s22 = int_to_ptr.vmem [resolvable:$true] %s707_s22  ;;  %s736_s10 = int_to_ptr.vmem [resolvable:$true] %s735_s10 }
  0xd5   : > { %s4557_s0 = scalar_lea.hbm %s5869_s13, 64 }
  0xd6   : > { %p4558_p5 = scmp.ne.s32.totalorder %s5869_s13, %s4557_s0  ;;  %p4564_p12 = scmp.lt.u32.totalorder %s4557_s0, %s5869_s13 }
  0xd8   : > { %p4560_p7 = pnand %p4558_p5, %p4977_p13 }
  0xda   : > { %p4561_p8 = pneg %p4560_p7 }
  0xdc   : > { %p4566_p0 = pnand %p4564_p12, %p4561_p8 }
  0xde   : > { %4569 = shalt.err (!%p4566_p0)
}
  0xdf   : > { %s4570_s20 = scalar_lea.vmem %s708_s22, 64  ;;  %p4578_p4 = scmp.lt.s32.totalorder %s708_s22, %s708_s22 }
  0xe0   : > { %p4571_p1 = scmp.ne.s32.totalorder %s708_s22, %s4570_s20  ;;  %p4579_p6 = scmp.lt.s32.totalorder %s4570_s20, %s4570_s20 }
  0xe2   : > { %p4573_p2 = pnand %p4571_p1, %p4977_p13  ;;  %p4580_p9 = por %p4579_p6, %p4578_p4 }
  0xe4   : > { %p4574_p3 = pneg %p4573_p2 }
  0xe6   : > { %p4581_p10 = pnand %p4580_p9, %p4574_p3 }
  0xe8   : > { %4584 = shalt.err (!%p4581_p10)
}
  0xe9   : > { %4251 = dma.hbm_to_vmem [thread:$0]  (!%p4962_p11), %s5869_s13, 64, %s708_s22, [#allocation9]  }
  0xea   : > { %s4585_s12 = scalar_lea.hbm %s5873_s17, 64 }
  0xeb   : > { %p4586_p5 = scmp.ne.s32.totalorder %s5873_s17, %s4585_s12  ;;  %p4592_p12 = scmp.lt.u32.totalorder %s4585_s12, %s5873_s17 }
  0xed   : > { %p4588_p7 = pnand %p4586_p5, %p4977_p13 }
  0xef   : > { %p4589_p8 = pneg %p4588_p7 }
  0xf1   : > { %p4594_p0 = pnand %p4592_p12, %p4589_p8 }
  0xf3   : > { %4597 = shalt.err (!%p4594_p0)
}
  0xf4   : > { %s4598_s0 = scalar_lea.vmem %s736_s10, 64  ;;  %p4606_p4 = scmp.lt.s32.totalorder %s736_s10, %s736_s10 }
  0xf5   : > { %p4599_p1 = scmp.ne.s32.totalorder %s736_s10, %s4598_s0  ;;  %p4607_p6 = scmp.lt.s32.totalorder %s4598_s0, %s4598_s0 }
  0xf7   : > { %p4601_p2 = pnand %p4599_p1, %p4977_p13  ;;  %p4608_p9 = por %p4607_p6, %p4606_p4 }
  0xf9   : > { %p4602_p3 = pneg %p4601_p2 }
  0xfb   : > { %p4609_p10 = pnand %p4608_p9, %p4602_p3 }
  0xfd   : > { %4612 = shalt.err (!%p4609_p10)
}
  0xfe   : > { %4257 = dma.hbm_to_vmem [thread:$0]  (!%p4962_p11), %s5873_s17, 64, %s736_s10, [#allocation12]  }
  0xff   : > { %s4759_s25 = smov [#allocation16]   ;;  %s4760_s11 = smov [#allocation17]  }
 0x100   : > { %s763_s20 = sshll.u32 %s4759_s25, 4  ;;  %s777_s28 = sshll.u32 %s4760_s11, 4  ;;  %s764_s20 = int_to_ptr.vmem [resolvable:$true] %s763_s20  ;;  %s778_s28 = int_to_ptr.vmem [resolvable:$true] %s777_s28 }
 0x101   : > { %s4613_s12 = scalar_lea.hbm %s5877_s21, 16 }
 0x102   : > { %p4614_p5 = scmp.ne.s32.totalorder %s5877_s21, %s4613_s12  ;;  %p4620_p12 = scmp.lt.u32.totalorder %s4613_s12, %s5877_s21 }
 0x104   : > { %p4616_p7 = pnand %p4614_p5, %p4977_p13 }
 0x106   : > { %p4617_p8 = pneg %p4616_p7 }
 0x108   : > { %p4622_p0 = pnand %p4620_p12, %p4617_p8 }
 0x10a   : > { %4625 = shalt.err (!%p4622_p0)
}
 0x10b   : > { %s4626_s10 = scalar_lea.vmem %s764_s20, 16  ;;  %s4633_s0 = scalar_lea.vmem %s764_s20, 32 }
 0x10c   : > { %p4627_p1 = scmp.ne.s32.totalorder %s764_s20, %s4626_s10  ;;  %p4634_p4 = scmp.lt.s32.totalorder %s764_s20, %s764_s20 }
 0x10d   : > { %p4635_p6 = scmp.lt.s32.totalorder %s4633_s0, %s4626_s10 }
 0x10e   : > { %p4629_p2 = pnand %p4627_p1, %p4977_p13 }
 0x10f   : > { %p4636_p9 = por %p4635_p6, %p4634_p4 }
 0x110   : > { %p4630_p3 = pneg %p4629_p2 }
 0x112   : > { %p4637_p10 = pnand %p4636_p9, %p4630_p3 }
 0x114   : > { %4640 = shalt.err (!%p4637_p10)
}
 0x115   : > { %4263 = dma.hbm_to_vmem [thread:$0]  (!%p4962_p11), %s5877_s21, 16, %s764_s20, [#allocation15]  }
 0x116   : > { %s4641_s15 = scalar_lea.hbm %s5879_s23, 16 }
 0x117   : > { %p4642_p5 = scmp.ne.s32.totalorder %s5879_s23, %s4641_s15  ;;  %p4648_p12 = scmp.lt.u32.totalorder %s4641_s15, %s5879_s23 }
 0x119   : > { %p4644_p7 = pnand %p4642_p5, %p4977_p13 }
 0x11b   : > { %p4645_p8 = pneg %p4644_p7 }
 0x11d   : > { %p4650_p0 = pnand %p4648_p12, %p4645_p8 }
 0x11f   : > { %4653 = shalt.err (!%p4650_p0)
}
 0x120   : > { %s4654_s6 = scalar_lea.vmem %s778_s28, 16  ;;  %s4661_s20 = scalar_lea.vmem %s778_s28, 32 }
 0x121   : > { %p4655_p1 = scmp.ne.s32.totalorder %s778_s28, %s4654_s6  ;;  %p4662_p4 = scmp.lt.s32.totalorder %s778_s28, %s778_s28 }
 0x122   : > { %p4663_p6 = scmp.lt.s32.totalorder %s4661_s20, %s4654_s6 }
 0x123   : > { %p4657_p2 = pnand %p4655_p1, %p4977_p13 }
 0x124   : > { %p4664_p9 = por %p4663_p6, %p4662_p4 }
 0x125   : > { %p4658_p3 = pneg %p4657_p2 }
 0x127   : > { %p4665_p10 = pnand %p4664_p9, %p4658_p3 }
 0x129   : > { %4668 = shalt.err (!%p4665_p10)
}
 0x12a   : > { %4266 = dma.hbm_to_vmem [thread:$0]  (!%p4962_p11), %s5879_s23, 16, %s778_s28, [#allocation18]  }
 0x12b   : > { %p3812_p5 = scmp.ge.s32.totalorder %s4747_s26, 8 }
 0x12c   : > { %p5943_p7 = scmp.ne.s32.totalorder (!%p3812_p5), %s5929_s9, 0 }
 0x12d   : > { %787 = sbr.rel (%p3812_p5) target bundleno = 324 (0x144), region = 112 }
 0x134   : > { %790 = sbr.rel (!%p5943_p7) target bundleno = 324 (0x144), region = 116  ;;  %s792_s8 = sand.u32 (%p5943_p7), 1, %s4727_s2  }
 0x135   : > { %s4193_s0 = smul.u32 (%p5943_p7), 96, %s792_s8  ;;  %s3813_s22 = sshll.u32 (%p5943_p7), %s4739_s7, 2 }
 0x136   : > { %s4194_s16 = smul.u32 (%p5943_p7), 48, %s4743_s3  ;;  %s5944_s14 = sld [smem:[#allocation31_spill]] (%p5943_p7) }
 0x137   : > { %s794_s28 = scalar_lea.vmem (%p5943_p7), [#allocation2], %s4193_s0 }
 0x138   : > { %s797_s25 = sadd.s32 (%p5943_p7), %s4194_s16, %s3813_s22 }
 0x139   : > { %s3814_s11 = sshll.u32 (%p5943_p7), %s797_s25, 3 }
 0x13c   : > { %s799_s12 = scalar_lea.vmem %s5944_s14, %s3814_s11 }
 0x13d   : > { %v812_v0 = vld [vmem:[%s799_s12] sm:$0xff]  ;;  %v814_v1 = vld [vmem:[%s799_s12 + $0x8] sm:$0xff]  ;;  %v816_v2 = vld [vmem:[%s799_s12 + $0x10] sm:$0xff] }
 0x13e   : > { %813 = vst [vmem:[%s794_s28] sm:$0xff] %v812_v0  ;;  %815 = vst [vmem:[%s794_s28 + $0x8] sm:$0xff] %v814_v1  ;;  %v818_v3 = vld [vmem:[%s799_s12 + $0x18] sm:$0xff]  ;;  %v820_v4 = vld [vmem:[%s799_s12 + $0x80] sm:$0xff] }
 0x13f   : > { %817 = vst [vmem:[%s794_s28 + $0x10] sm:$0xff] %v816_v2  ;;  %v822_v5 = vld [vmem:[%s799_s12 + $0x88] sm:$0xff]  ;;  %819 = vst [vmem:[%s794_s28 + $0x18] sm:$0xff] %v818_v3  ;;  %v824_v6 = vld [vmem:[%s799_s12 + $0x90] sm:$0xff] }
 0x140   : > { %821 = vst [vmem:[%s794_s28 + $0x20] sm:$0xff] %v820_v4  ;;  %823 = vst [vmem:[%s794_s28 + $0x28] sm:$0xff] %v822_v5  ;;  %v826_v7 = vld [vmem:[%s799_s12 + $0x98] sm:$0xff]  ;;  %v828_v8 = vld [vmem:[%s799_s12 + $0x100] sm:$0xff] }
 0x141   : > { %825 = vst [vmem:[%s794_s28 + $0x30] sm:$0xff] %v824_v6  ;;  %827 = vst [vmem:[%s794_s28 + $0x38] sm:$0xff] %v826_v7  ;;  %v830_v9 = vld [vmem:[%s799_s12 + $0x108] sm:$0xff]  ;;  %v832_v10 = vld [vmem:[%s799_s12 + $0x110] sm:$0xff] }
 0x142   : > { %829 = vst [vmem:[%s794_s28 + $0x40] sm:$0xff] %v828_v8  ;;  %v834_v11 = vld [vmem:[%s799_s12 + $0x118] sm:$0xff]  ;;  %831 = vst [vmem:[%s794_s28 + $0x48] sm:$0xff] %v830_v9 }
 0x143   : > { %833 = vst [vmem:[%s794_s28 + $0x50] sm:$0xff] %v832_v10  ;;  %835 = vst [vmem:[%s794_s28 + $0x58] sm:$0xff] %v834_v11 }
 0x144 PF: > { %p5945_p11 = scmp.ne.s32.totalorder %s5931_s5, 0 }
 0x145   : > { %s5946_s9 = sld [smem:[#allocation29_spill]] (!%p5945_p11)  ;;  %s847_s24 = sand.u32 (!%p5945_p11), 1, %s4723_s29  }
 0x146   : > { %844 = sbr.rel (%p5945_p11) target bundleno = 2398 (0x95e), region = 139 }
 0x147   : > { %s4195_s1 = smul.u32 (!%p5945_p11), 96, %s847_s24 }
 0x149   : > { %s5179_s6 = scalar_lea.vmem (!%p5945_p11), [#allocation2], %s4195_s1 }
 0x14b   : > { %p5947_p13 = scmp.ne.s32.totalorder (!%p5945_p11), %s5946_s9, 0 }
 0x14d   : > { %4698 = dma.done.wait (%p5947_p13), [#allocation4], 1024  }
 0x14e   : > { %4700 = vsyncadd (%p5947_p13), [#allocation4], 4294966272 }
 0x14f   : > { %4702 = dma.done.wait (%p5947_p13), [#allocation6], 512  }
 0x150   : > { %4704 = vsyncadd (%p5947_p13), [#allocation6], 4294966784 }
 0x151   : > { %4706 = dma.done.wait (%p5947_p13), [#allocation9], 320  }
 0x152   : > { %4708 = vsyncadd (%p5947_p13), [#allocation9], 4294966976 }
 0x153   : > { %4710 = dma.done.wait (%p5947_p13), [#allocation12], 128  }
 0x154   : > { %4712 = vsyncadd (%p5947_p13), [#allocation12], 4294967168 }
 0x155   : > { %4714 = dma.done.wait (%p5947_p13), [#allocation15], 32  }
 0x156   : > { %4716 = vsyncadd (%p5947_p13), [#allocation15], 4294967264 }
 0x157   : > { %4718 = dma.done.wait (%p5947_p13), [#allocation18], 16  }
 0x158   : > { %4720 = vsyncadd (%p5947_p13), [#allocation18], 4294967280  ;;  %v4761_v12 = vmov 0   ;;  %s5948_s20 = sld [smem:[#allocation33_spill]]  ;;  %v971_v15 = vld [vmem:[%s5179_s6 + $0x8] sm:$0xff]  ;;  %v973_v17 = vld [vmem:[%s5179_s6 + $0x18] sm:$0xff] }
 0x159   : > { %4358 = vset.pattern.permute.xlu1 %v4761_v12  ;;  %4357 = vset.pattern.permute.xlu0 %v4761_v12  ;;  %v975_v16 = vld [vmem:[%s5179_s6 + $0x28] sm:$0xff]  ;;  %v977_v18 = vld [vmem:[%s5179_s6 + $0x38] sm:$0xff]  ;;  %v970_v21 = vld [vmem:[%s5179_s6] sm:$0xff]  ;;  %vm1167_vm0 = vcmask 1041408   ;;  %s5949_s28 = sld [smem:[#allocation32_spill]]  ;;  %vm1142_vm1 = vcmask 162816  }
 0x15a   : > { %1212 = vmatprep.mubr.bf16.mxu0 %v4761_v12  ;;  %1325 = vmatprep.mubr.bf16.mxu1 %v4761_v12  ;;  %v5219_v19 = vpack.c.bf16 %v975_v16, %v971_v15  ;;  %v5221_v20 = vpack.c.bf16 %v977_v18, %v973_v17  ;;  %v974_v22 = vld [vmem:[%s5179_s6 + $0x20] sm:$0xff]  ;;  %v972_v23 = vld [vmem:[%s5179_s6 + $0x10] sm:$0xff]  ;;  %v979_v29 = vld [vmem:[%s5179_s6 + $0x48] sm:$0xf]  ;;  %s5950_s8 = sld [smem:[#allocation35_spill]]  ;;  %s5951_s15 = sld [smem:[#allocation37_spill]] }
 0x15b   : > { %v5226_v24 = vpack.c.bf16 %v974_v22, %v970_v21  ;;  %v976_v25 = vld [vmem:[%s5179_s6 + $0x30] sm:$0xff]  ;;  %v981_v30 = vld [vmem:[%s5179_s6 + $0x58] sm:$0xf]  ;;  %v978_v31 = vld [vmem:[%s5179_s6 + $0x40] sm:$0xf]  ;;  %v5243_v32 = vpack.c.bf16 %v979_v29, %v979_v29  ;;  %s5952_s1 = sld [smem:[#allocation39_spill]] }
 0x15c   : > { %1180 = vmatprep.subr.bf16.mxu0 %v5219_v19  ;;  %1293 = vmatprep.subr.bf16.mxu1 %v5221_v20  ;;  %v5237_v28 = vpack.c.bf16 %v976_v25, %v972_v23  ;;  %v5245_v33 = vpack.c.bf16 %v981_v30, %v981_v30  ;;  %v986_v34 = vpack.c.bf16 %v978_v31, %v978_v31  ;;  %v980_v35 = vld [vmem:[%s5179_s6 + $0x50] sm:$0xf]  ;;  %s5953_s25 = sld [smem:[#allocation41_spill]]  ;;  %s5954_s9 = sld [smem:[#allocation43_spill]]  ;;  %vm2658_vm2 = vcmask 261120  }
 0x15d   : > { %1181 = vmatpush1.bf16.msra.mxu0 %v5226_v24  ;;  %v988_v36 = vpack.c.bf16 %v980_v35, %v980_v35  ;;  %s5955_s12 = sld [smem:[#allocation46_spill]]  ;;  %s5956_s29 = sld [smem:[#allocation44_spill]]  ;;  %vm3068_vm3 = vcmask 1043456   ;;  %vm3064_vm4 = vcmask 64512   ;;  %vm3390_vm5 = vcmask 1040384  }
 0x15e   : > { %v1008_v13 = vld [vmem:[%s5948_s20 + $0x10] sm:$0xff]  ;;  %v1006_v14 = vld [vmem:[%s5948_s20] sm:$0xff]  ;;  %v1009_v26 = vld [vmem:[%s5948_s20 + $0x18] sm:$0xff]  ;;  %1294 = vmatpush1.bf16.msra.mxu1 %v5237_v28  ;;  %3837 = vmatprep.subr.msk.bf16.mxu0 %vm1167_vm0, %v5243_v32  ;;  %v5257_v38 = vsel %vm1167_vm0, %v986_v34, 0  ;;  %s5957_s10 = sld [smem:[#allocation48_spill]]  ;;  %s5958_s16 = sld [smem:[#allocation47_spill]] }
 0x15f   : > { %1034 = vperm.xlu1 %4358, %v1008_v13   ;;  %1024 = vperm.xlu0 %4357, %v1006_v14   ;;  %v1007_v27 = vld [vmem:[%s5948_s20 + $0x8] sm:$0xff]  ;;  %v1010_v39 = vld [vmem:[%s5948_s20 + $0x20] sm:$0xff]  ;;  %v5263_v40 = vsel %vm1167_vm0, %v988_v36, 0  ;;  %v1013_v42 = vld [vmem:[%s5948_s20 + $0x38] sm:$0xff]  ;;  %s5959_s30 = sld [smem:[#allocation50_spill]]  ;;  %s5960_s24 = sld [smem:[#allocation49_spill]] }
 0x160   : > { %v1011_v37 = vld [vmem:[%s5948_s20 + $0x28] sm:$0xff]  ;;  %3846 = vmatprep.subr.msk.bf16.mxu1 %vm1167_vm0, %v5245_v33  ;;  %v4359_v41 = vld [vmem:[%s5949_s28] sm:$0xff]   ;;  %v1012_v43 = vld [vmem:[%s5948_s20 + $0x30] sm:$0xff]  ;;  %s5964_s0 = sld [smem:[#allocation26_spill]]  ;;  %vm3386_vm6 = vcmask 15360  }
 0x161   : > { %1183 = vmatpush1.bf16.msra.mxu0 %v5257_v38  ;;  %v1015_v44 = vld [vmem:[%s5948_s20 + $0x48] sm:$0xff]  ;;  %v1014_v45 = vld [vmem:[%s5948_s20 + $0x40] sm:$0xff]  ;;  %v1017_v47 = vld [vmem:[%s5948_s20 + $0x58] sm:$0xff] }
 0x162   : > { %1296 = vmatpush1.bf16.msra.mxu1 %v5263_v40  ;;  %v4360_v46 = vld [vmem:[%s5949_s28 + $0x8] sm:$0xff]   ;;  %v1016_v48 = vld [vmem:[%s5948_s20 + $0x50] sm:$0xff]  ;;  %v1018_v50 = vld [vmem:[%s5948_s20 + $0x60] sm:$0xff] }
 0x163   : > { %1039 = vperm.xlu1 %4358, %v1009_v26   ;;  %1029 = vperm.xlu0 %4357, %v1007_v27   ;;  %v1019_v49 = vld [vmem:[%s5948_s20 + $0x68] sm:$0xff]  ;;  %v4361_v51 = vld [vmem:[%s5949_s28 + $0x10] sm:$0xff]   ;;  %v1021_v52 = vld [vmem:[%s5948_s20 + $0x78] sm:$0xff] }
 0x164   : > { %3838 = vmatmul.mubr.msk.bf16.vlgmr.msra.gmra.mrb[0].mxu0 %vm1142_vm1, %v4359_v41  ;;  %v1020_v53 = vld [vmem:[%s5948_s20 + $0x70] sm:$0xff]  ;;  %v1519_v54 = vld [vmem:[%s5950_s8 + $0x8] sm:$0xff]  ;;  %v1518_v55 = vld [vmem:[%s5950_s8] sm:$0xff] }
 0x165   : > { %3847 = vmatmul.mubr.msk.bf16.vlgmr.msra.gmra.mrb[0].mxu1 %vm1142_vm1, %v4359_v41  ;;  %1222 = vmatprep.mubr.bf16.mxu0 %v4761_v12  ;;  %v4362_v56 = vld [vmem:[%s5949_s28 + $0x18] sm:$0xff]   ;;  %v1905_v57 = vld [vmem:[%s5951_s15 + $0x8] sm:$0xff]  ;;  %v1904_v58 = vld [vmem:[%s5951_s15] sm:$0xff] }
 0x166   : > { %1335 = vmatprep.mubr.bf16.mxu1 %v4761_v12  ;;  %v1521_v59 = vld [vmem:[%s5950_s8 + $0x18] sm:$0xff]  ;;  %v1520_v60 = vld [vmem:[%s5950_s8 + $0x10] sm:$0xff]  ;;  %v4363_v61 = vld [vmem:[%s5949_s28 + $0x20] sm:$0xff]   ;;  %p960_p8 = scmp.lt.s32.totalorder %s5964_s0, 1 }
 0x167   : > { %1049 = vperm.xlu1 %4358, %v1011_v37   ;;  %1044 = vperm.xlu0 %4357, %v1010_v39   ;;  %v1907_v62 = vld [vmem:[%s5951_s15 + $0x18] sm:$0xff]  ;;  %v1906_v63 = vld [vmem:[%s5951_s15 + $0x10] sm:$0xff]  ;;  %v1523_v0 = vld [vmem:[%s5950_s8 + $0x28] sm:$0xff] }
 0x168   : > { %v1522_v1 = vld [vmem:[%s5950_s8 + $0x20] sm:$0xff]  ;;  %v4364_v2 = vld [vmem:[%s5949_s28 + $0x28] sm:$0xff]   ;;  %v1525_v5 = vld [vmem:[%s5950_s8 + $0x38] sm:$0xff]  ;;  %s5982_s0 = smov (!%p960_p8, %s5964_s0), 1 }
 0x169   : > { %v1909_v3 = vld [vmem:[%s5951_s15 + $0x28] sm:$0xff]  ;;  %v1908_v4 = vld [vmem:[%s5951_s15 + $0x20] sm:$0xff]  ;;  %v1524_v6 = vld [vmem:[%s5950_s8 + $0x30] sm:$0xff] }
 0x16a   : > { %v4365_v7 = vld [vmem:[%s5949_s28 + $0x30] sm:$0xff]   ;;  %v1911_v8 = vld [vmem:[%s5951_s15 + $0x38] sm:$0xff]  ;;  %v1527_v10 = vld [vmem:[%s5950_s8 + $0x48] sm:$0xff] }
 0x16b   : > { %1059 = vperm.xlu1 %4358, %v1013_v42   ;;  %1054 = vperm.xlu0 %4357, %v1012_v43   ;;  %v1910_v9 = vld [vmem:[%s5951_s15 + $0x30] sm:$0xff]  ;;  %v1526_v11 = vld [vmem:[%s5950_s8 + $0x40] sm:$0xff]  ;;  %v4366_v13 = vld [vmem:[%s5949_s28 + $0x38] sm:$0xff]  }
 0x16c   : > { %3839 = vmatmul.mubr.msk.bf16.gmra.mrb[4].mxu0 %vm1142_vm1, %v4360_v46  ;;  %v1913_v14 = vld [vmem:[%s5951_s15 + $0x48] sm:$0xff]  ;;  %v1912_v15 = vld [vmem:[%s5951_s15 + $0x40] sm:$0xff]  ;;  %v1529_v16 = vld [vmem:[%s5950_s8 + $0x58] sm:$0xff] }
 0x16d   : > { %3848 = vmatmul.mubr.msk.bf16.gmra.mrb[4].mxu1 %vm1142_vm1, %v4360_v46  ;;  %1232 = vmatprep.mubr.bf16.mxu0 %v4761_v12  ;;  %v1528_v17 = vld [vmem:[%s5950_s8 + $0x50] sm:$0xff]  ;;  %v1915_v18 = vld [vmem:[%s5951_s15 + $0x58] sm:$0xff]  ;;  %v1531_v22 = vld [vmem:[%s5950_s8 + $0x68] sm:$0xff] }
 0x16e   : > { %1345 = vmatprep.mubr.bf16.mxu1 %v4761_v12  ;;  %v1914_v21 = vld [vmem:[%s5951_s15 + $0x50] sm:$0xff]  ;;  %v1530_v23 = vld [vmem:[%s5950_s8 + $0x60] sm:$0xff]  ;;  %v1917_v25 = vld [vmem:[%s5951_s15 + $0x68] sm:$0xff] }
 0x16f   : > { %1069 = vperm.xlu1 %4358, %v1015_v44   ;;  %1064 = vperm.xlu0 %4357, %v1014_v45   ;;  %v1916_v26 = vld [vmem:[%s5951_s15 + $0x60] sm:$0xff]  ;;  %v1533_v27 = vld [vmem:[%s5950_s8 + $0x78] sm:$0xff]  ;;  %v1532_v29 = vld [vmem:[%s5950_s8 + $0x70] sm:$0xff] }
 0x170   : > { %v1919_v30 = vld [vmem:[%s5951_s15 + $0x78] sm:$0xff]  ;;  %v1918_v31 = vld [vmem:[%s5951_s15 + $0x70] sm:$0xff]  ;;  %v2455_v34 = vld [vmem:[%s5952_s1 + $0x8] sm:$0xff] }
 0x171   : > { %v2454_v35 = vld [vmem:[%s5952_s1] sm:$0xff]  ;;  %v2457_v36 = vld [vmem:[%s5952_s1 + $0x18] sm:$0xff]  ;;  %v2456_v37 = vld [vmem:[%s5952_s1 + $0x10] sm:$0xff] }
 0x172   : > { %v2625_v39 = vld [vmem:[%s5953_s25 + $0x8] sm:$0xff]  ;;  %v2624_v41 = vld [vmem:[%s5953_s25] sm:$0xff]  ;;  %v2627_v44 = vld [vmem:[%s5953_s25 + $0x18] sm:$0xff] }
 0x173   : > { %1079 = vperm.xlu1 %4358, %v1017_v47   ;;  %1074 = vperm.xlu0 %4357, %v1016_v48   ;;  %v2776_v42 = vld [vmem:[%s5954_s9 + $0x8] sm:$0xff]  ;;  %v2775_v43 = vld [vmem:[%s5954_s9] sm:$0xff]  ;;  %v2626_v45 = vld [vmem:[%s5953_s25 + $0x10] sm:$0xff] }
 0x174   : > { %3840 = vmatmul.mubr.msk.bf16.gmra.mrb[8].mxu0 %vm1142_vm1, %v4361_v51  ;;  %v2778_v46 = vld [vmem:[%s5954_s9 + $0x18] sm:$0xff]  ;;  %v2777_v47 = vld [vmem:[%s5954_s9 + $0x10] sm:$0xff]  ;;  %v3058_v48 = vld [vmem:[%s5955_s12] sm:$0xff] }
 0x175   : > { %3849 = vmatmul.mubr.msk.bf16.gmra.mrb[8].mxu1 %vm1142_vm1, %v4361_v51  ;;  %1242 = vmatprep.mubr.bf16.mxu0 %v4761_v12  ;;  %v3164_v51 = vld [vmem:[%s5958_s16] sm:$0xff]  ;;  %s3827_s16 = sshll.u32 %s5982_s0, 4 }
 0x176   : > { %1355 = vmatprep.mubr.bf16.mxu1 %v4761_v12 }
 0x177   : > { %1089 = vperm.xlu1 %4358, %v1019_v49   ;;  %1084 = vperm.xlu0 %4357, %v1018_v50   ;;  %v2958_v49 = vld [vmem:[%s5956_s29] sm:$0xff]  ;;  %s5961_s29 = sld [smem:[#allocation36_spill]] }
 0x178   : > { %v3268_v50 = vld [vmem:[%s5957_s10] sm:$0x3]  ;;  %s5963_s10 = sld [smem:[#allocation25_spill]] }
 0x17b   : > { %1099 = vperm.xlu1 %4358, %v1021_v52   ;;  %1094 = vperm.xlu0 %4357, %v1020_v53   ;;  %v3486_v52 = vld [vmem:[%s5959_s30] sm:$0x3] }
 0x17c   : > { %3841 = vmatmul.mubr.msk.bf16.gmra.mrb[12].mxu0 %vm1142_vm1, %v4362_v56  ;;  %v3380_v53 = vld [vmem:[%s5960_s24] sm:$0x3]  ;;  %s5965_s24 = sld [smem:[#allocation51_spill]] }
 0x17d   : > { %3850 = vmatmul.mubr.msk.bf16.gmra.mrb[12].mxu1 %vm1142_vm1, %v4362_v56  ;;  %1252 = vmatprep.mubr.bf16.mxu0 %v4761_v12  ;;  %s5962_s5 = smov %s5961_s29 }
 0x17e   : > { %1365 = vmatprep.mubr.bf16.mxu1 %v4761_v12  ;;  %s3826_s22 = sshll.u32 %s5963_s10, 2 }
 0x17f   : > { %1541 = vperm.xlu1 %4358, %v1519_v54   ;;  %1536 = vperm.xlu0 %4357, %v1518_v55   ;;  %p962_p12 = scmp.lt.s32.totalorder %s3826_s22, 15 }
 0x181   : > { %s5984_s22 = smov (!%p962_p12, %s3826_s22), 15 }
 0x182   : > { %s965_s11 = sadd.s32 %s3827_s16, %s5984_s22 }
 0x183   : > { %1927 = vperm.xlu1 %4358, %v1905_v57   ;;  %1922 = vperm.xlu0 %4357, %v1904_v58   ;;  %s3828_s30 = sshll.u32 %s965_s11, 1 }
 0x184   : > { %3842 = vmatmul.mubr.msk.bf16.gmra.mrb[16].mxu0 %vm1142_vm1, %v4363_v61  ;;  %s967_s1 = scalar_lea.vmem %s5965_s24, %s3828_s30 }
 0x185   : > { %3851 = vmatmul.mubr.msk.bf16.gmra.mrb[16].mxu1 %vm1142_vm1, %v4363_v61  ;;  %1262 = vmatprep.mubr.bf16.mxu0 %v4761_v12 }
 0x186   : > { %1375 = vmatprep.mubr.bf16.mxu1 %v4761_v12 }
 0x187   : > { %1551 = vperm.xlu1 %4358, %v1521_v59   ;;  %1546 = vperm.xlu0 %4357, %v1520_v60  }
 0x18b   : > { %1937 = vperm.xlu1 %4358, %v1907_v62   ;;  %1932 = vperm.xlu0 %4357, %v1906_v63  }
 0x18c   : > { %3843 = vmatmul.mubr.msk.bf16.gmra.mrb[20].mxu0 %vm1142_vm1, %v4364_v2 }
 0x18d   : > { %3852 = vmatmul.mubr.msk.bf16.gmra.mrb[20].mxu1 %vm1142_vm1, %v4364_v2  ;;  %1272 = vmatprep.mubr.bf16.mxu0 %v4761_v12 }
 0x18e   : > { %1385 = vmatprep.mubr.bf16.mxu1 %v4761_v12 }
 0x18f   : > { %1561 = vperm.xlu1 %4358, %v1523_v0   ;;  %1556 = vperm.xlu0 %4357, %v1522_v1  }
 0x193   : > { %1947 = vperm.xlu1 %4358, %v1909_v3   ;;  %1942 = vperm.xlu0 %4357, %v1908_v4  }
 0x194   : > { %3844 = vmatmul.mubr.msk.bf16.gmra.mrb[24].mxu0 %vm1142_vm1, %v4365_v7 }
 0x195   : > { %3853 = vmatmul.mubr.msk.bf16.gmra.mrb[24].mxu1 %vm1142_vm1, %v4365_v7  ;;  %1282 = vmatprep.mubr.bf16.mxu0 %v4761_v12 }
 0x196   : > { %1395 = vmatprep.mubr.bf16.mxu1 %v4761_v12 }
 0x197   : > { %1571 = vperm.xlu1 %4358, %v1525_v5   ;;  %1566 = vperm.xlu0 %4357, %v1524_v6  }
 0x19b   : > { %1957 = vperm.xlu1 %4358, %v1911_v8   ;;  %1952 = vperm.xlu0 %4357, %v1910_v9  }
 0x19c   : > { %3845 = vmatmul.mubr.msk.bf16.gmra.mrb[28].mxu0 %vm1142_vm1, %v4366_v13 }
 0x19d   : > { %3854 = vmatmul.mubr.msk.bf16.gmra.mrb[28].mxu1 %vm1142_vm1, %v4366_v13  ;;  %1694 = vmatprep.mubr.bf16.mxu0 %v4761_v12 }
 0x19e   : > { %1807 = vmatprep.mubr.bf16.mxu1 %v4761_v12 }
 0x19f   : > { %1581 = vperm.xlu1 %4358, %v1527_v10   ;;  %1576 = vperm.xlu0 %4357, %v1526_v11  }
 0x1a3   : > { %1967 = vperm.xlu1 %4358, %v1913_v14   ;;  %1962 = vperm.xlu0 %4357, %v1912_v15  }
 0x1a7   : > { %1591 = vperm.xlu1 %4358, %v1529_v16   ;;  %1586 = vperm.xlu0 %4357, %v1528_v17  }
 0x1ab   : > { %1977 = vperm.xlu1 %4358, %v1915_v18   ;;  %1972 = vperm.xlu0 %4357, %v1914_v21  }
 0x1af   : > { %1601 = vperm.xlu1 %4358, %v1531_v22   ;;  %1596 = vperm.xlu0 %4357, %v1530_v23  }
 0x1b3   : > { %1987 = vperm.xlu1 %4358, %v1917_v25   ;;  %1982 = vperm.xlu0 %4357, %v1916_v26  }
 0x1b7   : > { %1611 = vperm.xlu1 %4358, %v1533_v27   ;;  %1606 = vperm.xlu0 %4357, %v1532_v29  }
 0x1bb   : > { %1997 = vperm.xlu1 %4358, %v1919_v30   ;;  %1992 = vperm.xlu0 %4357, %v1918_v31  }
 0x1bf   : > { %2465 = vperm.xlu1 %4358, %v2455_v34   ;;  %2460 = vperm.xlu0 %4357, %v2454_v35  }
 0x1c3   : > { %2475 = vperm.xlu1 %4358, %v2457_v36   ;;  %2470 = vperm.xlu0 %4357, %v2456_v37  }
 0x1c7   : > { %2635 = vperm.xlu1 %4358, %v2625_v39   ;;  %2630 = vperm.xlu0 %4357, %v2624_v41  }
 0x1cb   : > { %2786 = vperm.xlu1 %4358, %v2776_v42   ;;  %2781 = vperm.xlu0 %4357, %v2775_v43  }
 0x1cf   : > { %2645 = vperm.xlu1 %4358, %v2627_v44   ;;  %2640 = vperm.xlu0 %4357, %v2626_v45  }
 0x1d3   : > { %2796 = vperm.xlu1 %4358, %v2778_v46   ;;  %2791 = vperm.xlu0 %4357, %v2777_v47  }
 0x1d7   : > { %3061 = vperm.xlu1 %4358, %v3058_v48   ;;  %2961 = vperm.xlu0 %4357, %v2958_v49  }
 0x1db   : > { %3271 = vperm.xlu1 %4358, %v3268_v50   ;;  %3167 = vperm.xlu0 %4357, %v3164_v51  }
 0x1de   : > { %v1025_v54 = vpop.permute.xlu0 %1024  ;;  %v1035_v58 = vpop.permute.xlu1 %1034 }
 0x1df   : > { %3489 = vperm.xlu1 %4358, %v3486_v52   ;;  %3383 = vperm.xlu0 %4357, %v3380_v53  }
 0x1e2   : > { %v1030_v61 = vpop.permute.xlu0 %1029  ;;  %v1040_v16 = vpop.permute.xlu1 %1039 }
 0x1e6   : > { %v1050_v49 = vpop.permute.xlu1 %1049 }
 0x237   : > { %v1214_v55 = vpop.f32.mrb[0].mxu0 }
 0x238   : > { %v1327_v56 = vpop.f32.mrb[0].mxu1  ;;  %v1216_v57 = vpop.f32.mrb[1].mxu0  ;;  %v1215_v59 = vadd.f32 %v1214_v55, %v1025_v54 }
 0x239   : > { %v1329_v60 = vpop.f32.mrb[1].mxu1  ;;  %v1328_v62 = vadd.f32 %v1327_v56, %v1025_v54  ;;  %v1217_v63 = vadd.f32 %v1216_v57, %v1025_v54  ;;  %v1218_v0 = vpop.f32.mrb[2].mxu0 }
 0x23a   : > { %v1330_v1 = vadd.f32 %v1329_v60, %v1025_v54  ;;  %v1219_v2 = vadd.f32 %v1218_v0, %v1030_v61  ;;  %v1331_v3 = vpop.f32.mrb[2].mxu1  ;;  %v1220_v4 = vpop.f32.mrb[3].mxu0  ;;  %v1406_v8 = vmax.f32 %v1215_v59, 0.0 }
 0x23b   : > { %v1332_v5 = vadd.f32 %v1331_v3, %v1030_v61  ;;  %v1221_v6 = vadd.f32 %v1220_v4, %v1030_v61  ;;  %v1333_v7 = vpop.f32.mrb[3].mxu1  ;;  %v1408_v11 = vmax.f32 %v1328_v62, 0.0  ;;  %v1407_v13 = vmax.f32 %v1217_v63, 0.0  ;;  %v1045_v54 = vpop.permute.xlu0 %1044 }
 0x23c   : > { %v1410_v9 = vmax.f32 %v1219_v2, 0.0  ;;  %v1334_v10 = vadd.f32 %v1333_v7, %v1030_v61  ;;  %v1409_v17 = vmax.f32 %v1330_v1, 0.0 }
 0x23d   : > { %v1412_v14 = vmax.f32 %v1332_v5, 0.0  ;;  %v1411_v15 = vmax.f32 %v1221_v6, 0.0 }
 0x23e   : > { %v1470_v18 = vpack.c.bf16 %v1410_v9, %v1406_v8  ;;  %v1413_v21 = vmax.f32 %v1334_v10, 0.0 }
 0x23f   : > { %v1224_v22 = vpop.f32.mrb[4].mxu0  ;;  %v1472_v23 = vpack.c.bf16 %v1412_v14, %v1408_v11  ;;  %v1471_v25 = vpack.c.bf16 %v1411_v15, %v1407_v13 }
 0x240   : > { %v1337_v26 = vpop.f32.mrb[4].mxu1  ;;  %v1226_v27 = vpop.f32.mrb[5].mxu0  ;;  %v1473_v29 = vpack.c.bf16 %v1413_v21, %v1409_v17  ;;  %v1225_v30 = vadd.f32 %v1224_v22, %v1035_v58 }
 0x241   : > { %v1339_v31 = vpop.f32.mrb[5].mxu1  ;;  %v1338_v34 = vadd.f32 %v1337_v26, %v1035_v58  ;;  %v1227_v35 = vadd.f32 %v1226_v27, %v1035_v58  ;;  %v1228_v36 = vpop.f32.mrb[6].mxu0  ;;  %1662 = vmatprep.subr.bf16.mxu0 %v1471_v25 }
 0x242   : > { %v1340_v37 = vadd.f32 %v1339_v31, %v1035_v58  ;;  %v1229_v39 = vadd.f32 %v1228_v36, %v1040_v16  ;;  %v1341_v41 = vpop.f32.mrb[6].mxu1  ;;  %1775 = vmatprep.subr.bf16.mxu1 %v1473_v29  ;;  %v1230_v42 = vpop.f32.mrb[7].mxu0  ;;  %1663 = vmatpush1.bf16.msra.mxu0 %v1470_v18  ;;  %v1414_v46 = vmax.f32 %v1225_v30, 0.0 }
 0x243   : > { %v1342_v43 = vadd.f32 %v1341_v41, %v1040_v16  ;;  %v1231_v44 = vadd.f32 %v1230_v42, %v1040_v16  ;;  %v1343_v45 = vpop.f32.mrb[7].mxu1  ;;  %1776 = vmatpush1.bf16.msra.mxu1 %v1472_v23  ;;  %v1416_v50 = vmax.f32 %v1338_v34, 0.0  ;;  %v1415_v51 = vmax.f32 %v1227_v35, 0.0  ;;  %v1055_v23 = vpop.permute.xlu0 %1054 }
 0x244   : > { %v1418_v47 = vmax.f32 %v1229_v39, 0.0  ;;  %v1344_v48 = vadd.f32 %v1343_v45, %v1040_v16  ;;  %v1417_v55 = vmax.f32 %v1340_v37, 0.0  ;;  %v1060_v16 = vpop.permute.xlu1 %1059 }
 0x245   : > { %v1420_v52 = vmax.f32 %v1342_v43, 0.0  ;;  %v1419_v53 = vmax.f32 %v1231_v44, 0.0 }
 0x246   : > { %v1474_v56 = vpack.c.bf16 %v1418_v47, %v1414_v46  ;;  %v1421_v57 = vmax.f32 %v1344_v48, 0.0 }
 0x247   : > { %v1234_v58 = vpop.f32.mrb[8].mxu0  ;;  %v1476_v59 = vpack.c.bf16 %v1420_v52, %v1416_v50  ;;  %v1475_v60 = vpack.c.bf16 %v1419_v53, %v1415_v51 }
 0x248   : > { %v1347_v61 = vpop.f32.mrb[8].mxu1  ;;  %v1236_v62 = vpop.f32.mrb[9].mxu0  ;;  %v1477_v63 = vpack.c.bf16 %v1421_v57, %v1417_v55  ;;  %v1235_v0 = vadd.f32 %v1234_v58, %v1045_v54 }
 0x249   : > { %v1349_v1 = vpop.f32.mrb[9].mxu1  ;;  %v1348_v2 = vadd.f32 %v1347_v61, %v1045_v54  ;;  %v1237_v3 = vadd.f32 %v1236_v62, %v1045_v54  ;;  %v1238_v4 = vpop.f32.mrb[10].mxu0  ;;  %1664 = vmatprep.subr.bf16.mxu0 %v1475_v60 }
 0x24a   : > { %v1350_v5 = vadd.f32 %v1349_v1, %v1045_v54  ;;  %v1239_v6 = vadd.f32 %v1238_v4, %v1050_v49  ;;  %v1351_v7 = vpop.f32.mrb[10].mxu1  ;;  %1777 = vmatprep.subr.bf16.mxu1 %v1477_v63  ;;  %v1240_v8 = vpop.f32.mrb[11].mxu0  ;;  %1665 = vmatpush1.bf16.msra.mxu0 %v1474_v56  ;;  %v1422_v13 = vmax.f32 %v1235_v0, 0.0 }
 0x24b   : > { %v1352_v9 = vadd.f32 %v1351_v7, %v1050_v49  ;;  %v1241_v10 = vadd.f32 %v1240_v8, %v1050_v49  ;;  %v1353_v11 = vpop.f32.mrb[11].mxu1  ;;  %1778 = vmatpush1.bf16.msra.mxu1 %v1476_v59  ;;  %v1424_v17 = vmax.f32 %v1348_v2, 0.0  ;;  %v1423_v18 = vmax.f32 %v1237_v3, 0.0  ;;  %v1070_v54 = vpop.permute.xlu1 %1069 }
 0x24c   : > { %v1426_v14 = vmax.f32 %v1239_v6, 0.0  ;;  %v1354_v15 = vadd.f32 %v1353_v11, %v1050_v49  ;;  %v1425_v25 = vmax.f32 %v1350_v5, 0.0  ;;  %v1065_v59 = vpop.permute.xlu0 %1064 }
 0x24d   : > { %v1428_v21 = vmax.f32 %v1352_v9, 0.0  ;;  %v1427_v22 = vmax.f32 %v1241_v10, 0.0 }
 0x24e   : > { %v1478_v26 = vpack.c.bf16 %v1426_v14, %v1422_v13  ;;  %v1429_v27 = vmax.f32 %v1354_v15, 0.0 }
 0x24f   : > { %v1244_v29 = vpop.f32.mrb[12].mxu0  ;;  %v1480_v30 = vpack.c.bf16 %v1428_v21, %v1424_v17  ;;  %v1479_v31 = vpack.c.bf16 %v1427_v22, %v1423_v18 }
 0x250   : > { %v1357_v34 = vpop.f32.mrb[12].mxu1  ;;  %v1246_v35 = vpop.f32.mrb[13].mxu0  ;;  %v1481_v36 = vpack.c.bf16 %v1429_v27, %v1425_v25  ;;  %v1245_v37 = vadd.f32 %v1244_v29, %v1055_v23 }
 0x251   : > { %v1359_v39 = vpop.f32.mrb[13].mxu1  ;;  %v1358_v41 = vadd.f32 %v1357_v34, %v1055_v23  ;;  %v1247_v42 = vadd.f32 %v1246_v35, %v1055_v23  ;;  %v1248_v43 = vpop.f32.mrb[14].mxu0  ;;  %1666 = vmatprep.subr.bf16.mxu0 %v1479_v31 }
 0x252   : > { %v1360_v44 = vadd.f32 %v1359_v39, %v1055_v23  ;;  %v1249_v45 = vadd.f32 %v1248_v43, %v1060_v16  ;;  %v1361_v46 = vpop.f32.mrb[14].mxu1  ;;  %1779 = vmatprep.subr.bf16.mxu1 %v1481_v36  ;;  %v1250_v47 = vpop.f32.mrb[15].mxu0  ;;  %1667 = vmatpush1.bf16.msra.mxu0 %v1478_v26  ;;  %v1430_v51 = vmax.f32 %v1245_v37, 0.0 }
 0x253   : > { %v1362_v48 = vadd.f32 %v1361_v46, %v1060_v16  ;;  %v1251_v49 = vadd.f32 %v1250_v47, %v1060_v16  ;;  %v1363_v50 = vpop.f32.mrb[15].mxu1  ;;  %1780 = vmatpush1.bf16.msra.mxu1 %v1480_v30  ;;  %v1432_v55 = vmax.f32 %v1358_v41, 0.0  ;;  %v1431_v56 = vmax.f32 %v1247_v42, 0.0  ;;  %v1080_v23 = vpop.permute.xlu1 %1079 }
 0x254   : > { %v1434_v52 = vmax.f32 %v1249_v45, 0.0  ;;  %v1364_v53 = vadd.f32 %v1363_v50, %v1060_v16  ;;  %v1433_v60 = vmax.f32 %v1360_v44, 0.0  ;;  %v1075_v30 = vpop.permute.xlu0 %1074 }
 0x255   : > { %v1436_v57 = vmax.f32 %v1362_v48, 0.0  ;;  %v1435_v58 = vmax.f32 %v1251_v49, 0.0 }
 0x256   : > { %v1482_v61 = vpack.c.bf16 %v1434_v52, %v1430_v51  ;;  %v1437_v62 = vmax.f32 %v1364_v53, 0.0 }
 0x257   : > { %v1254_v63 = vpop.f32.mrb[16].mxu0  ;;  %v1484_v0 = vpack.c.bf16 %v1436_v57, %v1432_v55  ;;  %v1483_v1 = vpack.c.bf16 %v1435_v58, %v1431_v56 }
 0x258   : > { %v1367_v2 = vpop.f32.mrb[16].mxu1  ;;  %v1256_v3 = vpop.f32.mrb[17].mxu0  ;;  %v1485_v4 = vpack.c.bf16 %v1437_v62, %v1433_v60  ;;  %v1255_v5 = vadd.f32 %v1254_v63, %v1065_v59 }
 0x259   : > { %v1369_v6 = vpop.f32.mrb[17].mxu1  ;;  %v1368_v7 = vadd.f32 %v1367_v2, %v1065_v59  ;;  %v1257_v8 = vadd.f32 %v1256_v3, %v1065_v59  ;;  %v1258_v9 = vpop.f32.mrb[18].mxu0  ;;  %1668 = vmatprep.subr.bf16.mxu0 %v1483_v1 }
 0x25a   : > { %v1370_v10 = vadd.f32 %v1369_v6, %v1065_v59  ;;  %v1259_v11 = vadd.f32 %v1258_v9, %v1070_v54  ;;  %v1371_v13 = vpop.f32.mrb[18].mxu1  ;;  %1781 = vmatprep.subr.bf16.mxu1 %v1485_v4  ;;  %v1260_v14 = vpop.f32.mrb[19].mxu0  ;;  %1669 = vmatpush1.bf16.msra.mxu0 %v1482_v61  ;;  %v1438_v18 = vmax.f32 %v1255_v5, 0.0 }
 0x25b   : > { %v1372_v15 = vadd.f32 %v1371_v13, %v1070_v54  ;;  %v1261_v16 = vadd.f32 %v1260_v14, %v1070_v54  ;;  %v1373_v17 = vpop.f32.mrb[19].mxu1  ;;  %1782 = vmatpush1.bf16.msra.mxu1 %v1484_v0  ;;  %v1440_v25 = vmax.f32 %v1368_v7, 0.0  ;;  %v1439_v26 = vmax.f32 %v1257_v8, 0.0  ;;  %v1090_v63 = vpop.permute.xlu1 %1089 }
 0x25c   : > { %v1442_v21 = vmax.f32 %v1259_v11, 0.0  ;;  %v1374_v22 = vadd.f32 %v1373_v17, %v1070_v54  ;;  %v1441_v31 = vmax.f32 %v1370_v10, 0.0  ;;  %v1085_v3 = vpop.permute.xlu0 %1084 }
 0x25d   : > { %v1444_v27 = vmax.f32 %v1372_v15, 0.0  ;;  %v1443_v29 = vmax.f32 %v1261_v16, 0.0 }
 0x25e   : > { %v1486_v34 = vpack.c.bf16 %v1442_v21, %v1438_v18  ;;  %v1445_v35 = vmax.f32 %v1374_v22, 0.0 }
 0x25f   : > { %v1264_v36 = vpop.f32.mrb[20].mxu0  ;;  %v1488_v37 = vpack.c.bf16 %v1444_v27, %v1440_v25  ;;  %v1487_v39 = vpack.c.bf16 %v1443_v29, %v1439_v26 }
 0x260   : > { %v1265_v41 = vadd.f32 %v1264_v36, %v1075_v30  ;;  %v1377_v42 = vpop.f32.mrb[20].mxu1  ;;  %v1266_v43 = vpop.f32.mrb[21].mxu0  ;;  %v1489_v44 = vpack.c.bf16 %v1445_v35, %v1441_v31 }
 0x261   : > { %v1378_v45 = vadd.f32 %v1377_v42, %v1075_v30  ;;  %v1267_v46 = vadd.f32 %v1266_v43, %v1075_v30  ;;  %v1379_v47 = vpop.f32.mrb[21].mxu1  ;;  %v1268_v48 = vpop.f32.mrb[22].mxu0  ;;  %1670 = vmatprep.subr.bf16.mxu0 %v1487_v39 }
 0x262   : > { %v1380_v49 = vadd.f32 %v1379_v47, %v1075_v30  ;;  %v1269_v50 = vadd.f32 %v1268_v48, %v1080_v23  ;;  %v1381_v51 = vpop.f32.mrb[22].mxu1  ;;  %v1270_v52 = vpop.f32.mrb[23].mxu0  ;;  %1783 = vmatprep.subr.bf16.mxu1 %v1489_v44  ;;  %1671 = vmatpush1.bf16.msra.mxu0 %v1486_v34  ;;  %v1446_v56 = vmax.f32 %v1265_v41, 0.0 }
 0x263   : > { %v1382_v53 = vadd.f32 %v1381_v51, %v1080_v23  ;;  %v1271_v54 = vadd.f32 %v1270_v52, %v1080_v23  ;;  %v1383_v55 = vpop.f32.mrb[23].mxu1  ;;  %1784 = vmatpush1.bf16.msra.mxu1 %v1488_v37  ;;  %v1448_v59 = vmax.f32 %v1378_v45, 0.0  ;;  %v1447_v60 = vmax.f32 %v1267_v46, 0.0  ;;  %v1100_v36 = vpop.permute.xlu1 %1099 }
 0x264   : > { %v1450_v57 = vmax.f32 %v1269_v50, 0.0  ;;  %v1384_v58 = vadd.f32 %v1383_v55, %v1080_v23  ;;  %v1449_v0 = vmax.f32 %v1380_v49, 0.0  ;;  %v1095_v42 = vpop.permute.xlu0 %1094 }
 0x265   : > { %v1452_v61 = vmax.f32 %v1382_v53, 0.0  ;;  %v1451_v62 = vmax.f32 %v1271_v54, 0.0 }
 0x266   : > { %v1490_v1 = vpack.c.bf16 %v1450_v57, %v1446_v56  ;;  %v1453_v2 = vmax.f32 %v1384_v58, 0.0 }
 0x267   : > { %v1492_v4 = vpack.c.bf16 %v1452_v61, %v1448_v59  ;;  %v1491_v5 = vpack.c.bf16 %v1451_v62, %v1447_v60  ;;  %v1274_v6 = vpop.f32.mrb[24].mxu0 }
 0x268   : > { %v1493_v7 = vpack.c.bf16 %v1453_v2, %v1449_v0  ;;  %v1275_v8 = vadd.f32 %v1274_v6, %v1085_v3  ;;  %v1387_v9 = vpop.f32.mrb[24].mxu1  ;;  %v1276_v10 = vpop.f32.mrb[25].mxu0 }
 0x269   : > { %v1388_v11 = vadd.f32 %v1387_v9, %v1085_v3  ;;  %v1277_v13 = vadd.f32 %v1276_v10, %v1085_v3  ;;  %v1389_v14 = vpop.f32.mrb[25].mxu1  ;;  %v1278_v15 = vpop.f32.mrb[26].mxu0  ;;  %1672 = vmatprep.subr.bf16.mxu0 %v1491_v5  ;;  %v4367_v10 = vld [vmem:[#allocation3] sm:$0xff]  }
 0x26a   : > { %v1390_v16 = vadd.f32 %v1389_v14, %v1085_v3  ;;  %v1279_v17 = vadd.f32 %v1278_v15, %v1090_v63  ;;  %v1391_v18 = vpop.f32.mrb[26].mxu1  ;;  %1785 = vmatprep.subr.bf16.mxu1 %v1493_v7  ;;  %v1280_v21 = vpop.f32.mrb[27].mxu0  ;;  %1673 = vmatpush1.bf16.msra.mxu0 %v1490_v1  ;;  %v1454_v26 = vmax.f32 %v1275_v8, 0.0  ;;  %v4378_v14 = vld [vmem:[%s5962_s5 + $0x18] sm:$0xff]   ;;  %v4379_v15 = vld [vmem:[%s5962_s5 + $0x20] sm:$0xff]  }
 0x26b   : > { %v1392_v22 = vadd.f32 %v1391_v18, %v1090_v63  ;;  %v1281_v23 = vadd.f32 %v1280_v21, %v1090_v63  ;;  %v1393_v25 = vpop.f32.mrb[27].mxu1  ;;  %1786 = vmatpush1.bf16.msra.mxu1 %v1492_v4  ;;  %v1456_v30 = vmax.f32 %v1388_v11, 0.0  ;;  %v1455_v31 = vmax.f32 %v1277_v13, 0.0  ;;  %v4368_v11 = vld [vmem:[#allocation3 + $0x8] sm:$0xff]   ;;  %v4377_v13 = vld [vmem:[%s5962_s5 + $0x10] sm:$0xff]   ;;  %v4382_v18 = vld [vmem:[%s5962_s5 + $0x38] sm:$0xff]   ;;  %v1542_v21 = vpop.permute.xlu1 %1541 }
 0x26c   : > { %v1458_v27 = vmax.f32 %v1279_v17, 0.0  ;;  %v1394_v29 = vadd.f32 %v1393_v25, %v1090_v63  ;;  %v1457_v37 = vmax.f32 %v1390_v16, 0.0  ;;  %v4380_v16 = vld [vmem:[%s5962_s5 + $0x28] sm:$0xff]   ;;  %v4381_v17 = vld [vmem:[%s5962_s5 + $0x30] sm:$0xff]  }
 0x26d   : > { %v1460_v34 = vmax.f32 %v1392_v22, 0.0  ;;  %v1459_v35 = vmax.f32 %v1281_v23, 0.0  ;;  %v1537_v22 = vpop.permute.xlu0 %1536 }
 0x26e   : > { %v1494_v39 = vpack.c.bf16 %v1458_v27, %v1454_v26  ;;  %v1461_v41 = vmax.f32 %v1394_v29, 0.0 }
 0x26f   : > { %v1496_v43 = vpack.c.bf16 %v1460_v34, %v1456_v30  ;;  %v1495_v44 = vpack.c.bf16 %v1459_v35, %v1455_v31  ;;  %v1284_v45 = vpop.f32.mrb[28].mxu0  ;;  %v1928_v23 = vpop.permute.xlu1 %1927 }
 0x270   : > { %v1497_v46 = vpack.c.bf16 %v1461_v41, %v1457_v37  ;;  %v1285_v47 = vadd.f32 %v1284_v45, %v1095_v42  ;;  %v1397_v48 = vpop.f32.mrb[28].mxu1  ;;  %v1286_v49 = vpop.f32.mrb[29].mxu0 }
 0x271   : > { %v1398_v50 = vadd.f32 %v1397_v48, %v1095_v42  ;;  %v1287_v51 = vadd.f32 %v1286_v49, %v1095_v42  ;;  %v1399_v52 = vpop.f32.mrb[29].mxu1  ;;  %v1288_v53 = vpop.f32.mrb[30].mxu0  ;;  %1674 = vmatprep.subr.bf16.mxu0 %v1495_v44 }
 0x272   : > { %v1400_v54 = vadd.f32 %v1399_v52, %v1095_v42  ;;  %v1289_v55 = vadd.f32 %v1288_v53, %v1100_v36  ;;  %v1401_v56 = vpop.f32.mrb[30].mxu1  ;;  %1787 = vmatprep.subr.bf16.mxu1 %v1497_v46  ;;  %v1290_v57 = vpop.f32.mrb[31].mxu0  ;;  %1675 = vmatpush1.bf16.msra.mxu0 %v1494_v39  ;;  %v1462_v61 = vmax.f32 %v1285_v47, 0.0  ;;  %v3925_v47 = vadd.f32 %v1928_v23, %v1542_v21 }
 0x273   : > { %v1402_v58 = vadd.f32 %v1401_v56, %v1100_v36  ;;  %v1291_v59 = vadd.f32 %v1290_v57, %v1100_v36  ;;  %v1403_v60 = vpop.f32.mrb[31].mxu1  ;;  %1788 = vmatpush1.bf16.msra.mxu1 %v1496_v43  ;;  %v1464_v0 = vmax.f32 %v1398_v50, 0.0  ;;  %v1463_v1 = vmax.f32 %v1287_v51, 0.0  ;;  %v1923_v25 = vpop.permute.xlu0 %1922 }
 0x274   : > { %v1466_v62 = vmax.f32 %v1289_v55, 0.0  ;;  %v1404_v63 = vadd.f32 %v1403_v60, %v1100_v36  ;;  %v1465_v4 = vmax.f32 %v1400_v54, 0.0  ;;  %v1552_v26 = vpop.permute.xlu1 %1551  ;;  %v3921_v43 = vadd.f32 %v1923_v25, %v1537_v22 }
 0x275   : > { %v1468_v2 = vmax.f32 %v1402_v58, 0.0  ;;  %v1467_v3 = vmax.f32 %v1291_v59, 0.0 }
 0x276   : > { %v1498_v5 = vpack.c.bf16 %v1466_v62, %v1462_v61  ;;  %v1469_v6 = vmax.f32 %v1404_v63, 0.0 }
 0x277   : > { %v1500_v7 = vpack.c.bf16 %v1468_v2, %v1464_v0  ;;  %v1499_v8 = vpack.c.bf16 %v1467_v3, %v1463_v1  ;;  %v1547_v27 = vpop.permute.xlu0 %1546 }
 0x278   : > { %v1501_v9 = vpack.c.bf16 %v1469_v6, %v1465_v4  ;;  %v1938_v29 = vpop.permute.xlu1 %1937 }
 0x279   : > { %1676 = vmatprep.subr.bf16.mxu0 %v1499_v8 }
 0x27a   : > { %1789 = vmatprep.subr.bf16.mxu1 %v1501_v9  ;;  %1677 = vmatpush1.bf16.msra.mxu0 %v1498_v5 }
 0x27b   : > { %1790 = vmatpush1.bf16.msra.mxu1 %v1500_v7  ;;  %2064 = vmatprep.subr.bf16.mxu0 %v5219_v19  ;;  %v4369_v19 = vld [vmem:[#allocation3 + $0x10] sm:$0xff]   ;;  %v1933_v30 = vpop.permute.xlu0 %1932 }
 0x27c   : > { %2177 = vmatprep.subr.bf16.mxu1 %v5221_v20  ;;  %v4370_v20 = vld [vmem:[#allocation3 + $0x18] sm:$0xff]   ;;  %v5585_v31 = vpop.permute.xlu1 %1561  ;;  %v3929_v5 = vadd.f32 %v1933_v30, %v1547_v27 }
 0x27d   : > { %1695 = vmatmul.mubr.bf16.vlgmr.msra.gmra.mrb[32].mxu0 %v4367_v10 }
 0x27e   : > { %1808 = vmatmul.mubr.bf16.vlgmr.msra.gmra.mrb[32].mxu1 %v4367_v10  ;;  %2065 = vmatpush1.bf16.msra.mxu0 %v5226_v24  ;;  %v4371_v24 = vld [vmem:[#allocation3 + $0x20] sm:$0xff]  }
 0x27f   : > { %2178 = vmatpush1.bf16.msra.mxu1 %v5237_v28  ;;  %1704 = vmatprep.mubr.bf16.mxu0 %v4761_v12  ;;  %v4372_v28 = vld [vmem:[#allocation3 + $0x28] sm:$0xff]   ;;  %v5587_v34 = vpop.permute.xlu0 %1556 }
 0x280   : > { %1817 = vmatprep.mubr.bf16.mxu1 %v4761_v12  ;;  %3871 = vmatprep.subr.msk.bf16.mxu0 %vm1167_vm0, %v5243_v32  ;;  %v4373_v32 = vld [vmem:[#allocation3 + $0x30] sm:$0xff]   ;;  %v5589_v35 = vpop.permute.xlu1 %1947 }
 0x281   : > { %3880 = vmatprep.subr.msk.bf16.mxu1 %vm1167_vm0, %v5245_v33  ;;  %v4374_v33 = vld [vmem:[#allocation3 + $0x38] sm:$0xff]  }
 0x282   : > { %2067 = vmatpush1.bf16.msra.mxu0 %v5257_v38  ;;  %v4375_v38 = vld [vmem:[%s5961_s29] sm:$0xff]  }
 0x283   : > { %2180 = vmatpush1.bf16.msra.mxu1 %v5263_v40  ;;  %v4376_v40 = vld [vmem:[%s5962_s5 + $0x8] sm:$0xff]   ;;  %v5591_v36 = vpop.permute.xlu0 %1942 }
 0x284   : > { %v5593_v37 = vpop.permute.xlu1 %1571 }
 0x285   : > { %1705 = vmatmul.mubr.bf16.gmra.mrb[36].mxu0 %v4368_v11 }
 0x286   : > { %1818 = vmatmul.mubr.bf16.gmra.mrb[36].mxu1 %v4368_v11  ;;  %1714 = vmatprep.mubr.bf16.mxu0 %v4761_v12 }
 0x287   : > { %1827 = vmatprep.mubr.bf16.mxu1 %v4761_v12  ;;  %v5595_v39 = vpop.permute.xlu0 %1566 }
 0x288   : > { %v5597_v41 = vpop.permute.xlu1 %1957 }
 0x28b   : > { %v5599_v42 = vpop.permute.xlu0 %1952 }
 0x28c   : > { %v5601_v44 = vpop.permute.xlu1 %1581 }
 0x28d   : > { %1715 = vmatmul.mubr.bf16.gmra.mrb[40].mxu0 %v4369_v19 }
 0x28e   : > { %1828 = vmatmul.mubr.bf16.gmra.mrb[40].mxu1 %v4369_v19  ;;  %1724 = vmatprep.mubr.bf16.mxu0 %v4761_v12 }
 0x28f   : > { %1837 = vmatprep.mubr.bf16.mxu1 %v4761_v12  ;;  %v5603_v45 = vpop.permute.xlu0 %1576 }
 0x290   : > { %v5605_v6 = vpop.permute.xlu1 %1967 }
 0x293   : > { %v5609_v10 = vpop.permute.xlu0 %1962 }
 0x295   : > { %1725 = vmatmul.mubr.bf16.gmra.mrb[44].mxu0 %v4370_v20 }
 0x296   : > { %1838 = vmatmul.mubr.bf16.gmra.mrb[44].mxu1 %v4370_v20  ;;  %1734 = vmatprep.mubr.bf16.mxu0 %v4761_v12 }
 0x297   : > { %1847 = vmatprep.mubr.bf16.mxu1 %v4761_v12 }
 0x29d   : > { %1735 = vmatmul.mubr.bf16.gmra.mrb[48].mxu0 %v4371_v24 }
 0x29e   : > { %1848 = vmatmul.mubr.bf16.gmra.mrb[48].mxu1 %v4371_v24  ;;  %1744 = vmatprep.mubr.bf16.mxu0 %v4761_v12  ;;  %v3933_v24 = vadd.f32 %v1938_v29, %v1552_v26 }
 0x29f   : > { %1857 = vmatprep.mubr.bf16.mxu1 %v4761_v12 }
 0x2a5   : > { %1745 = vmatmul.mubr.bf16.gmra.mrb[52].mxu0 %v4372_v28 }
 0x2a6   : > { %1858 = vmatmul.mubr.bf16.gmra.mrb[52].mxu1 %v4372_v28  ;;  %1754 = vmatprep.mubr.bf16.mxu0 %v4761_v12 }
 0x2a7   : > { %1867 = vmatprep.mubr.bf16.mxu1 %v4761_v12 }
 0x2ad   : > { %1755 = vmatmul.mubr.bf16.gmra.mrb[56].mxu0 %v4373_v32 }
 0x2ae   : > { %1868 = vmatmul.mubr.bf16.gmra.mrb[56].mxu1 %v4373_v32  ;;  %1764 = vmatprep.mubr.bf16.mxu0 %v4761_v12 }
 0x2af   : > { %1877 = vmatprep.mubr.bf16.mxu1 %v4761_v12 }
 0x2b5   : > { %1765 = vmatmul.mubr.bf16.gmra.mrb[60].mxu0 %v4374_v33 }
 0x2b6   : > { %1878 = vmatmul.mubr.bf16.gmra.mrb[60].mxu1 %v4374_v33  ;;  %2096 = vmatprep.mubr.bf16.mxu0 %v4761_v12 }
 0x2b7   : > { %2209 = vmatprep.mubr.bf16.mxu1 %v4761_v12 }
 0x2bd   : > { %3872 = vmatmul.mubr.msk.bf16.vlgmr.msra.gmra.mrb[32].mxu0 %vm1142_vm1, %v4375_v38 }
 0x2be   : > { %3881 = vmatmul.mubr.msk.bf16.vlgmr.msra.gmra.mrb[32].mxu1 %vm1142_vm1, %v4375_v38  ;;  %2106 = vmatprep.mubr.bf16.mxu0 %v4761_v12 }
 0x2bf   : > { %2219 = vmatprep.mubr.bf16.mxu1 %v4761_v12 }
 0x2c5   : > { %3873 = vmatmul.mubr.msk.bf16.gmra.mrb[36].mxu0 %vm1142_vm1, %v4376_v40 }
 0x2c6   : > { %3882 = vmatmul.mubr.msk.bf16.gmra.mrb[36].mxu1 %vm1142_vm1, %v4376_v40  ;;  %2116 = vmatprep.mubr.bf16.mxu0 %v4761_v12 }
 0x2c7   : > { %2229 = vmatprep.mubr.bf16.mxu1 %v4761_v12 }
 0x2cd   : > { %3874 = vmatmul.mubr.msk.bf16.gmra.mrb[40].mxu0 %vm1142_vm1, %v4377_v13 }
 0x2ce   : > { %3883 = vmatmul.mubr.msk.bf16.gmra.mrb[40].mxu1 %vm1142_vm1, %v4377_v13  ;;  %2126 = vmatprep.mubr.bf16.mxu0 %v4761_v12 }
 0x2cf   : > { %2239 = vmatprep.mubr.bf16.mxu1 %v4761_v12 }
 0x2d5   : > { %3875 = vmatmul.mubr.msk.bf16.gmra.mrb[44].mxu0 %vm1142_vm1, %v4378_v14 }
 0x2d6   : > { %3884 = vmatmul.mubr.msk.bf16.gmra.mrb[44].mxu1 %vm1142_vm1, %v4378_v14  ;;  %2136 = vmatprep.mubr.bf16.mxu0 %v4761_v12 }
 0x2d7   : > { %2249 = vmatprep.mubr.bf16.mxu1 %v4761_v12 }
 0x2dd   : > { %3876 = vmatmul.mubr.msk.bf16.gmra.mrb[48].mxu0 %vm1142_vm1, %v4379_v15 }
 0x2de   : > { %3885 = vmatmul.mubr.msk.bf16.gmra.mrb[48].mxu1 %vm1142_vm1, %v4379_v15  ;;  %2146 = vmatprep.mubr.bf16.mxu0 %v4761_v12 }
 0x2df   : > { %2259 = vmatprep.mubr.bf16.mxu1 %v4761_v12 }
 0x2e5   : > { %3877 = vmatmul.mubr.msk.bf16.gmra.mrb[52].mxu0 %vm1142_vm1, %v4380_v16 }
 0x2e6   : > { %3886 = vmatmul.mubr.msk.bf16.gmra.mrb[52].mxu1 %vm1142_vm1, %v4380_v16  ;;  %2156 = vmatprep.mubr.bf16.mxu0 %v4761_v12 }
 0x2e7   : > { %2269 = vmatprep.mubr.bf16.mxu1 %v4761_v12 }
 0x2ed   : > { %3878 = vmatmul.mubr.msk.bf16.gmra.mrb[56].mxu0 %vm1142_vm1, %v4381_v17 }
 0x2ee   : > { %3887 = vmatmul.mubr.msk.bf16.gmra.mrb[56].mxu1 %vm1142_vm1, %v4381_v17  ;;  %2166 = vmatprep.mubr.bf16.mxu0 %v4761_v12 }
 0x2ef   : > { %2279 = vmatprep.mubr.bf16.mxu1 %v4761_v12 }
 0x2f5   : > { %3879 = vmatmul.mubr.msk.bf16.gmra.mrb[60].mxu0 %vm1142_vm1, %v4382_v18 }
 0x2f6   : > { %3888 = vmatmul.mubr.msk.bf16.gmra.mrb[60].mxu1 %vm1142_vm1, %v4382_v18  ;;  %2522 = vmatprep.mubr.bf16.mxu0 %v4761_v12 }
 0x2f7   : > { %2575 = vmatprep.mubr.bf16.mxu1 %v4761_v12 }
 0x390   : > { %v2098_v46 = vpop.f32.mrb[32].mxu0 }
 0x391   : > { %v3922_v48 = vadd.f32 %v3921_v43, %v2098_v46  ;;  %v2211_v49 = vpop.f32.mrb[32].mxu1  ;;  %v2100_v50 = vpop.f32.mrb[33].mxu0 }
 0x392   : > { %v3986_v51 = vadd.f32 %v3921_v43, %v2211_v49  ;;  %v3924_v52 = vadd.f32 %v3921_v43, %v2100_v50  ;;  %v2213_v53 = vpop.f32.mrb[33].mxu1  ;;  %v2102_v54 = vpop.f32.mrb[34].mxu0 }
 0x393   : > { %v3988_v55 = vadd.f32 %v3921_v43, %v2213_v53  ;;  %v3926_v56 = vadd.f32 %v3925_v47, %v2102_v54  ;;  %v2215_v57 = vpop.f32.mrb[34].mxu1  ;;  %v2104_v58 = vpop.f32.mrb[35].mxu0  ;;  %v2354_v62 = vmax.f32 %v3922_v48, 0.0  ;;  %v3937_v48 = vadd.f32 %v5591_v36, %v5587_v34 }
 0x394   : > { %v3990_v59 = vadd.f32 %v3925_v47, %v2215_v57  ;;  %v3928_v60 = vadd.f32 %v3925_v47, %v2104_v58  ;;  %v2217_v61 = vpop.f32.mrb[35].mxu1  ;;  %v2356_v1 = vmax.f32 %v3986_v51, 0.0  ;;  %v2355_v2 = vmax.f32 %v3924_v52, 0.0  ;;  %v5623_v49 = vpop.permute.xlu1 %1591 }
 0x395   : > { %v2358_v63 = vmax.f32 %v3926_v56, 0.0  ;;  %v3992_v0 = vadd.f32 %v3925_v47, %v2217_v61  ;;  %v2357_v7 = vmax.f32 %v3988_v55, 0.0  ;;  %v5627_v53 = vpop.permute.xlu0 %1586  ;;  %v3941_v57 = vadd.f32 %v5589_v35, %v5585_v31 }
 0x396   : > { %v2360_v3 = vmax.f32 %v3990_v59, 0.0  ;;  %v2359_v4 = vmax.f32 %v3928_v60, 0.0 }
 0x397   : > { %v5607_v8 = vpack.c.bf16 %v2358_v63, %v2354_v62  ;;  %v2361_v9 = vmax.f32 %v3992_v0, 0.0 }
 0x398   : > { %v5611_v11 = vpack.c.bf16 %v2360_v3, %v2356_v1  ;;  %v5613_v19 = vpack.c.bf16 %v2359_v4, %v2355_v2  ;;  %v2108_v20 = vpop.f32.mrb[36].mxu0 }
 0x399   : > { %v5615_v28 = vpack.c.bf16 %v2361_v9, %v2357_v7  ;;  %v3930_v32 = vadd.f32 %v3929_v5, %v2108_v20  ;;  %v2221_v33 = vpop.f32.mrb[36].mxu1  ;;  %v2110_v38 = vpop.f32.mrb[37].mxu0 }
 0x39a   : > { %v3994_v40 = vadd.f32 %v3929_v5, %v2221_v33  ;;  %v3932_v13 = vadd.f32 %v3929_v5, %v2110_v38  ;;  %v2223_v14 = vpop.f32.mrb[37].mxu1  ;;  %v2112_v15 = vpop.f32.mrb[38].mxu0  ;;  %2490 = vmatprep.subr.bf16.mxu0 %v5613_v19  ;;  %v3945_v38 = vadd.f32 %v5599_v42, %v5595_v39 }
 0x39b   : > { %v3996_v16 = vadd.f32 %v3929_v5, %v2223_v14  ;;  %v3934_v17 = vadd.f32 %v3933_v24, %v2112_v15  ;;  %v2225_v18 = vpop.f32.mrb[38].mxu1  ;;  %2543 = vmatprep.subr.bf16.mxu1 %v5615_v28  ;;  %v2114_v21 = vpop.f32.mrb[39].mxu0  ;;  %2491 = vmatpush1.bf16.msra.mxu0 %v5607_v8  ;;  %v2362_v26 = vmax.f32 %v3930_v32, 0.0 }
 0x39c   : > { %v3998_v22 = vadd.f32 %v3933_v24, %v2225_v18  ;;  %v3936_v23 = vadd.f32 %v3933_v24, %v2114_v21  ;;  %v2227_v25 = vpop.f32.mrb[39].mxu1  ;;  %2544 = vmatpush1.bf16.msra.mxu1 %v5611_v11  ;;  %v2364_v30 = vmax.f32 %v3994_v40, 0.0  ;;  %v2363_v43 = vmax.f32 %v3932_v13, 0.0  ;;  %v5643_v40 = vpop.permute.xlu1 %1977 }
 0x39d   : > { %v2366_v27 = vmax.f32 %v3934_v17, 0.0  ;;  %v4000_v29 = vadd.f32 %v3933_v24, %v2227_v25  ;;  %v2365_v50 = vmax.f32 %v3996_v16, 0.0  ;;  %v5647_v16 = vpop.permute.xlu0 %1972 }
 0x39e   : > { %v2368_v46 = vmax.f32 %v3998_v22, 0.0  ;;  %v2367_v47 = vmax.f32 %v3936_v23, 0.0  ;;  %v3949_v22 = vadd.f32 %v5597_v41, %v5593_v37 }
 0x39f   : > { %v5625_v51 = vpack.c.bf16 %v2366_v27, %v2362_v26  ;;  %v2369_v52 = vmax.f32 %v4000_v29, 0.0 }
 0x3a0   : > { %v5629_v54 = vpack.c.bf16 %v2368_v46, %v2364_v30  ;;  %v5631_v55 = vpack.c.bf16 %v2367_v47, %v2363_v43  ;;  %v2118_v56 = vpop.f32.mrb[40].mxu0 }
 0x3a1   : > { %v5635_v58 = vpack.c.bf16 %v2369_v52, %v2365_v50  ;;  %v3938_v59 = vadd.f32 %v3937_v48, %v2118_v56  ;;  %v2231_v34 = vpop.f32.mrb[40].mxu1  ;;  %v2120_v36 = vpop.f32.mrb[41].mxu0 }
 0x3a2   : > { %v4002_v60 = vadd.f32 %v3937_v48, %v2231_v34  ;;  %v3940_v61 = vadd.f32 %v3937_v48, %v2120_v36  ;;  %v2233_v62 = vpop.f32.mrb[41].mxu1  ;;  %v2122_v63 = vpop.f32.mrb[42].mxu0  ;;  %2492 = vmatprep.subr.bf16.mxu0 %v5631_v55 }
 0x3a3   : > { %v4004_v0 = vadd.f32 %v3937_v48, %v2233_v62  ;;  %v3942_v1 = vadd.f32 %v3941_v57, %v2122_v63  ;;  %v2235_v2 = vpop.f32.mrb[42].mxu1  ;;  %2545 = vmatprep.subr.bf16.mxu1 %v5635_v58  ;;  %v2124_v3 = vpop.f32.mrb[43].mxu0  ;;  %2493 = vmatpush1.bf16.msra.mxu0 %v5625_v51  ;;  %v2370_v5 = vmax.f32 %v3938_v59, 0.0 }
 0x3a4   : > { %v4006_v31 = vadd.f32 %v3941_v57, %v2235_v2  ;;  %v3944_v35 = vadd.f32 %v3941_v57, %v2124_v3  ;;  %v2237_v4 = vpop.f32.mrb[43].mxu1  ;;  %2546 = vmatpush1.bf16.msra.mxu1 %v5629_v54  ;;  %v2372_v20 = vmax.f32 %v4002_v60, 0.0  ;;  %v2371_v24 = vmax.f32 %v3940_v61, 0.0  ;;  %v5663_v62 = vpop.permute.xlu1 %1601 }
 0x3a5   : > { %v2374_v7 = vmax.f32 %v3942_v1, 0.0  ;;  %v4008_v9 = vadd.f32 %v3941_v57, %v2237_v4  ;;  %v2373_v13 = vmax.f32 %v4004_v0, 0.0  ;;  %v3953_v61 = vadd.f32 %v5609_v10, %v5603_v45  ;;  %v5667_v2 = vpop.permute.xlu0 %1596 }
 0x3a6   : > { %v2376_v32 = vmax.f32 %v4006_v31, 0.0  ;;  %v2375_v33 = vmax.f32 %v3944_v35, 0.0  ;;  %v3957_v4 = vadd.f32 %v5605_v6, %v5601_v44 }
 0x3a7   : > { %v5645_v14 = vpack.c.bf16 %v2374_v7, %v2370_v5  ;;  %v2377_v15 = vmax.f32 %v4008_v9, 0.0 }
 0x3a8   : > { %v5649_v17 = vpack.c.bf16 %v2376_v32, %v2372_v20  ;;  %v5651_v18 = vpack.c.bf16 %v2375_v33, %v2371_v24  ;;  %v2128_v21 = vpop.f32.mrb[44].mxu0 }
 0x3a9   : > { %v5655_v23 = vpack.c.bf16 %v2377_v15, %v2373_v13  ;;  %v3946_v25 = vadd.f32 %v3945_v38, %v2128_v21  ;;  %v2241_v39 = vpop.f32.mrb[44].mxu1  ;;  %v2130_v42 = vpop.f32.mrb[45].mxu0 }
 0x3aa   : > { %v4010_v26 = vadd.f32 %v3945_v38, %v2241_v39  ;;  %v3948_v27 = vadd.f32 %v3945_v38, %v2130_v42  ;;  %v2243_v29 = vpop.f32.mrb[45].mxu1  ;;  %v2132_v30 = vpop.f32.mrb[46].mxu0  ;;  %2494 = vmatprep.subr.bf16.mxu0 %v5651_v18 }
 0x3ab   : > { %v4012_v43 = vadd.f32 %v3945_v38, %v2243_v29  ;;  %v3950_v46 = vadd.f32 %v3949_v22, %v2132_v30  ;;  %v2245_v47 = vpop.f32.mrb[46].mxu1  ;;  %2547 = vmatprep.subr.bf16.mxu1 %v5655_v23  ;;  %v2134_v48 = vpop.f32.mrb[47].mxu0  ;;  %2495 = vmatpush1.bf16.msra.mxu0 %v5645_v14  ;;  %v2378_v52 = vmax.f32 %v3946_v25, 0.0  ;;  %v3961_v30 = vadd.f32 %v5647_v16, %v5627_v53 }
 0x3ac   : > { %v4014_v37 = vadd.f32 %v3949_v22, %v2245_v47  ;;  %v3952_v41 = vadd.f32 %v3949_v22, %v2134_v48  ;;  %v2247_v50 = vpop.f32.mrb[47].mxu1  ;;  %2548 = vmatpush1.bf16.msra.mxu1 %v5649_v17  ;;  %v2380_v59 = vmax.f32 %v4010_v26, 0.0  ;;  %v2379_v34 = vmax.f32 %v3948_v27, 0.0 }
 0x3ad   : > { %v2382_v56 = vmax.f32 %v3950_v46, 0.0  ;;  %v4016_v57 = vadd.f32 %v3949_v22, %v2247_v50  ;;  %v2381_v63 = vmax.f32 %v4012_v43, 0.0  ;;  %v1988_v43 = vpop.permute.xlu1 %1987 }
 0x3ae   : > { %v2384_v36 = vmax.f32 %v4014_v37, 0.0  ;;  %v2383_v60 = vmax.f32 %v3952_v41, 0.0  ;;  %v1983_v37 = vpop.permute.xlu0 %1982 }
 0x3af   : > { %v5665_v0 = vpack.c.bf16 %v2382_v56, %v2378_v52  ;;  %v2385_v1 = vmax.f32 %v4016_v57, 0.0  ;;  %v3965_v56 = vadd.f32 %v5643_v40, %v5623_v49 }
 0x3b0   : > { %v5669_v3 = vpack.c.bf16 %v2384_v36, %v2380_v59  ;;  %v5671_v31 = vpack.c.bf16 %v2383_v60, %v2379_v34  ;;  %v2138_v35 = vpop.f32.mrb[48].mxu0 }
 0x3b1   : > { %v5675_v5 = vpack.c.bf16 %v2385_v1, %v2381_v63  ;;  %v3954_v7 = vadd.f32 %v3953_v61, %v2138_v35  ;;  %v2251_v45 = vpop.f32.mrb[48].mxu1  ;;  %v2140_v10 = vpop.f32.mrb[49].mxu0 }
 0x3b2   : > { %v4018_v9 = vadd.f32 %v3953_v61, %v2251_v45  ;;  %v3956_v20 = vadd.f32 %v3953_v61, %v2140_v10  ;;  %v2253_v24 = vpop.f32.mrb[49].mxu1  ;;  %v2142_v32 = vpop.f32.mrb[50].mxu0  ;;  %2496 = vmatprep.subr.bf16.mxu0 %v5671_v31 }
 0x3b3   : > { %v4020_v33 = vadd.f32 %v3953_v61, %v2253_v24  ;;  %v3958_v38 = vadd.f32 %v3957_v4, %v2142_v32  ;;  %v2255_v13 = vpop.f32.mrb[50].mxu1  ;;  %2549 = vmatprep.subr.bf16.mxu1 %v5675_v5  ;;  %v2144_v15 = vpop.f32.mrb[51].mxu0  ;;  %2497 = vmatpush1.bf16.msra.mxu0 %v5665_v0  ;;  %v2386_v22 = vmax.f32 %v3954_v7, 0.0 }
 0x3b4   : > { %v4022_v44 = vadd.f32 %v3957_v4, %v2255_v13  ;;  %v3960_v6 = vadd.f32 %v3957_v4, %v2144_v15  ;;  %v2257_v21 = vpop.f32.mrb[51].mxu1  ;;  %2550 = vmatpush1.bf16.msra.mxu1 %v5669_v3  ;;  %v2388_v42 = vmax.f32 %v4018_v9, 0.0  ;;  %v2387_v26 = vmax.f32 %v3956_v20, 0.0  ;;  %v1612_v13 = vpop.permute.xlu1 %1611 }
 0x3b5   : > { %v2390_v25 = vmax.f32 %v3958_v38, 0.0  ;;  %v4024_v39 = vadd.f32 %v3957_v4, %v2257_v21  ;;  %v2389_v46 = vmax.f32 %v4020_v33, 0.0  ;;  %v3969_v38 = vadd.f32 %v1983_v37, %v5667_v2  ;;  %v1607_v21 = vpop.permute.xlu0 %1606 }
 0x3b6   : > { %v2392_v27 = vmax.f32 %v4022_v44, 0.0  ;;  %v2391_v29 = vmax.f32 %v3960_v6, 0.0 }
 0x3b7   : > { %v5683_v47 = vpack.c.bf16 %v2390_v25, %v2386_v22  ;;  %v2393_v48 = vmax.f32 %v4024_v39, 0.0 }
 0x3b8   : > { %v5685_v41 = vpack.c.bf16 %v2392_v27, %v2388_v42  ;;  %v5687_v50 = vpack.c.bf16 %v2391_v29, %v2387_v26  ;;  %v2148_v52 = vpop.f32.mrb[52].mxu0  ;;  %v3973_v42 = vadd.f32 %v1988_v43, %v5663_v62 }
 0x3b9   : > { %v5691_v57 = vpack.c.bf16 %v2393_v48, %v2389_v46  ;;  %v3962_v59 = vadd.f32 %v3961_v30, %v2148_v52  ;;  %v2261_v34 = vpop.f32.mrb[52].mxu1  ;;  %v2150_v36 = vpop.f32.mrb[53].mxu0 }
 0x3ba   : > { %v4026_v53 = vadd.f32 %v3961_v30, %v2261_v34  ;;  %v3964_v16 = vadd.f32 %v3961_v30, %v2150_v36  ;;  %v2263_v60 = vpop.f32.mrb[53].mxu1  ;;  %v2152_v61 = vpop.f32.mrb[54].mxu0  ;;  %2498 = vmatprep.subr.bf16.mxu0 %v5687_v50 }
 0x3bb   : > { %v4028_v63 = vadd.f32 %v3961_v30, %v2263_v60  ;;  %v3966_v1 = vadd.f32 %v3965_v56, %v2152_v61  ;;  %v2265_v35 = vpop.f32.mrb[54].mxu1  ;;  %2551 = vmatprep.subr.bf16.mxu1 %v5691_v57  ;;  %v2154_v4 = vpop.f32.mrb[55].mxu0  ;;  %2499 = vmatpush1.bf16.msra.mxu0 %v5683_v47  ;;  %v2394_v45 = vmax.f32 %v3962_v59, 0.0 }
 0x3bc   : > { %v4030_v49 = vadd.f32 %v3965_v56, %v2265_v35  ;;  %v3968_v40 = vadd.f32 %v3965_v56, %v2154_v4  ;;  %v2267_v7 = vpop.f32.mrb[55].mxu1  ;;  %2552 = vmatpush1.bf16.msra.mxu1 %v5685_v41  ;;  %v2396_v20 = vmax.f32 %v4026_v53, 0.0  ;;  %v2395_v24 = vmax.f32 %v3964_v16, 0.0  ;;  %v1993_v61 = vpop.permute.xlu0 %1992 }
 0x3bd   : > { %v2398_v10 = vmax.f32 %v3966_v1, 0.0  ;;  %v4032_v9 = vadd.f32 %v3965_v56, %v2267_v7  ;;  %v2397_v15 = vmax.f32 %v4028_v63, 0.0 }
 0x3be   : > { %v2400_v32 = vmax.f32 %v4030_v49, 0.0  ;;  %v2399_v33 = vmax.f32 %v3968_v40, 0.0  ;;  %v3977_v49 = vadd.f32 %v1993_v61, %v1607_v21 }
 0x3bf   : > { %v5698_v44 = vpack.c.bf16 %v2398_v10, %v2394_v45  ;;  %v2401_v6 = vmax.f32 %v4032_v9, 0.0  ;;  %v1998_v10 = vpop.permute.xlu1 %1997 }
 0x3c0   : > { %v5700_v22 = vpack.c.bf16 %v2400_v32, %v2396_v20  ;;  %v5702_v25 = vpack.c.bf16 %v2399_v33, %v2395_v24  ;;  %v2158_v39 = vpop.f32.mrb[56].mxu0  ;;  %v3981_v32 = vadd.f32 %v1998_v10, %v1612_v13 }
 0x3c1   : > { %v5705_v26 = vpack.c.bf16 %v2401_v6, %v2397_v15  ;;  %v3970_v27 = vadd.f32 %v3969_v38, %v2158_v39  ;;  %v2271_v29 = vpop.f32.mrb[56].mxu1  ;;  %v2160_v30 = vpop.f32.mrb[57].mxu0 }
 0x3c2   : > { %v4034_v46 = vadd.f32 %v3969_v38, %v2271_v29  ;;  %v3972_v2 = vadd.f32 %v3969_v38, %v2160_v30  ;;  %v2273_v48 = vpop.f32.mrb[57].mxu1  ;;  %v2162_v37 = vpop.f32.mrb[58].mxu0  ;;  %2500 = vmatprep.subr.bf16.mxu0 %v5702_v25 }
 0x3c3   : > { %v4036_v52 = vadd.f32 %v3969_v38, %v2273_v48  ;;  %v3974_v56 = vadd.f32 %v3973_v42, %v2162_v37  ;;  %v2275_v59 = vpop.f32.mrb[58].mxu1  ;;  %2553 = vmatprep.subr.bf16.mxu1 %v5705_v26  ;;  %v2164_v34 = vpop.f32.mrb[59].mxu0  ;;  %2501 = vmatpush1.bf16.msra.mxu0 %v5698_v44  ;;  %v2402_v53 = vmax.f32 %v3970_v27, 0.0 }
 0x3c4   : > { %v4038_v62 = vadd.f32 %v3973_v42, %v2275_v59  ;;  %v3976_v43 = vadd.f32 %v3973_v42, %v2164_v34  ;;  %v2277_v36 = vpop.f32.mrb[59].mxu1  ;;  %2554 = vmatpush1.bf16.msra.mxu1 %v5700_v22  ;;  %v2404_v63 = vmax.f32 %v4034_v46, 0.0  ;;  %v2403_v1 = vmax.f32 %v3972_v2, 0.0 }
 0x3c5   : > { %v2406_v16 = vmax.f32 %v3974_v56, 0.0  ;;  %v4040_v60 = vadd.f32 %v3973_v42, %v2277_v36  ;;  %v2405_v40 = vmax.f32 %v4036_v52, 0.0 }
 0x3c6   : > { %v2408_v35 = vmax.f32 %v4038_v62, 0.0  ;;  %v2407_v4 = vmax.f32 %v3976_v43, 0.0 }
 0x3c7   : > { %v5711_v7 = vpack.c.bf16 %v2406_v16, %v2402_v53  ;;  %v2409_v45 = vmax.f32 %v4040_v60, 0.0 }
 0x3c8   : > { %v5713_v9 = vpack.c.bf16 %v2408_v35, %v2404_v63  ;;  %v5715_v20 = vpack.c.bf16 %v2407_v4, %v2403_v1  ;;  %v2168_v24 = vpop.f32.mrb[60].mxu0  ;;  %v4383_v35 = vld [vmem:[#allocation5] sm:$0xff]   ;;  %v4384_v4 = vld [vmem:[#allocation5 + $0x8] sm:$0xff]  }
 0x3c9   : > { %v5717_v33 = vpack.c.bf16 %v2409_v45, %v2405_v40  ;;  %v3978_v38 = vadd.f32 %v3977_v49, %v2168_v24  ;;  %v2281_v15 = vpop.f32.mrb[60].mxu1  ;;  %v2170_v6 = vpop.f32.mrb[61].mxu0 }
 0x3ca   : > { %v4042_v39 = vadd.f32 %v3977_v49, %v2281_v15  ;;  %v3980_v42 = vadd.f32 %v3977_v49, %v2170_v6  ;;  %v2283_v27 = vpop.f32.mrb[61].mxu1  ;;  %v2172_v21 = vpop.f32.mrb[62].mxu0  ;;  %2502 = vmatprep.subr.bf16.mxu0 %v5715_v20 }
 0x3cb   : > { %v4044_v29 = vadd.f32 %v3977_v49, %v2283_v27  ;;  %v3982_v30 = vadd.f32 %v3981_v32, %v2172_v21  ;;  %v2285_v46 = vpop.f32.mrb[62].mxu1  ;;  %2555 = vmatprep.subr.bf16.mxu1 %v5717_v33  ;;  %v2174_v2 = vpop.f32.mrb[63].mxu0  ;;  %2503 = vmatpush1.bf16.msra.mxu0 %v5711_v7  ;;  %v2410_v52 = vmax.f32 %v3978_v38, 0.0 }
 0x3cc   : > { %v4046_v13 = vadd.f32 %v3981_v32, %v2285_v46  ;;  %v3984_v48 = vadd.f32 %v3981_v32, %v2174_v2  ;;  %v2287_v37 = vpop.f32.mrb[63].mxu1  ;;  %2556 = vmatpush1.bf16.msra.mxu1 %v5713_v9  ;;  %v2412_v34 = vmax.f32 %v4042_v39, 0.0  ;;  %v2411_v62 = vmax.f32 %v3980_v42, 0.0  ;;  %v2466_v49 = vpop.permute.xlu1 %2465 }
 0x3cd   : > { %v2414_v56 = vmax.f32 %v3982_v30, 0.0  ;;  %v4048_v59 = vadd.f32 %v3981_v32, %v2287_v37  ;;  %v2413_v53 = vmax.f32 %v4044_v29, 0.0  ;;  %v2461_v40 = vpop.permute.xlu0 %2460 }
 0x3ce   : > { %v2416_v43 = vmax.f32 %v4046_v13, 0.0  ;;  %v2415_v36 = vmax.f32 %v3984_v48, 0.0 }
 0x3cf   : > { %v5723_v16 = vpack.c.bf16 %v2414_v56, %v2410_v52  ;;  %v2417_v60 = vmax.f32 %v4048_v59, 0.0 }
 0x3d0   : > { %v5725_v61 = vpack.c.bf16 %v2416_v43, %v2412_v34  ;;  %v5727_v63 = vpack.c.bf16 %v2415_v36, %v2411_v62  ;;  %v2476_v62 = vpop.permute.xlu1 %2475 }
 0x3d1   : > { %v5729_v1 = vpack.c.bf16 %v2417_v60, %v2413_v53  ;;  %v2471_v60 = vpop.permute.xlu0 %2470 }
 0x3d2   : > { %2504 = vmatprep.subr.bf16.mxu0 %v5727_v63 }
 0x3d3   : > { %2557 = vmatprep.subr.bf16.mxu1 %v5729_v1  ;;  %2505 = vmatpush1.bf16.msra.mxu0 %v5723_v16 }
 0x3d4   : > { %2558 = vmatpush1.bf16.msra.mxu1 %v5725_v61 }
 0x3d6   : > { %2523 = vmatmul.mubr.bf16.vlgmr.msra.gmra.mrb[64].mxu0 %v4383_v35 }
 0x3d7   : > { %2576 = vmatmul.mubr.bf16.vlgmr.msra.gmra.mrb[64].mxu1 %v4383_v35  ;;  %2532 = vmatprep.mubr.bf16.mxu0 %v4761_v12 }
 0x3d8   : > { %2585 = vmatprep.mubr.bf16.mxu1 %v4761_v12 }
 0x3de   : > { %2533 = vmatmul.mubr.bf16.gmra.mrb[68].mxu0 %v4384_v4 }
 0x3df   : > { %2586 = vmatmul.mubr.bf16.gmra.mrb[68].mxu1 %v4384_v4  ;;  %2697 = vmatprep.mubr.bf16.mxu0 %v4761_v12 }
 0x3e0   : > { %2750 = vmatprep.mubr.bf16.mxu1 %v4761_v12 }
 0x4a9   : > { %v2524_v45 = vpop.f32.mrb[64].mxu0 }
 0x4aa   : > { %v2525_v10 = vadd.f32 %v2524_v45, %v2461_v40  ;;  %v2577_v24 = vpop.f32.mrb[64].mxu1  ;;  %v2526_v32 = vpop.f32.mrb[65].mxu0 }
 0x4ab   : > { %v2578_v38 = vadd.f32 %v2577_v24, %v2461_v40  ;;  %v2527_v15 = vadd.f32 %v2526_v32, %v2461_v40  ;;  %v2579_v6 = vpop.f32.mrb[65].mxu1  ;;  %v2528_v39 = vpop.f32.mrb[66].mxu0 }
 0x4ac   : > { %v2580_v42 = vadd.f32 %v2579_v6, %v2461_v40  ;;  %v2529_v27 = vadd.f32 %v2528_v39, %v2466_v49  ;;  %v2581_v21 = vpop.f32.mrb[66].mxu1  ;;  %v2530_v29 = vpop.f32.mrb[67].mxu0  ;;  %v2596_v13 = vmax.f32 %v2525_v10, 0.0 }
 0x4ad   : > { %v2582_v30 = vadd.f32 %v2581_v21, %v2466_v49  ;;  %v2531_v46 = vadd.f32 %v2530_v29, %v2466_v49  ;;  %v2583_v2 = vpop.f32.mrb[67].mxu1  ;;  %v2598_v52 = vmax.f32 %v2578_v38, 0.0  ;;  %v2597_v56 = vmax.f32 %v2527_v15, 0.0 }
 0x4ae   : > { %v2600_v48 = vmax.f32 %v2529_v27, 0.0  ;;  %v2584_v37 = vadd.f32 %v2583_v2, %v2466_v49  ;;  %v2599_v43 = vmax.f32 %v2580_v42, 0.0 }
 0x4af   : > { %v2602_v59 = vmax.f32 %v2582_v30, 0.0  ;;  %v2601_v34 = vmax.f32 %v2531_v46, 0.0 }
 0x4b0   : > { %v2612_v36 = vpack.c.bf16 %v2600_v48, %v2596_v13  ;;  %v2603_v53 = vmax.f32 %v2584_v37, 0.0 }
 0x4b1   : > { %v2614_v35 = vpack.c.bf16 %v2602_v59, %v2598_v52  ;;  %v2613_v4 = vpack.c.bf16 %v2601_v34, %v2597_v56  ;;  %v2534_v40 = vpop.f32.mrb[68].mxu0 }
 0x4b2   : > { %v2615_v45 = vpack.c.bf16 %v2603_v53, %v2599_v43  ;;  %v2535_v24 = vadd.f32 %v2534_v40, %v2471_v60  ;;  %v2587_v32 = vpop.f32.mrb[68].mxu1  ;;  %v2536_v6 = vpop.f32.mrb[69].mxu0 }
 0x4b3   : > { %v2588_v39 = vadd.f32 %v2587_v32, %v2471_v60  ;;  %v2537_v10 = vadd.f32 %v2536_v6, %v2471_v60  ;;  %v2589_v27 = vpop.f32.mrb[69].mxu1  ;;  %v2538_v49 = vpop.f32.mrb[70].mxu0  ;;  %2665 = vmatprep.subr.bf16.mxu0 %v2613_v4 }
 0x4b4   : > { %v2590_v38 = vadd.f32 %v2589_v27, %v2471_v60  ;;  %v2539_v15 = vadd.f32 %v2538_v49, %v2476_v62  ;;  %v2591_v21 = vpop.f32.mrb[70].mxu1  ;;  %2718 = vmatprep.subr.bf16.mxu1 %v2615_v45  ;;  %v2540_v42 = vpop.f32.mrb[71].mxu0  ;;  %2666 = vmatpush1.bf16.msra.mxu0 %v2612_v36  ;;  %v2604_v2 = vmax.f32 %v2535_v24, 0.0  ;;  %v4385_v45 = vld [vmem:[#allocation7] sm:$0xff]  }
 0x4b5   : > { %v2592_v29 = vadd.f32 %v2591_v21, %v2476_v62  ;;  %v2541_v30 = vadd.f32 %v2540_v42, %v2476_v62  ;;  %v2593_v46 = vpop.f32.mrb[71].mxu1  ;;  %2719 = vmatpush1.bf16.msra.mxu1 %v2614_v35  ;;  %v2606_v37 = vmax.f32 %v2588_v39, 0.0  ;;  %v2605_v52 = vmax.f32 %v2537_v10, 0.0 }
 0x4b6   : > { %v2608_v13 = vmax.f32 %v2539_v15, 0.0  ;;  %v2594_v48 = vadd.f32 %v2593_v46, %v2476_v62  ;;  %v2607_v34 = vmax.f32 %v2590_v38, 0.0  ;;  %v4386_v62 = vld [vmem:[#allocation7 + $0x8] sm:$0xff]  }
 0x4b7   : > { %v2610_v56 = vmax.f32 %v2592_v29, 0.0  ;;  %v2609_v59 = vmax.f32 %v2541_v30, 0.0 }
 0x4b8   : > { %v2616_v43 = vpack.c.bf16 %v2608_v13, %v2604_v2  ;;  %v2611_v53 = vmax.f32 %v2594_v48, 0.0 }
 0x4b9   : > { %v2618_v60 = vpack.c.bf16 %v2610_v56, %v2606_v37  ;;  %v2617_v4 = vpack.c.bf16 %v2609_v59, %v2605_v52 }
 0x4ba   : > { %v2619_v40 = vpack.c.bf16 %v2611_v53, %v2607_v34 }
 0x4bb   : > { %2667 = vmatprep.subr.bf16.mxu0 %v2617_v4 }
 0x4bc   : > { %2720 = vmatprep.subr.bf16.mxu1 %v2619_v40  ;;  %2668 = vmatpush1.bf16.msra.mxu0 %v2616_v43 }
 0x4bd   : > { %2721 = vmatpush1.bf16.msra.mxu1 %v2618_v60  ;;  %2811 = vmatprep.subr.bf16.mxu0 %v5613_v19  ;;  %v2636_v19 = vpop.permute.xlu1 %2635 }
 0x4be   : > { %2864 = vmatprep.subr.bf16.mxu1 %v5615_v28  ;;  %v2631_v28 = vpop.permute.xlu0 %2630 }
 0x4bf   : > { %3893 = vmatmul.mubr.msk.bf16.vlgmr.msra.gmra.mrb[72].mxu0 %vm2658_vm2, %v4385_v45 }
 0x4c0   : > { %3895 = vmatmul.mubr.msk.bf16.vlgmr.msra.gmra.mrb[72].mxu1 %vm2658_vm2, %v4385_v45  ;;  %2812 = vmatpush1.bf16.msra.mxu0 %v5607_v8  ;;  %v4387_v8 = vld [vmem:[#allocation8] sm:$0xff]  }
 0x4c1   : > { %2865 = vmatpush1.bf16.msra.mxu1 %v5611_v11  ;;  %2813 = vmatprep.subr.bf16.mxu0 %v5631_v55  ;;  %v4388_v11 = vld [vmem:[#allocation8 + $0x8] sm:$0xff]  }
 0x4c2   : > { %2866 = vmatprep.subr.bf16.mxu1 %v5635_v58  ;;  %2707 = vmatprep.mubr.bf16.mxu0 %v4761_v12 }
 0x4c3   : > { %2760 = vmatprep.mubr.bf16.mxu1 %v4761_v12 }
 0x4c4   : > { %2814 = vmatpush1.bf16.msra.mxu0 %v5625_v51  ;;  %v2787_v51 = vpop.permute.xlu1 %2786 }
 0x4c5   : > { %2867 = vmatpush1.bf16.msra.mxu1 %v5629_v54  ;;  %2815 = vmatprep.subr.bf16.mxu0 %v5651_v18  ;;  %v2782_v54 = vpop.permute.xlu0 %2781  ;;  %v4053_v18 = vadd.f32 %v2787_v51, %v2636_v19 }
 0x4c6   : > { %2868 = vmatprep.subr.bf16.mxu1 %v5655_v23  ;;  %v4049_v55 = vadd.f32 %v2782_v54, %v2631_v28 }
 0x4c7   : > { %3894 = vmatmul.mubr.msk.bf16.gmra.mrb[76].mxu0 %vm2658_vm2, %v4386_v62 }
 0x4c8   : > { %2816 = vmatpush1.bf16.msra.mxu0 %v5645_v14  ;;  %3896 = vmatmul.mubr.msk.bf16.gmra.mrb[76].mxu1 %vm2658_vm2, %v4386_v62  ;;  %v2646_v58 = vpop.permute.xlu1 %2645 }
 0x4c9   : > { %2869 = vmatpush1.bf16.msra.mxu1 %v5649_v17  ;;  %2817 = vmatprep.subr.bf16.mxu0 %v5671_v31  ;;  %v2641_v14 = vpop.permute.xlu0 %2640 }
 0x4ca   : > { %2870 = vmatprep.subr.bf16.mxu1 %v5675_v5  ;;  %2843 = vmatprep.mubr.bf16.mxu0 %v4761_v12 }
 0x4cb   : > { %2896 = vmatprep.mubr.bf16.mxu1 %v4761_v12 }
 0x4cc   : > { %2818 = vmatpush1.bf16.msra.mxu0 %v5665_v0  ;;  %v2797_v39 = vpop.permute.xlu1 %2796 }
 0x4cd   : > { %2871 = vmatpush1.bf16.msra.mxu1 %v5669_v3  ;;  %2819 = vmatprep.subr.bf16.mxu0 %v5687_v50  ;;  %v4061_v38 = vadd.f32 %v2797_v39, %v2646_v58  ;;  %v2957_v58 = vld [vmem:[#allocation10] sm:$0xf] }
 0x4ce   : > { %2872 = vmatprep.subr.bf16.mxu1 %v5691_v57 }
 0x4d0   : > { %2820 = vmatpush1.bf16.msra.mxu0 %v5683_v47 }
 0x4d1   : > { %2873 = vmatpush1.bf16.msra.mxu1 %v5685_v41  ;;  %2821 = vmatprep.subr.bf16.mxu0 %v5702_v25 }
 0x4d2   : > { %2874 = vmatprep.subr.bf16.mxu1 %v5705_v26 }
 0x4d4   : > { %2822 = vmatpush1.bf16.msra.mxu0 %v5698_v44 }
 0x4d5   : > { %2875 = vmatpush1.bf16.msra.mxu1 %v5700_v22  ;;  %2823 = vmatprep.subr.bf16.mxu0 %v5715_v20 }
 0x4d6   : > { %2876 = vmatprep.subr.bf16.mxu1 %v5717_v33 }
 0x4d8   : > { %2824 = vmatpush1.bf16.msra.mxu0 %v5711_v7 }
 0x4d9   : > { %2877 = vmatpush1.bf16.msra.mxu1 %v5713_v9  ;;  %2825 = vmatprep.subr.bf16.mxu0 %v5727_v63 }
 0x4da   : > { %2878 = vmatprep.subr.bf16.mxu1 %v5729_v1 }
 0x4dc   : > { %2826 = vmatpush1.bf16.msra.mxu0 %v5723_v16  ;;  %v2792_v16 = vpop.permute.xlu0 %2791 }
 0x4dd   : > { %2879 = vmatpush1.bf16.msra.mxu1 %v5725_v61  ;;  %v4057_v35 = vadd.f32 %v2792_v16, %v2641_v14 }
 0x4df   : > { %2844 = vmatmul.mubr.bf16.vlgmr.msra.gmra.mrb[72].mxu0 %v4387_v8 }
 0x4e0   : > { %2897 = vmatmul.mubr.bf16.vlgmr.msra.gmra.mrb[72].mxu1 %v4387_v8  ;;  %2853 = vmatprep.mubr.bf16.mxu0 %v4761_v12  ;;  %v2962_v14 = vpop.permute.xlu0 %2961 }
 0x4e1   : > { %2906 = vmatprep.mubr.bf16.mxu1 %v4761_v12 }
 0x4e7   : > { %2854 = vmatmul.mubr.bf16.gmra.mrb[76].mxu0 %v4388_v11 }
 0x4e8   : > { %2907 = vmatmul.mubr.bf16.gmra.mrb[76].mxu1 %v4388_v11  ;;  %2999 = vmatprep.mubr.bf16.mxu0 %v4761_v12 }
 0x4e9   : > { %3040 = vmatprep.mubr.bf16.mxu1 %v4761_v12 }
 0x5b2   : > { %v2845_v17 = vpop.f32.mrb[72].mxu0 }
 0x5b3   : > { %v4050_v23 = vadd.f32 %v4049_v55, %v2845_v17  ;;  %v2898_v0 = vpop.f32.mrb[72].mxu1  ;;  %v2847_v3 = vpop.f32.mrb[73].mxu0 }
 0x5b4   : > { %v4066_v31 = vadd.f32 %v4049_v55, %v2898_v0  ;;  %v4052_v5 = vadd.f32 %v4049_v55, %v2847_v3  ;;  %v2900_v47 = vpop.f32.mrb[73].mxu1  ;;  %v2849_v41 = vpop.f32.mrb[74].mxu0 }
 0x5b5   : > { %v4068_v50 = vadd.f32 %v4049_v55, %v2900_v47  ;;  %v4054_v57 = vadd.f32 %v4053_v18, %v2849_v41  ;;  %v2902_v44 = vpop.f32.mrb[74].mxu1  ;;  %v2851_v22 = vpop.f32.mrb[75].mxu0  ;;  %v2933_v9 = vmax.f32 %v4050_v23, 0.0 }
 0x5b6   : > { %v4070_v25 = vadd.f32 %v4053_v18, %v2902_v44  ;;  %v4056_v26 = vadd.f32 %v4053_v18, %v2851_v22  ;;  %v2904_v7 = vpop.f32.mrb[75].mxu1  ;;  %v2935_v61 = vmax.f32 %v4066_v31, 0.0  ;;  %v2934_v63 = vmax.f32 %v4052_v5, 0.0 }
 0x5b7   : > { %v2937_v20 = vmax.f32 %v4054_v57, 0.0  ;;  %v4072_v33 = vadd.f32 %v4053_v18, %v2904_v7  ;;  %v2936_v24 = vmax.f32 %v4068_v50, 0.0 }
 0x5b8   : > { %v2939_v1 = vmax.f32 %v4070_v25, 0.0  ;;  %v2938_v36 = vmax.f32 %v4056_v26, 0.0 }
 0x5b9   : > { %v5783_v32 = vpack.c.bf16 %v2937_v20, %v2933_v9  ;;  %v2940_v6 = vmax.f32 %v4072_v33, 0.0 }
 0x5ba   : > { %v5785_v10 = vpack.c.bf16 %v2939_v1, %v2935_v61  ;;  %v5787_v27 = vpack.c.bf16 %v2938_v36, %v2934_v63  ;;  %v2855_v49 = vpop.f32.mrb[76].mxu0  ;;  %v3057_v1 = vld [vmem:[#allocation11] sm:$0xf]  ;;  %v3163_v36 = vld [vmem:[#allocation13] sm:$0xf] }
 0x5bb   : > { %v5789_v15 = vpack.c.bf16 %v2940_v6, %v2936_v24  ;;  %v4058_v21 = vadd.f32 %v4057_v35, %v2855_v49  ;;  %v2908_v42 = vpop.f32.mrb[76].mxu1  ;;  %v2857_v29 = vpop.f32.mrb[77].mxu0 }
 0x5bc   : > { %v4074_v30 = vadd.f32 %v4057_v35, %v2908_v42  ;;  %v4060_v46 = vadd.f32 %v4057_v35, %v2857_v29  ;;  %v2910_v2 = vpop.f32.mrb[77].mxu1  ;;  %v2859_v13 = vpop.f32.mrb[78].mxu0  ;;  %2967 = vmatprep.subr.bf16.mxu0 %v5787_v27 }
 0x5bd   : > { %v4076_v48 = vadd.f32 %v4057_v35, %v2910_v2  ;;  %v4062_v37 = vadd.f32 %v4061_v38, %v2859_v13  ;;  %v2912_v52 = vpop.f32.mrb[78].mxu1  ;;  %3008 = vmatprep.subr.bf16.mxu1 %v5789_v15  ;;  %v2861_v56 = vpop.f32.mrb[79].mxu0  ;;  %2968 = vmatpush1.bf16.msra.mxu0 %v5783_v32  ;;  %v2941_v53 = vmax.f32 %v4058_v21, 0.0 }
 0x5be   : > { %v4078_v59 = vadd.f32 %v4061_v38, %v2912_v52  ;;  %v4064_v34 = vadd.f32 %v4061_v38, %v2861_v56  ;;  %v2914_v43 = vpop.f32.mrb[79].mxu1  ;;  %3009 = vmatpush1.bf16.msra.mxu1 %v5785_v10  ;;  %v2943_v40 = vmax.f32 %v4074_v30, 0.0  ;;  %v2942_v45 = vmax.f32 %v4060_v46, 0.0  ;;  %v3168_v35 = vpop.permute.xlu0 %3167 }
 0x5bf   : > { %v2945_v60 = vmax.f32 %v4062_v37, 0.0  ;;  %v4080_v4 = vadd.f32 %v4061_v38, %v2914_v43  ;;  %v2944_v11 = vmax.f32 %v4076_v48, 0.0  ;;  %v3062_v24 = vpop.permute.xlu1 %3061 }
 0x5c0   : > { %v2947_v62 = vmax.f32 %v4078_v59, 0.0  ;;  %v2946_v8 = vmax.f32 %v4064_v34, 0.0 }
 0x5c1   : > { %v2953_v19 = vpack.c.bf16 %v2945_v60, %v2941_v53  ;;  %v2948_v28 = vmax.f32 %v4080_v4, 0.0  ;;  %v3267_v60 = vld [vmem:[#allocation14] sm:$0x1] }
 0x5c2   : > { %v2955_v51 = vpack.c.bf16 %v2947_v62, %v2943_v40  ;;  %v2954_v54 = vpack.c.bf16 %v2946_v8, %v2942_v45 }
 0x5c3   : > { %v2956_v55 = vpack.c.bf16 %v2948_v28, %v2944_v11  ;;  %v3272_v4 = vpop.permute.xlu1 %3271 }
 0x5c4   : > { %2969 = vmatprep.subr.bf16.mxu0 %v2954_v54 }
 0x5c5   : > { %3010 = vmatprep.subr.bf16.mxu1 %v2956_v55  ;;  %2970 = vmatpush1.bf16.msra.mxu0 %v2953_v19 }
 0x5c6   : > { %3011 = vmatpush1.bf16.msra.mxu1 %v2955_v51 }
 0x5c8   : > { %3899 = vmatmul.mubr.msk.bf16.vlgmr.msra.gmra.mrb[80].mxu0 %vm2658_vm2, %v2957_v58 }
 0x5c9   : > { %3900 = vmatmul.mubr.msk.bf16.vlgmr.msra.gmra.mrb[80].mxu1 %vm2658_vm2, %v2957_v58  ;;  %3113 = vmatprep.mubr.bf16.mxu0 %v4761_v12 }
 0x5ca   : > { %3154 = vmatprep.mubr.bf16.mxu1 %v4761_v12 }
 0x69b   : > { %v3001_v17 = vpop.f32.mrb[80].mxu0 }
 0x69c   : > { %v3002_v18 = vadd.f32 %v3001_v17, %v2962_v14  ;;  %v3042_v23 = vpop.f32.mrb[80].mxu1  ;;  %v3003_v0 = vpop.f32.mrb[81].mxu0 }
 0x69d   : > { %v3043_v3 = vadd.f32 %v3042_v23, %v2962_v14  ;;  %v3004_v31 = vadd.f32 %v3003_v0, %v2962_v14  ;;  %v3044_v5 = vpop.f32.mrb[81].mxu1  ;;  %v3005_v47 = vpop.f32.mrb[82].mxu0 }
 0x69e   : > { %v3049_v41 = vmax.f32 %v3002_v18, 0.0  ;;  %v3045_v50 = vadd.f32 %v3044_v5, %v2962_v14  ;;  %v3046_v57 = vpop.f32.mrb[82].mxu1  ;;  %v3006_v44 = vpop.f32.mrb[83].mxu0 }
 0x69f   : > { %v3051_v22 = vmax.f32 %v3043_v3, 0.0  ;;  %v3050_v25 = vmax.f32 %v3004_v31, 0.0  ;;  %v3047_v26 = vpop.f32.mrb[83].mxu1  ;;  %v3379_v57 = vld [vmem:[#allocation16] sm:$0x1] }
 0x6a0   : > { %v3053_v7 = vpack.c.bf16 %v3049_v41, %v3049_v41  ;;  %v3052_v9 = vmax.f32 %v3045_v50, 0.0  ;;  %v3485_v44 = vld [vmem:[#allocation17] sm:$0x1]  ;;  %v4762_v26 = vmov 1983009808  }
 0x6a1   : > { %v3055_v20 = vpack.c.bf16 %v3051_v22, %v3051_v22  ;;  %v3054_v33 = vpack.c.bf16 %v3050_v25, %v3050_v25  ;;  %v3490_v22 = vpop.permute.xlu1 %3489  ;;  %v3384_v25 = vpop.permute.xlu0 %3383 }
 0x6a2   : > { %v3056_v16 = vpack.c.bf16 %v3052_v9, %v3052_v9  ;;  %v3070_v61 = vsel %vm3068_vm3, %v3053_v7, 0  ;;  %v3592_v7 = vunpack.c.l.s4 %v4762_v26  ;;  %v3594_v9 = vlaneseq }
 0x6a3   : > { %3901 = vmatprep.subr.msk.bf16.mxu0 %vm3068_vm3, %v3054_v33  ;;  %v3076_v63 = vsel %vm3068_vm3, %v3055_v20, 0  ;;  %v4089_v20 = vadd.f32 %v3490_v22, %v3384_v25 }
 0x6a4   : > { %3903 = vmatprep.subr.msk.bf16.mxu1 %vm3068_vm3, %v3056_v16  ;;  %3082 = vmatpush1.bf16.msra.mxu0 %v3070_v61  ;;  %v3593_v16 = vunpack.c.0.s8 %v3592_v7  ;;  %v3595_v61 = vshrl.u32 %v3594_v9, 7 }
 0x6a5   : > { %3123 = vmatpush1.bf16.msra.mxu1 %v3076_v63  ;;  %3173 = vmatprep.subr.bf16.mxu0 %v5787_v27 }
 0x6a6   : > { %3214 = vmatprep.subr.bf16.mxu1 %v5789_v15 }
 0x6a7   : > { %3902 = vmatmul.mubr.msk.bf16.vlgmr.msra.gmra.mrb[84].mxu0 %vm3064_vm4, %v3057_v1 }
 0x6a8   : > { %3904 = vmatmul.mubr.msk.bf16.vlgmr.msra.gmra.mrb[84].mxu1 %vm3064_vm4, %v3057_v1  ;;  %3174 = vmatpush1.bf16.msra.mxu0 %v5783_v32  ;;  %v4081_v32 = vadd.f32 %v3168_v35, %v3062_v24 }
 0x6a9   : > { %3215 = vmatpush1.bf16.msra.mxu1 %v5785_v10  ;;  %3175 = vmatprep.subr.bf16.mxu0 %v2954_v54 }
 0x6aa   : > { %3216 = vmatprep.subr.bf16.mxu1 %v2956_v55  ;;  %3205 = vmatprep.mubr.bf16.mxu0 %v4761_v12 }
 0x6ab   : > { %3246 = vmatprep.mubr.bf16.mxu1 %v4761_v12 }
 0x6ac   : > { %3176 = vmatpush1.bf16.msra.mxu0 %v2953_v19 }
 0x6ad   : > { %3217 = vmatpush1.bf16.msra.mxu1 %v2955_v51 }
 0x6b3   : > { %3905 = vmatmul.mubr.msk.bf16.vlgmr.msra.gmra.mrb[84].mxu0 %vm2658_vm2, %v3163_v36 }
 0x6b4   : > { %3906 = vmatmul.mubr.msk.bf16.vlgmr.msra.gmra.mrb[84].mxu1 %vm2658_vm2, %v3163_v36  ;;  %3321 = vmatprep.mubr.bf16.mxu0 %v4761_v12 }
 0x6b5   : > { %3362 = vmatprep.mubr.bf16.mxu1 %v4761_v12 }
 0x786   : > { %v3207_v6 = vpop.f32.mrb[84].mxu0 }
 0x787   : > { %v4082_v39 = vadd.f32 %v4081_v32, %v3207_v6  ;;  %v3248_v10 = vpop.f32.mrb[84].mxu1  ;;  %v3209_v27 = vpop.f32.mrb[85].mxu0 }
 0x788   : > { %v4086_v49 = vadd.f32 %v4081_v32, %v3248_v10  ;;  %v4084_v38 = vadd.f32 %v4081_v32, %v3209_v27  ;;  %v3250_v15 = vpop.f32.mrb[85].mxu1  ;;  %v3211_v21 = vpop.f32.mrb[86].mxu0 }
 0x789   : > { %v3259_v42 = vmax.f32 %v4082_v39, 0.0  ;;  %v4088_v29 = vadd.f32 %v4081_v32, %v3250_v15  ;;  %v3252_v30 = vpop.f32.mrb[86].mxu1  ;;  %v3212_v46 = vpop.f32.mrb[87].mxu0  ;;  %v3596_v15 = vsub.s32 %v3593_v16, %v3595_v61 }
 0x78a   : > { %v3261_v2 = vmax.f32 %v4086_v49, 0.0  ;;  %v3260_v13 = vmax.f32 %v4084_v38, 0.0  ;;  %v3253_v48 = vpop.f32.mrb[87].mxu1 }
 0x78b   : > { %v3263_v37 = vpack.c.bf16 %v3259_v42, %v3259_v42  ;;  %v3262_v52 = vmax.f32 %v4088_v29, 0.0 }
 0x78c   : > { %v3265_v56 = vpack.c.bf16 %v3261_v2, %v3261_v2  ;;  %v3264_v59 = vpack.c.bf16 %v3260_v13, %v3260_v13 }
 0x78d   : > { %v3266_v34 = vpack.c.bf16 %v3262_v52, %v3262_v52  ;;  %v3278_v43 = vsel %vm3068_vm3, %v3263_v37, 0 }
 0x78e   : > { %3907 = vmatprep.subr.msk.bf16.mxu0 %vm3068_vm3, %v3264_v59  ;;  %v3284_v53 = vsel %vm3068_vm3, %v3265_v56, 0 }
 0x78f   : > { %3909 = vmatprep.subr.msk.bf16.mxu1 %vm3068_vm3, %v3266_v34  ;;  %3290 = vmatpush1.bf16.msra.mxu0 %v3278_v43 }
 0x790   : > { %3331 = vmatpush1.bf16.msra.mxu1 %v3284_v53 }
 0x792   : > { %3908 = vmatmul.mubr.msk.bf16.vlgmr.msra.gmra.mrb[88].mxu0 %vm3064_vm4, %v3267_v60 }
 0x793   : > { %3910 = vmatmul.mubr.msk.bf16.vlgmr.msra.gmra.mrb[88].mxu1 %vm3064_vm4, %v3267_v60  ;;  %3435 = vmatprep.mubr.bf16.mxu0 %v4761_v12 }
 0x794   : > { %3476 = vmatprep.mubr.bf16.mxu1 %v4761_v12 }
 0x865   : > { %v3323_v40 = vpop.f32.mrb[88].mxu0 }
 0x866   : > { %v3324_v45 = vadd.f32 %v3323_v40, %v3272_v4  ;;  %v3364_v62 = vpop.f32.mrb[88].mxu1  ;;  %v3325_v8 = vpop.f32.mrb[89].mxu0 }
 0x867   : > { %v3365_v11 = vadd.f32 %v3364_v62, %v3272_v4  ;;  %v3326_v19 = vadd.f32 %v3325_v8, %v3272_v4  ;;  %v3366_v28 = vpop.f32.mrb[89].mxu1  ;;  %v3327_v51 = vpop.f32.mrb[90].mxu0 }
 0x868   : > { %v3371_v54 = vmax.f32 %v3324_v45, 0.0  ;;  %v3367_v55 = vadd.f32 %v3366_v28, %v3272_v4  ;;  %v3368_v58 = vpop.f32.mrb[90].mxu1  ;;  %v3328_v14 = vpop.f32.mrb[91].mxu0 }
 0x869   : > { %v3373_v17 = vmax.f32 %v3365_v11, 0.0  ;;  %v3372_v18 = vmax.f32 %v3326_v19, 0.0  ;;  %v3369_v23 = vpop.f32.mrb[91].mxu1 }
 0x86a   : > { %v3375_v0 = vpack.c.bf16 %v3371_v54, %v3371_v54  ;;  %v3374_v3 = vmax.f32 %v3367_v55, 0.0 }
 0x86b   : > { %v3377_v31 = vpack.c.bf16 %v3373_v17, %v3373_v17  ;;  %v3376_v5 = vpack.c.bf16 %v3372_v18, %v3372_v18 }
 0x86c   : > { %v3378_v47 = vpack.c.bf16 %v3374_v3, %v3374_v3  ;;  %v3392_v41 = vsel %vm3390_vm5, %v3375_v0, 0 }
 0x86d   : > { %3911 = vmatprep.subr.msk.bf16.mxu0 %vm3390_vm5, %v3376_v5  ;;  %v3398_v50 = vsel %vm3390_vm5, %v3377_v31, 0 }
 0x86e   : > { %3913 = vmatprep.subr.msk.bf16.mxu1 %vm3390_vm5, %v3378_v47  ;;  %3404 = vmatpush1.bf16.msra.mxu0 %v3392_v41 }
 0x86f   : > { %3445 = vmatpush1.bf16.msra.mxu1 %v3398_v50  ;;  %3915 = vmatprep.subr.msk.bf16.mxu0 %vm3068_vm3, %v3264_v59 }
 0x870   : > { %3917 = vmatprep.subr.msk.bf16.mxu1 %vm3068_vm3, %v3266_v34 }
 0x871   : > { %3912 = vmatmul.mubr.msk.bf16.vlgmr.msra.gmra.mrb[92].mxu0 %vm3386_vm6, %v3379_v57 }
 0x872   : > { %3914 = vmatmul.mubr.msk.bf16.vlgmr.msra.gmra.mrb[92].mxu1 %vm3386_vm6, %v3379_v57  ;;  %3496 = vmatpush1.bf16.msra.mxu0 %v3278_v43 }
 0x873   : > { %3537 = vmatpush1.bf16.msra.mxu1 %v3284_v53  ;;  %3527 = vmatprep.mubr.bf16.mxu0 %v4761_v12 }
 0x874   : > { %3568 = vmatprep.mubr.bf16.mxu1 %v4761_v12 }
 0x87d   : > { %3916 = vmatmul.mubr.msk.bf16.vlgmr.msra.gmra.mrb[92].mxu0 %vm3064_vm4, %v3485_v44 }
 0x87e   : > { %3918 = vmatmul.mubr.msk.bf16.vlgmr.msra.gmra.mrb[92].mxu1 %vm3064_vm4, %v3485_v44 }
 0x950   : > { %v3529_v33 = vpop.f32.mrb[92].mxu0 }
 0x951   : > { %v4090_v12 = vadd.f32 %v4089_v20, %v3529_v33  ;;  %v3570_v63 = vpop.f32.mrb[92].mxu1  ;;  %v3531_v1 = vpop.f32.mrb[93].mxu0 }
 0x952   : > { %v4094_v36 = vadd.f32 %v4089_v20, %v3570_v63  ;;  %v4092_v35 = vadd.f32 %v4089_v20, %v3531_v1  ;;  %v3572_v24 = vpop.f32.mrb[93].mxu1  ;;  %v3533_v32 = vpop.f32.mrb[94].mxu0 }
 0x953   : > { %v3581_v6 = vmax.f32 %v4090_v12, 0.0  ;;  %v4096_v39 = vadd.f32 %v4089_v20, %v3572_v24  ;;  %v3574_v10 = vpop.f32.mrb[94].mxu1  ;;  %v3534_v27 = vpop.f32.mrb[95].mxu0 }
 0x954   : > { %v3583_v49 = vmax.f32 %v4094_v36, 0.0  ;;  %v3582_v38 = vmax.f32 %v4092_v35, 0.0  ;;  %v3575_v21 = vpop.f32.mrb[95].mxu1 }
 0x955   : > { %v3584_v42 = vmax.f32 %v4096_v39, 0.0 }
 0x956   : > { %v3589_v29 = vcombine.low %v3581_v6, %v3582_v38 }
 0x957   : > { %v3590_v30 = vcombine.low %v3583_v49, %v3584_v42 }
 0x958   : > { %v3597_v46 = vrot.slane %v3589_v29, %v3596_v15 }
 0x959   : > { %v3604_v2 = vrot.slane %v3590_v30, %v3596_v15 }
 0x95b   : > { %v3605_v13 = vcombine.low %v3597_v46, %v3604_v2 }
 0x95d   : > { %3607 = vst [vmem:[%s967_s1] sm:$0xff] %v3605_v13 }
 0x95e PF: > { %s41_s26 = sadd.s32 1, %s4747_s26   ;;  %s5966_s6 = sld [smem:[#allocation30_spill]] }
 0x95f   : > { %p38_p0 = scmp.ge.s32.totalorder %s41_s26, 10   ;;  %s5967_s27 = sld [smem:[#allocation27_spill]] }
 0x960   : > { %s5968_s10 = sld [smem:[#allocation28_spill]]  ;;  %s5969_s29 = smov %s4727_s2 }
 0x961   : > { %s5972_s30 = smov %s4743_s3  ;;  %40 = sbr.rel (!%p38_p0) target bundleno = 31 (0x1f), region = 219 }
 0x964   : > { %s5970_s2 = smov %s5966_s6  ;;  %s5971_s6 = smov %s4739_s7 }
 0x965   : > { %s5973_s7 = smov %s5967_s27 }
 0x966   : > { %s5974_s3 = smov %s5968_s10 }
 0x968   :  { %3638 = vsyncpa [#allocation4], 1 }
 0x969   :  { %3640 = vsyncpa [#allocation4 + $0x1], 1 }
 0x96a   :  { %3641 = vsyncpa [#allocation6], 1 }
 0x96b   :  { %3642 = vsyncpa [#allocation9], 1 }
 0x96c   :  { %3643 = vsyncpa [#allocation12], 1 }
 0x96d   :  { %3644 = vsyncpa [#allocation15], 1 }
 0x96e   :  { %3645 = vsyncpa [#allocation18], 1 }

// kernel: encoder_forward.3
= control target key start
LH: loop header
LB: loop body
LE: loop exit
PB: predicated region body
PF: predicated region fallthrough
CT: control target
= control target key end

     0   :  { %s15463_s0 = inlined_call_operand.vmem [shape: f32[4,2048], index: 0, kind: input, shape index: {}]   ;;  %s15464_s1 = inlined_call_operand.hbm [shape: bf16[2048,1536], index: 1, kind: input, shape index: {}]   ;;  %s15465_s2 = inlined_call_operand.hbm [shape: f32[1,1536], index: 2, kind: input, shape index: {}]   ;;  %s15466_s3 = inlined_call_operand.hbm [shape: bf16[1536,1024], index: 3, kind: input, shape index: {}]   ;;  %s15467_s4 = inlined_call_operand.hbm [shape: f32[1,1024], index: 4, kind: input, shape index: {}]   ;;  %s15468_s5 = inlined_call_operand.hbm [shape: bf16[1024,512], index: 5, kind: input, shape index: {}]   ;;  %s15469_s6 = inlined_call_operand.hbm [shape: f32[1,512], index: 6, kind: input, shape index: {}]   ;;  %s15470_s7 = inlined_call_operand.hbm [shape: bf16[512,128], index: 7, kind: input, shape index: {}]   ;;  %s15471_s8 = inlined_call_operand.hbm [shape: f32[1,128], index: 8, kind: input, shape index: {}]   ;;  %s15472_s9 = inlined_call_operand.vmem [shape: f32[4,128], index: 9, kind: output, shape index: {}]  }
   0x1   :  { %15475 = sst [smem:[#allocation21_spill]] %s15465_s2 }
   0x2   :  { %14 = vsyncpa [#allocation4], 0 }
   0x3   :  { %16 = vsyncpa [#allocation4 + $0x1], 0 }
   0x4   :  { %17 = vsyncpa [#allocation6], 0 }
   0x5   :  { %18 = vsyncpa [#allocation9], 0 }
   0x6   :  { %19 = vsyncpa [#allocation12], 0 }
   0x7   :  { %20 = vsyncpa [#allocation15], 0  ;;  %s14536_s30 = smov 0   ;;  %s14538_s10 = smov 0  }
   0x8   :  { %s14540_s11 = smov 0   ;;  %s14542_s12 = smov 0  }
   0x9 LB: > { %s14469_s13 = smov [#allocation5]   ;;  %s14557_s15 = sadd.s32 4294967295, %s14467_s12   ;;  %s14467_s12 = sphi %s14542_s12, %s15496_s12   ;;  %s14463_s11 = sphi %s14540_s11, %s15495_s11   ;;  %s14459_s10 = sphi %s14538_s10, %s15494_s10   ;;  %s14455_s30 = sphi %s14536_s30, %s15493_s30  }
   0xa   : > { %s264_s14 = sshll.u32 %s14469_s13, 4  ;;  %p11422_p0 = scmp.ge.s32.totalorder %s14467_s12, 1  ;;  %s14563_s14 = int_to_ptr.vmem [resolvable:$true] %s264_s14 }
   0xb   : > { %p15473_p1 = scmp.eq.s32.totalorder %s14557_s15, 0  ;;  %p251_p2 = scmp.lt.s32.totalorder %s14467_s12, 5 }
   0xc   : > { %s14470_s17 = smov [#allocation8]   ;;  %s14471_s19 = smov [#allocation11]  }
   0xd   : > { %p14565_p4 = pnand %p11422_p0, %p251_p2  ;;  %s288_s18 = sshll.u32 %s14470_s17, 4  ;;  %s14571_s18 = int_to_ptr.vmem [resolvable:$true] %s288_s18 }
   0xe   : > { %s312_s20 = sshll.u32 %s14471_s19, 4  ;;  %s14472_s22 = smov [#allocation7]   ;;  %s14579_s20 = int_to_ptr.vmem [resolvable:$true] %s312_s20 }
   0xf   : > { %s15476_s16 = scalar_select %p14565_p4, 1, 0 }
  0x10   : > { %p13106_p5 = pneg %p14565_p4  ;;  %s14581_s23 = sshll.u32 %s14472_s22, 4  ;;  %s275_s23 = int_to_ptr.vmem [resolvable:$true] %s14581_s23 }
  0x11   : > { %s15478_s2 = sld [smem:[#allocation21_spill]] }
  0x12   : > { %p14575_p6 = pnand %p13106_p5, %p15473_p1 }
  0x14   : > { %p14591_p8 = pneg %p14575_p6 }
  0x17   : > { %s14191_s26 = scalar_lea.hbm %s15478_s2, 192 }
  0x18   : > { %p14192_p7 = scmp.ne.s32.totalorder %s15478_s2, %s14191_s26  ;;  %p14198_p11 = scmp.lt.u32.totalorder %s14191_s26, %s15478_s2 }
  0x1a   : > { %p14194_p9 = pnand %p14591_p8, %p14192_p7 }
  0x1c   : > { %p14195_p10 = pneg %p14194_p9 }
  0x1e   : > { %p14200_p12 = pnand %p14198_p11, %p14195_p10 }
  0x20   : > { %14203 = shalt.err (!%p14200_p12)
}
  0x21   : > { %s14204_s19 = scalar_lea.vmem %s14563_s14, 192  ;;  %p14212_p5 = scmp.lt.s32.totalorder %s14563_s14, %s14563_s14 }
  0x22   : > { %p14205_p13 = scmp.ne.s32.totalorder %s14563_s14, %s14204_s19  ;;  %p14213_p3 = scmp.lt.s32.totalorder %s14204_s19, %s14204_s19 }
  0x24   : > { %p14207_p0 = pnand %p14205_p13, %p14591_p8  ;;  %p14214_p7 = por %p14213_p3, %p14212_p5 }
  0x26   : > { %p14208_p2 = pneg %p14207_p0 }
  0x28   : > { %p14215_p9 = pnand %p14214_p7, %p14208_p2 }
  0x2a   : > { %14218 = shalt.err (!%p14215_p9)
}
  0x2b   : > { %13109 = dma.hbm_to_vmem [thread:$0]  (!%p14575_p6), %s15478_s2, 192, %s14563_s14, [#allocation6]  }
  0x2c   : > { %s14219_s27 = scalar_lea.hbm %s15467_s4, 128 }
  0x2d   : > { %p14220_p10 = scmp.ne.s32.totalorder %s15467_s4, %s14219_s27  ;;  %p14226_p12 = scmp.lt.u32.totalorder %s14219_s27, %s15467_s4 }
  0x2f   : > { %p14222_p3 = pnand %p14220_p10, %p14591_p8 }
  0x31   : > { %p14223_p11 = pneg %p14222_p3 }
  0x33   : > { %p14228_p13 = pnand %p14226_p12, %p14223_p11 }
  0x35   : > { %14231 = shalt.err (!%p14228_p13)
}
  0x36   : > { %s14232_s14 = scalar_lea.vmem %s14571_s18, 128  ;;  %p14240_p7 = scmp.lt.s32.totalorder %s14571_s18, %s14571_s18 }
  0x37   : > { %p14233_p0 = scmp.ne.s32.totalorder %s14571_s18, %s14232_s14  ;;  %p14241_p9 = scmp.lt.s32.totalorder %s14232_s14, %s14232_s14 }
  0x39   : > { %p14235_p2 = pnand %p14233_p0, %p14591_p8  ;;  %p14242_p10 = por %p14241_p9, %p14240_p7 }
  0x3b   : > { %p14236_p5 = pneg %p14235_p2 }
  0x3d   : > { %p14243_p3 = pnand %p14242_p10, %p14236_p5 }
  0x3f   : > { %14246 = shalt.err (!%p14243_p3)
}
  0x40   : > { %13115 = dma.hbm_to_vmem [thread:$0]  (!%p14575_p6), %s15467_s4, 128, %s14571_s18, [#allocation9]  }
  0x41   : > { %s14247_s27 = scalar_lea.hbm %s15469_s6, 64 }
  0x42   : > { %p14248_p11 = scmp.ne.s32.totalorder %s15469_s6, %s14247_s27  ;;  %p14254_p0 = scmp.lt.u32.totalorder %s14247_s27, %s15469_s6 }
  0x44   : > { %p14250_p12 = pnand %p14248_p11, %p14591_p8 }
  0x46   : > { %p14251_p13 = pneg %p14250_p12 }
  0x48   : > { %p14256_p2 = pnand %p14254_p0, %p14251_p13 }
  0x4a   : > { %14259 = shalt.err (!%p14256_p2)
}
  0x4b   : > { %s14260_s18 = scalar_lea.vmem %s14579_s20, 64  ;;  %p14268_p10 = scmp.lt.s32.totalorder %s14579_s20, %s14579_s20 }
  0x4c   : > { %p14261_p5 = scmp.ne.s32.totalorder %s14579_s20, %s14260_s18  ;;  %p14269_p3 = scmp.lt.s32.totalorder %s14260_s18, %s14260_s18 }
  0x4e   : > { %p14263_p7 = pnand %p14261_p5, %p14591_p8  ;;  %p14270_p11 = por %p14269_p3, %p14268_p10 }
  0x50   : > { %p14264_p9 = pneg %p14263_p7 }
  0x52   : > { %p14271_p12 = pnand %p14270_p11, %p14264_p9 }
  0x54   : > { %14274 = shalt.err (!%p14271_p12)
}
  0x55   : > { %13121 = dma.hbm_to_vmem [thread:$0]  (!%p14575_p6), %s15469_s6, 64, %s14579_s20, [#allocation12]  }
  0x56   : > { %s14275_s26 = scalar_lea.hbm %s15466_s3, 98304 }
  0x57   : > { %p14276_p13 = scmp.ne.s32.totalorder %s15466_s3, %s14275_s26  ;;  %p14282_p5 = scmp.lt.u32.totalorder %s14275_s26, %s15466_s3 }
  0x59   : > { %p14278_p0 = pnand %p14276_p13, %p14591_p8 }
  0x5b   : > { %p14279_p2 = pneg %p14278_p0 }
  0x5d   : > { %p14284_p7 = pnand %p14282_p5, %p14279_p2 }
  0x5f   : > { %14287 = shalt.err (!%p14284_p7)
}
  0x60   : > { %s14288_s19 = scalar_lea.vmem %s275_s23, 98304  ;;  %p14296_p11 = scmp.lt.s32.totalorder %s275_s23, %s275_s23 }
  0x61   : > { %p14289_p9 = scmp.ne.s32.totalorder %s275_s23, %s14288_s19  ;;  %p14297_p12 = scmp.lt.s32.totalorder %s14288_s19, %s14288_s19 }
  0x63   : > { %p14291_p10 = pnand %p14289_p9, %p14591_p8  ;;  %p14298_p1 = por %p14297_p12, %p14296_p11 }
  0x65   : > { %p14292_p3 = pneg %p14291_p10 }
  0x67   : > { %p14299_p4 = pnand %p14298_p1, %p14292_p3 }
  0x69   : > { %14302 = shalt.err (!%p14299_p4)
}
  0x6a   : > { %s14473_s20 = smov 512   ;;  %s14474_s18 = smov 32  }
  0x6b   : > { %13112 = dma.hbm_to_vmem [thread:$0]  (!%p14575_p6), %s15466_s3, 98304, %s275_s23, [#allocation6], %s14473_s20, %s14473_s20, %s14474_s18  }
  0x6c   : > { %s14475_s24 = smov [#allocation10]   ;;  %s14303_s28 = scalar_lea.hbm %s15468_s5, 32768 }
  0x6d   : > { %s298_s25 = sshll.u32 %s14475_s24, 4  ;;  %p14304_p1 = scmp.ne.s32.totalorder %s15468_s5, %s14303_s28  ;;  %s299_s25 = int_to_ptr.vmem [resolvable:$true] %s298_s25 }
  0x6e   : > { %p14310_p0 = scmp.lt.u32.totalorder %s14303_s28, %s15468_s5 }
  0x6f   : > { %p14306_p4 = pnand %p14304_p1, %p14591_p8 }
  0x71   : > { %p14307_p13 = pneg %p14306_p4 }
  0x73   : > { %p14312_p2 = pnand %p14310_p0, %p14307_p13 }
  0x75   : > { %14315 = shalt.err (!%p14312_p2)
}
  0x76   : > { %s14316_s23 = scalar_lea.vmem %s299_s25, 32768  ;;  %p14324_p10 = scmp.lt.s32.totalorder %s299_s25, %s299_s25 }
  0x77   : > { %p14317_p5 = scmp.ne.s32.totalorder %s299_s25, %s14316_s23  ;;  %p14325_p3 = scmp.lt.s32.totalorder %s14316_s23, %s14316_s23 }
  0x79   : > { %p14319_p7 = pnand %p14317_p5, %p14591_p8  ;;  %p14326_p11 = por %p14325_p3, %p14324_p10 }
  0x7b   : > { %p14320_p9 = pneg %p14319_p7 }
  0x7d   : > { %p14327_p12 = pnand %p14326_p11, %p14320_p9 }
  0x7f   : > { %14330 = shalt.err (!%p14327_p12)
}
  0x80   : > { %s14476_s20 = smov 256   ;;  %s14477_s18 = smov 16  }
  0x81   : > { %13118 = dma.hbm_to_vmem [thread:$0]  (!%p14575_p6), %s15468_s5, 32768, %s299_s25, [#allocation9], %s14476_s20, %s14476_s20, %s14477_s18  }
  0x82   : > { %s14478_s22 = smov [#allocation13]   ;;  %s14331_s28 = scalar_lea.hbm %s15470_s7, 4096 }
  0x83   : > { %s322_s24 = sshll.u32 %s14478_s22, 4  ;;  %p14332_p1 = scmp.ne.s32.totalorder %s15470_s7, %s14331_s28  ;;  %s323_s24 = int_to_ptr.vmem [resolvable:$true] %s322_s24 }
  0x84   : > { %p14338_p0 = scmp.lt.u32.totalorder %s14331_s28, %s15470_s7 }
  0x85   : > { %p14334_p4 = pnand %p14332_p1, %p14591_p8 }
  0x87   : > { %p14335_p13 = pneg %p14334_p4 }
  0x89   : > { %p14340_p2 = pnand %p14338_p0, %p14335_p13 }
  0x8b   : > { %14343 = shalt.err (!%p14340_p2)
}
  0x8c   : > { %s14344_s25 = scalar_lea.vmem %s323_s24, 4096  ;;  %p14352_p10 = scmp.lt.s32.totalorder %s323_s24, %s323_s24 }
  0x8d   : > { %p14345_p5 = scmp.ne.s32.totalorder %s323_s24, %s14344_s25  ;;  %p14353_p3 = scmp.lt.s32.totalorder %s14344_s25, %s14344_s25 }
  0x8f   : > { %p14347_p7 = pnand %p14345_p5, %p14591_p8  ;;  %p14354_p11 = por %p14353_p3, %p14352_p10 }
  0x91   : > { %p14348_p9 = pneg %p14347_p7 }
  0x93   : > { %p14355_p12 = pnand %p14354_p11, %p14348_p9 }
  0x95   : > { %14358 = shalt.err (!%p14355_p12)
}
  0x96   : > { %s14479_s20 = smov 64   ;;  %s14480_s18 = smov 4  }
  0x97   : > { %13124 = dma.hbm_to_vmem [thread:$0]  (!%p14575_p6), %s15470_s7, 4096, %s323_s24, [#allocation12], %s14479_s20, %s14479_s20, %s14480_s18  }
  0x98   : > { %s14481_s22 = smov [#allocation14]   ;;  %s14359_s13 = scalar_lea.hbm %s15471_s8, 16 }
  0x99   : > { %s336_s26 = sshll.u32 %s14481_s22, 4  ;;  %p14360_p1 = scmp.ne.s32.totalorder %s15471_s8, %s14359_s13  ;;  %s337_s26 = int_to_ptr.vmem [resolvable:$true] %s336_s26 }
  0x9a   : > { %p14366_p0 = scmp.lt.u32.totalorder %s14359_s13, %s15471_s8 }
  0x9b   : > { %p14362_p4 = pnand %p14360_p1, %p14591_p8 }
  0x9d   : > { %p14363_p13 = pneg %p14362_p4 }
  0x9f   : > { %p14368_p2 = pnand %p14366_p0, %p14363_p13 }
  0xa1   : > { %14371 = shalt.err (!%p14368_p2)
}
  0xa2   : > { %s14372_s24 = scalar_lea.vmem %s337_s26, 16  ;;  %s14379_s20 = scalar_lea.vmem %s337_s26, 32 }
  0xa3   : > { %p14373_p5 = scmp.ne.s32.totalorder %s337_s26, %s14372_s24  ;;  %p14380_p10 = scmp.lt.s32.totalorder %s337_s26, %s337_s26 }
  0xa4   : > { %p14381_p3 = scmp.lt.s32.totalorder %s14379_s20, %s14372_s24 }
  0xa5   : > { %p14375_p7 = pnand %p14373_p5, %p14591_p8 }
  0xa6   : > { %p14382_p11 = por %p14381_p3, %p14380_p10 }
  0xa7   : > { %p14376_p9 = pneg %p14375_p7 }
  0xa9   : > { %p14383_p12 = pnand %p14382_p11, %p14376_p9 }
  0xab   : > { %14386 = shalt.err (!%p14383_p12)
}
  0xac   : > { %13127 = dma.hbm_to_vmem [thread:$0]  (!%p14575_p6), %s15471_s8, 16, %s337_s26, [#allocation15]  }
  0xad   : > { %s14732_s29 = sadd.s32 1, %s14467_s12   ;;  %s59_s14 = sadd.s32 1, %s14463_s11 }
  0xae   : > { %s56_s21 = ssub.s32 %s14467_s12, %s14732_s29  ;;  %p66_p1 = scmp.ne.s32.totalorder %s14463_s11, %s14459_s10 }
  0xaf   : > { %p57_p8 = scmp.eq.s32.totalorder %s56_s21, 0  ;;  %p67_p4 = scmp.eq.s32.totalorder %s14467_s12, 0 }
  0xb0   : > { %p72_p13 = scmp.ne.s32.totalorder %s14459_s10, %s14455_s30  ;;  %p15480_p2 = scmp.eq.s32.totalorder %s14557_s15, 0 }
  0xb1   : > { %s14743_s22 = scalar_select %p57_p8, %s14463_s11, %s59_s14  }
  0xb2   : > { %p68_p0 = por %p67_p4, %p66_p1  ;;  %p14747_p5 = por %p15480_p2, %p72_p13 }
  0xb3   : > { %p13139_p7 = scmp.lt.s32.totalorder %s14467_s12, 4  ;;  %s356_s28 = sand.u32 1, %s14463_s11  }
  0xb4   : > { %s13073_s26 = smul.u32 3072, %s356_s28  ;;  %s14392_s21 = scalar_lea.hbm %s15464_s1, 196608 }
  0xb5   : > { %s13074_s13 = smul.u32 49152, %s14467_s12  ;;  %p14754_p6 = pnand %p13139_p7, %p68_p0 }
  0xb6   : > { %s360_s25 = scalar_lea.vmem [#allocation3], %s13073_s26  ;;  %s14765_s12 = scalar_lea.sflag [#allocation4], %s356_s28 }
  0xb7   : > { %s14761_s30 = scalar_lea.hbm %s15464_s1, %s13074_s13  ;;  %s368_s24 = sshll.u32 %s360_s25, 4  ;;  %s14763_s24 = int_to_ptr.vmem [resolvable:$true] %s368_s24 }
  0xb8   : > { %s14387_s20 = scalar_lea.hbm %s14761_s30, 49152  ;;  %p14389_p10 = pneg %p14754_p6 }
  0xb9   : > { %p14388_p9 = scmp.ne.s32.totalorder %s14761_s30, %s14387_s20  ;;  %p14393_p12 = scmp.lt.u32.totalorder %s14761_s30, %s15464_s1 }
  0xba   : > { %p14394_p8 = scmp.lt.u32.totalorder %s14392_s21, %s14387_s20  ;;  %p14396_p4 = scmp.lt.u32.totalorder %s14387_s20, %s14761_s30 }
  0xbb   : > { %p14390_p3 = pnand %p14389_p10, %p14388_p9 }
  0xbc   : > { %p14395_p1 = por %p14394_p8, %p14393_p12 }
  0xbd   : > { %p14391_p11 = pneg %p14390_p3 }
  0xbe   : > { %p14397_p13 = por %p14396_p4, %p14395_p1 }
  0xc0   : > { %p14398_p0 = pnand %p14397_p13, %p14391_p11 }
  0xc2   : > { %14401 = shalt.err (!%p14398_p0)
}
  0xc3   : > { %s14402_s28 = scalar_lea.vmem %s14763_s24, 49152  ;;  %s14482_s26 = smov [#allocation3]  }
  0xc4   : > { %p14403_p2 = scmp.ne.s32.totalorder %s14763_s24, %s14402_s28  ;;  %s14407_s19 = sshll.u32 %s14482_s26, 4  ;;  %s14408_s19 = int_to_ptr.vmem [resolvable:$false] %s14407_s19 }
  0xc5   : > { %s14409_s23 = scalar_lea.vmem %s14408_s19, 98304  ;;  %p14410_p3 = scmp.lt.s32.totalorder %s14763_s24, %s14408_s19 }
  0xc6   : > { %p14405_p7 = pnand %p14403_p2, %p14389_p10  ;;  %p14411_p12 = scmp.lt.s32.totalorder %s14409_s23, %s14402_s28 }
  0xc8   : > { %p14406_p9 = pneg %p14405_p7  ;;  %p14412_p8 = por %p14411_p12, %p14410_p3 }
  0xca   : > { %p14413_p1 = pnand %p14412_p8, %p14406_p9 }
  0xcc   : > { %14416 = shalt.err (!%p14413_p1)
}
  0xcd   : > { %s14483_s25 = smov 768   ;;  %s14484_s20 = smov 48  }
  0xce   : > { %13131 = dma.hbm_to_vmem [thread:$0]  (!%p14754_p6), %s14761_s30, 49152, %s14763_s24, %s14765_s12, %s14483_s25, %s14483_s25, %s14484_s20  }
  0xcf   : > { %p15483_p10 = scmp.ne.s32.totalorder %s15476_s16, 0 }
  0xd0   : > { %s382_s18 = sand.u32 (!%p15483_p10), 1, %s14459_s10  }
  0xd1   : > { %380 = sbr.rel (%p15483_p10) target bundleno = 2308 (0x904), region = 56  ;;  %s383_s21 = scalar_lea.sflag (!%p15483_p10), [#allocation4], %s382_s18 }
  0xd2   : > { %s13075_s2 = smul.u32 (!%p15483_p10), 3072, %s382_s18 }
  0xd4   : > { %s14796_s14 = scalar_lea.vmem (!%p15483_p10), [#allocation3], %s13075_s2 }
  0xd8   : > { %14434 = dma.done.wait (%p14747_p5), %s383_s21, 49152  }
  0xd9   : > { %14436 = vsyncadd (%p14747_p5), %s383_s21, 4294918144  ;;  %p15484_p11 = scmp.eq.s32.totalorder %s14557_s15, 0 }
  0xdb   : > { %14438 = dma.done.wait (%p15484_p11), [#allocation6], 98496   ;;  %p15485_p6 = pmov %p15484_p11 }
  0xdd   : > { %14440 = vsyncadd (%p15485_p6), [#allocation6], 4294868800  ;;  %p15486_p4 = pmov %p15485_p6 }
  0xdf   : > { %14442 = dma.done.wait (%p15486_p4), [#allocation9], 32896   ;;  %p15487_p13 = pmov %p15486_p4 }
  0xe0   : > { %p15488_p0 = pmov %p15486_p4 }
  0xe1   : > { %14444 = vsyncadd (%p15487_p13), [#allocation9], 4294934400 }
  0xe2   : > { %14446 = dma.done.wait (%p15488_p0), [#allocation12], 4160   ;;  %p15489_p2 = pmov %p15488_p0 }
  0xe3   : > { %p15490_p5 = pmov %p15488_p0 }
  0xe4   : > { %14448 = vsyncadd (%p15489_p2), [#allocation12], 4294963136 }
  0xe5   : > { %14450 = dma.done.wait (%p15490_p5), [#allocation15], 16   ;;  %p15491_p7 = pmov %p15488_p0 }
  0xe6   : > { %s11442_s16 = sshll.u32 %s14557_s15, 2  ;;  %p15492_p3 = scmp.ne.s32.totalorder %s14557_s15, 0 }
  0xe7   : > { %14452 = vsyncadd (%p15491_p7), [#allocation15], 4294967280  ;;  %p450_p9 = scmp.lt.s32.totalorder %s11442_s16, 15  ;;  %v14485_v0 = vmov (!%p15492_p3), 0.0  }
  0xe8   : > { %460 = sbr.rel (%p15492_p3) target bundleno = 239 (0xef), region = 92  ;;  %461 = vst [vmem:[#allocation2] sm:$0xff] (!%p15492_p3), %v14485_v0  ;;  %462 = vst [vmem:[#allocation2 + $0x8] sm:$0xff] (!%p15492_p3), %v14485_v0 }
  0xe9   : > { %s15498_s16 = smov (!%p450_p9, %s11442_s16), 15  ;;  %463 = vst [vmem:[#allocation2 + $0x10] sm:$0xff] (!%p15492_p3), %v14485_v0  ;;  %464 = vst [vmem:[#allocation2 + $0x18] sm:$0xff] (!%p15492_p3), %v14485_v0 }
  0xea   : > { %s11443_s27 = sshll.u32 %s15498_s16, 2  ;;  %465 = vst [vmem:[#allocation2 + $0x20] sm:$0xff] (!%p15492_p3), %v14485_v0  ;;  %466 = vst [vmem:[#allocation2 + $0x28] sm:$0xff] (!%p15492_p3), %v14485_v0 }
  0xeb   : > { %s14822_s24 = scalar_lea.vmem %s15463_s0, %s11443_s27 }
  0xef PF: > { %v13195_v1 = vld [vmem:[%s14796_s14 + $0x4] ss:$48 sps:$4 sm:$0xff]   ;;  %v13197_v2 = vld [vmem:[%s14796_s14 + $0xc] ss:$48 sps:$4 sm:$0xff]   ;;  %v13199_v3 = vld [vmem:[%s14796_s14] ss:$48 sps:$4 sm:$0xff]  }
  0xf0   : > { %2789 = vmatprep.subr.bf16.mxu0 %v13195_v1  ;;  %v13200_v4 = vld [vmem:[%s14796_s14 + $0x8] ss:$48 sps:$4 sm:$0xff]   ;;  %2871 = vmatprep.subr.bf16.mxu1 %v13197_v2  ;;  %v13201_v5 = vld [vmem:[%s14796_s14 + $0x64] ss:$48 sps:$4 sm:$0xff]   ;;  %v13203_v6 = vld [vmem:[%s14796_s14 + $0x6c] ss:$48 sps:$4 sm:$0xff]  }
  0xf1   : > { %2790 = vmatpush1.bf16.msra.mxu0 %v13199_v3  ;;  %2872 = vmatpush1.bf16.msra.mxu1 %v13200_v4  ;;  %v13205_v7 = vld [vmem:[%s14796_s14 + $0x60] ss:$48 sps:$4 sm:$0xff]   ;;  %v13206_v8 = vld [vmem:[%s14796_s14 + $0x68] ss:$48 sps:$4 sm:$0xff]   ;;  %v13207_v9 = vld [vmem:[%s14796_s14 + $0xc4] ss:$48 sps:$4 sm:$0xff]  }
  0xf2   : > { %2791 = vmatprep.subr.bf16.mxu0 %v13201_v5  ;;  %2873 = vmatprep.subr.bf16.mxu1 %v13203_v6  ;;  %v13209_v10 = vld [vmem:[%s14796_s14 + $0xcc] ss:$48 sps:$4 sm:$0xff]   ;;  %v13211_v11 = vld [vmem:[%s14796_s14 + $0xc0] ss:$48 sps:$4 sm:$0xff]   ;;  %v13212_v12 = vld [vmem:[%s14796_s14 + $0xc8] ss:$48 sps:$4 sm:$0xff]  }
  0xf3   : > { %v13213_v13 = vld [vmem:[%s14796_s14 + $0x124] ss:$48 sps:$4 sm:$0xff]   ;;  %v13215_v14 = vld [vmem:[%s14796_s14 + $0x12c] ss:$48 sps:$4 sm:$0xff]   ;;  %v13217_v15 = vld [vmem:[%s14796_s14 + $0x120] ss:$48 sps:$4 sm:$0xff]  }
  0xf4   : > { %v13218_v16 = vld [vmem:[%s14796_s14 + $0x128] ss:$48 sps:$4 sm:$0xff]   ;;  %v13219_v17 = vld [vmem:[%s14796_s14 + $0x184] ss:$48 sps:$4 sm:$0xff]   ;;  %v13221_v18 = vld [vmem:[%s14796_s14 + $0x18c] ss:$48 sps:$4 sm:$0xff]  }
  0xf5   : > { %2792 = vmatpush1.bf16.msra.mxu0 %v13205_v7  ;;  %2874 = vmatpush1.bf16.msra.mxu1 %v13206_v8  ;;  %v13223_v19 = vld [vmem:[%s14796_s14 + $0x180] ss:$48 sps:$4 sm:$0xff]   ;;  %v13224_v20 = vld [vmem:[%s14796_s14 + $0x188] ss:$48 sps:$4 sm:$0xff]   ;;  %v13225_v21 = vld [vmem:[%s14796_s14 + $0x1e4] ss:$48 sps:$4 sm:$0xff]  }
  0xf6   : > { %2793 = vmatprep.subr.bf16.mxu0 %v13207_v9  ;;  %2875 = vmatprep.subr.bf16.mxu1 %v13209_v10  ;;  %v13227_v22 = vld [vmem:[%s14796_s14 + $0x1ec] ss:$48 sps:$4 sm:$0xff]   ;;  %v13229_v23 = vld [vmem:[%s14796_s14 + $0x1e0] ss:$48 sps:$4 sm:$0xff]   ;;  %v13230_v24 = vld [vmem:[%s14796_s14 + $0x1e8] ss:$48 sps:$4 sm:$0xff]  }
  0xf7   : > { %v13231_v25 = vld [vmem:[%s14796_s14 + $0x244] ss:$48 sps:$4 sm:$0xff]   ;;  %v13233_v26 = vld [vmem:[%s14796_s14 + $0x24c] ss:$48 sps:$4 sm:$0xff]   ;;  %v13235_v27 = vld [vmem:[%s14796_s14 + $0x240] ss:$48 sps:$4 sm:$0xff]  }
  0xf8   : > { %v13236_v28 = vld [vmem:[%s14796_s14 + $0x248] ss:$48 sps:$4 sm:$0xff]   ;;  %v13237_v29 = vld [vmem:[%s14796_s14 + $0x2a4] ss:$48 sps:$4 sm:$0xff]   ;;  %v13239_v30 = vld [vmem:[%s14796_s14 + $0x2ac] ss:$48 sps:$4 sm:$0xff]  }
  0xf9   : > { %2794 = vmatpush1.bf16.msra.mxu0 %v13211_v11  ;;  %2876 = vmatpush1.bf16.msra.mxu1 %v13212_v12  ;;  %v13241_v31 = vld [vmem:[%s14796_s14 + $0x2a0] ss:$48 sps:$4 sm:$0xff]   ;;  %v13242_v32 = vld [vmem:[%s14796_s14 + $0x2a8] ss:$48 sps:$4 sm:$0xff]   ;;  %v13243_v33 = vld [vmem:[%s14796_s14 + $0x304] ss:$48 sps:$4 sm:$0xff]  }
  0xfa   : > { %2795 = vmatprep.subr.bf16.mxu0 %v13213_v13  ;;  %2877 = vmatprep.subr.bf16.mxu1 %v13215_v14  ;;  %v13245_v34 = vld [vmem:[%s14796_s14 + $0x30c] ss:$48 sps:$4 sm:$0xff]   ;;  %v13247_v35 = vld [vmem:[%s14796_s14 + $0x300] ss:$48 sps:$4 sm:$0xff]   ;;  %v13248_v36 = vld [vmem:[%s14796_s14 + $0x308] ss:$48 sps:$4 sm:$0xff]  }
  0xfb   : > { %v13249_v37 = vld [vmem:[%s14796_s14 + $0x364] ss:$48 sps:$4 sm:$0xff]   ;;  %v13251_v38 = vld [vmem:[%s14796_s14 + $0x36c] ss:$48 sps:$4 sm:$0xff]   ;;  %v13253_v39 = vld [vmem:[%s14796_s14 + $0x360] ss:$48 sps:$4 sm:$0xff]  }
  0xfc   : > { %v13254_v40 = vld [vmem:[%s14796_s14 + $0x368] ss:$48 sps:$4 sm:$0xff]   ;;  %v13255_v41 = vld [vmem:[%s14796_s14 + $0x3c4] ss:$48 sps:$4 sm:$0xff]   ;;  %v13257_v42 = vld [vmem:[%s14796_s14 + $0x3cc] ss:$48 sps:$4 sm:$0xff]  }
  0xfd   : > { %2796 = vmatpush1.bf16.msra.mxu0 %v13217_v15  ;;  %2878 = vmatpush1.bf16.msra.mxu1 %v13218_v16  ;;  %v13259_v43 = vld [vmem:[%s14796_s14 + $0x3c0] ss:$48 sps:$4 sm:$0xff]   ;;  %v13260_v44 = vld [vmem:[%s14796_s14 + $0x3c8] ss:$48 sps:$4 sm:$0xff]   ;;  %v13261_v45 = vld [vmem:[%s14796_s14 + $0x424] ss:$48 sps:$4 sm:$0xff]  }
  0xfe   : > { %2797 = vmatprep.subr.bf16.mxu0 %v13219_v17  ;;  %2879 = vmatprep.subr.bf16.mxu1 %v13221_v18  ;;  %v13263_v46 = vld [vmem:[%s14796_s14 + $0x42c] ss:$48 sps:$4 sm:$0xff]   ;;  %v467_v47 = vld [vmem:[%s14822_s24] sm:$0xff]  ;;  %v13266_v50 = vld [vmem:[%s14796_s14 + $0x428] ss:$48 sps:$4 sm:$0xff]   ;;  %p11829_p12 = scmp.ne.s32.totalorder %s14557_s15, 3 }
  0xff   : > { %v13265_v48 = vld [vmem:[%s14796_s14 + $0x420] ss:$48 sps:$4 sm:$0xff]   ;;  %v471_v49 = vcombine.high %v467_v47, %v467_v47  ;;  %v13267_v51 = vld [vmem:[%s14796_s14 + $0x484] ss:$48 sps:$4 sm:$0xff]   ;;  %v13269_v52 = vld [vmem:[%s14796_s14 + $0x48c] ss:$48 sps:$4 sm:$0xff]   ;;  %v14898_v7 = vpack.c.bf16 %v467_v47, %v467_v47 }
 0x100   : > { %v13271_v54 = vld [vmem:[%s14796_s14 + $0x480] ss:$48 sps:$4 sm:$0xff]   ;;  %v13272_v55 = vld [vmem:[%s14796_s14 + $0x488] ss:$48 sps:$4 sm:$0xff]   ;;  %v13273_v56 = vld [vmem:[%s14796_s14 + $0x4e4] ss:$48 sps:$4 sm:$0xff]  }
 0x101   : > { %2798 = vmatpush1.bf16.msra.mxu0 %v13223_v19  ;;  %2880 = vmatpush1.bf16.msra.mxu1 %v13224_v20  ;;  %v14877_v53 = vpack.c.bf16 %v471_v49, %v471_v49  ;;  %v13275_v57 = vld [vmem:[%s14796_s14 + $0x4ec] ss:$48 sps:$4 sm:$0xff]   ;;  %v13277_v58 = vld [vmem:[%s14796_s14 + $0x4e0] ss:$48 sps:$4 sm:$0xff]   ;;  %v13278_v59 = vld [vmem:[%s14796_s14 + $0x4e8] ss:$48 sps:$4 sm:$0xff]  }
 0x102   : > { %2799 = vmatprep.subr.bf16.mxu0 %v13225_v21  ;;  %2881 = vmatprep.subr.bf16.mxu1 %v13227_v22  ;;  %v13279_v60 = vld [vmem:[%s14796_s14 + $0x544] ss:$48 sps:$4 sm:$0xff]   ;;  %v13281_v61 = vld [vmem:[%s14796_s14 + $0x54c] ss:$48 sps:$4 sm:$0xff]   ;;  %v13283_v62 = vld [vmem:[%s14796_s14 + $0x540] ss:$48 sps:$4 sm:$0xff]  }
 0x103   : > { %2821 = vmatprep.mubr.bf16.mxu0 %v14877_v53  ;;  %2903 = vmatprep.mubr.bf16.mxu1 %v14877_v53  ;;  %v13284_v63 = vld [vmem:[%s14796_s14 + $0x548] ss:$48 sps:$4 sm:$0xff]   ;;  %v13285_v0 = vld [vmem:[%s14796_s14 + $0x5a4] ss:$48 sps:$4 sm:$0xff]   ;;  %v13287_v1 = vld [vmem:[%s14796_s14 + $0x5ac] ss:$48 sps:$4 sm:$0xff]  }
 0x104   : > { %v13289_v2 = vld [vmem:[%s14796_s14 + $0x5a0] ss:$48 sps:$4 sm:$0xff]   ;;  %v13290_v3 = vld [vmem:[%s14796_s14 + $0x5a8] ss:$48 sps:$4 sm:$0xff]   ;;  %v13294_v4 = vld [vmem:[%s14796_s14 + $0x604] ss:$48 sps:$4 sm:$0xff]  }
 0x105   : > { %2800 = vmatpush1.bf16.msra.mxu0 %v13229_v23  ;;  %2882 = vmatpush1.bf16.msra.mxu1 %v13230_v24  ;;  %v13297_v5 = vld [vmem:[%s14796_s14 + $0x60c] ss:$48 sps:$4 sm:$0xff]   ;;  %v13292_v6 = vld [vmem:[%s14796_s14 + $0x600] ss:$48 sps:$4 sm:$0xff]   ;;  %v13295_v8 = vld [vmem:[%s14796_s14 + $0x608] ss:$48 sps:$4 sm:$0xff]  }
 0x106   : > { %2801 = vmatprep.subr.bf16.mxu0 %v13231_v25  ;;  %2883 = vmatprep.subr.bf16.mxu1 %v13233_v26  ;;  %v13300_v9 = vld [vmem:[%s14796_s14 + $0x664] ss:$48 sps:$4 sm:$0xff]   ;;  %v13303_v10 = vld [vmem:[%s14796_s14 + $0x66c] ss:$48 sps:$4 sm:$0xff]   ;;  %v13298_v11 = vld [vmem:[%s14796_s14 + $0x660] ss:$48 sps:$4 sm:$0xff]  }
 0x107   : > { %v13301_v12 = vld [vmem:[%s14796_s14 + $0x668] ss:$48 sps:$4 sm:$0xff]   ;;  %v13306_v13 = vld [vmem:[%s14796_s14 + $0x6c4] ss:$48 sps:$4 sm:$0xff]   ;;  %v13309_v14 = vld [vmem:[%s14796_s14 + $0x6cc] ss:$48 sps:$4 sm:$0xff]  }
 0x108   : > { %v13304_v15 = vld [vmem:[%s14796_s14 + $0x6c0] ss:$48 sps:$4 sm:$0xff]   ;;  %v13307_v16 = vld [vmem:[%s14796_s14 + $0x6c8] ss:$48 sps:$4 sm:$0xff]   ;;  %v13312_v17 = vld [vmem:[%s14796_s14 + $0x724] ss:$48 sps:$4 sm:$0xff]  }
 0x109   : > { %2802 = vmatpush1.bf16.msra.mxu0 %v13235_v27  ;;  %2884 = vmatpush1.bf16.msra.mxu1 %v13236_v28  ;;  %v13315_v18 = vld [vmem:[%s14796_s14 + $0x72c] ss:$48 sps:$4 sm:$0xff]   ;;  %v13310_v19 = vld [vmem:[%s14796_s14 + $0x720] ss:$48 sps:$4 sm:$0xff]   ;;  %v13313_v20 = vld [vmem:[%s14796_s14 + $0x728] ss:$48 sps:$4 sm:$0xff]  }
 0x10a   : > { %2803 = vmatprep.subr.bf16.mxu0 %v13237_v29  ;;  %2885 = vmatprep.subr.bf16.mxu1 %v13239_v30  ;;  %v13318_v21 = vld [vmem:[%s14796_s14 + $0x784] ss:$48 sps:$4 sm:$0xff]   ;;  %v13321_v22 = vld [vmem:[%s14796_s14 + $0x78c] ss:$48 sps:$4 sm:$0xff]   ;;  %v13316_v23 = vld [vmem:[%s14796_s14 + $0x780] ss:$48 sps:$4 sm:$0xff]  }
 0x10b   : > { %v13319_v24 = vld [vmem:[%s14796_s14 + $0x788] ss:$48 sps:$4 sm:$0xff]   ;;  %v13324_v25 = vld [vmem:[%s14796_s14 + $0x7e4] ss:$48 sps:$4 sm:$0xff]   ;;  %v13327_v26 = vld [vmem:[%s14796_s14 + $0x7ec] ss:$48 sps:$4 sm:$0xff]  }
 0x10c   : > { %v13322_v27 = vld [vmem:[%s14796_s14 + $0x7e0] ss:$48 sps:$4 sm:$0xff]   ;;  %v13325_v28 = vld [vmem:[%s14796_s14 + $0x7e8] ss:$48 sps:$4 sm:$0xff]   ;;  %v13330_v29 = vld [vmem:[%s14796_s14 + $0x844] ss:$48 sps:$4 sm:$0xff]  }
 0x10d   : > { %2804 = vmatpush1.bf16.msra.mxu0 %v13241_v31  ;;  %2886 = vmatpush1.bf16.msra.mxu1 %v13242_v32  ;;  %v13333_v30 = vld [vmem:[%s14796_s14 + $0x84c] ss:$48 sps:$4 sm:$0xff]   ;;  %v13349_v47 = vld [vmem:[%s14796_s14 + $0x968] ss:$48 sps:$4 sm:$0xff]  }
 0x10e   : > { %2805 = vmatprep.subr.bf16.mxu0 %v13243_v33  ;;  %2887 = vmatprep.subr.bf16.mxu1 %v13245_v34  ;;  %v14926_v31 = vld [vmem:[%s14822_s24 + $0x8] sm:$0xff]  ;;  %v13328_v33 = vld [vmem:[%s14796_s14 + $0x840] ss:$48 sps:$4 sm:$0xff]  }
 0x10f   : > { %v472_v32 = vcombine.high %v14926_v31, %v14926_v31  ;;  %v13331_v34 = vld [vmem:[%s14796_s14 + $0x848] ss:$48 sps:$4 sm:$0xff]   ;;  %v13357_v49 = vld [vmem:[%s14796_s14 + $0x9cc] ss:$48 sps:$4 sm:$0xff]  }
 0x111   : > { %2806 = vmatpush1.bf16.msra.mxu0 %v13247_v35  ;;  %2888 = vmatpush1.bf16.msra.mxu1 %v13248_v36  ;;  %v14932_v35 = vpack.c.bf16 %v472_v32, %v472_v32  ;;  %v13336_v36 = vld [vmem:[%s14796_s14 + $0x8a4] ss:$48 sps:$4 sm:$0xff]   ;;  %v13424_v32 = vld [vmem:[%s14796_s14 + $0x1fc] ss:$48 sps:$4 sm:$0xff]  }
 0x112   : > { %2807 = vmatprep.subr.bf16.mxu0 %v13249_v37  ;;  %2889 = vmatprep.subr.bf16.mxu1 %v13251_v38  ;;  %v13339_v37 = vld [vmem:[%s14796_s14 + $0x8ac] ss:$48 sps:$4 sm:$0xff]   ;;  %v13334_v38 = vld [vmem:[%s14796_s14 + $0x8a0] ss:$48 sps:$4 sm:$0xff]  }
 0x115   : > { %2808 = vmatpush1.bf16.msra.mxu0 %v13253_v39  ;;  %2890 = vmatpush1.bf16.msra.mxu1 %v13254_v40  ;;  %v13337_v39 = vld [vmem:[%s14796_s14 + $0x8a8] ss:$48 sps:$4 sm:$0xff]   ;;  %v13342_v40 = vld [vmem:[%s14796_s14 + $0x904] ss:$48 sps:$4 sm:$0xff]  }
 0x116   : > { %2809 = vmatprep.subr.bf16.mxu0 %v13255_v41  ;;  %2891 = vmatprep.subr.bf16.mxu1 %v13257_v42  ;;  %v13345_v41 = vld [vmem:[%s14796_s14 + $0x90c] ss:$48 sps:$4 sm:$0xff]   ;;  %v13340_v42 = vld [vmem:[%s14796_s14 + $0x900] ss:$48 sps:$4 sm:$0xff]  }
 0x119   : > { %2810 = vmatpush1.bf16.msra.mxu0 %v13259_v43  ;;  %2892 = vmatpush1.bf16.msra.mxu1 %v13260_v44  ;;  %v13343_v43 = vld [vmem:[%s14796_s14 + $0x908] ss:$48 sps:$4 sm:$0xff]   ;;  %v13348_v44 = vld [vmem:[%s14796_s14 + $0x964] ss:$48 sps:$4 sm:$0xff]  }
 0x11a   : > { %2811 = vmatprep.subr.bf16.mxu0 %v13261_v45  ;;  %2893 = vmatprep.subr.bf16.mxu1 %v13263_v46  ;;  %v13351_v45 = vld [vmem:[%s14796_s14 + $0x96c] ss:$48 sps:$4 sm:$0xff]   ;;  %v13346_v46 = vld [vmem:[%s14796_s14 + $0x960] ss:$48 sps:$4 sm:$0xff]  }
 0x11d   : > { %2812 = vmatpush1.bf16.msra.mxu0 %v13265_v48  ;;  %2894 = vmatpush1.bf16.msra.mxu1 %v13266_v50  ;;  %v13354_v48 = vld [vmem:[%s14796_s14 + $0x9c4] ss:$48 sps:$4 sm:$0xff]   ;;  %v13352_v50 = vld [vmem:[%s14796_s14 + $0x9c0] ss:$48 sps:$4 sm:$0xff]  }
 0x11e   : > { %2813 = vmatprep.subr.bf16.mxu0 %v13267_v51  ;;  %2895 = vmatprep.subr.bf16.mxu1 %v13269_v52  ;;  %v13355_v51 = vld [vmem:[%s14796_s14 + $0x9c8] ss:$48 sps:$4 sm:$0xff]   ;;  %v13360_v52 = vld [vmem:[%s14796_s14 + $0xa24] ss:$48 sps:$4 sm:$0xff]  }
 0x121   : > { %2814 = vmatpush1.bf16.msra.mxu0 %v13271_v54  ;;  %2896 = vmatpush1.bf16.msra.mxu1 %v13272_v55  ;;  %v13363_v54 = vld [vmem:[%s14796_s14 + $0xa2c] ss:$48 sps:$4 sm:$0xff]   ;;  %v13358_v55 = vld [vmem:[%s14796_s14 + $0xa20] ss:$48 sps:$4 sm:$0xff]  }
 0x122   : > { %2815 = vmatprep.subr.bf16.mxu0 %v13273_v56  ;;  %2897 = vmatprep.subr.bf16.mxu1 %v13275_v57  ;;  %v13361_v56 = vld [vmem:[%s14796_s14 + $0xa28] ss:$48 sps:$4 sm:$0xff]   ;;  %v13366_v57 = vld [vmem:[%s14796_s14 + $0xa84] ss:$48 sps:$4 sm:$0xff]  }
 0x125   : > { %2816 = vmatpush1.bf16.msra.mxu0 %v13277_v58  ;;  %2898 = vmatpush1.bf16.msra.mxu1 %v13278_v59  ;;  %v13369_v58 = vld [vmem:[%s14796_s14 + $0xa8c] ss:$48 sps:$4 sm:$0xff]   ;;  %v13364_v59 = vld [vmem:[%s14796_s14 + $0xa80] ss:$48 sps:$4 sm:$0xff]  }
 0x126   : > { %2817 = vmatprep.subr.bf16.mxu0 %v13279_v60  ;;  %2899 = vmatprep.subr.bf16.mxu1 %v13281_v61  ;;  %v13367_v60 = vld [vmem:[%s14796_s14 + $0xa88] ss:$48 sps:$4 sm:$0xff]   ;;  %v13372_v61 = vld [vmem:[%s14796_s14 + $0xae4] ss:$48 sps:$4 sm:$0xff]  }
 0x129   : > { %2818 = vmatpush1.bf16.msra.mxu0 %v13283_v62  ;;  %2900 = vmatpush1.bf16.msra.mxu1 %v13284_v63  ;;  %v13375_v62 = vld [vmem:[%s14796_s14 + $0xaec] ss:$48 sps:$4 sm:$0xff]   ;;  %v13370_v63 = vld [vmem:[%s14796_s14 + $0xae0] ss:$48 sps:$4 sm:$0xff]  }
 0x12a   : > { %2819 = vmatprep.subr.bf16.mxu0 %v13285_v0  ;;  %2901 = vmatprep.subr.bf16.mxu1 %v13287_v1  ;;  %v13373_v0 = vld [vmem:[%s14796_s14 + $0xae8] ss:$48 sps:$4 sm:$0xff]   ;;  %v13378_v1 = vld [vmem:[%s14796_s14 + $0xb44] ss:$48 sps:$4 sm:$0xff]  }
 0x12d   : > { %2820 = vmatpush1.bf16.msra.mxu0 %v13289_v2  ;;  %2902 = vmatpush1.bf16.msra.mxu1 %v13290_v3  ;;  %v13381_v2 = vld [vmem:[%s14796_s14 + $0xb4c] ss:$48 sps:$4 sm:$0xff]   ;;  %v13376_v3 = vld [vmem:[%s14796_s14 + $0xb40] ss:$48 sps:$4 sm:$0xff]  }
 0x12e   : > { %2830 = vmatprep.subr.bf16.mxu0 %v13294_v4  ;;  %2912 = vmatprep.subr.bf16.mxu1 %v13297_v5  ;;  %v13379_v4 = vld [vmem:[%s14796_s14 + $0xb48] ss:$48 sps:$4 sm:$0xff]   ;;  %v13384_v5 = vld [vmem:[%s14796_s14 + $0xba4] ss:$48 sps:$4 sm:$0xff]  }
 0x130   : > { %2822 = vmatmul.mubr.bf16.vlgmr.msra.gmra.mrb[0].mxu0 %v14898_v7  ;;  %2904 = vmatmul.mubr.bf16.vlgmr.msra.gmra.mrb[0].mxu1 %v14898_v7 }
 0x131   : > { %2831 = vmatpush1.bf16.msra.mxu0 %v13292_v6  ;;  %2913 = vmatpush1.bf16.msra.mxu1 %v13295_v8  ;;  %v13387_v6 = vld [vmem:[%s14796_s14 + $0xbac] ss:$48 sps:$4 sm:$0xff]   ;;  %v13382_v8 = vld [vmem:[%s14796_s14 + $0xba0] ss:$48 sps:$4 sm:$0xff]  }
 0x132   : > { %2832 = vmatprep.subr.bf16.mxu0 %v13300_v9  ;;  %2914 = vmatprep.subr.bf16.mxu1 %v13303_v10  ;;  %v13385_v9 = vld [vmem:[%s14796_s14 + $0xba8] ss:$48 sps:$4 sm:$0xff]   ;;  %v13391_v10 = vld [vmem:[%s14796_s14 + $0x14] ss:$48 sps:$4 sm:$0xff]  }
 0x133   : > { %2862 = vmatprep.mubr.bf16.mxu0 %v14932_v35  ;;  %2944 = vmatprep.mubr.bf16.mxu1 %v14932_v35 }
 0x135   : > { %2833 = vmatpush1.bf16.msra.mxu0 %v13298_v11  ;;  %2915 = vmatpush1.bf16.msra.mxu1 %v13301_v12  ;;  %v13394_v11 = vld [vmem:[%s14796_s14 + $0x1c] ss:$48 sps:$4 sm:$0xff]   ;;  %v14976_v12 = vpack.c.bf16 %v14926_v31, %v14926_v31  ;;  %v13421_v31 = vld [vmem:[%s14796_s14 + $0x1f4] ss:$48 sps:$4 sm:$0xff]  }
 0x136   : > { %2834 = vmatprep.subr.bf16.mxu0 %v13306_v13  ;;  %2916 = vmatprep.subr.bf16.mxu1 %v13309_v14  ;;  %v13389_v13 = vld [vmem:[%s14796_s14 + $0x10] ss:$48 sps:$4 sm:$0xff]   ;;  %v13392_v14 = vld [vmem:[%s14796_s14 + $0x18] ss:$48 sps:$4 sm:$0xff]  }
 0x139   : > { %2835 = vmatpush1.bf16.msra.mxu0 %v13304_v15  ;;  %2917 = vmatpush1.bf16.msra.mxu1 %v13307_v16  ;;  %v13397_v15 = vld [vmem:[%s14796_s14 + $0x74] ss:$48 sps:$4 sm:$0xff]   ;;  %v13400_v16 = vld [vmem:[%s14796_s14 + $0x7c] ss:$48 sps:$4 sm:$0xff]  }
 0x13a   : > { %2836 = vmatprep.subr.bf16.mxu0 %v13312_v17  ;;  %2918 = vmatprep.subr.bf16.mxu1 %v13315_v18  ;;  %v13395_v17 = vld [vmem:[%s14796_s14 + $0x70] ss:$48 sps:$4 sm:$0xff]   ;;  %v13398_v18 = vld [vmem:[%s14796_s14 + $0x78] ss:$48 sps:$4 sm:$0xff]  }
 0x13d   : > { %2837 = vmatpush1.bf16.msra.mxu0 %v13310_v19  ;;  %2919 = vmatpush1.bf16.msra.mxu1 %v13313_v20  ;;  %v13403_v19 = vld [vmem:[%s14796_s14 + $0xd4] ss:$48 sps:$4 sm:$0xff]   ;;  %v13406_v20 = vld [vmem:[%s14796_s14 + $0xdc] ss:$48 sps:$4 sm:$0xff]  }
 0x13e   : > { %2838 = vmatprep.subr.bf16.mxu0 %v13318_v21  ;;  %2920 = vmatprep.subr.bf16.mxu1 %v13321_v22  ;;  %v13401_v21 = vld [vmem:[%s14796_s14 + $0xd0] ss:$48 sps:$4 sm:$0xff]   ;;  %v13404_v22 = vld [vmem:[%s14796_s14 + $0xd8] ss:$48 sps:$4 sm:$0xff]  }
 0x141   : > { %2839 = vmatpush1.bf16.msra.mxu0 %v13316_v23  ;;  %2921 = vmatpush1.bf16.msra.mxu1 %v13319_v24  ;;  %v13409_v23 = vld [vmem:[%s14796_s14 + $0x134] ss:$48 sps:$4 sm:$0xff]   ;;  %v13412_v24 = vld [vmem:[%s14796_s14 + $0x13c] ss:$48 sps:$4 sm:$0xff]  }
 0x142   : > { %2840 = vmatprep.subr.bf16.mxu0 %v13324_v25  ;;  %2922 = vmatprep.subr.bf16.mxu1 %v13327_v26  ;;  %v13407_v25 = vld [vmem:[%s14796_s14 + $0x130] ss:$48 sps:$4 sm:$0xff]   ;;  %v13410_v26 = vld [vmem:[%s14796_s14 + $0x138] ss:$48 sps:$4 sm:$0xff]  }
 0x145   : > { %2841 = vmatpush1.bf16.msra.mxu0 %v13322_v27  ;;  %2923 = vmatpush1.bf16.msra.mxu1 %v13325_v28  ;;  %v13415_v27 = vld [vmem:[%s14796_s14 + $0x194] ss:$48 sps:$4 sm:$0xff]   ;;  %v13418_v28 = vld [vmem:[%s14796_s14 + $0x19c] ss:$48 sps:$4 sm:$0xff]  }
 0x146   : > { %2842 = vmatprep.subr.bf16.mxu0 %v13330_v29  ;;  %2924 = vmatprep.subr.bf16.mxu1 %v13333_v30  ;;  %v13413_v29 = vld [vmem:[%s14796_s14 + $0x190] ss:$48 sps:$4 sm:$0xff]   ;;  %v13416_v30 = vld [vmem:[%s14796_s14 + $0x198] ss:$48 sps:$4 sm:$0xff]  }
 0x149   : > { %2843 = vmatpush1.bf16.msra.mxu0 %v13328_v33  ;;  %2925 = vmatpush1.bf16.msra.mxu1 %v13331_v34  ;;  %v13419_v33 = vld [vmem:[%s14796_s14 + $0x1f0] ss:$48 sps:$4 sm:$0xff]   ;;  %v13422_v34 = vld [vmem:[%s14796_s14 + $0x1f8] ss:$48 sps:$4 sm:$0xff]  }
 0x14a   : > { %2844 = vmatprep.subr.bf16.mxu0 %v13336_v36  ;;  %2926 = vmatprep.subr.bf16.mxu1 %v13339_v37  ;;  %v13427_v36 = vld [vmem:[%s14796_s14 + $0x254] ss:$48 sps:$4 sm:$0xff]   ;;  %v13430_v37 = vld [vmem:[%s14796_s14 + $0x25c] ss:$48 sps:$4 sm:$0xff]  }
 0x14d   : > { %2845 = vmatpush1.bf16.msra.mxu0 %v13334_v38  ;;  %2927 = vmatpush1.bf16.msra.mxu1 %v13337_v39  ;;  %v13425_v38 = vld [vmem:[%s14796_s14 + $0x250] ss:$48 sps:$4 sm:$0xff]   ;;  %v13428_v39 = vld [vmem:[%s14796_s14 + $0x258] ss:$48 sps:$4 sm:$0xff]  }
 0x14e   : > { %2846 = vmatprep.subr.bf16.mxu0 %v13342_v40  ;;  %2928 = vmatprep.subr.bf16.mxu1 %v13345_v41  ;;  %v13433_v40 = vld [vmem:[%s14796_s14 + $0x2b4] ss:$48 sps:$4 sm:$0xff]   ;;  %v13436_v41 = vld [vmem:[%s14796_s14 + $0x2bc] ss:$48 sps:$4 sm:$0xff]  }
 0x151   : > { %2847 = vmatpush1.bf16.msra.mxu0 %v13340_v42  ;;  %2929 = vmatpush1.bf16.msra.mxu1 %v13343_v43  ;;  %v13431_v42 = vld [vmem:[%s14796_s14 + $0x2b0] ss:$48 sps:$4 sm:$0xff]   ;;  %v13434_v43 = vld [vmem:[%s14796_s14 + $0x2b8] ss:$48 sps:$4 sm:$0xff]  }
 0x152   : > { %2848 = vmatprep.subr.bf16.mxu0 %v13348_v44  ;;  %2930 = vmatprep.subr.bf16.mxu1 %v13351_v45  ;;  %v13439_v44 = vld [vmem:[%s14796_s14 + $0x314] ss:$48 sps:$4 sm:$0xff]   ;;  %v13442_v45 = vld [vmem:[%s14796_s14 + $0x31c] ss:$48 sps:$4 sm:$0xff]  }
 0x155   : > { %2849 = vmatpush1.bf16.msra.mxu0 %v13346_v46  ;;  %2931 = vmatpush1.bf16.msra.mxu1 %v13349_v47  ;;  %v13437_v46 = vld [vmem:[%s14796_s14 + $0x310] ss:$48 sps:$4 sm:$0xff]   ;;  %v13440_v47 = vld [vmem:[%s14796_s14 + $0x318] ss:$48 sps:$4 sm:$0xff]  }
 0x156   : > { %2850 = vmatprep.subr.bf16.mxu0 %v13354_v48  ;;  %2932 = vmatprep.subr.bf16.mxu1 %v13357_v49  ;;  %v13445_v48 = vld [vmem:[%s14796_s14 + $0x374] ss:$48 sps:$4 sm:$0xff]   ;;  %v13448_v49 = vld [vmem:[%s14796_s14 + $0x37c] ss:$48 sps:$4 sm:$0xff]  }
 0x159   : > { %2851 = vmatpush1.bf16.msra.mxu0 %v13352_v50  ;;  %2933 = vmatpush1.bf16.msra.mxu1 %v13355_v51  ;;  %v13443_v50 = vld [vmem:[%s14796_s14 + $0x370] ss:$48 sps:$4 sm:$0xff]   ;;  %v13446_v51 = vld [vmem:[%s14796_s14 + $0x378] ss:$48 sps:$4 sm:$0xff]  }
 0x15a   : > { %2852 = vmatprep.subr.bf16.mxu0 %v13360_v52  ;;  %2934 = vmatprep.subr.bf16.mxu1 %v13363_v54  ;;  %v13451_v52 = vld [vmem:[%s14796_s14 + $0x3d4] ss:$48 sps:$4 sm:$0xff]   ;;  %v13454_v54 = vld [vmem:[%s14796_s14 + $0x3dc] ss:$48 sps:$4 sm:$0xff]  }
 0x15d   : > { %2853 = vmatpush1.bf16.msra.mxu0 %v13358_v55  ;;  %2935 = vmatpush1.bf16.msra.mxu1 %v13361_v56  ;;  %v13449_v55 = vld [vmem:[%s14796_s14 + $0x3d0] ss:$48 sps:$4 sm:$0xff]   ;;  %v13452_v56 = vld [vmem:[%s14796_s14 + $0x3d8] ss:$48 sps:$4 sm:$0xff]  }
 0x15e   : > { %2854 = vmatprep.subr.bf16.mxu0 %v13366_v57  ;;  %2936 = vmatprep.subr.bf16.mxu1 %v13369_v58  ;;  %v13457_v57 = vld [vmem:[%s14796_s14 + $0x434] ss:$48 sps:$4 sm:$0xff]   ;;  %v13460_v58 = vld [vmem:[%s14796_s14 + $0x43c] ss:$48 sps:$4 sm:$0xff]  }
 0x161   : > { %2855 = vmatpush1.bf16.msra.mxu0 %v13364_v59  ;;  %2937 = vmatpush1.bf16.msra.mxu1 %v13367_v60  ;;  %v13455_v59 = vld [vmem:[%s14796_s14 + $0x430] ss:$48 sps:$4 sm:$0xff]   ;;  %v13458_v60 = vld [vmem:[%s14796_s14 + $0x438] ss:$48 sps:$4 sm:$0xff]  }
 0x162   : > { %2856 = vmatprep.subr.bf16.mxu0 %v13372_v61  ;;  %2938 = vmatprep.subr.bf16.mxu1 %v13375_v62  ;;  %v13463_v61 = vld [vmem:[%s14796_s14 + $0x494] ss:$48 sps:$4 sm:$0xff]   ;;  %v13466_v62 = vld [vmem:[%s14796_s14 + $0x49c] ss:$48 sps:$4 sm:$0xff]  }
 0x165   : > { %2857 = vmatpush1.bf16.msra.mxu0 %v13370_v63  ;;  %2939 = vmatpush1.bf16.msra.mxu1 %v13373_v0  ;;  %v13461_v63 = vld [vmem:[%s14796_s14 + $0x490] ss:$48 sps:$4 sm:$0xff]   ;;  %v13464_v0 = vld [vmem:[%s14796_s14 + $0x498] ss:$48 sps:$4 sm:$0xff]  }
 0x166   : > { %2858 = vmatprep.subr.bf16.mxu0 %v13378_v1  ;;  %2940 = vmatprep.subr.bf16.mxu1 %v13381_v2  ;;  %v13469_v1 = vld [vmem:[%s14796_s14 + $0x4f4] ss:$48 sps:$4 sm:$0xff]   ;;  %v13472_v2 = vld [vmem:[%s14796_s14 + $0x4fc] ss:$48 sps:$4 sm:$0xff]  }
 0x169   : > { %2859 = vmatpush1.bf16.msra.mxu0 %v13376_v3  ;;  %2941 = vmatpush1.bf16.msra.mxu1 %v13379_v4  ;;  %v13467_v3 = vld [vmem:[%s14796_s14 + $0x4f0] ss:$48 sps:$4 sm:$0xff]   ;;  %v13470_v4 = vld [vmem:[%s14796_s14 + $0x4f8] ss:$48 sps:$4 sm:$0xff]  }
 0x16a   : > { %2860 = vmatprep.subr.bf16.mxu0 %v13384_v5  ;;  %2942 = vmatprep.subr.bf16.mxu1 %v13387_v6  ;;  %v13475_v5 = vld [vmem:[%s14796_s14 + $0x554] ss:$48 sps:$4 sm:$0xff]   ;;  %v13478_v6 = vld [vmem:[%s14796_s14 + $0x55c] ss:$48 sps:$4 sm:$0xff]  }
 0x16d   : > { %2861 = vmatpush1.bf16.msra.mxu0 %v13382_v8  ;;  %2943 = vmatpush1.bf16.msra.mxu1 %v13385_v9  ;;  %v13473_v8 = vld [vmem:[%s14796_s14 + $0x550] ss:$48 sps:$4 sm:$0xff]   ;;  %v13476_v9 = vld [vmem:[%s14796_s14 + $0x558] ss:$48 sps:$4 sm:$0xff]  }
 0x16e   : > { %2953 = vmatprep.subr.bf16.mxu0 %v13391_v10  ;;  %3035 = vmatprep.subr.bf16.mxu1 %v13394_v11  ;;  %v13481_v10 = vld [vmem:[%s14796_s14 + $0x5b4] ss:$48 sps:$4 sm:$0xff]   ;;  %v13484_v11 = vld [vmem:[%s14796_s14 + $0x5bc] ss:$48 sps:$4 sm:$0xff]  }
 0x170   : > { %2863 = vmatmul.mubr.bf16.vlgmr.msra.gmra.mrb[0].mxu0 %v14976_v12  ;;  %2945 = vmatmul.mubr.bf16.vlgmr.msra.gmra.mrb[0].mxu1 %v14976_v12 }
 0x171   : > { %2954 = vmatpush1.bf16.msra.mxu0 %v13389_v13  ;;  %3036 = vmatpush1.bf16.msra.mxu1 %v13392_v14  ;;  %v13479_v13 = vld [vmem:[%s14796_s14 + $0x5b0] ss:$48 sps:$4 sm:$0xff]   ;;  %v13482_v14 = vld [vmem:[%s14796_s14 + $0x5b8] ss:$48 sps:$4 sm:$0xff]  }
 0x172   : > { %2955 = vmatprep.subr.bf16.mxu0 %v13397_v15  ;;  %3037 = vmatprep.subr.bf16.mxu1 %v13400_v16  ;;  %v13487_v15 = vld [vmem:[%s14796_s14 + $0x614] ss:$48 sps:$4 sm:$0xff]   ;;  %v13490_v16 = vld [vmem:[%s14796_s14 + $0x61c] ss:$48 sps:$4 sm:$0xff]  }
 0x173   : > { %2985 = vmatprep.mubr.bf16.mxu0 %v14877_v53  ;;  %3067 = vmatprep.mubr.bf16.mxu1 %v14877_v53 }
 0x175   : > { %2956 = vmatpush1.bf16.msra.mxu0 %v13395_v17  ;;  %3038 = vmatpush1.bf16.msra.mxu1 %v13398_v18  ;;  %v13485_v17 = vld [vmem:[%s14796_s14 + $0x610] ss:$48 sps:$4 sm:$0xff]   ;;  %v13488_v18 = vld [vmem:[%s14796_s14 + $0x618] ss:$48 sps:$4 sm:$0xff]  }
 0x176   : > { %2957 = vmatprep.subr.bf16.mxu0 %v13403_v19  ;;  %3039 = vmatprep.subr.bf16.mxu1 %v13406_v20  ;;  %v13493_v19 = vld [vmem:[%s14796_s14 + $0x674] ss:$48 sps:$4 sm:$0xff]   ;;  %v13496_v20 = vld [vmem:[%s14796_s14 + $0x67c] ss:$48 sps:$4 sm:$0xff]  }
 0x179   : > { %2958 = vmatpush1.bf16.msra.mxu0 %v13401_v21  ;;  %3040 = vmatpush1.bf16.msra.mxu1 %v13404_v22  ;;  %v13491_v21 = vld [vmem:[%s14796_s14 + $0x670] ss:$48 sps:$4 sm:$0xff]   ;;  %v13494_v22 = vld [vmem:[%s14796_s14 + $0x678] ss:$48 sps:$4 sm:$0xff]  }
 0x17a   : > { %2959 = vmatprep.subr.bf16.mxu0 %v13409_v23  ;;  %3041 = vmatprep.subr.bf16.mxu1 %v13412_v24  ;;  %v13499_v23 = vld [vmem:[%s14796_s14 + $0x6d4] ss:$48 sps:$4 sm:$0xff]   ;;  %v13502_v24 = vld [vmem:[%s14796_s14 + $0x6dc] ss:$48 sps:$4 sm:$0xff]  }
 0x17d   : > { %2960 = vmatpush1.bf16.msra.mxu0 %v13407_v25  ;;  %3042 = vmatpush1.bf16.msra.mxu1 %v13410_v26  ;;  %v13497_v25 = vld [vmem:[%s14796_s14 + $0x6d0] ss:$48 sps:$4 sm:$0xff]   ;;  %v13500_v26 = vld [vmem:[%s14796_s14 + $0x6d8] ss:$48 sps:$4 sm:$0xff]  }
 0x17e   : > { %2961 = vmatprep.subr.bf16.mxu0 %v13415_v27  ;;  %3043 = vmatprep.subr.bf16.mxu1 %v13418_v28  ;;  %v13505_v27 = vld [vmem:[%s14796_s14 + $0x734] ss:$48 sps:$4 sm:$0xff]   ;;  %v13508_v28 = vld [vmem:[%s14796_s14 + $0x73c] ss:$48 sps:$4 sm:$0xff]  }
 0x181   : > { %2962 = vmatpush1.bf16.msra.mxu0 %v13413_v29  ;;  %3044 = vmatpush1.bf16.msra.mxu1 %v13416_v30  ;;  %v13503_v29 = vld [vmem:[%s14796_s14 + $0x730] ss:$48 sps:$4 sm:$0xff]   ;;  %v13506_v30 = vld [vmem:[%s14796_s14 + $0x738] ss:$48 sps:$4 sm:$0xff]  }
 0x182   : > { %2963 = vmatprep.subr.bf16.mxu0 %v13421_v31  ;;  %3045 = vmatprep.subr.bf16.mxu1 %v13424_v32  ;;  %v13511_v31 = vld [vmem:[%s14796_s14 + $0x794] ss:$48 sps:$4 sm:$0xff]   ;;  %v13514_v32 = vld [vmem:[%s14796_s14 + $0x79c] ss:$48 sps:$4 sm:$0xff]  }
 0x185   : > { %2964 = vmatpush1.bf16.msra.mxu0 %v13419_v33  ;;  %3046 = vmatpush1.bf16.msra.mxu1 %v13422_v34  ;;  %v13509_v33 = vld [vmem:[%s14796_s14 + $0x790] ss:$48 sps:$4 sm:$0xff]   ;;  %v13512_v34 = vld [vmem:[%s14796_s14 + $0x798] ss:$48 sps:$4 sm:$0xff]  }
 0x186   : > { %2965 = vmatprep.subr.bf16.mxu0 %v13427_v36  ;;  %3047 = vmatprep.subr.bf16.mxu1 %v13430_v37  ;;  %v13517_v36 = vld [vmem:[%s14796_s14 + $0x7f4] ss:$48 sps:$4 sm:$0xff]   ;;  %v13520_v37 = vld [vmem:[%s14796_s14 + $0x7fc] ss:$48 sps:$4 sm:$0xff]  }
 0x189   : > { %2966 = vmatpush1.bf16.msra.mxu0 %v13425_v38  ;;  %3048 = vmatpush1.bf16.msra.mxu1 %v13428_v39  ;;  %v13515_v38 = vld [vmem:[%s14796_s14 + $0x7f0] ss:$48 sps:$4 sm:$0xff]   ;;  %v13518_v39 = vld [vmem:[%s14796_s14 + $0x7f8] ss:$48 sps:$4 sm:$0xff]  }
 0x18a   : > { %2967 = vmatprep.subr.bf16.mxu0 %v13433_v40  ;;  %3049 = vmatprep.subr.bf16.mxu1 %v13436_v41  ;;  %v13523_v40 = vld [vmem:[%s14796_s14 + $0x854] ss:$48 sps:$4 sm:$0xff]   ;;  %v13526_v41 = vld [vmem:[%s14796_s14 + $0x85c] ss:$48 sps:$4 sm:$0xff]  }
 0x18d   : > { %2968 = vmatpush1.bf16.msra.mxu0 %v13431_v42  ;;  %3050 = vmatpush1.bf16.msra.mxu1 %v13434_v43  ;;  %v13521_v42 = vld [vmem:[%s14796_s14 + $0x850] ss:$48 sps:$4 sm:$0xff]   ;;  %v13524_v43 = vld [vmem:[%s14796_s14 + $0x858] ss:$48 sps:$4 sm:$0xff]  }
 0x18e   : > { %2969 = vmatprep.subr.bf16.mxu0 %v13439_v44  ;;  %3051 = vmatprep.subr.bf16.mxu1 %v13442_v45  ;;  %v13529_v44 = vld [vmem:[%s14796_s14 + $0x8b4] ss:$48 sps:$4 sm:$0xff]   ;;  %v13532_v45 = vld [vmem:[%s14796_s14 + $0x8bc] ss:$48 sps:$4 sm:$0xff]  }
 0x191   : > { %2970 = vmatpush1.bf16.msra.mxu0 %v13437_v46  ;;  %3052 = vmatpush1.bf16.msra.mxu1 %v13440_v47  ;;  %v13527_v46 = vld [vmem:[%s14796_s14 + $0x8b0] ss:$48 sps:$4 sm:$0xff]   ;;  %v13530_v47 = vld [vmem:[%s14796_s14 + $0x8b8] ss:$48 sps:$4 sm:$0xff]  }
 0x192   : > { %2971 = vmatprep.subr.bf16.mxu0 %v13445_v48  ;;  %3053 = vmatprep.subr.bf16.mxu1 %v13448_v49  ;;  %v13535_v48 = vld [vmem:[%s14796_s14 + $0x914] ss:$48 sps:$4 sm:$0xff]   ;;  %v13538_v49 = vld [vmem:[%s14796_s14 + $0x91c] ss:$48 sps:$4 sm:$0xff]  }
 0x195   : > { %2972 = vmatpush1.bf16.msra.mxu0 %v13443_v50  ;;  %3054 = vmatpush1.bf16.msra.mxu1 %v13446_v51  ;;  %v13533_v50 = vld [vmem:[%s14796_s14 + $0x910] ss:$48 sps:$4 sm:$0xff]   ;;  %v13536_v51 = vld [vmem:[%s14796_s14 + $0x918] ss:$48 sps:$4 sm:$0xff]  }
 0x196   : > { %2973 = vmatprep.subr.bf16.mxu0 %v13451_v52  ;;  %3055 = vmatprep.subr.bf16.mxu1 %v13454_v54  ;;  %v13541_v52 = vld [vmem:[%s14796_s14 + $0x974] ss:$48 sps:$4 sm:$0xff]   ;;  %v13544_v54 = vld [vmem:[%s14796_s14 + $0x97c] ss:$48 sps:$4 sm:$0xff]  }
 0x199   : > { %2974 = vmatpush1.bf16.msra.mxu0 %v13449_v55  ;;  %3056 = vmatpush1.bf16.msra.mxu1 %v13452_v56  ;;  %v13539_v55 = vld [vmem:[%s14796_s14 + $0x970] ss:$48 sps:$4 sm:$0xff]   ;;  %v13542_v56 = vld [vmem:[%s14796_s14 + $0x978] ss:$48 sps:$4 sm:$0xff]  }
 0x19a   : > { %2975 = vmatprep.subr.bf16.mxu0 %v13457_v57  ;;  %3057 = vmatprep.subr.bf16.mxu1 %v13460_v58  ;;  %v13547_v57 = vld [vmem:[%s14796_s14 + $0x9d4] ss:$48 sps:$4 sm:$0xff]   ;;  %v13550_v58 = vld [vmem:[%s14796_s14 + $0x9dc] ss:$48 sps:$4 sm:$0xff]  }
 0x19d   : > { %2976 = vmatpush1.bf16.msra.mxu0 %v13455_v59  ;;  %3058 = vmatpush1.bf16.msra.mxu1 %v13458_v60  ;;  %v13545_v59 = vld [vmem:[%s14796_s14 + $0x9d0] ss:$48 sps:$4 sm:$0xff]   ;;  %v13548_v60 = vld [vmem:[%s14796_s14 + $0x9d8] ss:$48 sps:$4 sm:$0xff]  }
 0x19e   : > { %2977 = vmatprep.subr.bf16.mxu0 %v13463_v61  ;;  %3059 = vmatprep.subr.bf16.mxu1 %v13466_v62  ;;  %v13553_v61 = vld [vmem:[%s14796_s14 + $0xa34] ss:$48 sps:$4 sm:$0xff]   ;;  %v13556_v62 = vld [vmem:[%s14796_s14 + $0xa3c] ss:$48 sps:$4 sm:$0xff]  }
 0x1a1   : > { %2978 = vmatpush1.bf16.msra.mxu0 %v13461_v63  ;;  %3060 = vmatpush1.bf16.msra.mxu1 %v13464_v0  ;;  %v13551_v63 = vld [vmem:[%s14796_s14 + $0xa30] ss:$48 sps:$4 sm:$0xff]   ;;  %v13554_v0 = vld [vmem:[%s14796_s14 + $0xa38] ss:$48 sps:$4 sm:$0xff]  }
 0x1a2   : > { %2979 = vmatprep.subr.bf16.mxu0 %v13469_v1  ;;  %3061 = vmatprep.subr.bf16.mxu1 %v13472_v2  ;;  %v13559_v1 = vld [vmem:[%s14796_s14 + $0xa94] ss:$48 sps:$4 sm:$0xff]   ;;  %v13562_v2 = vld [vmem:[%s14796_s14 + $0xa9c] ss:$48 sps:$4 sm:$0xff]  }
 0x1a5   : > { %2980 = vmatpush1.bf16.msra.mxu0 %v13467_v3  ;;  %3062 = vmatpush1.bf16.msra.mxu1 %v13470_v4  ;;  %v13557_v3 = vld [vmem:[%s14796_s14 + $0xa90] ss:$48 sps:$4 sm:$0xff]   ;;  %v13560_v4 = vld [vmem:[%s14796_s14 + $0xa98] ss:$48 sps:$4 sm:$0xff]  }
 0x1a6   : > { %2981 = vmatprep.subr.bf16.mxu0 %v13475_v5  ;;  %3063 = vmatprep.subr.bf16.mxu1 %v13478_v6  ;;  %v13565_v5 = vld [vmem:[%s14796_s14 + $0xaf4] ss:$48 sps:$4 sm:$0xff]   ;;  %v13568_v6 = vld [vmem:[%s14796_s14 + $0xafc] ss:$48 sps:$4 sm:$0xff]  }
 0x1a9   : > { %2982 = vmatpush1.bf16.msra.mxu0 %v13473_v8  ;;  %3064 = vmatpush1.bf16.msra.mxu1 %v13476_v9  ;;  %v13563_v8 = vld [vmem:[%s14796_s14 + $0xaf0] ss:$48 sps:$4 sm:$0xff]   ;;  %v13566_v9 = vld [vmem:[%s14796_s14 + $0xaf8] ss:$48 sps:$4 sm:$0xff]  }
 0x1aa   : > { %2983 = vmatprep.subr.bf16.mxu0 %v13481_v10  ;;  %3065 = vmatprep.subr.bf16.mxu1 %v13484_v11  ;;  %v13571_v10 = vld [vmem:[%s14796_s14 + $0xb54] ss:$48 sps:$4 sm:$0xff]   ;;  %v13574_v11 = vld [vmem:[%s14796_s14 + $0xb5c] ss:$48 sps:$4 sm:$0xff]  }
 0x1ad   : > { %2984 = vmatpush1.bf16.msra.mxu0 %v13479_v13  ;;  %3066 = vmatpush1.bf16.msra.mxu1 %v13482_v14  ;;  %v13569_v13 = vld [vmem:[%s14796_s14 + $0xb50] ss:$48 sps:$4 sm:$0xff]   ;;  %v13572_v14 = vld [vmem:[%s14796_s14 + $0xb58] ss:$48 sps:$4 sm:$0xff]  }
 0x1ae   : > { %2994 = vmatprep.subr.bf16.mxu0 %v13487_v15  ;;  %3076 = vmatprep.subr.bf16.mxu1 %v13490_v16  ;;  %v13577_v15 = vld [vmem:[%s14796_s14 + $0xbb4] ss:$48 sps:$4 sm:$0xff]   ;;  %v13580_v16 = vld [vmem:[%s14796_s14 + $0xbbc] ss:$48 sps:$4 sm:$0xff]  }
 0x1b0   : > { %2986 = vmatmul.mubr.bf16.vlgmr.msra.gmra.mrb[4].mxu0 %v14898_v7  ;;  %3068 = vmatmul.mubr.bf16.vlgmr.msra.gmra.mrb[4].mxu1 %v14898_v7 }
 0x1b1   : > { %2995 = vmatpush1.bf16.msra.mxu0 %v13485_v17  ;;  %3077 = vmatpush1.bf16.msra.mxu1 %v13488_v18  ;;  %v13575_v17 = vld [vmem:[%s14796_s14 + $0xbb0] ss:$48 sps:$4 sm:$0xff]   ;;  %v13578_v18 = vld [vmem:[%s14796_s14 + $0xbb8] ss:$48 sps:$4 sm:$0xff]  }
 0x1b2   : > { %2996 = vmatprep.subr.bf16.mxu0 %v13493_v19  ;;  %3078 = vmatprep.subr.bf16.mxu1 %v13496_v20  ;;  %v13583_v19 = vld [vmem:[%s14796_s14 + $0x24] ss:$48 sps:$4 sm:$0xff]   ;;  %v13586_v20 = vld [vmem:[%s14796_s14 + $0x2c] ss:$48 sps:$4 sm:$0xff]  }
 0x1b3   : > { %3026 = vmatprep.mubr.bf16.mxu0 %v14932_v35  ;;  %3108 = vmatprep.mubr.bf16.mxu1 %v14932_v35 }
 0x1b5   : > { %2997 = vmatpush1.bf16.msra.mxu0 %v13491_v21  ;;  %3079 = vmatpush1.bf16.msra.mxu1 %v13494_v22  ;;  %v13581_v21 = vld [vmem:[%s14796_s14 + $0x20] ss:$48 sps:$4 sm:$0xff]   ;;  %v13584_v22 = vld [vmem:[%s14796_s14 + $0x28] ss:$48 sps:$4 sm:$0xff]  }
 0x1b6   : > { %2998 = vmatprep.subr.bf16.mxu0 %v13499_v23  ;;  %3080 = vmatprep.subr.bf16.mxu1 %v13502_v24  ;;  %v13589_v23 = vld [vmem:[%s14796_s14 + $0x84] ss:$48 sps:$4 sm:$0xff]   ;;  %v13592_v24 = vld [vmem:[%s14796_s14 + $0x8c] ss:$48 sps:$4 sm:$0xff]  }
 0x1b9   : > { %2999 = vmatpush1.bf16.msra.mxu0 %v13497_v25  ;;  %3081 = vmatpush1.bf16.msra.mxu1 %v13500_v26  ;;  %v13587_v25 = vld [vmem:[%s14796_s14 + $0x80] ss:$48 sps:$4 sm:$0xff]   ;;  %v13590_v26 = vld [vmem:[%s14796_s14 + $0x88] ss:$48 sps:$4 sm:$0xff]  }
 0x1ba   : > { %3000 = vmatprep.subr.bf16.mxu0 %v13505_v27  ;;  %3082 = vmatprep.subr.bf16.mxu1 %v13508_v28  ;;  %v13595_v27 = vld [vmem:[%s14796_s14 + $0xe4] ss:$48 sps:$4 sm:$0xff]   ;;  %v13598_v28 = vld [vmem:[%s14796_s14 + $0xec] ss:$48 sps:$4 sm:$0xff]  }
 0x1bd   : > { %3001 = vmatpush1.bf16.msra.mxu0 %v13503_v29  ;;  %3083 = vmatpush1.bf16.msra.mxu1 %v13506_v30  ;;  %v13593_v29 = vld [vmem:[%s14796_s14 + $0xe0] ss:$48 sps:$4 sm:$0xff]   ;;  %v13596_v30 = vld [vmem:[%s14796_s14 + $0xe8] ss:$48 sps:$4 sm:$0xff]  }
 0x1be   : > { %3002 = vmatprep.subr.bf16.mxu0 %v13511_v31  ;;  %3084 = vmatprep.subr.bf16.mxu1 %v13514_v32  ;;  %v13601_v31 = vld [vmem:[%s14796_s14 + $0x144] ss:$48 sps:$4 sm:$0xff]   ;;  %v13604_v32 = vld [vmem:[%s14796_s14 + $0x14c] ss:$48 sps:$4 sm:$0xff]  }
 0x1c1   : > { %3003 = vmatpush1.bf16.msra.mxu0 %v13509_v33  ;;  %3085 = vmatpush1.bf16.msra.mxu1 %v13512_v34  ;;  %v13599_v33 = vld [vmem:[%s14796_s14 + $0x140] ss:$48 sps:$4 sm:$0xff]   ;;  %v13602_v34 = vld [vmem:[%s14796_s14 + $0x148] ss:$48 sps:$4 sm:$0xff]  }
 0x1c2   : > { %3004 = vmatprep.subr.bf16.mxu0 %v13517_v36  ;;  %3086 = vmatprep.subr.bf16.mxu1 %v13520_v37  ;;  %v13610_v36 = vld [vmem:[%s14796_s14 + $0x1ac] ss:$48 sps:$4 sm:$0xff]   ;;  %v13605_v37 = vld [vmem:[%s14796_s14 + $0x1a0] ss:$48 sps:$4 sm:$0xff]  }
 0x1c5   : > { %3005 = vmatpush1.bf16.msra.mxu0 %v13515_v38  ;;  %3087 = vmatpush1.bf16.msra.mxu1 %v13518_v39  ;;  %v13608_v38 = vld [vmem:[%s14796_s14 + $0x1a8] ss:$48 sps:$4 sm:$0xff]   ;;  %v13613_v39 = vld [vmem:[%s14796_s14 + $0x204] ss:$48 sps:$4 sm:$0xff]  }
 0x1c6   : > { %3006 = vmatprep.subr.bf16.mxu0 %v13523_v40  ;;  %3088 = vmatprep.subr.bf16.mxu1 %v13526_v41  ;;  %v13616_v40 = vld [vmem:[%s14796_s14 + $0x20c] ss:$48 sps:$4 sm:$0xff]   ;;  %v13611_v41 = vld [vmem:[%s14796_s14 + $0x200] ss:$48 sps:$4 sm:$0xff]  }
 0x1c9   : > { %3007 = vmatpush1.bf16.msra.mxu0 %v13521_v42  ;;  %3089 = vmatpush1.bf16.msra.mxu1 %v13524_v43  ;;  %v13614_v42 = vld [vmem:[%s14796_s14 + $0x208] ss:$48 sps:$4 sm:$0xff]   ;;  %v13619_v43 = vld [vmem:[%s14796_s14 + $0x264] ss:$48 sps:$4 sm:$0xff]  }
 0x1ca   : > { %3008 = vmatprep.subr.bf16.mxu0 %v13529_v44  ;;  %3090 = vmatprep.subr.bf16.mxu1 %v13532_v45  ;;  %v13622_v44 = vld [vmem:[%s14796_s14 + $0x26c] ss:$48 sps:$4 sm:$0xff]   ;;  %v13617_v45 = vld [vmem:[%s14796_s14 + $0x260] ss:$48 sps:$4 sm:$0xff]  }
 0x1cd   : > { %3009 = vmatpush1.bf16.msra.mxu0 %v13527_v46  ;;  %3091 = vmatpush1.bf16.msra.mxu1 %v13530_v47  ;;  %v13620_v46 = vld [vmem:[%s14796_s14 + $0x268] ss:$48 sps:$4 sm:$0xff]   ;;  %v13625_v47 = vld [vmem:[%s14796_s14 + $0x2c4] ss:$48 sps:$4 sm:$0xff]  }
 0x1ce   : > { %3010 = vmatprep.subr.bf16.mxu0 %v13535_v48  ;;  %3092 = vmatprep.subr.bf16.mxu1 %v13538_v49  ;;  %v13628_v48 = vld [vmem:[%s14796_s14 + $0x2cc] ss:$48 sps:$4 sm:$0xff]   ;;  %v13623_v49 = vld [vmem:[%s14796_s14 + $0x2c0] ss:$48 sps:$4 sm:$0xff]  }
 0x1d1   : > { %3011 = vmatpush1.bf16.msra.mxu0 %v13533_v50  ;;  %3093 = vmatpush1.bf16.msra.mxu1 %v13536_v51  ;;  %v13626_v50 = vld [vmem:[%s14796_s14 + $0x2c8] ss:$48 sps:$4 sm:$0xff]   ;;  %v13631_v51 = vld [vmem:[%s14796_s14 + $0x324] ss:$48 sps:$4 sm:$0xff]  }
 0x1d2   : > { %3012 = vmatprep.subr.bf16.mxu0 %v13541_v52  ;;  %3094 = vmatprep.subr.bf16.mxu1 %v13544_v54  ;;  %v13634_v52 = vld [vmem:[%s14796_s14 + $0x32c] ss:$48 sps:$4 sm:$0xff]   ;;  %v13629_v54 = vld [vmem:[%s14796_s14 + $0x320] ss:$48 sps:$4 sm:$0xff]  }
 0x1d5   : > { %3013 = vmatpush1.bf16.msra.mxu0 %v13539_v55  ;;  %3095 = vmatpush1.bf16.msra.mxu1 %v13542_v56  ;;  %v13632_v55 = vld [vmem:[%s14796_s14 + $0x328] ss:$48 sps:$4 sm:$0xff]   ;;  %v13637_v56 = vld [vmem:[%s14796_s14 + $0x384] ss:$48 sps:$4 sm:$0xff]  }
 0x1d6   : > { %3014 = vmatprep.subr.bf16.mxu0 %v13547_v57  ;;  %3096 = vmatprep.subr.bf16.mxu1 %v13550_v58  ;;  %v13640_v57 = vld [vmem:[%s14796_s14 + $0x38c] ss:$48 sps:$4 sm:$0xff]   ;;  %v13635_v58 = vld [vmem:[%s14796_s14 + $0x380] ss:$48 sps:$4 sm:$0xff]  }
 0x1d9   : > { %3015 = vmatpush1.bf16.msra.mxu0 %v13545_v59  ;;  %3097 = vmatpush1.bf16.msra.mxu1 %v13548_v60  ;;  %v13638_v59 = vld [vmem:[%s14796_s14 + $0x388] ss:$48 sps:$4 sm:$0xff]   ;;  %v13643_v60 = vld [vmem:[%s14796_s14 + $0x3e4] ss:$48 sps:$4 sm:$0xff]  }
 0x1da   : > { %3016 = vmatprep.subr.bf16.mxu0 %v13553_v61  ;;  %3098 = vmatprep.subr.bf16.mxu1 %v13556_v62  ;;  %v13646_v61 = vld [vmem:[%s14796_s14 + $0x3ec] ss:$48 sps:$4 sm:$0xff]   ;;  %v13641_v62 = vld [vmem:[%s14796_s14 + $0x3e0] ss:$48 sps:$4 sm:$0xff]  }
 0x1dd   : > { %3017 = vmatpush1.bf16.msra.mxu0 %v13551_v63  ;;  %3099 = vmatpush1.bf16.msra.mxu1 %v13554_v0  ;;  %v13644_v63 = vld [vmem:[%s14796_s14 + $0x3e8] ss:$48 sps:$4 sm:$0xff]   ;;  %v13649_v0 = vld [vmem:[%s14796_s14 + $0x444] ss:$48 sps:$4 sm:$0xff]  }
 0x1de   : > { %3018 = vmatprep.subr.bf16.mxu0 %v13559_v1  ;;  %3100 = vmatprep.subr.bf16.mxu1 %v13562_v2  ;;  %v13652_v1 = vld [vmem:[%s14796_s14 + $0x44c] ss:$48 sps:$4 sm:$0xff]   ;;  %v13647_v2 = vld [vmem:[%s14796_s14 + $0x440] ss:$48 sps:$4 sm:$0xff]  }
 0x1e1   : > { %3019 = vmatpush1.bf16.msra.mxu0 %v13557_v3  ;;  %3101 = vmatpush1.bf16.msra.mxu1 %v13560_v4  ;;  %v13650_v3 = vld [vmem:[%s14796_s14 + $0x448] ss:$48 sps:$4 sm:$0xff]   ;;  %v13655_v4 = vld [vmem:[%s14796_s14 + $0x4a4] ss:$48 sps:$4 sm:$0xff]  }
 0x1e2   : > { %3020 = vmatprep.subr.bf16.mxu0 %v13565_v5  ;;  %3102 = vmatprep.subr.bf16.mxu1 %v13568_v6  ;;  %v13658_v5 = vld [vmem:[%s14796_s14 + $0x4ac] ss:$48 sps:$4 sm:$0xff]   ;;  %v13653_v6 = vld [vmem:[%s14796_s14 + $0x4a0] ss:$48 sps:$4 sm:$0xff]  }
 0x1e5   : > { %3021 = vmatpush1.bf16.msra.mxu0 %v13563_v8  ;;  %3103 = vmatpush1.bf16.msra.mxu1 %v13566_v9  ;;  %v13656_v8 = vld [vmem:[%s14796_s14 + $0x4a8] ss:$48 sps:$4 sm:$0xff]   ;;  %v13661_v9 = vld [vmem:[%s14796_s14 + $0x504] ss:$48 sps:$4 sm:$0xff]  }
 0x1e6   : > { %3022 = vmatprep.subr.bf16.mxu0 %v13571_v10  ;;  %3104 = vmatprep.subr.bf16.mxu1 %v13574_v11  ;;  %v13664_v10 = vld [vmem:[%s14796_s14 + $0x50c] ss:$48 sps:$4 sm:$0xff]   ;;  %v13659_v11 = vld [vmem:[%s14796_s14 + $0x500] ss:$48 sps:$4 sm:$0xff]  }
 0x1e9   : > { %3023 = vmatpush1.bf16.msra.mxu0 %v13569_v13  ;;  %3105 = vmatpush1.bf16.msra.mxu1 %v13572_v14  ;;  %v13662_v13 = vld [vmem:[%s14796_s14 + $0x508] ss:$48 sps:$4 sm:$0xff]   ;;  %v13667_v14 = vld [vmem:[%s14796_s14 + $0x564] ss:$48 sps:$4 sm:$0xff]  }
 0x1ea   : > { %3024 = vmatprep.subr.bf16.mxu0 %v13577_v15  ;;  %3106 = vmatprep.subr.bf16.mxu1 %v13580_v16  ;;  %v13670_v15 = vld [vmem:[%s14796_s14 + $0x56c] ss:$48 sps:$4 sm:$0xff]   ;;  %v13665_v16 = vld [vmem:[%s14796_s14 + $0x560] ss:$48 sps:$4 sm:$0xff]  }
 0x1ed   : > { %3025 = vmatpush1.bf16.msra.mxu0 %v13575_v17  ;;  %3107 = vmatpush1.bf16.msra.mxu1 %v13578_v18  ;;  %v13668_v17 = vld [vmem:[%s14796_s14 + $0x568] ss:$48 sps:$4 sm:$0xff]   ;;  %v13673_v18 = vld [vmem:[%s14796_s14 + $0x5c4] ss:$48 sps:$4 sm:$0xff]  }
 0x1ee   : > { %3117 = vmatprep.subr.bf16.mxu0 %v13583_v19  ;;  %3199 = vmatprep.subr.bf16.mxu1 %v13586_v20  ;;  %v13676_v19 = vld [vmem:[%s14796_s14 + $0x5cc] ss:$48 sps:$4 sm:$0xff]   ;;  %v13671_v20 = vld [vmem:[%s14796_s14 + $0x5c0] ss:$48 sps:$4 sm:$0xff]  }
 0x1f0   : > { %3027 = vmatmul.mubr.bf16.vlgmr.msra.gmra.mrb[4].mxu0 %v14976_v12  ;;  %3109 = vmatmul.mubr.bf16.vlgmr.msra.gmra.mrb[4].mxu1 %v14976_v12 }
 0x1f1   : > { %3118 = vmatpush1.bf16.msra.mxu0 %v13581_v21  ;;  %3200 = vmatpush1.bf16.msra.mxu1 %v13584_v22  ;;  %v13674_v21 = vld [vmem:[%s14796_s14 + $0x5c8] ss:$48 sps:$4 sm:$0xff]   ;;  %v13679_v22 = vld [vmem:[%s14796_s14 + $0x624] ss:$48 sps:$4 sm:$0xff]  }
 0x1f2   : > { %3119 = vmatprep.subr.bf16.mxu0 %v13589_v23  ;;  %3201 = vmatprep.subr.bf16.mxu1 %v13592_v24  ;;  %v13682_v23 = vld [vmem:[%s14796_s14 + $0x62c] ss:$48 sps:$4 sm:$0xff]   ;;  %v13677_v24 = vld [vmem:[%s14796_s14 + $0x620] ss:$48 sps:$4 sm:$0xff]  }
 0x1f3   : > { %3149 = vmatprep.mubr.bf16.mxu0 %v14877_v53  ;;  %3231 = vmatprep.mubr.bf16.mxu1 %v14877_v53  ;;  %v13607_v53 = vld [vmem:[%s14796_s14 + $0x1a4] ss:$48 sps:$4 sm:$0xff]  }
 0x1f5   : > { %3120 = vmatpush1.bf16.msra.mxu0 %v13587_v25  ;;  %3202 = vmatpush1.bf16.msra.mxu1 %v13590_v26  ;;  %v13680_v25 = vld [vmem:[%s14796_s14 + $0x628] ss:$48 sps:$4 sm:$0xff]   ;;  %v13685_v26 = vld [vmem:[%s14796_s14 + $0x684] ss:$48 sps:$4 sm:$0xff]  }
 0x1f6   : > { %3121 = vmatprep.subr.bf16.mxu0 %v13595_v27  ;;  %3203 = vmatprep.subr.bf16.mxu1 %v13598_v28  ;;  %v13688_v27 = vld [vmem:[%s14796_s14 + $0x68c] ss:$48 sps:$4 sm:$0xff]   ;;  %v13683_v28 = vld [vmem:[%s14796_s14 + $0x680] ss:$48 sps:$4 sm:$0xff]  }
 0x1f9   : > { %3122 = vmatpush1.bf16.msra.mxu0 %v13593_v29  ;;  %3204 = vmatpush1.bf16.msra.mxu1 %v13596_v30  ;;  %v13686_v29 = vld [vmem:[%s14796_s14 + $0x688] ss:$48 sps:$4 sm:$0xff]   ;;  %v13691_v30 = vld [vmem:[%s14796_s14 + $0x6e4] ss:$48 sps:$4 sm:$0xff]  }
 0x1fa   : > { %3123 = vmatprep.subr.bf16.mxu0 %v13601_v31  ;;  %3205 = vmatprep.subr.bf16.mxu1 %v13604_v32  ;;  %v13694_v31 = vld [vmem:[%s14796_s14 + $0x6ec] ss:$48 sps:$4 sm:$0xff]   ;;  %v13692_v32 = vld [vmem:[%s14796_s14 + $0x6e8] ss:$48 sps:$4 sm:$0xff]  }
 0x1fd   : > { %3124 = vmatpush1.bf16.msra.mxu0 %v13599_v33  ;;  %3206 = vmatpush1.bf16.msra.mxu1 %v13602_v34  ;;  %v13697_v33 = vld [vmem:[%s14796_s14 + $0x744] ss:$48 sps:$4 sm:$0xff]   ;;  %v13700_v34 = vld [vmem:[%s14796_s14 + $0x74c] ss:$48 sps:$4 sm:$0xff]  }
 0x1fe   : > { %3125 = vmatprep.subr.bf16.mxu0 %v13607_v53  ;;  %3207 = vmatprep.subr.bf16.mxu1 %v13610_v36  ;;  %v13695_v53 = vld [vmem:[%s14796_s14 + $0x740] ss:$48 sps:$4 sm:$0xff]   ;;  %v13698_v36 = vld [vmem:[%s14796_s14 + $0x748] ss:$48 sps:$4 sm:$0xff]  }
 0x201   : > { %3126 = vmatpush1.bf16.msra.mxu0 %v13605_v37  ;;  %3208 = vmatpush1.bf16.msra.mxu1 %v13608_v38  ;;  %v13706_v37 = vld [vmem:[%s14796_s14 + $0x7ac] ss:$48 sps:$4 sm:$0xff]   ;;  %v13701_v38 = vld [vmem:[%s14796_s14 + $0x7a0] ss:$48 sps:$4 sm:$0xff]  }
 0x202   : > { %3127 = vmatprep.subr.bf16.mxu0 %v13613_v39  ;;  %3209 = vmatprep.subr.bf16.mxu1 %v13616_v40  ;;  %v13704_v39 = vld [vmem:[%s14796_s14 + $0x7a8] ss:$48 sps:$4 sm:$0xff]   ;;  %v13709_v40 = vld [vmem:[%s14796_s14 + $0x804] ss:$48 sps:$4 sm:$0xff]  }
 0x205   : > { %3128 = vmatpush1.bf16.msra.mxu0 %v13611_v41  ;;  %3210 = vmatpush1.bf16.msra.mxu1 %v13614_v42  ;;  %v13712_v41 = vld [vmem:[%s14796_s14 + $0x80c] ss:$48 sps:$4 sm:$0xff]   ;;  %v13707_v42 = vld [vmem:[%s14796_s14 + $0x800] ss:$48 sps:$4 sm:$0xff]  }
 0x206   : > { %3129 = vmatprep.subr.bf16.mxu0 %v13619_v43  ;;  %3211 = vmatprep.subr.bf16.mxu1 %v13622_v44  ;;  %v13710_v43 = vld [vmem:[%s14796_s14 + $0x808] ss:$48 sps:$4 sm:$0xff]   ;;  %v13715_v44 = vld [vmem:[%s14796_s14 + $0x864] ss:$48 sps:$4 sm:$0xff]  }
 0x209   : > { %3130 = vmatpush1.bf16.msra.mxu0 %v13617_v45  ;;  %3212 = vmatpush1.bf16.msra.mxu1 %v13620_v46  ;;  %v13718_v45 = vld [vmem:[%s14796_s14 + $0x86c] ss:$48 sps:$4 sm:$0xff]  }
 0x20a   : > { %3131 = vmatprep.subr.bf16.mxu0 %v13625_v47  ;;  %3213 = vmatprep.subr.bf16.mxu1 %v13628_v48  ;;  %v479_v48 = vld [vmem:[#allocation2] sm:$0xff] }
 0x20d   : > { %3132 = vmatpush1.bf16.msra.mxu0 %v13623_v49  ;;  %3214 = vmatpush1.bf16.msra.mxu1 %v13626_v50  ;;  %v480_v50 = vld [vmem:[#allocation2 + $0x8] sm:$0xff] }
 0x20e   : > { %3133 = vmatprep.subr.bf16.mxu0 %v13631_v51  ;;  %3215 = vmatprep.subr.bf16.mxu1 %v13634_v52 }
 0x211   : > { %3134 = vmatpush1.bf16.msra.mxu0 %v13629_v54  ;;  %3216 = vmatpush1.bf16.msra.mxu1 %v13632_v55 }
 0x212   : > { %3135 = vmatprep.subr.bf16.mxu0 %v13637_v56  ;;  %3217 = vmatprep.subr.bf16.mxu1 %v13640_v57  ;;  %v13713_v57 = vld [vmem:[%s14796_s14 + $0x860] ss:$48 sps:$4 sm:$0xff]  }
 0x215   : > { %3136 = vmatpush1.bf16.msra.mxu0 %v13635_v58  ;;  %3218 = vmatpush1.bf16.msra.mxu1 %v13638_v59  ;;  %v13716_v58 = vld [vmem:[%s14796_s14 + $0x868] ss:$48 sps:$4 sm:$0xff]  }
 0x216   : > { %3137 = vmatprep.subr.bf16.mxu0 %v13643_v60  ;;  %3219 = vmatprep.subr.bf16.mxu1 %v13646_v61  ;;  %v13721_v61 = vld [vmem:[%s14796_s14 + $0x8c4] ss:$48 sps:$4 sm:$0xff]  }
 0x219   : > { %3138 = vmatpush1.bf16.msra.mxu0 %v13641_v62  ;;  %3220 = vmatpush1.bf16.msra.mxu1 %v13644_v63  ;;  %v13724_v62 = vld [vmem:[%s14796_s14 + $0x8cc] ss:$48 sps:$4 sm:$0xff]  }
 0x21a   : > { %3139 = vmatprep.subr.bf16.mxu0 %v13649_v0  ;;  %3221 = vmatprep.subr.bf16.mxu1 %v13652_v1  ;;  %v13719_v1 = vld [vmem:[%s14796_s14 + $0x8c0] ss:$48 sps:$4 sm:$0xff]  }
 0x21d   : > { %3140 = vmatpush1.bf16.msra.mxu0 %v13647_v2  ;;  %3222 = vmatpush1.bf16.msra.mxu1 %v13650_v3  ;;  %v13722_v2 = vld [vmem:[%s14796_s14 + $0x8c8] ss:$48 sps:$4 sm:$0xff]   ;;  %v13727_v3 = vld [vmem:[%s14796_s14 + $0x924] ss:$48 sps:$4 sm:$0xff]  }
 0x21e   : > { %3141 = vmatprep.subr.bf16.mxu0 %v13655_v4  ;;  %3223 = vmatprep.subr.bf16.mxu1 %v13658_v5  ;;  %v13730_v4 = vld [vmem:[%s14796_s14 + $0x92c] ss:$48 sps:$4 sm:$0xff]   ;;  %v13725_v5 = vld [vmem:[%s14796_s14 + $0x920] ss:$48 sps:$4 sm:$0xff]  }
 0x221   : > { %3142 = vmatpush1.bf16.msra.mxu0 %v13653_v6  ;;  %3224 = vmatpush1.bf16.msra.mxu1 %v13656_v8  ;;  %v13728_v6 = vld [vmem:[%s14796_s14 + $0x928] ss:$48 sps:$4 sm:$0xff]   ;;  %v13733_v8 = vld [vmem:[%s14796_s14 + $0x984] ss:$48 sps:$4 sm:$0xff]  }
 0x222   : > { %3143 = vmatprep.subr.bf16.mxu0 %v13661_v9  ;;  %3225 = vmatprep.subr.bf16.mxu1 %v13664_v10  ;;  %v13736_v9 = vld [vmem:[%s14796_s14 + $0x98c] ss:$48 sps:$4 sm:$0xff]   ;;  %v13731_v10 = vld [vmem:[%s14796_s14 + $0x980] ss:$48 sps:$4 sm:$0xff]  }
 0x225   : > { %3144 = vmatpush1.bf16.msra.mxu0 %v13659_v11  ;;  %3226 = vmatpush1.bf16.msra.mxu1 %v13662_v13  ;;  %v13734_v11 = vld [vmem:[%s14796_s14 + $0x988] ss:$48 sps:$4 sm:$0xff]   ;;  %v13739_v13 = vld [vmem:[%s14796_s14 + $0x9e4] ss:$48 sps:$4 sm:$0xff]  }
 0x226   : > { %3145 = vmatprep.subr.bf16.mxu0 %v13667_v14  ;;  %3227 = vmatprep.subr.bf16.mxu1 %v13670_v15  ;;  %v13742_v14 = vld [vmem:[%s14796_s14 + $0x9ec] ss:$48 sps:$4 sm:$0xff]   ;;  %v13737_v15 = vld [vmem:[%s14796_s14 + $0x9e0] ss:$48 sps:$4 sm:$0xff]  }
 0x229   : > { %3146 = vmatpush1.bf16.msra.mxu0 %v13665_v16  ;;  %3228 = vmatpush1.bf16.msra.mxu1 %v13668_v17  ;;  %v13740_v16 = vld [vmem:[%s14796_s14 + $0x9e8] ss:$48 sps:$4 sm:$0xff]   ;;  %v13745_v17 = vld [vmem:[%s14796_s14 + $0xa44] ss:$48 sps:$4 sm:$0xff]  }
 0x22a   : > { %3147 = vmatprep.subr.bf16.mxu0 %v13673_v18  ;;  %3229 = vmatprep.subr.bf16.mxu1 %v13676_v19  ;;  %v13748_v18 = vld [vmem:[%s14796_s14 + $0xa4c] ss:$48 sps:$4 sm:$0xff]   ;;  %v13743_v19 = vld [vmem:[%s14796_s14 + $0xa40] ss:$48 sps:$4 sm:$0xff]  }
 0x22d   : > { %3148 = vmatpush1.bf16.msra.mxu0 %v13671_v20  ;;  %3230 = vmatpush1.bf16.msra.mxu1 %v13674_v21  ;;  %v13746_v20 = vld [vmem:[%s14796_s14 + $0xa48] ss:$48 sps:$4 sm:$0xff]   ;;  %v13751_v21 = vld [vmem:[%s14796_s14 + $0xaa4] ss:$48 sps:$4 sm:$0xff]  }
 0x22e   : > { %3158 = vmatprep.subr.bf16.mxu0 %v13679_v22  ;;  %3240 = vmatprep.subr.bf16.mxu1 %v13682_v23  ;;  %v13754_v22 = vld [vmem:[%s14796_s14 + $0xaac] ss:$48 sps:$4 sm:$0xff]   ;;  %v13749_v23 = vld [vmem:[%s14796_s14 + $0xaa0] ss:$48 sps:$4 sm:$0xff]  }
 0x230   : > { %3150 = vmatmul.mubr.bf16.vlgmr.msra.gmra.mrb[8].mxu0 %v14898_v7  ;;  %3232 = vmatmul.mubr.bf16.vlgmr.msra.gmra.mrb[8].mxu1 %v14898_v7  ;;  %v13689_v7 = vld [vmem:[%s14796_s14 + $0x6e0] ss:$48 sps:$4 sm:$0xff]  }
 0x231   : > { %3159 = vmatpush1.bf16.msra.mxu0 %v13677_v24  ;;  %3241 = vmatpush1.bf16.msra.mxu1 %v13680_v25  ;;  %v13752_v24 = vld [vmem:[%s14796_s14 + $0xaa8] ss:$48 sps:$4 sm:$0xff]   ;;  %v13757_v25 = vld [vmem:[%s14796_s14 + $0xb04] ss:$48 sps:$4 sm:$0xff]  }
 0x232   : > { %3160 = vmatprep.subr.bf16.mxu0 %v13685_v26  ;;  %3242 = vmatprep.subr.bf16.mxu1 %v13688_v27  ;;  %v13760_v26 = vld [vmem:[%s14796_s14 + $0xb0c] ss:$48 sps:$4 sm:$0xff]   ;;  %v13755_v27 = vld [vmem:[%s14796_s14 + $0xb00] ss:$48 sps:$4 sm:$0xff]  }
 0x233   : > { %3190 = vmatprep.mubr.bf16.mxu0 %v14932_v35  ;;  %3272 = vmatprep.mubr.bf16.mxu1 %v14932_v35  ;;  %v13703_v35 = vld [vmem:[%s14796_s14 + $0x7a4] ss:$48 sps:$4 sm:$0xff]  }
 0x235   : > { %3161 = vmatpush1.bf16.msra.mxu0 %v13683_v28  ;;  %3243 = vmatpush1.bf16.msra.mxu1 %v13686_v29  ;;  %v13758_v28 = vld [vmem:[%s14796_s14 + $0xb08] ss:$48 sps:$4 sm:$0xff]   ;;  %v13763_v29 = vld [vmem:[%s14796_s14 + $0xb64] ss:$48 sps:$4 sm:$0xff]  }
 0x236   : > { %3162 = vmatprep.subr.bf16.mxu0 %v13691_v30  ;;  %3244 = vmatprep.subr.bf16.mxu1 %v13694_v31  ;;  %v13766_v30 = vld [vmem:[%s14796_s14 + $0xb6c] ss:$48 sps:$4 sm:$0xff]   ;;  %v13761_v31 = vld [vmem:[%s14796_s14 + $0xb60] ss:$48 sps:$4 sm:$0xff]  }
 0x239   : > { %3163 = vmatpush1.bf16.msra.mxu0 %v13689_v7  ;;  %3245 = vmatpush1.bf16.msra.mxu1 %v13692_v32  ;;  %v13764_v7 = vld [vmem:[%s14796_s14 + $0xb68] ss:$48 sps:$4 sm:$0xff]   ;;  %v13769_v32 = vld [vmem:[%s14796_s14 + $0xbc4] ss:$48 sps:$4 sm:$0xff]  }
 0x23a   : > { %3164 = vmatprep.subr.bf16.mxu0 %v13697_v33  ;;  %3246 = vmatprep.subr.bf16.mxu1 %v13700_v34  ;;  %v13772_v33 = vld [vmem:[%s14796_s14 + $0xbcc] ss:$48 sps:$4 sm:$0xff]   ;;  %v13767_v34 = vld [vmem:[%s14796_s14 + $0xbc0] ss:$48 sps:$4 sm:$0xff]  }
 0x23d   : > { %3165 = vmatpush1.bf16.msra.mxu0 %v13695_v53  ;;  %3247 = vmatpush1.bf16.msra.mxu1 %v13698_v36  ;;  %v13770_v53 = vld [vmem:[%s14796_s14 + $0xbc8] ss:$48 sps:$4 sm:$0xff]  }
 0x23e   : > { %3166 = vmatprep.subr.bf16.mxu0 %v13703_v35  ;;  %3248 = vmatprep.subr.bf16.mxu1 %v13706_v37  ;;  %v481_v37 = vld [vmem:[#allocation2 + $0x10] sm:$0xff] }
 0x241   : > { %3167 = vmatpush1.bf16.msra.mxu0 %v13701_v38  ;;  %3249 = vmatpush1.bf16.msra.mxu1 %v13704_v39  ;;  %v482_v39 = vld [vmem:[#allocation2 + $0x18] sm:$0xff] }
 0x242   : > { %3168 = vmatprep.subr.bf16.mxu0 %v13709_v40  ;;  %3250 = vmatprep.subr.bf16.mxu1 %v13712_v41 }
 0x243   : > { %v2864_v46 = vpop.f32.mrb[0].mxu0  ;;  %v2946_v47 = vpop.f32.mrb[0].mxu1 }
 0x244   : > { %v2866_v49 = vpop.f32.mrb[1].mxu0  ;;  %v2948_v51 = vpop.f32.mrb[1].mxu1 }
 0x245   : > { %v3293_v52 = vcombine.low %v2864_v46, %v2866_v49  ;;  %v3294_v54 = vcombine.low %v2946_v47, %v2948_v51  ;;  %v2868_v55 = vpop.f32.mrb[2].mxu0  ;;  %v2950_v56 = vpop.f32.mrb[2].mxu1  ;;  %3169 = vmatpush1.bf16.msra.mxu0 %v13707_v42  ;;  %3251 = vmatpush1.bf16.msra.mxu1 %v13710_v43  ;;  %v483_v51 = vld [vmem:[#allocation2 + $0x20] sm:$0xff] }
 0x246   : > { %v2869_v59 = vpop.f32.mrb[3].mxu0  ;;  %v2951_v60 = vpop.f32.mrb[3].mxu1  ;;  %3170 = vmatprep.subr.bf16.mxu0 %v13715_v44  ;;  %3252 = vmatprep.subr.bf16.mxu1 %v13718_v45 }
 0x247   : > { %v3305_v63 = vadd.f32 %v3293_v52, %v479_v48  ;;  %v3306_v0 = vadd.f32 %v3294_v54, %v480_v50  ;;  %v484_v52 = vld [vmem:[#allocation2 + $0x28] sm:$0xff] }
 0x249   : > { %3311 = vst [vmem:[#allocation2] sm:$0xff] %v3305_v63  ;;  %3312 = vst [vmem:[#allocation2 + $0x8] sm:$0xff] %v3306_v0  ;;  %3171 = vmatpush1.bf16.msra.mxu0 %v13713_v57  ;;  %3253 = vmatpush1.bf16.msra.mxu1 %v13716_v58  ;;  %v3427_v63 = vld [vmem:[#allocation7] sm:$0xff] (!%p11829_p12) }
 0x24a   : > { %3172 = vmatprep.subr.bf16.mxu0 %v13721_v61  ;;  %3254 = vmatprep.subr.bf16.mxu1 %v13724_v62  ;;  %v3431_v0 = vld [vmem:[#allocation7 + $0x20] sm:$0xff] (!%p11829_p12) }
 0x24d   : > { %3173 = vmatpush1.bf16.msra.mxu0 %v13719_v1  ;;  %3255 = vmatpush1.bf16.msra.mxu1 %v13722_v2  ;;  %v3428_v1 = vld [vmem:[#allocation7 + $0x8] sm:$0xff] (!%p11829_p12)  ;;  %v11831_v2 = vcombine.high (!%p11829_p12), %v3427_v63, %v3431_v0 }
 0x24e   : > { %3174 = vmatprep.subr.bf16.mxu0 %v13727_v3  ;;  %3256 = vmatprep.subr.bf16.mxu1 %v13730_v4  ;;  %v3432_v3 = vld [vmem:[#allocation7 + $0x28] sm:$0xff] (!%p11829_p12)  ;;  %v11830_v4 = vcombine.low (!%p11829_p12), %v3427_v63, %v3431_v0 }
 0x24f   : > { %v3488_v63 = vld [vmem:[#allocation7 + $0x1e8] sm:$0xff] (!%p11829_p12) }
 0x250   : > { %v3321_v0 = vld [vmem:[#allocation2] sm:$0xff] (!%p11829_p12) }
 0x251   : > { %3175 = vmatpush1.bf16.msra.mxu0 %v13725_v5  ;;  %3257 = vmatpush1.bf16.msra.mxu1 %v13728_v6  ;;  %v3435_v5 = vld [vmem:[#allocation7 + $0x40] sm:$0xff] (!%p11829_p12) }
 0x252   : > { %3176 = vmatprep.subr.bf16.mxu0 %v13733_v8  ;;  %3258 = vmatprep.subr.bf16.mxu1 %v13736_v9  ;;  %v3439_v6 = vld [vmem:[#allocation7 + $0x60] sm:$0xff] (!%p11829_p12)  ;;  %v11833_v8 = vcombine.high (!%p11829_p12), %v3428_v1, %v3432_v3  ;;  %v11832_v9 = vcombine.low (!%p11829_p12), %v3428_v1, %v3432_v3 }
 0x255   : > { %3177 = vmatpush1.bf16.msra.mxu0 %v13731_v10  ;;  %3259 = vmatpush1.bf16.msra.mxu1 %v13734_v11  ;;  %v11839_v10 = vcombine.high (!%p11829_p12), %v3435_v5, %v3439_v6  ;;  %v3436_v11 = vld [vmem:[#allocation7 + $0x48] sm:$0xff] (!%p11829_p12) }
 0x256   : > { %3178 = vmatprep.subr.bf16.mxu0 %v13739_v13  ;;  %3260 = vmatprep.subr.bf16.mxu1 %v13742_v14  ;;  %v3440_v13 = vld [vmem:[#allocation7 + $0x68] sm:$0xff] (!%p11829_p12)  ;;  %v3443_v14 = vld [vmem:[#allocation7 + $0x80] sm:$0xff] (!%p11829_p12) }
 0x259   : > { %3179 = vmatpush1.bf16.msra.mxu0 %v13737_v15  ;;  %3261 = vmatpush1.bf16.msra.mxu1 %v13740_v16  ;;  %v11841_v15 = vcombine.high (!%p11829_p12), %v3436_v11, %v3440_v13  ;;  %v3447_v16 = vld [vmem:[#allocation7 + $0xa0] sm:$0xff] (!%p11829_p12) }
 0x25a   : > { %3180 = vmatprep.subr.bf16.mxu0 %v13745_v17  ;;  %3262 = vmatprep.subr.bf16.mxu1 %v13748_v18  ;;  %v3444_v17 = vld [vmem:[#allocation7 + $0x88] sm:$0xff] (!%p11829_p12) }
 0x25b   : > { %v3448_v18 = vld [vmem:[#allocation7 + $0xa8] sm:$0xff] (!%p11829_p12) }
 0x25d   : > { %3181 = vmatpush1.bf16.msra.mxu0 %v13743_v19  ;;  %3263 = vmatpush1.bf16.msra.mxu1 %v13746_v20  ;;  %v11838_v19 = vcombine.low (!%p11829_p12), %v3435_v5, %v3439_v6  ;;  %v11840_v20 = vcombine.low (!%p11829_p12), %v3436_v11, %v3440_v13  ;;  %v3491_v6 = vld [vmem:[#allocation7 + $0x200] sm:$0xff] (!%p11829_p12)  ;;  %v3496_v11 = vld [vmem:[#allocation7 + $0x228] sm:$0xff] (!%p11829_p12) }
 0x25e   : > { %3182 = vmatprep.subr.bf16.mxu0 %v13751_v21  ;;  %3264 = vmatprep.subr.bf16.mxu1 %v13754_v22  ;;  %v11847_v21 = vcombine.high (!%p11829_p12), %v3443_v14, %v3447_v16  ;;  %v11849_v22 = vcombine.high (!%p11829_p12), %v3444_v17, %v3448_v18 }
 0x261   : > { %3183 = vmatpush1.bf16.msra.mxu0 %v13749_v23  ;;  %3265 = vmatpush1.bf16.msra.mxu1 %v13752_v24  ;;  %v3451_v23 = vld [vmem:[#allocation7 + $0xc0] sm:$0xff] (!%p11829_p12) }
 0x262   : > { %3184 = vmatprep.subr.bf16.mxu0 %v13757_v25  ;;  %3266 = vmatprep.subr.bf16.mxu1 %v13760_v26  ;;  %v3455_v24 = vld [vmem:[#allocation7 + $0xe0] sm:$0xff] (!%p11829_p12)  ;;  %v3452_v25 = vld [vmem:[#allocation7 + $0xc8] sm:$0xff] (!%p11829_p12) }
 0x263   : > { %v3456_v26 = vld [vmem:[#allocation7 + $0xe8] sm:$0xff] (!%p11829_p12) }
 0x265   : > { %3185 = vmatpush1.bf16.msra.mxu0 %v13755_v27  ;;  %3267 = vmatpush1.bf16.msra.mxu1 %v13758_v28  ;;  %v11846_v27 = vcombine.low (!%p11829_p12), %v3443_v14, %v3447_v16  ;;  %v11848_v28 = vcombine.low (!%p11829_p12), %v3444_v17, %v3448_v18  ;;  %v3499_v18 = vld [vmem:[#allocation7 + $0x240] sm:$0xff] (!%p11829_p12) }
 0x266   : > { %3186 = vmatprep.subr.bf16.mxu0 %v13763_v29  ;;  %3268 = vmatprep.subr.bf16.mxu1 %v13766_v30  ;;  %v11855_v29 = vcombine.high (!%p11829_p12), %v3451_v23, %v3455_v24  ;;  %v11857_v30 = vcombine.high (!%p11829_p12), %v3452_v25, %v3456_v26 }
 0x269   : > { %3187 = vmatpush1.bf16.msra.mxu0 %v13761_v31  ;;  %3269 = vmatpush1.bf16.msra.mxu1 %v13764_v7  ;;  %v3459_v31 = vld [vmem:[#allocation7 + $0x100] sm:$0xff] (!%p11829_p12) }
 0x26a   : > { %3188 = vmatprep.subr.bf16.mxu0 %v13769_v32  ;;  %3270 = vmatprep.subr.bf16.mxu1 %v13772_v33  ;;  %v3463_v7 = vld [vmem:[#allocation7 + $0x120] sm:$0xff] (!%p11829_p12)  ;;  %v3331_v32 = vlaneseq (!%p11829_p12)  ;;  %v3460_v33 = vld [vmem:[#allocation7 + $0x108] sm:$0xff] (!%p11829_p12) }
 0x26d   : > { %3189 = vmatpush1.bf16.msra.mxu0 %v13767_v34  ;;  %3271 = vmatpush1.bf16.msra.mxu1 %v13770_v53  ;;  %v3464_v34 = vld [vmem:[#allocation7 + $0x128] sm:$0xff] (!%p11829_p12)  ;;  %v11854_v53 = vcombine.low (!%p11829_p12), %v3451_v23, %v3455_v24 }
 0x26e   : > { %8077 = vmatprep.subr.bf16.mxu0 (!%p11829_p12), %v11831_v2  ;;  %8323 = vmatprep.subr.bf16.mxu1 (!%p11829_p12), %v11833_v8  ;;  %v3495_v8 = vld [vmem:[#allocation7 + $0x220] sm:$0xff] (!%p11829_p12) }
 0x26f   : > { %v11895_v16 = vcombine.high (!%p11829_p12), %v3491_v6, %v3495_v8  ;;  %v11894_v23 = vcombine.low (!%p11829_p12), %v3491_v6, %v3495_v8 }
 0x270   : > { %3191 = vmatmul.mubr.bf16.vlgmr.msra.gmra.mrb[8].mxu0 %v14976_v12  ;;  %3273 = vmatmul.mubr.bf16.vlgmr.msra.gmra.mrb[8].mxu1 %v14976_v12 }
 0x271   : > { %8078 = vmatpush1.bf16.msra.mxu0 (!%p11829_p12), %v11830_v4  ;;  %8324 = vmatpush1.bf16.msra.mxu1 (!%p11829_p12), %v11832_v9 }
 0x272   : > { %8079 = vmatprep.subr.bf16.mxu0 (!%p11829_p12), %v11839_v10  ;;  %8325 = vmatprep.subr.bf16.mxu1 (!%p11829_p12), %v11841_v15  ;;  %v3492_v10 = vld [vmem:[#allocation7 + $0x208] sm:$0xff] (!%p11829_p12) }
 0x273   : > { %v11897_v17 = vcombine.high (!%p11829_p12), %v3492_v10, %v3496_v11  ;;  %v11896_v24 = vcombine.low (!%p11829_p12), %v3492_v10, %v3496_v11  ;;  %v3547_v11 = vld [vmem:[#allocation7 + $0x3c0] sm:$0xff] (!%p11829_p12) }
 0x275   : > { %8080 = vmatpush1.bf16.msra.mxu0 (!%p11829_p12), %v11838_v19  ;;  %8326 = vmatpush1.bf16.msra.mxu1 (!%p11829_p12), %v11840_v20  ;;  %v3503_v19 = vld [vmem:[#allocation7 + $0x260] sm:$0xff] (!%p11829_p12) }
 0x276   : > { %8081 = vmatprep.subr.bf16.mxu0 (!%p11829_p12), %v11847_v21  ;;  %8327 = vmatprep.subr.bf16.mxu1 (!%p11829_p12), %v11849_v22  ;;  %v3500_v21 = vld [vmem:[#allocation7 + $0x248] sm:$0xff] (!%p11829_p12) }
 0x277   : > { %v3504_v22 = vld [vmem:[#allocation7 + $0x268] sm:$0xff] (!%p11829_p12) }
 0x279   : > { %8082 = vmatpush1.bf16.msra.mxu0 (!%p11829_p12), %v11846_v27  ;;  %8328 = vmatpush1.bf16.msra.mxu1 (!%p11829_p12), %v11848_v28  ;;  %v3507_v27 = vld [vmem:[#allocation7 + $0x280] sm:$0xff] (!%p11829_p12) }
 0x27a   : > { %8083 = vmatprep.subr.bf16.mxu0 (!%p11829_p12), %v11855_v29  ;;  %8329 = vmatprep.subr.bf16.mxu1 (!%p11829_p12), %v11857_v30  ;;  %v3511_v28 = vld [vmem:[#allocation7 + $0x2a0] sm:$0xff] (!%p11829_p12)  ;;  %v3508_v29 = vld [vmem:[#allocation7 + $0x288] sm:$0xff] (!%p11829_p12) }
 0x27b   : > { %v3512_v30 = vld [vmem:[#allocation7 + $0x2a8] sm:$0xff] (!%p11829_p12) }
 0x27d   : > { %8084 = vmatpush1.bf16.msra.mxu0 (!%p11829_p12), %v11854_v53  ;;  %v3519_v53 = vld [vmem:[#allocation7 + $0x2e0] sm:$0xff] (!%p11829_p12) }
 0x2c3   : > { %v3028_v36 = vpop.f32.mrb[4].mxu0  ;;  %v3110_v35 = vpop.f32.mrb[4].mxu1 }
 0x2c4   : > { %v3030_v38 = vpop.f32.mrb[5].mxu0  ;;  %v3112_v40 = vpop.f32.mrb[5].mxu1 }
 0x2c5   : > { %v3295_v41 = vcombine.low %v3028_v36, %v3030_v38  ;;  %v3296_v42 = vcombine.low %v3110_v35, %v3112_v40  ;;  %v3032_v43 = vpop.f32.mrb[6].mxu0  ;;  %v3114_v44 = vpop.f32.mrb[6].mxu1  ;;  %v11856_v36 = vcombine.low (!%p11829_p12), %v3452_v25, %v3456_v26  ;;  %v11863_v35 = vcombine.high (!%p11829_p12), %v3459_v31, %v3463_v7  ;;  %v3467_v38 = vld [vmem:[#allocation7 + $0x140] sm:$0xff] (!%p11829_p12) }
 0x2c6   : > { %v3033_v45 = vpop.f32.mrb[7].mxu0  ;;  %v3115_v46 = vpop.f32.mrb[7].mxu1  ;;  %v15251_v40 = vshrl.u32 (!%p11829_p12), %v3331_v32, 7  ;;  %v11862_v43 = vcombine.low (!%p11829_p12), %v3459_v31, %v3463_v7  ;;  %v11864_v44 = vcombine.low (!%p11829_p12), %v3460_v33, %v3464_v34  ;;  %v11903_v25 = vcombine.high (!%p11829_p12), %v3499_v18, %v3503_v19 }
 0x2c7   : > { %v3307_v47 = vadd.f32 %v3295_v41, %v481_v37  ;;  %v3308_v48 = vadd.f32 %v3296_v42, %v482_v39  ;;  %v11865_v37 = vcombine.high (!%p11829_p12), %v3460_v33, %v3464_v34  ;;  %v3471_v39 = vld [vmem:[#allocation7 + $0x160] sm:$0xff] (!%p11829_p12)  ;;  %v3468_v41 = vld [vmem:[#allocation7 + $0x148] sm:$0xff] (!%p11829_p12)  ;;  %8330 = vmatpush1.bf16.msra.mxu1 (!%p11829_p12), %v11856_v36  ;;  %8085 = vmatprep.subr.bf16.mxu0 (!%p11829_p12), %v11863_v35 }
 0x2c8   : > { %v3472_v42 = vld [vmem:[#allocation7 + $0x168] sm:$0xff] (!%p11829_p12)  ;;  %v11871_v45 = vcombine.high (!%p11829_p12), %v3467_v38, %v3471_v39  ;;  %8086 = vmatpush1.bf16.msra.mxu0 (!%p11829_p12), %v11862_v43  ;;  %v11905_v26 = vcombine.high (!%p11829_p12), %v3500_v21, %v3504_v22  ;;  %v11902_v31 = vcombine.low (!%p11829_p12), %v3499_v18, %v3503_v19  ;;  %v11904_v7 = vcombine.low (!%p11829_p12), %v3500_v21, %v3504_v22  ;;  %v3515_v34 = vld [vmem:[#allocation7 + $0x2c0] sm:$0xff] (!%p11829_p12) }
 0x2c9   : > { %3313 = vst [vmem:[#allocation2 + $0x10] sm:$0xff] %v3307_v47  ;;  %3314 = vst [vmem:[#allocation2 + $0x18] sm:$0xff] %v3308_v48  ;;  %8331 = vmatprep.subr.bf16.mxu1 (!%p11829_p12), %v11865_v37  ;;  %v11873_v46 = vcombine.high (!%p11829_p12), %v3468_v41, %v3472_v42  ;;  %v3475_v47 = vld [vmem:[#allocation7 + $0x180] sm:$0xff] (!%p11829_p12)  ;;  %v11911_v32 = vcombine.high (!%p11829_p12), %v3507_v27, %v3511_v28  ;;  %v11913_v33 = vcombine.high (!%p11829_p12), %v3508_v29, %v3512_v30  ;;  %v3516_v36 = vld [vmem:[#allocation7 + $0x2c8] sm:$0xff] (!%p11829_p12) }
 0x2ca   : > { %v3479_v48 = vld [vmem:[#allocation7 + $0x1a0] sm:$0xff] (!%p11829_p12)  ;;  %8087 = vmatprep.subr.bf16.mxu0 (!%p11829_p12), %v11871_v45  ;;  %v3520_v35 = vld [vmem:[#allocation7 + $0x2e8] sm:$0xff] (!%p11829_p12)  ;;  %v11910_v37 = vcombine.low (!%p11829_p12), %v3507_v27, %v3511_v28 }
 0x2cb   : > { %8332 = vmatpush1.bf16.msra.mxu1 (!%p11829_p12), %v11864_v44  ;;  %v11878_v1 = vcombine.low (!%p11829_p12), %v3475_v47, %v3479_v48  ;;  %v3527_v43 = vld [vmem:[#allocation7 + $0x320] sm:$0xff] (!%p11829_p12)  ;;  %v3524_v44 = vld [vmem:[#allocation7 + $0x308] sm:$0xff] (!%p11829_p12) }
 0x2cc   : > { %8333 = vmatprep.subr.bf16.mxu1 (!%p11829_p12), %v11873_v46  ;;  %v3528_v45 = vld [vmem:[#allocation7 + $0x328] sm:$0xff] (!%p11829_p12)  ;;  %v11918_v46 = vcombine.low (!%p11829_p12), %v3515_v34, %v3519_v53 }
 0x2cd   : > { %v3560_v27 = vld [vmem:[#allocation7 + $0x428] sm:$0xff] (!%p11829_p12) }
 0x343   : > { %v3192_v49 = vpop.f32.mrb[8].mxu0  ;;  %v3274_v50 = vpop.f32.mrb[8].mxu1  ;;  %3320 = sbr.rel (%p11829_p12) target bundleno = 2308 (0x904), region = 96 }
 0x344   : > { %v3194_v12 = vpop.f32.mrb[9].mxu0  ;;  %v3276_v54 = vpop.f32.mrb[9].mxu1 }
 0x345   : > { %v3297_v55 = vcombine.low %v3192_v49, %v3194_v12  ;;  %v3298_v56 = vcombine.low %v3274_v50, %v3276_v54  ;;  %v3196_v57 = vpop.f32.mrb[10].mxu0  ;;  %v3278_v58 = vpop.f32.mrb[10].mxu1  ;;  %v15254_v49 = vsub.s32 (!%p11829_p12), 0, %v15251_v40  ;;  %v15257_v50 = vsub.s32 (!%p11829_p12), 1, %v15251_v40  ;;  %v3480_v12 = vld [vmem:[#allocation7 + $0x1a8] sm:$0xff] (!%p11829_p12) }
 0x346   : > { %v3197_v59 = vpop.f32.mrb[11].mxu0  ;;  %v3279_v60 = vpop.f32.mrb[11].mxu1  ;;  %v11872_v54 = vcombine.low (!%p11829_p12), %v3468_v41, %v3472_v42  ;;  %v3483_v58 = vld [vmem:[#allocation7 + $0x1c0] sm:$0xff] (!%p11829_p12)  ;;  %v11921_v41 = vcombine.high (!%p11829_p12), %v3516_v36, %v3520_v35 }
 0x347   : > { %v3309_v61 = vadd.f32 %v3297_v55, %v483_v51  ;;  %v3310_v62 = vadd.f32 %v3298_v56, %v484_v52  ;;  %v3476_v51 = vld [vmem:[#allocation7 + $0x188] sm:$0xff] (!%p11829_p12)  ;;  %v11870_v52 = vcombine.low (!%p11829_p12), %v3467_v38, %v3471_v39  ;;  %v11879_v55 = vcombine.high (!%p11829_p12), %v3475_v47, %v3479_v48  ;;  %v15259_v56 = vld [vmem:[#allocation5] sm:$0xff] (!%p11829_p12)  ;;  %v3487_v59 = vld [vmem:[#allocation7 + $0x1e0] sm:$0xff] (!%p11829_p12) }
 0x348   : > { %v11881_v57 = vcombine.high (!%p11829_p12), %v3476_v51, %v3480_v12  ;;  %v3334_v60 = vrot.slane (!%p11829_p12), %v15259_v56, %v15254_v49  ;;  %8334 = vmatpush1.bf16.msra.mxu1 (!%p11829_p12), %v11872_v54  ;;  %v11880_v3 = vcombine.low (!%p11829_p12), %v3476_v51, %v3480_v12  ;;  %v11887_v4 = vcombine.high (!%p11829_p12), %v3483_v58, %v3487_v59  ;;  %v3523_v42 = vld [vmem:[#allocation7 + $0x300] sm:$0xff] (!%p11829_p12) }
 0x349   : > { %3315 = vst [vmem:[#allocation2 + $0x20] sm:$0xff] %v3309_v61  ;;  %3316 = vst [vmem:[#allocation2 + $0x28] sm:$0xff] %v3310_v62  ;;  %v3338_v61 = vrot.slane (!%p11829_p12), %v15259_v56, %v15257_v50  ;;  %v3484_v62 = vld [vmem:[#allocation7 + $0x1c8] sm:$0xff] (!%p11829_p12)  ;;  %8088 = vmatpush1.bf16.msra.mxu0 (!%p11829_p12), %v11870_v52  ;;  %v11886_v13 = vcombine.low (!%p11829_p12), %v3483_v58, %v3487_v59  ;;  %v11912_v38 = vcombine.low (!%p11829_p12), %v3508_v29, %v3512_v30  ;;  %v3531_v12 = vld [vmem:[#allocation7 + $0x340] sm:$0xff] (!%p11829_p12) }
 0x34a   : > { %8089 = vmatprep.subr.bf16.mxu0 %v11879_v55  ;;  %8335 = vmatprep.subr.bf16.mxu1 %v11881_v57  ;;  %v11889_v5 = vcombine.high %v3484_v62, %v3488_v63  ;;  %v11888_v15 = vcombine.low %v3484_v62, %v3488_v63  ;;  %v11919_v39 = vcombine.high %v3515_v34, %v3519_v53  ;;  %v3535_v52 = vld [vmem:[#allocation7 + $0x360] sm:$0xff]  ;;  %v15274_v54 = vsub.s32 2, %v15251_v40  ;;  %v3532_v57 = vld [vmem:[#allocation7 + $0x348] sm:$0xff] }
 0x34b   : > { %v3379_v2 = vcombine.low %v3334_v60, %v3338_v61  ;;  %v11920_v47 = vcombine.low %v3516_v36, %v3520_v35  ;;  %v11927_v48 = vcombine.high %v3523_v42, %v3527_v43  ;;  %v11929_v51 = vcombine.high %v3524_v44, %v3528_v45  ;;  %v3536_v58 = vld [vmem:[#allocation7 + $0x368] sm:$0xff]  ;;  %v3539_v63 = vld [vmem:[#allocation7 + $0x380] sm:$0xff] }
 0x34c   : > { %8336 = vmatpush1.bf16.msra.mxu1 %v11880_v3  ;;  %v15277_v55 = vsub.s32 3, %v15251_v40  ;;  %v11926_v59 = vcombine.low %v3523_v42, %v3527_v43  ;;  %v11928_v60 = vcombine.low %v3524_v44, %v3528_v45  ;;  %v11935_v61 = vcombine.high %v3531_v12, %v3535_v52  ;;  %v3540_v3 = vld [vmem:[#allocation7 + $0x388] sm:$0xff] }
 0x34d   : > { %v15265_v9 = vadd.f32 %v3379_v2, %v3321_v0  ;;  %8090 = vmatpush1.bf16.msra.mxu0 %v11878_v1  ;;  %8337 = vmatprep.subr.bf16.mxu1 %v11889_v5  ;;  %v11937_v62 = vcombine.high %v3532_v57, %v3536_v58  ;;  %v3543_v0 = vld [vmem:[#allocation7 + $0x3a0] sm:$0xff]  ;;  %v3342_v1 = vrot.slane %v15259_v56, %v15274_v54  ;;  %v3564_v53 = vld [vmem:[#allocation7 + $0x448] sm:$0xff] }
 0x34e   : > { %8091 = vmatprep.subr.bf16.mxu0 %v11887_v4  ;;  %v3346_v2 = vrot.slane %v15259_v56, %v15277_v55  ;;  %v3544_v4 = vld [vmem:[#allocation7 + $0x3a8] sm:$0xff]  ;;  %v11934_v5 = vcombine.low %v3531_v12, %v3535_v52  ;;  %v11936_v6 = vcombine.low %v3532_v57, %v3536_v58  ;;  %v11943_v8 = vcombine.high %v3539_v63, %v3543_v0 }
 0x34f   : > { %v3403_v14 = vcombine.high %v15265_v9, %v15265_v9  ;;  %v11945_v10 = vcombine.high %v3540_v3, %v3544_v4  ;;  %v11942_v18 = vcombine.low %v3539_v63, %v3543_v0  ;;  %v11944_v19 = vcombine.low %v3540_v3, %v3544_v4  ;;  %v3568_v36 = vld [vmem:[#allocation7 + $0x468] sm:$0xff] }
 0x350   : > { %8338 = vmatpush1.bf16.msra.mxu1 %v11888_v15  ;;  %v3548_v15 = vld [vmem:[#allocation7 + $0x3c8] sm:$0xff]  ;;  %v15289_v34 = vpack.c.bf16 %v15265_v9, %v15265_v9  ;;  %v11969_v42 = vcombine.high %v3564_v53, %v3568_v36 }
 0x351   : > { %v15269_v20 = vpack.c.bf16 %v3403_v14, %v3403_v14  ;;  %8092 = vmatpush1.bf16.msra.mxu0 %v11886_v13  ;;  %8339 = vmatprep.subr.bf16.mxu1 %v11897_v17  ;;  %v3551_v13 = vld [vmem:[#allocation7 + $0x3e0] sm:$0xff]  ;;  %v3380_v14 = vcombine.low %v3342_v1, %v3346_v2  ;;  %v3322_v17 = vld [vmem:[#allocation2 + $0x8] sm:$0xff] }
 0x352   : > { %8093 = vmatprep.subr.bf16.mxu0 %v11895_v16  ;;  %v3552_v16 = vld [vmem:[#allocation7 + $0x3e8] sm:$0xff]  ;;  %v11951_v21 = vcombine.high %v3547_v11, %v3551_v13  ;;  %v11950_v28 = vcombine.low %v3547_v11, %v3551_v13 }
 0x353   : > { %8109 = vmatprep.mubr.bf16.mxu0 %v15269_v20  ;;  %8355 = vmatprep.mubr.bf16.mxu1 %v15269_v20  ;;  %v11953_v22 = vcombine.high %v3548_v15, %v3552_v16  ;;  %v11952_v29 = vcombine.low %v3548_v15, %v3552_v16  ;;  %v3572_v43 = vld [vmem:[#allocation7 + $0x488] sm:$0xff]  ;;  %v3603_v16 = vld [vmem:[#allocation7 + $0x580] sm:$0xff] }
 0x354   : > { %8340 = vmatpush1.bf16.msra.mxu1 %v11896_v24  ;;  %v3559_v24 = vld [vmem:[#allocation7 + $0x420] sm:$0xff]  ;;  %v3576_v44 = vld [vmem:[#allocation7 + $0x4a8] sm:$0xff] }
 0x355   : > { %8094 = vmatpush1.bf16.msra.mxu0 %v11894_v23  ;;  %8341 = vmatprep.subr.bf16.mxu1 %v11905_v26  ;;  %v3555_v23 = vld [vmem:[#allocation7 + $0x400] sm:$0xff]  ;;  %v3556_v26 = vld [vmem:[#allocation7 + $0x408] sm:$0xff]  ;;  %v11977_v52 = vcombine.high %v3572_v43, %v3576_v44 }
 0x356   : > { %8095 = vmatprep.subr.bf16.mxu0 %v11903_v25  ;;  %v15283_v25 = vadd.f32 %v3380_v14, %v3322_v17  ;;  %v11959_v30 = vcombine.high %v3555_v23, %v3559_v24  ;;  %v11958_v35 = vcombine.low %v3555_v23, %v3559_v24  ;;  %v3580_v12 = vld [vmem:[#allocation7 + $0x4c8] sm:$0xff]  ;;  %v3607_v17 = vld [vmem:[#allocation7 + $0x5a0] sm:$0xff] }
 0x357   : > { %v3584_v57 = vld [vmem:[#allocation7 + $0x4e8] sm:$0xff]  ;;  %v12007_v24 = vcombine.high %v3603_v16, %v3607_v17 }
 0x358   : > { %8342 = vmatpush1.bf16.msra.mxu1 %v11904_v7  ;;  %v3563_v7 = vld [vmem:[#allocation7 + $0x440] sm:$0xff]  ;;  %v3588_v63 = vld [vmem:[#allocation7 + $0x508] sm:$0xff]  ;;  %v11985_v0 = vcombine.high %v3580_v12, %v3584_v57  ;;  %v11984_v3 = vcombine.low %v3580_v12, %v3584_v57 }
 0x359   : > { %8096 = vmatpush1.bf16.msra.mxu0 %v11902_v31  ;;  %8343 = vmatprep.subr.bf16.mxu1 %v11913_v33  ;;  %v11961_v31 = vcombine.high %v3556_v26, %v3560_v27  ;;  %v3404_v33 = vcombine.high %v15283_v25, %v15283_v25  ;;  %v3592_v1 = vld [vmem:[#allocation7 + $0x528] sm:$0xff]  ;;  %v3635_v12 = vld [vmem:[#allocation7 + $0x680] sm:$0xff] }
 0x35a   : > { %8097 = vmatprep.subr.bf16.mxu0 %v11911_v32  ;;  %v3567_v32 = vld [vmem:[#allocation7 + $0x460] sm:$0xff]  ;;  %v3600_v11 = vld [vmem:[#allocation7 + $0x568] sm:$0xff]  ;;  %v11992_v14 = vcombine.low %v3588_v63, %v3592_v1 }
 0x35b   : > { %v15291_v45 = vpack.c.bf16 %v3404_v33, %v3404_v33  ;;  %v11966_v9 = vcombine.low %v3563_v7, %v3567_v32  ;;  %v3619_v33 = vld [vmem:[#allocation7 + $0x600] sm:$0xff]  ;;  %v3636_v57 = vld [vmem:[#allocation7 + $0x688] sm:$0xff] }
 0x35c   : > { %8344 = vmatpush1.bf16.msra.mxu1 %v11912_v38  ;;  %v11967_v38 = vcombine.high %v3563_v7, %v3567_v32 }
 0x35d   : > { %8098 = vmatpush1.bf16.msra.mxu0 %v11910_v37  ;;  %8345 = vmatprep.subr.bf16.mxu1 %v11921_v41  ;;  %v11960_v37 = vcombine.low %v3556_v26, %v3560_v27  ;;  %v3575_v41 = vld [vmem:[#allocation7 + $0x4a0] sm:$0xff] }
 0x35e   : > { %8099 = vmatprep.subr.bf16.mxu0 %v11919_v39  ;;  %v3571_v39 = vld [vmem:[#allocation7 + $0x480] sm:$0xff] }
 0x35f   : > { %v11974_v58 = vcombine.low %v3571_v39, %v3575_v41  ;;  %v3611_v26 = vld [vmem:[#allocation7 + $0x5c0] sm:$0xff] }
 0x360   : > { %8346 = vmatpush1.bf16.msra.mxu1 %v11920_v47  ;;  %v11975_v47 = vcombine.high %v3571_v39, %v3575_v41  ;;  %v3615_v27 = vld [vmem:[#allocation7 + $0x5e0] sm:$0xff] }
 0x361   : > { %8100 = vmatpush1.bf16.msra.mxu0 %v11918_v46  ;;  %8347 = vmatprep.subr.bf16.mxu1 %v11929_v51  ;;  %v11968_v46 = vcombine.low %v3564_v53, %v3568_v36  ;;  %v3583_v51 = vld [vmem:[#allocation7 + $0x4e0] sm:$0xff]  ;;  %v12015_v32 = vcombine.high %v3611_v26, %v3615_v27  ;;  %v3620_v36 = vld [vmem:[#allocation7 + $0x608] sm:$0xff] }
 0x362   : > { %8101 = vmatprep.subr.bf16.mxu0 %v11927_v48  ;;  %v3579_v48 = vld [vmem:[#allocation7 + $0x4c0] sm:$0xff] }
 0x363   : > { %v11982_v2 = vcombine.low %v3579_v48, %v3583_v51  ;;  %v3623_v53 = vld [vmem:[#allocation7 + $0x620] sm:$0xff] }
 0x364   : > { %8348 = vmatpush1.bf16.msra.mxu1 %v11928_v60  ;;  %v11983_v60 = vcombine.high %v3579_v48, %v3583_v51  ;;  %v12023_v41 = vcombine.high %v3619_v33, %v3623_v53 }
 0x365   : > { %8102 = vmatpush1.bf16.msra.mxu0 %v11926_v59  ;;  %8349 = vmatprep.subr.bf16.mxu1 %v11937_v62  ;;  %v11976_v59 = vcombine.low %v3572_v43, %v3576_v44  ;;  %v3591_v62 = vld [vmem:[#allocation7 + $0x520] sm:$0xff]  ;;  %v3628_v44 = vld [vmem:[#allocation7 + $0x648] sm:$0xff] }
 0x366   : > { %8103 = vmatprep.subr.bf16.mxu0 %v11935_v61  ;;  %v3587_v61 = vld [vmem:[#allocation7 + $0x500] sm:$0xff] }
 0x367   : > { %v11991_v4 = vcombine.high %v3587_v61, %v3591_v62  ;;  %v11990_v13 = vcombine.low %v3587_v61, %v3591_v62  ;;  %v3631_v43 = vld [vmem:[#allocation7 + $0x660] sm:$0xff] }
 0x368   : > { %8350 = vmatpush1.bf16.msra.mxu1 %v11936_v6  ;;  %v3599_v6 = vld [vmem:[#allocation7 + $0x560] sm:$0xff] }
 0x369   : > { %8104 = vmatpush1.bf16.msra.mxu0 %v11934_v5  ;;  %8351 = vmatprep.subr.bf16.mxu1 %v11945_v10  ;;  %v3595_v5 = vld [vmem:[#allocation7 + $0x540] sm:$0xff]  ;;  %v11993_v10 = vcombine.high %v3588_v63, %v3592_v1  ;;  %v3644_v1 = vld [vmem:[#allocation7 + $0x6c8] sm:$0xff] }
 0x36a   : > { %8105 = vmatprep.subr.bf16.mxu0 %v11943_v8  ;;  %v3596_v8 = vld [vmem:[#allocation7 + $0x548] sm:$0xff]  ;;  %v11999_v15 = vcombine.high %v3595_v5, %v3599_v6  ;;  %v3643_v63 = vld [vmem:[#allocation7 + $0x6c0] sm:$0xff] }
 0x36b   : > { %v12000_v23 = vcombine.low %v3596_v8, %v3600_v11 }
 0x36c   : > { %8352 = vmatpush1.bf16.msra.mxu1 %v11944_v19  ;;  %v12001_v19 = vcombine.high %v3596_v8, %v3600_v11  ;;  %v3651_v8 = vld [vmem:[#allocation7 + $0x700] sm:$0xff]  ;;  %v3652_v11 = vld [vmem:[#allocation7 + $0x708] sm:$0xff] }
 0x36d   : > { %8106 = vmatpush1.bf16.msra.mxu0 %v11942_v18  ;;  %8353 = vmatprep.subr.bf16.mxu1 %v11953_v22  ;;  %v3604_v18 = vld [vmem:[#allocation7 + $0x588] sm:$0xff]  ;;  %v11998_v22 = vcombine.low %v3595_v5, %v3599_v6 }
 0x36e   : > { %8107 = vmatprep.subr.bf16.mxu0 %v11951_v21  ;;  %v3608_v21 = vld [vmem:[#allocation7 + $0x5a8] sm:$0xff] }
 0x36f   : > { %v12008_v7 = vcombine.low %v3604_v18, %v3608_v21 }
 0x370   : > { %8354 = vmatpush1.bf16.msra.mxu1 %v11952_v29  ;;  %v12009_v29 = vcombine.high %v3604_v18, %v3608_v21  ;;  %v3659_v18 = vld [vmem:[#allocation7 + $0x740] sm:$0xff]  ;;  %v3660_v21 = vld [vmem:[#allocation7 + $0x748] sm:$0xff] }
 0x371   : > { %8108 = vmatpush1.bf16.msra.mxu0 %v11950_v28  ;;  %8364 = vmatprep.subr.bf16.mxu1 %v11961_v31  ;;  %v3612_v28 = vld [vmem:[#allocation7 + $0x5c8] sm:$0xff]  ;;  %v12006_v31 = vcombine.low %v3603_v16, %v3607_v17 }
 0x372   : > { %8118 = vmatprep.subr.bf16.mxu0 %v11959_v30  ;;  %v3616_v30 = vld [vmem:[#allocation7 + $0x5e8] sm:$0xff] }
 0x373   : > { %8356 = vmatmul.mubr.bf16.vlgmr.msra.gmra.mrb[0].mxu1 %v15289_v34  ;;  %v12016_v39 = vcombine.low %v3612_v28, %v3616_v30 }
 0x374   : > { %8110 = vmatmul.mubr.bf16.vlgmr.msra.gmra.mrb[0].mxu0 %v15289_v34  ;;  %8365 = vmatpush1.bf16.msra.mxu1 %v11960_v37  ;;  %v3624_v37 = vld [vmem:[#allocation7 + $0x628] sm:$0xff] }
 0x375   : > { %8119 = vmatpush1.bf16.msra.mxu0 %v11958_v35  ;;  %8366 = vmatprep.subr.bf16.mxu1 %v11969_v42  ;;  %v12017_v35 = vcombine.high %v3612_v28, %v3616_v30  ;;  %v3627_v42 = vld [vmem:[#allocation7 + $0x640] sm:$0xff]  ;;  %v12024_v48 = vcombine.low %v3620_v36, %v3624_v37 }
 0x376   : > { %8120 = vmatprep.subr.bf16.mxu0 %v11967_v38  ;;  %8150 = vmatprep.mubr.bf16.mxu0 %v15291_v45  ;;  %v12014_v38 = vcombine.low %v3611_v26, %v3615_v27  ;;  %v12031_v51 = vcombine.high %v3627_v42, %v3631_v43  ;;  %v3353_v26 = vsub.s32 5, %v15251_v40  ;;  %v3667_v30 = vld [vmem:[#allocation7 + $0x780] sm:$0xff] }
 0x377   : > { %8396 = vmatprep.mubr.bf16.mxu1 %v15291_v45 }
 0x378   : > { %8367 = vmatpush1.bf16.msra.mxu1 %v11968_v46  ;;  %v3632_v46 = vld [vmem:[#allocation7 + $0x668] sm:$0xff] }
 0x379   : > { %8121 = vmatpush1.bf16.msra.mxu0 %v11966_v9  ;;  %8368 = vmatprep.subr.bf16.mxu1 %v11977_v52  ;;  %v12025_v9 = vcombine.high %v3620_v36, %v3624_v37  ;;  %v3639_v52 = vld [vmem:[#allocation7 + $0x6a0] sm:$0xff]  ;;  %v12032_v61 = vcombine.low %v3628_v44, %v3632_v46  ;;  %v3354_v36 = vrot.slane %v15259_v56, %v3353_v26 }
 0x37a   : > { %8122 = vmatprep.subr.bf16.mxu0 %v11975_v47  ;;  %v12022_v47 = vcombine.low %v3619_v33, %v3623_v53  ;;  %v12039_v62 = vcombine.high %v3635_v12, %v3639_v52  ;;  %v3672_v33 = vld [vmem:[#allocation7 + $0x7a8] sm:$0xff]  ;;  %v3675_v37 = vld [vmem:[#allocation7 + $0x7c0] sm:$0xff] }
 0x37c   : > { %8369 = vmatpush1.bf16.msra.mxu1 %v11976_v59  ;;  %v3640_v59 = vld [vmem:[#allocation7 + $0x6a8] sm:$0xff] }
 0x37d   : > { %8123 = vmatpush1.bf16.msra.mxu0 %v11974_v58  ;;  %8370 = vmatprep.subr.bf16.mxu1 %v11985_v0  ;;  %v12033_v58 = vcombine.high %v3628_v44, %v3632_v46  ;;  %v3647_v0 = vld [vmem:[#allocation7 + $0x6e0] sm:$0xff]  ;;  %v12040_v5 = vcombine.low %v3636_v57, %v3640_v59 }
 0x37e   : > { %8124 = vmatprep.subr.bf16.mxu0 %v11983_v60  ;;  %v12030_v60 = vcombine.low %v3627_v42, %v3631_v43  ;;  %v12047_v6 = vcombine.high %v3643_v63, %v3647_v0  ;;  %v3676_v42 = vld [vmem:[#allocation7 + $0x7c8] sm:$0xff] }
 0x37f   : > { %v3680_v43 = vld [vmem:[#allocation7 + $0x7e8] sm:$0xff] }
 0x380   : > { %8371 = vmatpush1.bf16.msra.mxu1 %v11984_v3  ;;  %v3648_v3 = vld [vmem:[#allocation7 + $0x6e8] sm:$0xff] }
 0x381   : > { %8125 = vmatpush1.bf16.msra.mxu0 %v11982_v2  ;;  %8372 = vmatprep.subr.bf16.mxu1 %v11993_v10  ;;  %v12041_v2 = vcombine.high %v3636_v57, %v3640_v59  ;;  %v3655_v10 = vld [vmem:[#allocation7 + $0x720] sm:$0xff]  ;;  %v12048_v16 = vcombine.low %v3644_v1, %v3648_v3  ;;  %v12081_v57 = vcombine.high %v3676_v42, %v3680_v43 }
 0x382   : > { %8126 = vmatprep.subr.bf16.mxu0 %v11991_v4  ;;  %v12038_v4 = vcombine.low %v3635_v12, %v3639_v52  ;;  %v12055_v17 = vcombine.high %v3651_v8, %v3655_v10  ;;  %v12054_v27 = vcombine.low %v3651_v8, %v3655_v10  ;;  %v3687_v12 = vld [vmem:[#allocation7 + $0x820] sm:$0xff]  ;;  %v3684_v52 = vld [vmem:[#allocation7 + $0x808] sm:$0xff] }
 0x384   : > { %8373 = vmatpush1.bf16.msra.mxu1 %v11992_v14  ;;  %v3656_v14 = vld [vmem:[#allocation7 + $0x728] sm:$0xff] }
 0x385   : > { %8127 = vmatpush1.bf16.msra.mxu0 %v11990_v13  ;;  %8374 = vmatprep.subr.bf16.mxu1 %v12001_v19  ;;  %v12049_v13 = vcombine.high %v3644_v1, %v3648_v3  ;;  %v3663_v19 = vld [vmem:[#allocation7 + $0x760] sm:$0xff]  ;;  %v12056_v28 = vcombine.low %v3652_v11, %v3656_v14  ;;  %v3696_v3 = vld [vmem:[#allocation7 + $0x868] sm:$0xff] }
 0x386   : > { %8128 = vmatprep.subr.bf16.mxu0 %v11999_v15  ;;  %v12046_v15 = vcombine.low %v3643_v63, %v3647_v0  ;;  %v3691_v63 = vld [vmem:[#allocation7 + $0x840] sm:$0xff] }
 0x387   : > { %v3695_v0 = vld [vmem:[#allocation7 + $0x860] sm:$0xff] }
 0x388   : > { %8375 = vmatpush1.bf16.msra.mxu1 %v12000_v23  ;;  %v3664_v23 = vld [vmem:[#allocation7 + $0x768] sm:$0xff]  ;;  %v12095_v10 = vcombine.high %v3691_v63, %v3695_v0 }
 0x389   : > { %8129 = vmatpush1.bf16.msra.mxu0 %v11998_v22  ;;  %8376 = vmatprep.subr.bf16.mxu1 %v12009_v29  ;;  %v12057_v22 = vcombine.high %v3652_v11, %v3656_v14  ;;  %v12063_v29 = vcombine.high %v3659_v18, %v3663_v19  ;;  %v3699_v11 = vld [vmem:[#allocation7 + $0x880] sm:$0xff]  ;;  %v3700_v14 = vld [vmem:[#allocation7 + $0x888] sm:$0xff] }
 0x38a   : > { %8130 = vmatprep.subr.bf16.mxu0 %v12007_v24  ;;  %v3349_v24 = vsub.s32 4, %v15251_v40 }
 0x38c   : > { %8377 = vmatpush1.bf16.msra.mxu1 %v12008_v7  ;;  %v3668_v7 = vld [vmem:[#allocation7 + $0x788] sm:$0xff]  ;;  %v3350_v53 = vrot.slane %v15259_v56, %v3349_v24 }
 0x38d   : > { %8131 = vmatpush1.bf16.msra.mxu0 %v12006_v31  ;;  %8378 = vmatprep.subr.bf16.mxu1 %v12017_v35  ;;  %v3671_v31 = vld [vmem:[#allocation7 + $0x7a0] sm:$0xff]  ;;  %v12062_v35 = vcombine.low %v3659_v18, %v3663_v19  ;;  %v12073_v44 = vcombine.high %v3668_v7, %v3672_v33 }
 0x38e   : > { %8132 = vmatprep.subr.bf16.mxu0 %v12015_v32  ;;  %v12065_v32 = vcombine.high %v3660_v21, %v3664_v23  ;;  %v3381_v46 = vcombine.low %v3350_v53, %v3354_v36  ;;  %v3720_v36 = vld [vmem:[#allocation7 + $0x928] sm:$0xff] }
 0x390   : > { %8379 = vmatpush1.bf16.msra.mxu1 %v12016_v39  ;;  %v12071_v39 = vcombine.high %v3667_v30, %v3671_v31 }
 0x391   : > { %8133 = vmatpush1.bf16.msra.mxu0 %v12014_v38  ;;  %8380 = vmatprep.subr.bf16.mxu1 %v12025_v9  ;;  %v12064_v38 = vcombine.low %v3660_v21, %v3664_v23  ;;  %v3323_v9 = vld [vmem:[#allocation2 + $0x10] sm:$0xff]  ;;  %v3707_v21 = vld [vmem:[#allocation7 + $0x8c0] sm:$0xff]  ;;  %v3708_v23 = vld [vmem:[#allocation7 + $0x8c8] sm:$0xff] }
 0x392   : > { %8134 = vmatprep.subr.bf16.mxu0 %v12023_v41  ;;  %v3679_v41 = vld [vmem:[#allocation7 + $0x7e0] sm:$0xff]  ;;  %v15305_v59 = vadd.f32 %v3381_v46, %v3323_v9 }
 0x393   : > { %v12079_v56 = vcombine.high %v3675_v37, %v3679_v41 }
 0x394   : > { %8381 = vmatpush1.bf16.msra.mxu1 %v12024_v48  ;;  %v12072_v48 = vcombine.low %v3668_v7, %v3672_v33  ;;  %v3715_v7 = vld [vmem:[#allocation7 + $0x900] sm:$0xff]  ;;  %v3716_v33 = vld [vmem:[#allocation7 + $0x908] sm:$0xff] }
 0x395   : > { %8135 = vmatpush1.bf16.msra.mxu0 %v12022_v47  ;;  %8382 = vmatprep.subr.bf16.mxu1 %v12033_v58  ;;  %v12070_v47 = vcombine.low %v3667_v30, %v3671_v31  ;;  %v3688_v58 = vld [vmem:[#allocation7 + $0x828] sm:$0xff]  ;;  %v12120_v46 = vcombine.low %v3716_v33, %v3720_v36 }
 0x396   : > { %8136 = vmatprep.subr.bf16.mxu0 %v12031_v51  ;;  %v3683_v51 = vld [vmem:[#allocation7 + $0x800] sm:$0xff]  ;;  %v12089_v1 = vcombine.high %v3684_v52, %v3688_v58  ;;  %v12088_v8 = vcombine.low %v3684_v52, %v3688_v58  ;;  %v3736_v52 = vld [vmem:[#allocation7 + $0x9a8] sm:$0xff] }
 0x398   : > { %8383 = vmatpush1.bf16.msra.mxu1 %v12032_v61  ;;  %v12080_v61 = vcombine.low %v3676_v42, %v3680_v43  ;;  %v3724_v42 = vld [vmem:[#allocation7 + $0x948] sm:$0xff]  ;;  %v12121_v43 = vcombine.high %v3716_v33, %v3720_v36 }
 0x399   : > { %8137 = vmatpush1.bf16.msra.mxu0 %v12030_v60  ;;  %8384 = vmatprep.subr.bf16.mxu1 %v12041_v2  ;;  %v12078_v60 = vcombine.low %v3675_v37, %v3679_v41  ;;  %v3692_v2 = vld [vmem:[#allocation7 + $0x848] sm:$0xff]  ;;  %v3727_v41 = vld [vmem:[#allocation7 + $0x960] sm:$0xff] }
 0x39a   : > { %8138 = vmatprep.subr.bf16.mxu0 %v12039_v62  ;;  %v12087_v62 = vcombine.high %v3683_v51, %v3687_v12  ;;  %v12096_v18 = vcombine.low %v3692_v2, %v3696_v3 }
 0x39c   : > { %8385 = vmatpush1.bf16.msra.mxu1 %v12040_v5  ;;  %v15311_v5 = vpack.c.bf16 %v15283_v25, %v15283_v25  ;;  %v12094_v25 = vcombine.low %v3691_v63, %v3695_v0  ;;  %v3740_v63 = vld [vmem:[#allocation7 + $0x9c8] sm:$0xff] }
 0x39d   : > { %8139 = vmatpush1.bf16.msra.mxu0 %v12038_v4  ;;  %8386 = vmatprep.subr.bf16.mxu1 %v12049_v13  ;;  %v3405_v4 = vcombine.high %v15305_v59, %v15305_v59  ;;  %v3703_v13 = vld [vmem:[#allocation7 + $0x8a0] sm:$0xff] }
 0x39e   : > { %8140 = vmatprep.subr.bf16.mxu0 %v12047_v6  ;;  %v12086_v6 = vcombine.low %v3683_v51, %v3687_v12  ;;  %v12103_v19 = vcombine.high %v3699_v11, %v3703_v13  ;;  %v3732_v51 = vld [vmem:[#allocation7 + $0x988] sm:$0xff] }
 0x39f   : > { %v12137_v0 = vcombine.high %v3732_v51, %v3736_v52 }
 0x3a0   : > { %8387 = vmatpush1.bf16.msra.mxu1 %v12048_v16  ;;  %v3704_v16 = vld [vmem:[#allocation7 + $0x8a8] sm:$0xff] }
 0x3a1   : > { %8141 = vmatpush1.bf16.msra.mxu0 %v12046_v15  ;;  %8388 = vmatprep.subr.bf16.mxu1 %v12057_v22  ;;  %v12097_v15 = vcombine.high %v3692_v2, %v3696_v3  ;;  %v3711_v22 = vld [vmem:[#allocation7 + $0x8e0] sm:$0xff]  ;;  %v12104_v30 = vcombine.low %v3700_v14, %v3704_v16  ;;  %v12136_v3 = vcombine.low %v3732_v51, %v3736_v52 }
 0x3a2   : > { %8142 = vmatprep.subr.bf16.mxu0 %v12055_v17  ;;  %v15313_v17 = vpack.c.bf16 %v3405_v4, %v3405_v4  ;;  %v12111_v31 = vcombine.high %v3707_v21, %v3711_v22 }
 0x3a4   : > { %8389 = vmatpush1.bf16.msra.mxu1 %v12056_v28  ;;  %v3712_v28 = vld [vmem:[#allocation7 + $0x8e8] sm:$0xff] }
 0x3a5   : > { %8143 = vmatpush1.bf16.msra.mxu0 %v12054_v27  ;;  %8390 = vmatprep.subr.bf16.mxu1 %v12065_v32  ;;  %v12105_v27 = vcombine.high %v3700_v14, %v3704_v16  ;;  %v3719_v32 = vld [vmem:[#allocation7 + $0x920] sm:$0xff]  ;;  %v12113_v53 = vcombine.high %v3708_v23, %v3712_v28  ;;  %v12112_v37 = vcombine.low %v3708_v23, %v3712_v28 }
 0x3a6   : > { %8144 = vmatprep.subr.bf16.mxu0 %v12063_v29  ;;  %v12102_v29 = vcombine.low %v3699_v11, %v3703_v13  ;;  %v12118_v9 = vcombine.low %v3715_v7, %v3719_v32  ;;  %v3752_v13 = vld [vmem:[#allocation7 + $0xa28] sm:$0xff] }
 0x3a8   : > { %8391 = vmatpush1.bf16.msra.mxu1 %v12064_v38  ;;  %v12119_v38 = vcombine.high %v3715_v7, %v3719_v32  ;;  %v3768_v32 = vld [vmem:[#allocation7 + $0xaa8] sm:$0xff] }
 0x3a9   : > { %8145 = vmatpush1.bf16.msra.mxu0 %v12062_v35  ;;  %8392 = vmatprep.subr.bf16.mxu1 %v12073_v44  ;;  %v12110_v35 = vcombine.low %v3707_v21, %v3711_v22  ;;  %v3728_v44 = vld [vmem:[#allocation7 + $0x968] sm:$0xff] }
 0x3aa   : > { %8146 = vmatprep.subr.bf16.mxu0 %v12071_v39  ;;  %v3723_v39 = vld [vmem:[#allocation7 + $0x940] sm:$0xff]  ;;  %v12129_v12 = vcombine.high %v3724_v42, %v3728_v44  ;;  %v12128_v58 = vcombine.low %v3724_v42, %v3728_v44  ;;  %v3760_v22 = vld [vmem:[#allocation7 + $0xa68] sm:$0xff] }
 0x3ac   : > { %8393 = vmatpush1.bf16.msra.mxu1 %v12072_v48  ;;  %v3731_v48 = vld [vmem:[#allocation7 + $0x980] sm:$0xff] }
 0x3ad   : > { %8147 = vmatpush1.bf16.msra.mxu0 %v12070_v47  ;;  %8394 = vmatprep.subr.bf16.mxu1 %v12081_v57  ;;  %v12127_v47 = vcombine.high %v3723_v39, %v3727_v41  ;;  %v12126_v57 = vcombine.low %v3723_v39, %v3727_v41  ;;  %v3776_v41 = vld [vmem:[#allocation7 + $0xae8] sm:$0xff] }
 0x3ae   : > { %8148 = vmatprep.subr.bf16.mxu0 %v12079_v56  ;;  %v3735_v56 = vld [vmem:[#allocation7 + $0x9a0] sm:$0xff] }
 0x3af   : > { %v12134_v2 = vcombine.low %v3731_v48, %v3735_v56 }
 0x3b0   : > { %8395 = vmatpush1.bf16.msra.mxu1 %v12080_v61  ;;  %v3739_v61 = vld [vmem:[#allocation7 + $0x9c0] sm:$0xff] }
 0x3b1   : > { %8149 = vmatpush1.bf16.msra.mxu0 %v12078_v60  ;;  %8405 = vmatprep.subr.bf16.mxu1 %v12089_v1  ;;  %v12135_v60 = vcombine.high %v3731_v48, %v3735_v56  ;;  %v3744_v1 = vld [vmem:[#allocation7 + $0x9e8] sm:$0xff] }
 0x3b2   : > { %8159 = vmatprep.subr.bf16.mxu0 %v12087_v62  ;;  %v3743_v62 = vld [vmem:[#allocation7 + $0x9e0] sm:$0xff]  ;;  %v12145_v11 = vcombine.high %v3740_v63, %v3744_v1  ;;  %v3784_v56 = vld [vmem:[#allocation7 + $0xb28] sm:$0xff] }
 0x3b3   : > { %8397 = vmatmul.mubr.bf16.vlgmr.msra.gmra.mrb[0].mxu1 %v15311_v5  ;;  %v12143_v4 = vcombine.high %v3739_v61, %v3743_v62  ;;  %v12142_v14 = vcombine.low %v3739_v61, %v3743_v62  ;;  %v3792_v62 = vld [vmem:[#allocation7 + $0xb68] sm:$0xff] }
 0x3b4   : > { %8151 = vmatmul.mubr.bf16.vlgmr.msra.gmra.mrb[0].mxu0 %v15311_v5  ;;  %8406 = vmatpush1.bf16.msra.mxu1 %v12088_v8  ;;  %v3751_v8 = vld [vmem:[#allocation7 + $0xa20] sm:$0xff] }
 0x3b5   : > { %8160 = vmatpush1.bf16.msra.mxu0 %v12086_v6  ;;  %8407 = vmatprep.subr.bf16.mxu1 %v12097_v15  ;;  %v3747_v6 = vld [vmem:[#allocation7 + $0xa00] sm:$0xff]  ;;  %v12144_v15 = vcombine.low %v3740_v63, %v3744_v1  ;;  %v3357_v63 = vsub.s32 6, %v15251_v40 }
 0x3b6   : > { %8161 = vmatprep.subr.bf16.mxu0 %v12095_v10  ;;  %8191 = vmatprep.mubr.bf16.mxu0 %v15313_v17  ;;  %v3748_v10 = vld [vmem:[#allocation7 + $0xa08] sm:$0xff]  ;;  %v12151_v16 = vcombine.high %v3747_v6, %v3751_v8  ;;  %v12150_v23 = vcombine.low %v3747_v6, %v3751_v8  ;;  %v3799_v6 = vld [vmem:[#allocation7 + $0xba0] sm:$0xff] }
 0x3b7   : > { %8437 = vmatprep.mubr.bf16.mxu1 %v15313_v17  ;;  %v12153_v21 = vcombine.high %v3748_v10, %v3752_v13  ;;  %v3796_v8 = vld [vmem:[#allocation7 + $0xb88] sm:$0xff] }
 0x3b8   : > { %8408 = vmatpush1.bf16.msra.mxu1 %v12096_v18  ;;  %v3759_v18 = vld [vmem:[#allocation7 + $0xa60] sm:$0xff] }
 0x3b9   : > { %8162 = vmatpush1.bf16.msra.mxu0 %v12094_v25  ;;  %8409 = vmatprep.subr.bf16.mxu1 %v12105_v27  ;;  %v3755_v25 = vld [vmem:[#allocation7 + $0xa40] sm:$0xff]  ;;  %v12152_v27 = vcombine.low %v3748_v10, %v3752_v13  ;;  %v14189_v13 = vld [vmem:[#allocation5] sm:$0xff] }
 0x3ba   : > { %8163 = vmatprep.subr.bf16.mxu0 %v12103_v19  ;;  %v3756_v19 = vld [vmem:[#allocation7 + $0xa48] sm:$0xff]  ;;  %v12159_v28 = vcombine.high %v3755_v25, %v3759_v18  ;;  %v12158_v33 = vcombine.low %v3755_v25, %v3759_v18  ;;  %v3803_v25 = vld [vmem:[#allocation7 + $0xbc0] sm:$0xff] }
 0x3bb   : > { %v12161_v7 = vcombine.high %v3756_v19, %v3760_v22 }
 0x3bc   : > { %8410 = vmatpush1.bf16.msra.mxu1 %v12104_v30  ;;  %v3767_v30 = vld [vmem:[#allocation7 + $0xaa0] sm:$0xff] }
 0x3bd   : > { %8164 = vmatpush1.bf16.msra.mxu0 %v12102_v29  ;;  %8411 = vmatprep.subr.bf16.mxu1 %v12113_v53  ;;  %v3763_v29 = vld [vmem:[#allocation7 + $0xa80] sm:$0xff]  ;;  %v12160_v53 = vcombine.low %v3756_v19, %v3760_v22  ;;  %v3804_v22 = vld [vmem:[#allocation7 + $0xbc8] sm:$0xff] }
 0x3be   : > { %8165 = vmatprep.subr.bf16.mxu0 %v12111_v31  ;;  %v3764_v31 = vld [vmem:[#allocation7 + $0xa88] sm:$0xff]  ;;  %v12167_v36 = vcombine.high %v3763_v29, %v3767_v30  ;;  %v12166_v42 = vcombine.low %v3763_v29, %v3767_v30 }
 0x3bf   : > { %v12169_v39 = vcombine.high %v3764_v31, %v3768_v32 }
 0x3c0   : > { %8412 = vmatpush1.bf16.msra.mxu1 %v12112_v37  ;;  %v3775_v37 = vld [vmem:[#allocation7 + $0xae0] sm:$0xff] }
 0x3c1   : > { %8166 = vmatpush1.bf16.msra.mxu0 %v12110_v35  ;;  %8413 = vmatprep.subr.bf16.mxu1 %v12121_v43  ;;  %v3771_v35 = vld [vmem:[#allocation7 + $0xac0] sm:$0xff]  ;;  %v12168_v43 = vcombine.low %v3764_v31, %v3768_v32 }
 0x3c2   : > { %8167 = vmatprep.subr.bf16.mxu0 %v12119_v38  ;;  %v3772_v38 = vld [vmem:[#allocation7 + $0xac8] sm:$0xff]  ;;  %v12175_v44 = vcombine.high %v3771_v35, %v3775_v37  ;;  %v12174_v51 = vcombine.low %v3771_v35, %v3775_v37  ;;  %v3811_v32 = vld [vmem:[#allocation7 + $0xc00] sm:$0xff] }
 0x3c3   : > { %v12177_v48 = vcombine.high %v3772_v38, %v3776_v41  ;;  %v3816_v35 = vld [vmem:[#allocation7 + $0xc28] sm:$0xff] }
 0x3c4   : > { %8414 = vmatpush1.bf16.msra.mxu1 %v12120_v46  ;;  %v3783_v46 = vld [vmem:[#allocation7 + $0xb20] sm:$0xff] }
 0x3c5   : > { %8168 = vmatpush1.bf16.msra.mxu0 %v12118_v9  ;;  %8415 = vmatprep.subr.bf16.mxu1 %v12129_v12  ;;  %v3779_v9 = vld [vmem:[#allocation7 + $0xb00] sm:$0xff]  ;;  %v12176_v12 = vcombine.low %v3772_v38, %v3776_v41 }
 0x3c6   : > { %8169 = vmatprep.subr.bf16.mxu0 %v12127_v47  ;;  %v3780_v47 = vld [vmem:[#allocation7 + $0xb08] sm:$0xff]  ;;  %v12183_v52 = vcombine.high %v3779_v9, %v3783_v46  ;;  %v12182_v1 = vcombine.low %v3779_v9, %v3783_v46 }
 0x3c7   : > { %v12185_v61 = vcombine.high %v3780_v47, %v3784_v56  ;;  %v3820_v9 = vld [vmem:[#allocation7 + $0xc48] sm:$0xff] }
 0x3c8   : > { %8416 = vmatpush1.bf16.msra.mxu1 %v12128_v58  ;;  %v3791_v58 = vld [vmem:[#allocation7 + $0xb60] sm:$0xff]  ;;  %v3824_v46 = vld [vmem:[#allocation7 + $0xc68] sm:$0xff] }
 0x3c9   : > { %8170 = vmatpush1.bf16.msra.mxu0 %v12126_v57  ;;  %8417 = vmatprep.subr.bf16.mxu1 %v12137_v0  ;;  %v3787_v57 = vld [vmem:[#allocation7 + $0xb40] sm:$0xff]  ;;  %v3361_v0 = vsub.s32 7, %v15251_v40 }
 0x3ca   : > { %8171 = vmatprep.subr.bf16.mxu0 %v12135_v60  ;;  %v3788_v60 = vld [vmem:[#allocation7 + $0xb48] sm:$0xff] }
 0x3cb   : > { %v12193_v10 = vcombine.high %v3788_v60, %v3792_v62  ;;  %v12192_v18 = vcombine.low %v3788_v60, %v3792_v62  ;;  %v12225_v60 = vcombine.high %v3820_v9, %v3824_v46 }
 0x3cc   : > { %8418 = vmatpush1.bf16.msra.mxu1 %v12136_v3  ;;  %v12191_v3 = vcombine.high %v3787_v57, %v3791_v58 }
 0x3cd   : > { %8172 = vmatpush1.bf16.msra.mxu0 %v12134_v2  ;;  %8419 = vmatprep.subr.bf16.mxu1 %v12145_v11  ;;  %v12184_v2 = vcombine.low %v3780_v47, %v3784_v56  ;;  %v3800_v11 = vld [vmem:[#allocation7 + $0xba8] sm:$0xff] }
 0x3ce   : > { %8173 = vmatprep.subr.bf16.mxu0 %v12143_v4  ;;  %v3795_v4 = vld [vmem:[#allocation7 + $0xb80] sm:$0xff]  ;;  %v12200_v31 = vcombine.low %v3796_v8, %v3800_v11 }
 0x3cf   : > { %v12199_v19 = vcombine.high %v3795_v4, %v3799_v6  ;;  %v12198_v30 = vcombine.low %v3795_v4, %v3799_v6  ;;  %v3839_v4 = vld [vmem:[#allocation7 + $0xce0] sm:$0xff]  ;;  %v3836_v6 = vld [vmem:[#allocation7 + $0xcc8] sm:$0xff] }
 0x3d0   : > { %8420 = vmatpush1.bf16.msra.mxu1 %v12144_v15  ;;  %v3362_v15 = vrot.slane %v14189_v13, %v3361_v0 }
 0x3d1   : > { %8174 = vmatpush1.bf16.msra.mxu0 %v12142_v14  ;;  %8421 = vmatprep.subr.bf16.mxu1 %v12153_v21  ;;  %v3358_v14 = vrot.slane %v14189_v13, %v3357_v63  ;;  %v3807_v21 = vld [vmem:[#allocation7 + $0xbe0] sm:$0xff] }
 0x3d2   : > { %8175 = vmatprep.subr.bf16.mxu0 %v12151_v16  ;;  %v12190_v16 = vcombine.low %v3787_v57, %v3791_v58  ;;  %v12206_v38 = vcombine.low %v3803_v25, %v3807_v21  ;;  %v3831_v57 = vld [vmem:[#allocation7 + $0xca0] sm:$0xff]  ;;  %v3828_v58 = vld [vmem:[#allocation7 + $0xc88] sm:$0xff] }
 0x3d3   : > { %v3382_v29 = vcombine.low %v3358_v14, %v3362_v15  ;;  %v3843_v15 = vld [vmem:[#allocation7 + $0xd00] sm:$0xff] }
 0x3d4   : > { %8422 = vmatpush1.bf16.msra.mxu1 %v12152_v27  ;;  %v12201_v27 = vcombine.high %v3796_v8, %v3800_v11 }
 0x3d5   : > { %8176 = vmatpush1.bf16.msra.mxu0 %v12150_v23  ;;  %8423 = vmatprep.subr.bf16.mxu1 %v12161_v7  ;;  %v3808_v23 = vld [vmem:[#allocation7 + $0xbe8] sm:$0xff]  ;;  %v12207_v7 = vcombine.high %v3803_v25, %v3807_v21 }
 0x3d6   : > { %8177 = vmatprep.subr.bf16.mxu0 %v12159_v28  ;;  %v3324_v28 = vld [vmem:[#allocation2 + $0x18] sm:$0xff]  ;;  %v3844_v25 = vld [vmem:[#allocation7 + $0xd08] sm:$0xff] }
 0x3d7   : > { %v15325_v37 = vadd.f32 %v3382_v29, %v3324_v28  ;;  %v3855_v28 = vld [vmem:[#allocation7 + $0xd60] sm:$0xff]  ;;  %v3852_v29 = vld [vmem:[#allocation7 + $0xd48] sm:$0xff] }
 0x3d8   : > { %8424 = vmatpush1.bf16.msra.mxu1 %v12160_v53  ;;  %v12209_v53 = vcombine.high %v3804_v22, %v3808_v23 }
 0x3d9   : > { %8178 = vmatpush1.bf16.msra.mxu0 %v12158_v33  ;;  %8425 = vmatprep.subr.bf16.mxu1 %v12169_v39  ;;  %v3815_v33 = vld [vmem:[#allocation7 + $0xc20] sm:$0xff]  ;;  %v12208_v39 = vcombine.low %v3804_v22, %v3808_v23  ;;  %v3406_v47 = vcombine.high %v15325_v37, %v15325_v37 }
 0x3da   : > { %8179 = vmatprep.subr.bf16.mxu0 %v12167_v36  ;;  %v3812_v36 = vld [vmem:[#allocation7 + $0xc08] sm:$0xff]  ;;  %v12215_v41 = vcombine.high %v3811_v32, %v3815_v33  ;;  %v12214_v56 = vcombine.low %v3811_v32, %v3815_v33 }
 0x3db   : > { %v15333_v62 = vpack.c.bf16 %v3406_v47, %v3406_v47 }
 0x3dc   : > { %8426 = vmatpush1.bf16.msra.mxu1 %v12168_v43  ;;  %v3823_v43 = vld [vmem:[#allocation7 + $0xc60] sm:$0xff] }
 0x3dd   : > { %8180 = vmatpush1.bf16.msra.mxu0 %v12166_v42  ;;  %8427 = vmatprep.subr.bf16.mxu1 %v12177_v48  ;;  %v3819_v42 = vld [vmem:[#allocation7 + $0xc40] sm:$0xff]  ;;  %v15331_v48 = vpack.c.bf16 %v15305_v59, %v15305_v59 }
 0x3de   : > { %8181 = vmatprep.subr.bf16.mxu0 %v12175_v44  ;;  %v12217_v44 = vcombine.high %v3812_v36, %v3816_v35  ;;  %v12222_v59 = vcombine.low %v3819_v42, %v3823_v43 }
 0x3e0   : > { %8428 = vmatpush1.bf16.msra.mxu1 %v12176_v12  ;;  %v12223_v12 = vcombine.high %v3819_v42, %v3823_v43 }
 0x3e1   : > { %8182 = vmatpush1.bf16.msra.mxu0 %v12174_v51  ;;  %8429 = vmatprep.subr.bf16.mxu1 %v12185_v61  ;;  %v12216_v51 = vcombine.low %v3812_v36, %v3816_v35  ;;  %v3832_v61 = vld [vmem:[#allocation7 + $0xca8] sm:$0xff]  ;;  %v3863_v36 = vld [vmem:[#allocation7 + $0xda0] sm:$0xff] }
 0x3e2   : > { %8183 = vmatprep.subr.bf16.mxu0 %v12183_v52  ;;  %v3827_v52 = vld [vmem:[#allocation7 + $0xc80] sm:$0xff]  ;;  %v12233_v8 = vcombine.high %v3828_v58, %v3832_v61  ;;  %v12232_v13 = vcombine.low %v3828_v58, %v3832_v61  ;;  %v3860_v35 = vld [vmem:[#allocation7 + $0xd88] sm:$0xff] }
 0x3e3   : > { %v12230_v11 = vcombine.low %v3827_v52, %v3831_v57  ;;  %v3879_v58 = vld [vmem:[#allocation7 + $0xe20] sm:$0xff] }
 0x3e4   : > { %8430 = vmatpush1.bf16.msra.mxu1 %v12184_v2  ;;  %v12231_v2 = vcombine.high %v3827_v52, %v3831_v57  ;;  %v3875_v57 = vld [vmem:[#allocation7 + $0xe00] sm:$0xff] }
 0x3e5   : > { %8184 = vmatpush1.bf16.msra.mxu0 %v12182_v1  ;;  %8431 = vmatprep.subr.bf16.mxu1 %v12193_v10  ;;  %v12224_v1 = vcombine.low %v3820_v9, %v3824_v46  ;;  %v3840_v10 = vld [vmem:[#allocation7 + $0xce8] sm:$0xff]  ;;  %v3871_v9 = vld [vmem:[#allocation7 + $0xde0] sm:$0xff] }
 0x3e6   : > { %8185 = vmatprep.subr.bf16.mxu0 %v12191_v3  ;;  %v3835_v3 = vld [vmem:[#allocation7 + $0xcc0] sm:$0xff]  ;;  %v12240_v22 = vcombine.low %v3836_v6, %v3840_v10  ;;  %v3868_v46 = vld [vmem:[#allocation7 + $0xdc8] sm:$0xff] }
 0x3e7   : > { %v12239_v14 = vcombine.high %v3835_v3, %v3839_v4  ;;  %v12238_v21 = vcombine.low %v3835_v3, %v3839_v4  ;;  %v12279_v3 = vcombine.high %v3875_v57, %v3879_v58  ;;  %v3883_v4 = vld [vmem:[#allocation7 + $0xe40] sm:$0xff] }
 0x3e8   : > { %8432 = vmatpush1.bf16.msra.mxu1 %v12192_v18  ;;  %v12241_v18 = vcombine.high %v3836_v6, %v3840_v10  ;;  %v3887_v6 = vld [vmem:[#allocation7 + $0xe60] sm:$0xff] }
 0x3e9   : > { %8186 = vmatpush1.bf16.msra.mxu0 %v12190_v16  ;;  %8433 = vmatprep.subr.bf16.mxu1 %v12201_v27  ;;  %v3847_v16 = vld [vmem:[#allocation7 + $0xd20] sm:$0xff] }
 0x3ea   : > { %8187 = vmatprep.subr.bf16.mxu0 %v12199_v19  ;;  %v3848_v19 = vld [vmem:[#allocation7 + $0xd28] sm:$0xff]  ;;  %v12247_v23 = vcombine.high %v3843_v15, %v3847_v16  ;;  %v3851_v27 = vld [vmem:[#allocation7 + $0xd40] sm:$0xff] }
 0x3eb   : > { %v12248_v32 = vcombine.low %v3844_v25, %v3848_v19  ;;  %v12255_v33 = vcombine.high %v3851_v27, %v3855_v28 }
 0x3ec   : > { %8434 = vmatpush1.bf16.msra.mxu1 %v12200_v31  ;;  %v3856_v31 = vld [vmem:[#allocation7 + $0xd68] sm:$0xff] }
 0x3ed   : > { %8188 = vmatpush1.bf16.msra.mxu0 %v12198_v30  ;;  %8435 = vmatprep.subr.bf16.mxu1 %v12209_v53  ;;  %v12249_v30 = vcombine.high %v3844_v25, %v3848_v19  ;;  %v3859_v53 = vld [vmem:[#allocation7 + $0xd80] sm:$0xff]  ;;  %v12256_v42 = vcombine.low %v3852_v29, %v3856_v31  ;;  %v3892_v19 = vld [vmem:[#allocation7 + $0xe88] sm:$0xff] }
 0x3ee   : > { %8189 = vmatprep.subr.bf16.mxu0 %v12207_v7  ;;  %v12246_v7 = vcombine.low %v3843_v15, %v3847_v16  ;;  %v12263_v43 = vcombine.high %v3859_v53, %v3863_v36  ;;  %v12287_v15 = vcombine.high %v3883_v4, %v3887_v6  ;;  %v3891_v16 = vld [vmem:[#allocation7 + $0xe80] sm:$0xff] }
 0x3ef   : > { %v3895_v25 = vld [vmem:[#allocation7 + $0xea0] sm:$0xff] }
 0x3f0   : > { %8436 = vmatpush1.bf16.msra.mxu1 %v12208_v39  ;;  %v3864_v39 = vld [vmem:[#allocation7 + $0xda8] sm:$0xff] }
 0x3f1   : > { %8190 = vmatpush1.bf16.msra.mxu0 %v12206_v38  ;;  %8446 = vmatprep.subr.bf16.mxu1 %v12217_v44  ;;  %v12257_v38 = vcombine.high %v3852_v29, %v3856_v31  ;;  %v3867_v44 = vld [vmem:[#allocation7 + $0xdc0] sm:$0xff]  ;;  %v12265_v47 = vcombine.high %v3860_v35, %v3864_v39  ;;  %v3900_v31 = vld [vmem:[#allocation7 + $0xec8] sm:$0xff] }
 0x3f2   : > { %8200 = vmatprep.subr.bf16.mxu0 %v12215_v41  ;;  %v12254_v41 = vcombine.low %v3851_v27, %v3855_v28  ;;  %v12271_v52 = vcombine.high %v3867_v44, %v3871_v9  ;;  %v12295_v27 = vcombine.high %v3891_v16, %v3895_v25  ;;  %v3899_v29 = vld [vmem:[#allocation7 + $0xec0] sm:$0xff] }
 0x3f3   : > { %8438 = vmatmul.mubr.bf16.vlgmr.msra.gmra.mrb[0].mxu1 %v15331_v48 }
 0x3f4   : > { %8192 = vmatmul.mubr.bf16.vlgmr.msra.gmra.mrb[0].mxu0 %v15331_v48  ;;  %8447 = vmatpush1.bf16.msra.mxu1 %v12216_v51  ;;  %v12262_v51 = vcombine.low %v3859_v53, %v3863_v36 }
 0x3f5   : > { %8201 = vmatpush1.bf16.msra.mxu0 %v12214_v56  ;;  %8448 = vmatprep.subr.bf16.mxu1 %v12225_v60  ;;  %v3872_v56 = vld [vmem:[#allocation7 + $0xde8] sm:$0xff] }
 0x3f6   : > { %8202 = vmatprep.subr.bf16.mxu0 %v12223_v12  ;;  %8232 = vmatprep.mubr.bf16.mxu0 %v15333_v62  ;;  %v12264_v12 = vcombine.low %v3860_v35, %v3864_v39  ;;  %v3876_v60 = vld [vmem:[#allocation7 + $0xe08] sm:$0xff]  ;;  %v12273_v61 = vcombine.high %v3868_v46, %v3872_v56  ;;  %v3907_v35 = vld [vmem:[#allocation7 + $0xf00] sm:$0xff] }
 0x3f7   : > { %8478 = vmatprep.mubr.bf16.mxu1 %v15333_v62  ;;  %v3908_v39 = vld [vmem:[#allocation7 + $0xf08] sm:$0xff] }
 0x3f8   : > { %8449 = vmatpush1.bf16.msra.mxu1 %v12224_v1  ;;  %v12270_v1 = vcombine.low %v3867_v44, %v3871_v9 }
 0x3f9   : > { %8203 = vmatpush1.bf16.msra.mxu0 %v12222_v59  ;;  %8450 = vmatprep.subr.bf16.mxu1 %v12233_v8  ;;  %v3880_v59 = vld [vmem:[#allocation7 + $0xe28] sm:$0xff] }
 0x3fa   : > { %8204 = vmatprep.subr.bf16.mxu0 %v12231_v2  ;;  %v12272_v2 = vcombine.low %v3868_v46, %v3872_v56  ;;  %v3884_v8 = vld [vmem:[#allocation7 + $0xe48] sm:$0xff]  ;;  %v12281_v10 = vcombine.high %v3876_v60, %v3880_v59  ;;  %v3915_v46 = vld [vmem:[#allocation7 + $0xf40] sm:$0xff] }
 0x3fb   : > { %v3916_v56 = vld [vmem:[#allocation7 + $0xf48] sm:$0xff] }
 0x3fc   : > { %8451 = vmatpush1.bf16.msra.mxu1 %v12232_v13  ;;  %v12278_v13 = vcombine.low %v3875_v57, %v3879_v58 }
 0x3fd   : > { %8205 = vmatpush1.bf16.msra.mxu0 %v12230_v11  ;;  %8452 = vmatprep.subr.bf16.mxu1 %v12241_v18  ;;  %v3888_v11 = vld [vmem:[#allocation7 + $0xe68] sm:$0xff] }
 0x3fe   : > { %8206 = vmatprep.subr.bf16.mxu0 %v12239_v14  ;;  %v12280_v14 = vcombine.low %v3876_v60, %v3880_v59  ;;  %v12289_v18 = vcombine.high %v3884_v8, %v3888_v11  ;;  %v3927_v59 = vld [vmem:[#allocation7 + $0xfa0] sm:$0xff] }
 0x400   : > { %8453 = vmatpush1.bf16.msra.mxu1 %v12240_v22  ;;  %v12286_v22 = vcombine.low %v3883_v4, %v3887_v6  ;;  %v3928_v4 = vld [vmem:[#allocation7 + $0xfa8] sm:$0xff] }
 0x401   : > { %8207 = vmatpush1.bf16.msra.mxu0 %v12238_v21  ;;  %8454 = vmatprep.subr.bf16.mxu1 %v12249_v30  ;;  %v3896_v21 = vld [vmem:[#allocation7 + $0xea8] sm:$0xff]  ;;  %v3903_v30 = vld [vmem:[#allocation7 + $0xee0] sm:$0xff] }
 0x402   : > { %8208 = vmatprep.subr.bf16.mxu0 %v12247_v23  ;;  %v12288_v23 = vcombine.low %v3884_v8, %v3888_v11  ;;  %v12297_v28 = vcombine.high %v3892_v19, %v3896_v21  ;;  %v12303_v53 = vcombine.high %v3899_v29, %v3903_v30 }
 0x404   : > { %8455 = vmatpush1.bf16.msra.mxu1 %v12248_v32  ;;  %v12294_v32 = vcombine.low %v3891_v16, %v3895_v25  ;;  %v3932_v16 = vld [vmem:[#allocation7 + $0xfc8] sm:$0xff] }
 0x405   : > { %8209 = vmatpush1.bf16.msra.mxu0 %v12246_v7  ;;  %8456 = vmatprep.subr.bf16.mxu1 %v12257_v38  ;;  %v3904_v7 = vld [vmem:[#allocation7 + $0xee8] sm:$0xff]  ;;  %v3911_v38 = vld [vmem:[#allocation7 + $0xf20] sm:$0xff] }
 0x406   : > { %8210 = vmatprep.subr.bf16.mxu0 %v12255_v33  ;;  %v12296_v33 = vcombine.low %v3892_v19, %v3896_v21  ;;  %v12305_v36 = vcombine.high %v3900_v31, %v3904_v7  ;;  %v12311_v44 = vcombine.high %v3907_v35, %v3911_v38  ;;  %v3936_v25 = vld [vmem:[#allocation7 + $0xfe8] sm:$0xff] }
 0x408   : > { %8457 = vmatpush1.bf16.msra.mxu1 %v12256_v42  ;;  %v12302_v42 = vcombine.low %v3899_v29, %v3903_v30  ;;  %v3940_v30 = vld [vmem:[#allocation7 + $0x1008] sm:$0xff] }
 0x409   : > { %8211 = vmatpush1.bf16.msra.mxu0 %v12254_v41  ;;  %8458 = vmatprep.subr.bf16.mxu1 %v12265_v47  ;;  %v3912_v41 = vld [vmem:[#allocation7 + $0xf28] sm:$0xff]  ;;  %v3919_v47 = vld [vmem:[#allocation7 + $0xf60] sm:$0xff] }
 0x40a   : > { %8212 = vmatprep.subr.bf16.mxu0 %v12263_v43  ;;  %v12304_v43 = vcombine.low %v3900_v31, %v3904_v7  ;;  %v12313_v9 = vcombine.high %v3908_v39, %v3912_v41  ;;  %v12312_v57 = vcombine.low %v3908_v39, %v3912_v41  ;;  %v12319_v58 = vcombine.high %v3915_v46, %v3919_v47  ;;  %v3944_v31 = vld [vmem:[#allocation7 + $0x1028] sm:$0xff] }
 0x40b   : > { %v12318_v6 = vcombine.low %v3915_v46, %v3919_v47  ;;  %v15351_v39 = vpack.c.bf16 %v15325_v37, %v15325_v37  ;;  %v3948_v41 = vld [vmem:[#allocation7 + $0x1048] sm:$0xff]  ;;  %v3955_v47 = vld [vmem:[#allocation7 + $0x1080] sm:$0xff] }
 0x40c   : > { %8459 = vmatpush1.bf16.msra.mxu1 %v12264_v12  ;;  %v15339_v12 = vld [vmem:[#allocation5 + $0x8] sm:$0xf] }
 0x40d   : > { %8213 = vmatpush1.bf16.msra.mxu0 %v12262_v51  ;;  %8460 = vmatprep.subr.bf16.mxu1 %v12273_v61  ;;  %v3920_v51 = vld [vmem:[#allocation7 + $0xf68] sm:$0xff]  ;;  %v3923_v61 = vld [vmem:[#allocation7 + $0xf80] sm:$0xff] }
 0x40e   : > { %8214 = vmatprep.subr.bf16.mxu0 %v12271_v52  ;;  %v12310_v52 = vcombine.low %v3907_v35, %v3911_v38  ;;  %v12321_v60 = vcombine.high %v3916_v56, %v3920_v51  ;;  %v12320_v8 = vcombine.low %v3916_v56, %v3920_v51  ;;  %v12326_v19 = vcombine.low %v3923_v61, %v3927_v59  ;;  %v3951_v35 = vld [vmem:[#allocation7 + $0x1060] sm:$0xff] }
 0x40f   : > { %v3959_v56 = vld [vmem:[#allocation7 + $0x10a0] sm:$0xff] }
 0x410   : > { %8461 = vmatpush1.bf16.msra.mxu1 %v12272_v2  ;;  %v3370_v2 = vrot.slane %v15339_v12, %v15257_v50 }
 0x411   : > { %8215 = vmatpush1.bf16.msra.mxu0 %v12270_v1  ;;  %8462 = vmatprep.subr.bf16.mxu1 %v12281_v10  ;;  %v3366_v1 = vrot.slane %v15339_v12, %v15254_v49  ;;  %v12327_v10 = vcombine.high %v3923_v61, %v3927_v59  ;;  %v3963_v59 = vld [vmem:[#allocation7 + $0x10c0] sm:$0xff] }
 0x412   : > { %8216 = vmatprep.subr.bf16.mxu0 %v12279_v3  ;;  %v3924_v3 = vld [vmem:[#allocation7 + $0xf88] sm:$0xff] }
 0x413   : > { %v12329_v11 = vcombine.high %v3924_v3, %v3928_v4  ;;  %v12328_v21 = vcombine.low %v3924_v3, %v3928_v4  ;;  %v3968_v3 = vld [vmem:[#allocation7 + $0x10e8] sm:$0xff]  ;;  %v12358_v4 = vcombine.low %v3955_v47, %v3959_v56 }
 0x414   : > { %8463 = vmatpush1.bf16.msra.mxu1 %v12280_v14  ;;  %v3935_v14 = vld [vmem:[#allocation7 + $0xfe0] sm:$0xff] }
 0x415   : > { %8217 = vmatpush1.bf16.msra.mxu0 %v12278_v13  ;;  %8464 = vmatprep.subr.bf16.mxu1 %v12289_v18  ;;  %v3931_v13 = vld [vmem:[#allocation7 + $0xfc0] sm:$0xff] }
 0x416   : > { %8218 = vmatprep.subr.bf16.mxu0 %v12287_v15  ;;  %v3383_v15 = vcombine.low %v3366_v1, %v3370_v2  ;;  %v3325_v18 = vld [vmem:[#allocation2 + $0x20] sm:$0xff]  ;;  %v12334_v7 = vcombine.low %v3931_v13, %v3935_v14 }
 0x417   : > { %v3967_v1 = vld [vmem:[#allocation7 + $0x10e0] sm:$0xff]  ;;  %v3964_v2 = vld [vmem:[#allocation7 + $0x10c8] sm:$0xff] }
 0x418   : > { %8465 = vmatpush1.bf16.msra.mxu1 %v12288_v23  ;;  %v12337_v23 = vcombine.high %v3932_v16, %v3936_v25  ;;  %v15345_v29 = vadd.f32 %v3383_v15, %v3325_v18  ;;  %v3976_v15 = vld [vmem:[#allocation7 + $0x1128] sm:$0xff] }
 0x419   : > { %8219 = vmatpush1.bf16.msra.mxu0 %v12286_v22  ;;  %8466 = vmatprep.subr.bf16.mxu1 %v12297_v28  ;;  %v12335_v22 = vcombine.high %v3931_v13, %v3935_v14  ;;  %v3943_v28 = vld [vmem:[#allocation7 + $0x1020] sm:$0xff]  ;;  %v3972_v14 = vld [vmem:[#allocation7 + $0x1108] sm:$0xff] }
 0x41a   : > { %8220 = vmatprep.subr.bf16.mxu0 %v12295_v27  ;;  %v3939_v27 = vld [vmem:[#allocation7 + $0x1000] sm:$0xff]  ;;  %v3407_v38 = vcombine.high %v15345_v29, %v15345_v29 }
 0x41b   : > { %v3975_v13 = vld [vmem:[#allocation7 + $0x1120] sm:$0xff] }
 0x41c   : > { %8467 = vmatpush1.bf16.msra.mxu1 %v12296_v33  ;;  %v12343_v33 = vcombine.high %v3939_v27, %v3943_v28  ;;  %v15353_v51 = vpack.c.bf16 %v3407_v38, %v3407_v38 }
 0x41d   : > { %8221 = vmatpush1.bf16.msra.mxu0 %v12294_v32  ;;  %8468 = vmatprep.subr.bf16.mxu1 %v12305_v36  ;;  %v12336_v32 = vcombine.low %v3932_v16, %v3936_v25  ;;  %v3947_v36 = vld [vmem:[#allocation7 + $0x1040] sm:$0xff]  ;;  %v12366_v16 = vcombine.low %v3963_v59, %v3967_v1  ;;  %v12368_v25 = vcombine.low %v3964_v2, %v3968_v3 }
 0x41e   : > { %8222 = vmatprep.subr.bf16.mxu0 %v12303_v53  ;;  %v12345_v53 = vcombine.high %v3940_v30, %v3944_v31  ;;  %v12350_v37 = vcombine.low %v3947_v36, %v3951_v35 }
 0x420   : > { %8469 = vmatpush1.bf16.msra.mxu1 %v12304_v43  ;;  %v12342_v43 = vcombine.low %v3939_v27, %v3943_v28  ;;  %v3984_v27 = vld [vmem:[#allocation7 + $0x1168] sm:$0xff] }
 0x421   : > { %8223 = vmatpush1.bf16.msra.mxu0 %v12302_v42  ;;  %8470 = vmatprep.subr.bf16.mxu1 %v12313_v9  ;;  %v3952_v42 = vld [vmem:[#allocation7 + $0x1068] sm:$0xff]  ;;  %v12351_v9 = vcombine.high %v3947_v36, %v3951_v35 }
 0x422   : > { %8224 = vmatprep.subr.bf16.mxu0 %v12311_v44  ;;  %v12344_v44 = vcombine.low %v3940_v30, %v3944_v31  ;;  %v12353_v46 = vcombine.high %v3948_v41, %v3952_v42  ;;  %v12376_v30 = vcombine.low %v3972_v14, %v3976_v15  ;;  %v3992_v36 = vld [vmem:[#allocation7 + $0x11a8] sm:$0xff] }
 0x424   : > { %8471 = vmatpush1.bf16.msra.mxu1 %v12312_v57  ;;  %v3960_v57 = vld [vmem:[#allocation7 + $0x10a8] sm:$0xff] }
 0x425   : > { %8225 = vmatpush1.bf16.msra.mxu0 %v12310_v52  ;;  %8472 = vmatprep.subr.bf16.mxu1 %v12321_v60  ;;  %v3956_v52 = vld [vmem:[#allocation7 + $0x1088] sm:$0xff]  ;;  %v12359_v60 = vcombine.high %v3955_v47, %v3959_v56 }
 0x426   : > { %8226 = vmatprep.subr.bf16.mxu0 %v12319_v58  ;;  %v12352_v58 = vcombine.low %v3948_v41, %v3952_v42  ;;  %v12361_v61 = vcombine.high %v3956_v52, %v3960_v57 }
 0x428   : > { %8473 = vmatpush1.bf16.msra.mxu1 %v12320_v8  ;;  %v12367_v8 = vcombine.high %v3963_v59, %v3967_v1 }
 0x429   : > { %8227 = vmatpush1.bf16.msra.mxu0 %v12318_v6  ;;  %8474 = vmatprep.subr.bf16.mxu1 %v12329_v11  ;;  %v12360_v6 = vcombine.low %v3956_v52, %v3960_v57  ;;  %v3971_v11 = vld [vmem:[#allocation7 + $0x1100] sm:$0xff] }
 0x42a   : > { %8228 = vmatprep.subr.bf16.mxu0 %v12327_v10  ;;  %v12369_v10 = vcombine.high %v3964_v2, %v3968_v3  ;;  %v12375_v18 = vcombine.high %v3971_v11, %v3975_v13  ;;  %v12374_v28 = vcombine.low %v3971_v11, %v3975_v13 }
 0x42c   : > { %8475 = vmatpush1.bf16.msra.mxu1 %v12328_v21  ;;  %v3979_v21 = vld [vmem:[#allocation7 + $0x1140] sm:$0xff] }
 0x42d   : > { %8229 = vmatpush1.bf16.msra.mxu0 %v12326_v19  ;;  %8476 = vmatprep.subr.bf16.mxu1 %v12337_v23  ;;  %v12377_v19 = vcombine.high %v3972_v14, %v3976_v15  ;;  %v3980_v23 = vld [vmem:[#allocation7 + $0x1148] sm:$0xff] }
 0x42e   : > { %8230 = vmatprep.subr.bf16.mxu0 %v12335_v22  ;;  %v3983_v22 = vld [vmem:[#allocation7 + $0x1160] sm:$0xff]  ;;  %v12384_v38 = vcombine.low %v3980_v23, %v3984_v27 }
 0x42f   : > { %v12383_v31 = vcombine.high %v3979_v21, %v3983_v22  ;;  %v12382_v35 = vcombine.low %v3979_v21, %v3983_v22 }
 0x430   : > { %8477 = vmatpush1.bf16.msra.mxu1 %v12336_v32  ;;  %v3987_v32 = vld [vmem:[#allocation7 + $0x1180] sm:$0xff] }
 0x431   : > { %8231 = vmatpush1.bf16.msra.mxu0 %v12334_v7  ;;  %8487 = vmatprep.subr.bf16.mxu1 %v12345_v53  ;;  %v12385_v7 = vcombine.high %v3980_v23, %v3984_v27  ;;  %v3988_v53 = vld [vmem:[#allocation7 + $0x1188] sm:$0xff] }
 0x432   : > { %8241 = vmatprep.subr.bf16.mxu0 %v12343_v33  ;;  %v3991_v33 = vld [vmem:[#allocation7 + $0x11a0] sm:$0xff]  ;;  %v12393_v42 = vcombine.high %v3988_v53, %v3992_v36  ;;  %v12392_v56 = vcombine.low %v3988_v53, %v3992_v36 }
 0x433   : > { %8479 = vmatmul.mubr.bf16.vlgmr.msra.gmra.mrb[0].mxu1 %v15351_v39  ;;  %v12391_v41 = vcombine.high %v3987_v32, %v3991_v33  ;;  %v12390_v47 = vcombine.low %v3987_v32, %v3991_v33 }
 0x434   : > { %8233 = vmatmul.mubr.bf16.vlgmr.msra.gmra.mrb[0].mxu0 %v15351_v39  ;;  %8488 = vmatpush1.bf16.msra.mxu1 %v12344_v44  ;;  %v3999_v44 = vld [vmem:[#allocation7 + $0x11e0] sm:$0xff] }
 0x435   : > { %8242 = vmatpush1.bf16.msra.mxu0 %v12342_v43  ;;  %8489 = vmatprep.subr.bf16.mxu1 %v12353_v46  ;;  %v3995_v43 = vld [vmem:[#allocation7 + $0x11c0] sm:$0xff]  ;;  %v4000_v46 = vld [vmem:[#allocation7 + $0x11e8] sm:$0xff] }
 0x436   : > { %8243 = vmatprep.subr.bf16.mxu0 %v12351_v9  ;;  %8273 = vmatprep.mubr.bf16.mxu0 %v15353_v51  ;;  %v3996_v9 = vld [vmem:[#allocation7 + $0x11c8] sm:$0xff]  ;;  %v12399_v52 = vcombine.high %v3995_v43, %v3999_v44  ;;  %v12398_v59 = vcombine.low %v3995_v43, %v3999_v44 }
 0x437   : > { %8519 = vmatprep.mubr.bf16.mxu1 %v15353_v51  ;;  %v12401_v57 = vcombine.high %v3996_v9, %v4000_v46  ;;  %v12400_v1 = vcombine.low %v3996_v9, %v4000_v46 }
 0x438   : > { %8490 = vmatpush1.bf16.msra.mxu1 %v12352_v58  ;;  %v4007_v58 = vld [vmem:[#allocation7 + $0x1220] sm:$0xff] }
 0x439   : > { %8244 = vmatpush1.bf16.msra.mxu0 %v12350_v37  ;;  %8491 = vmatprep.subr.bf16.mxu1 %v12361_v61  ;;  %v4003_v37 = vld [vmem:[#allocation7 + $0x1200] sm:$0xff]  ;;  %v4008_v61 = vld [vmem:[#allocation7 + $0x1228] sm:$0xff] }
 0x43a   : > { %8245 = vmatprep.subr.bf16.mxu0 %v12359_v60  ;;  %v4004_v60 = vld [vmem:[#allocation7 + $0x1208] sm:$0xff]  ;;  %v12407_v2 = vcombine.high %v4003_v37, %v4007_v58  ;;  %v12406_v11 = vcombine.low %v4003_v37, %v4007_v58 }
 0x43b   : > { %v12409_v3 = vcombine.high %v4004_v60, %v4008_v61  ;;  %v12408_v13 = vcombine.low %v4004_v60, %v4008_v61 }
 0x43c   : > { %8492 = vmatpush1.bf16.msra.mxu1 %v12360_v6  ;;  %v4015_v6 = vld [vmem:[#allocation7 + $0x1260] sm:$0xff] }
 0x43d   : > { %8246 = vmatpush1.bf16.msra.mxu0 %v12358_v4  ;;  %8493 = vmatprep.subr.bf16.mxu1 %v12369_v10  ;;  %v4011_v4 = vld [vmem:[#allocation7 + $0x1240] sm:$0xff]  ;;  %v4016_v10 = vld [vmem:[#allocation7 + $0x1268] sm:$0xff] }
 0x43e   : > { %8247 = vmatprep.subr.bf16.mxu0 %v12367_v8  ;;  %v4012_v8 = vld [vmem:[#allocation7 + $0x1248] sm:$0xff]  ;;  %v12415_v14 = vcombine.high %v4011_v4, %v4015_v6  ;;  %v12414_v21 = vcombine.low %v4011_v4, %v4015_v6 }
 0x43f   : > { %v12417_v15 = vcombine.high %v4012_v8, %v4016_v10  ;;  %v12416_v22 = vcombine.low %v4012_v8, %v4016_v10  ;;  %v4052_v4 = vld [vmem:[#allocation7 + $0x1388] sm:$0xff] }
 0x440   : > { %8494 = vmatpush1.bf16.msra.mxu1 %v12368_v25  ;;  %v4023_v25 = vld [vmem:[#allocation7 + $0x12a0] sm:$0xff]  ;;  %v4056_v6 = vld [vmem:[#allocation7 + $0x13a8] sm:$0xff] }
 0x441   : > { %8248 = vmatpush1.bf16.msra.mxu0 %v12366_v16  ;;  %8495 = vmatprep.subr.bf16.mxu1 %v12377_v19  ;;  %v4019_v16 = vld [vmem:[#allocation7 + $0x1280] sm:$0xff]  ;;  %v4024_v19 = vld [vmem:[#allocation7 + $0x12a8] sm:$0xff] }
 0x442   : > { %8249 = vmatprep.subr.bf16.mxu0 %v12375_v18  ;;  %v4020_v18 = vld [vmem:[#allocation7 + $0x1288] sm:$0xff]  ;;  %v12423_v23 = vcombine.high %v4019_v16, %v4023_v25  ;;  %v12422_v32 = vcombine.low %v4019_v16, %v4023_v25 }
 0x443   : > { %v12425_v27 = vcombine.high %v4020_v18, %v4024_v19  ;;  %v12424_v33 = vcombine.low %v4020_v18, %v4024_v19  ;;  %v4060_v25 = vld [vmem:[#allocation7 + $0x13c8] sm:$0xff] }
 0x444   : > { %8496 = vmatpush1.bf16.msra.mxu1 %v12376_v30  ;;  %v4031_v30 = vld [vmem:[#allocation7 + $0x12e0] sm:$0xff]  ;;  %v4064_v18 = vld [vmem:[#allocation7 + $0x13e8] sm:$0xff] }
 0x445   : > { %8250 = vmatpush1.bf16.msra.mxu0 %v12374_v28  ;;  %8497 = vmatprep.subr.bf16.mxu1 %v12385_v7  ;;  %v4027_v28 = vld [vmem:[#allocation7 + $0x12c0] sm:$0xff]  ;;  %v4032_v7 = vld [vmem:[#allocation7 + $0x12e8] sm:$0xff] }
 0x446   : > { %8251 = vmatprep.subr.bf16.mxu0 %v12383_v31  ;;  %v4028_v31 = vld [vmem:[#allocation7 + $0x12c8] sm:$0xff]  ;;  %v12431_v53 = vcombine.high %v4027_v28, %v4031_v30  ;;  %v12430_v43 = vcombine.low %v4027_v28, %v4031_v30  ;;  %v4071_v28 = vld [vmem:[#allocation7 + $0x1420] sm:$0xff] }
 0x447   : > { %v12433_v36 = vcombine.high %v4028_v31, %v4032_v7  ;;  %v12432_v44 = vcombine.low %v4028_v31, %v4032_v7  ;;  %v3326_v19 = vld [vmem:[#allocation2 + $0x28] sm:$0xff] }
 0x448   : > { %8498 = vmatpush1.bf16.msra.mxu1 %v12384_v38  ;;  %v4039_v38 = vld [vmem:[#allocation7 + $0x1320] sm:$0xff]  ;;  %v4068_v31 = vld [vmem:[#allocation7 + $0x1408] sm:$0xff] }
 0x449   : > { %8252 = vmatpush1.bf16.msra.mxu0 %v12382_v35  ;;  %8499 = vmatprep.subr.bf16.mxu1 %v12393_v42  ;;  %v4035_v35 = vld [vmem:[#allocation7 + $0x1300] sm:$0xff]  ;;  %v4040_v42 = vld [vmem:[#allocation7 + $0x1328] sm:$0xff] }
 0x44a   : > { %8253 = vmatprep.subr.bf16.mxu0 %v12391_v41  ;;  %v4036_v41 = vld [vmem:[#allocation7 + $0x1308] sm:$0xff]  ;;  %v12439_v9 = vcombine.high %v4035_v35, %v4039_v38  ;;  %v12438_v37 = vcombine.low %v4035_v35, %v4039_v38  ;;  %v4075_v35 = vld [vmem:[#allocation7 + $0x1440] sm:$0xff] }
 0x44b   : > { %v12441_v46 = vcombine.high %v4036_v41, %v4040_v42  ;;  %v12440_v58 = vcombine.low %v4036_v41, %v4040_v42  ;;  %v4072_v7 = vld [vmem:[#allocation7 + $0x1428] sm:$0xff]  ;;  %v4079_v38 = vld [vmem:[#allocation7 + $0x1460] sm:$0xff]  ;;  %v15369_v42 = vpack.c.bf16 %v15345_v29, %v15345_v29 }
 0x44c   : > { %8500 = vmatpush1.bf16.msra.mxu1 %v12392_v56  ;;  %v4047_v56 = vld [vmem:[#allocation7 + $0x1360] sm:$0xff]  ;;  %v12478_v29 = vcombine.low %v4075_v35, %v4079_v38 }
 0x44d   : > { %8254 = vmatpush1.bf16.msra.mxu0 %v12390_v47  ;;  %8501 = vmatprep.subr.bf16.mxu1 %v12401_v57  ;;  %v4043_v47 = vld [vmem:[#allocation7 + $0x1340] sm:$0xff]  ;;  %v4048_v57 = vld [vmem:[#allocation7 + $0x1368] sm:$0xff] }
 0x44e   : > { %8255 = vmatprep.subr.bf16.mxu0 %v12399_v52  ;;  %v4044_v52 = vld [vmem:[#allocation7 + $0x1348] sm:$0xff]  ;;  %v12447_v60 = vcombine.high %v4043_v47, %v4047_v56  ;;  %v12446_v8 = vcombine.low %v4043_v47, %v4047_v56  ;;  %v12479_v47 = vcombine.high %v4075_v35, %v4079_v38 }
 0x44f   : > { %v12449_v61 = vcombine.high %v4044_v52, %v4048_v57  ;;  %v12448_v10 = vcombine.low %v4044_v52, %v4048_v57  ;;  %v4083_v52 = vld [vmem:[#allocation7 + $0x1480] sm:$0xff]  ;;  %v4116_v35 = vld [vmem:[#allocation7 + $0x1588] sm:$0xff] }
 0x450   : > { %8502 = vmatpush1.bf16.msra.mxu1 %v12400_v1  ;;  %v4055_v1 = vld [vmem:[#allocation7 + $0x13a0] sm:$0xff]  ;;  %v4120_v38 = vld [vmem:[#allocation7 + $0x15a8] sm:$0xff] }
 0x451   : > { %8256 = vmatpush1.bf16.msra.mxu0 %v12398_v59  ;;  %8503 = vmatprep.subr.bf16.mxu1 %v12409_v3  ;;  %v4051_v59 = vld [vmem:[#allocation7 + $0x1380] sm:$0xff]  ;;  %v3378_v3 = vrot.slane %v15339_v12, %v15277_v55 }
 0x452   : > { %8257 = vmatprep.subr.bf16.mxu0 %v12407_v2  ;;  %v3374_v2 = vrot.slane %v15339_v12, %v15274_v54  ;;  %v12456_v12 = vcombine.low %v4052_v4, %v4056_v6  ;;  %v4087_v57 = vld [vmem:[#allocation7 + $0x14a0] sm:$0xff] }
 0x454   : > { %8504 = vmatpush1.bf16.msra.mxu1 %v12408_v13  ;;  %v12457_v13 = vcombine.high %v4052_v4, %v4056_v6  ;;  %v3384_v16 = vcombine.low %v3374_v2, %v3378_v3  ;;  %v4091_v2 = vld [vmem:[#allocation7 + $0x14c0] sm:$0xff]  ;;  %v4092_v4 = vld [vmem:[#allocation7 + $0x14c8] sm:$0xff] }
 0x455   : > { %8258 = vmatpush1.bf16.msra.mxu0 %v12406_v11  ;;  %8505 = vmatprep.subr.bf16.mxu1 %v12417_v15  ;;  %v12455_v11 = vcombine.high %v4051_v59, %v4055_v1  ;;  %v4063_v15 = vld [vmem:[#allocation7 + $0x13e0] sm:$0xff]  ;;  %v4096_v6 = vld [vmem:[#allocation7 + $0x14e8] sm:$0xff] }
 0x456   : > { %8259 = vmatprep.subr.bf16.mxu0 %v12415_v14  ;;  %v4059_v14 = vld [vmem:[#allocation7 + $0x13c0] sm:$0xff]  ;;  %v15363_v30 = vadd.f32 %v3384_v16, %v3326_v19  ;;  %v4100_v16 = vld [vmem:[#allocation7 + $0x1508] sm:$0xff]  ;;  %v12496_v19 = vcombine.low %v4092_v4, %v4096_v6 }
 0x457   : > { %v4095_v3 = vld [vmem:[#allocation7 + $0x14e0] sm:$0xff] }
 0x458   : > { %8506 = vmatpush1.bf16.msra.mxu1 %v12416_v22  ;;  %v12463_v22 = vcombine.high %v4059_v14, %v4063_v15  ;;  %v3408_v41 = vcombine.high %v15363_v30, %v15363_v30 }
 0x459   : > { %8260 = vmatpush1.bf16.msra.mxu0 %v12414_v21  ;;  %8507 = vmatprep.subr.bf16.mxu1 %v12425_v27  ;;  %v12454_v21 = vcombine.low %v4051_v59, %v4055_v1  ;;  %v4067_v27 = vld [vmem:[#allocation7 + $0x1400] sm:$0xff]  ;;  %v12487_v59 = vcombine.high %v4083_v52, %v4087_v57 }
 0x45a   : > { %8261 = vmatprep.subr.bf16.mxu0 %v12423_v23  ;;  %v12465_v23 = vcombine.high %v4060_v25, %v4064_v18 }
 0x45c   : > { %8508 = vmatpush1.bf16.msra.mxu1 %v12424_v33  ;;  %v12464_v33 = vcombine.low %v4060_v25, %v4064_v18  ;;  %v4104_v25 = vld [vmem:[#allocation7 + $0x1528] sm:$0xff]  ;;  %v12494_v18 = vcombine.low %v4091_v2, %v4095_v3 }
 0x45d   : > { %8262 = vmatpush1.bf16.msra.mxu0 %v12422_v32  ;;  %8509 = vmatprep.subr.bf16.mxu1 %v12433_v36  ;;  %v12462_v32 = vcombine.low %v4059_v14, %v4063_v15  ;;  %v12473_v36 = vcombine.high %v4068_v31, %v4072_v7  ;;  %v4099_v14 = vld [vmem:[#allocation7 + $0x1500] sm:$0xff] }
 0x45e   : > { %8263 = vmatprep.subr.bf16.mxu0 %v12431_v53  ;;  %v12471_v53 = vcombine.high %v4067_v27, %v4071_v28  ;;  %v4103_v15 = vld [vmem:[#allocation7 + $0x1520] sm:$0xff] }
 0x460   : > { %8510 = vmatpush1.bf16.msra.mxu1 %v12432_v44  ;;  %v4080_v44 = vld [vmem:[#allocation7 + $0x1468] sm:$0xff] }
 0x461   : > { %8264 = vmatpush1.bf16.msra.mxu0 %v12430_v43  ;;  %8511 = vmatprep.subr.bf16.mxu1 %v12441_v46  ;;  %v4076_v43 = vld [vmem:[#allocation7 + $0x1448] sm:$0xff]  ;;  %v12472_v46 = vcombine.low %v4068_v31, %v4072_v7  ;;  %v12502_v31 = vcombine.low %v4099_v14, %v4103_v15  ;;  %v12504_v7 = vcombine.low %v4100_v16, %v4104_v25 }
 0x462   : > { %8265 = vmatprep.subr.bf16.mxu0 %v12439_v9  ;;  %v12470_v9 = vcombine.low %v4067_v27, %v4071_v28  ;;  %v12481_v56 = vcombine.high %v4076_v43, %v4080_v44  ;;  %v4108_v27 = vld [vmem:[#allocation7 + $0x1548] sm:$0xff] }
 0x463   : > { %v4112_v28 = vld [vmem:[#allocation7 + $0x1568] sm:$0xff] }
 0x464   : > { %8512 = vmatpush1.bf16.msra.mxu1 %v12440_v58  ;;  %v4084_v58 = vld [vmem:[#allocation7 + $0x1488] sm:$0xff] }
 0x465   : > { %8266 = vmatpush1.bf16.msra.mxu0 %v12438_v37  ;;  %8513 = vmatprep.subr.bf16.mxu1 %v12449_v61  ;;  %v15371_v37 = vpack.c.bf16 %v3408_v41, %v3408_v41  ;;  %v12480_v61 = vcombine.low %v4076_v43, %v4080_v44  ;;  %v12512_v43 = vcombine.low %v4108_v27, %v4112_v28 }
 0x466   : > { %8267 = vmatprep.subr.bf16.mxu0 %v12447_v60  ;;  %v4088_v60 = vld [vmem:[#allocation7 + $0x14a8] sm:$0xff] }
 0x467   : > { %v12489_v1 = vcombine.high %v4084_v58, %v4088_v60 }
 0x468   : > { %8514 = vmatpush1.bf16.msra.mxu1 %v12448_v10  ;;  %v12488_v10 = vcombine.low %v4084_v58, %v4088_v60  ;;  %v12520_v58 = vcombine.low %v4116_v35, %v4120_v38 }
 0x469   : > { %8268 = vmatpush1.bf16.msra.mxu0 %v12446_v8  ;;  %8515 = vmatprep.subr.bf16.mxu1 %v12457_v13  ;;  %v12486_v8 = vcombine.low %v4083_v52, %v4087_v57  ;;  %v12497_v13 = vcombine.high %v4092_v4, %v4096_v6  ;;  %v4128_v52 = vld [vmem:[#allocation7 + $0x15e8] sm:$0xff] }
 0x46a   : > { %8269 = vmatprep.subr.bf16.mxu0 %v12455_v11  ;;  %v12495_v11 = vcombine.high %v4091_v2, %v4095_v3  ;;  %v4136_v2 = vld [vmem:[#allocation7 + $0x1628] sm:$0xff] }
 0x46c   : > { %8516 = vmatpush1.bf16.msra.mxu1 %v12456_v12  ;;  %v12505_v12 = vcombine.high %v4100_v16, %v4104_v25 }
 0x46d   : > { %8270 = vmatpush1.bf16.msra.mxu0 %v12454_v21  ;;  %8517 = vmatprep.subr.bf16.mxu1 %v12465_v23  ;;  %v12503_v21 = vcombine.high %v4099_v14, %v4103_v15  ;;  %v4111_v23 = vld [vmem:[#allocation7 + $0x1560] sm:$0xff]  ;;  %v4144_v14 = vld [vmem:[#allocation7 + $0x1668] sm:$0xff] }
 0x46e   : > { %8271 = vmatprep.subr.bf16.mxu0 %v12463_v22  ;;  %v4107_v22 = vld [vmem:[#allocation7 + $0x1540] sm:$0xff] }
 0x46f   : > { %v12510_v41 = vcombine.low %v4107_v22, %v4111_v23 }
 0x470   : > { %8518 = vmatpush1.bf16.msra.mxu1 %v12464_v33  ;;  %v12513_v33 = vcombine.high %v4108_v27, %v4112_v28 }
 0x471   : > { %8272 = vmatpush1.bf16.msra.mxu0 %v12462_v32  ;;  %8528 = vmatprep.subr.bf16.mxu1 %v12473_v36  ;;  %v12511_v32 = vcombine.high %v4107_v22, %v4111_v23  ;;  %v4119_v36 = vld [vmem:[#allocation7 + $0x15a0] sm:$0xff]  ;;  %v4152_v22 = vld [vmem:[#allocation7 + $0x16a8] sm:$0xff] }
 0x472   : > { %8282 = vmatprep.subr.bf16.mxu0 %v12471_v53  ;;  %v4115_v53 = vld [vmem:[#allocation7 + $0x1580] sm:$0xff] }
 0x473   : > { %8520 = vmatmul.mubr.bf16.vlgmr.msra.gmra.mrb[0].mxu1 %v15369_v42  ;;  %v12519_v44 = vcombine.high %v4115_v53, %v4119_v36  ;;  %v12518_v57 = vcombine.low %v4115_v53, %v4119_v36  ;;  %v4160_v53 = vld [vmem:[#allocation7 + $0x16e8] sm:$0xff] }
 0x474   : > { %8274 = vmatmul.mubr.bf16.vlgmr.msra.gmra.mrb[0].mxu0 %v15369_v42  ;;  %8529 = vmatpush1.bf16.msra.mxu1 %v12472_v46  ;;  %v4123_v46 = vld [vmem:[#allocation7 + $0x15c0] sm:$0xff] }
 0x475   : > { %8283 = vmatpush1.bf16.msra.mxu0 %v12470_v9  ;;  %8530 = vmatprep.subr.bf16.mxu1 %v12481_v56  ;;  %v12521_v9 = vcombine.high %v4116_v35, %v4120_v38  ;;  %v4124_v56 = vld [vmem:[#allocation7 + $0x15c8] sm:$0xff] }
 0x476   : > { %8284 = vmatprep.subr.bf16.mxu0 %v12479_v47  ;;  %8314 = vmatprep.mubr.bf16.mxu0 %v15371_v37  ;;  %v4127_v47 = vld [vmem:[#allocation7 + $0x15e0] sm:$0xff]  ;;  %v12528_v4 = vcombine.low %v4124_v56, %v4128_v52 }
 0x477   : > { %8560 = vmatprep.mubr.bf16.mxu1 %v15371_v37  ;;  %v12527_v60 = vcombine.high %v4123_v46, %v4127_v47  ;;  %v12526_v3 = vcombine.low %v4123_v46, %v4127_v47  ;;  %v4168_v46 = vld [vmem:[#allocation7 + $0x1728] sm:$0xff] }
 0x478   : > { %8531 = vmatpush1.bf16.msra.mxu1 %v12480_v61  ;;  %v4131_v61 = vld [vmem:[#allocation7 + $0x1600] sm:$0xff] }
 0x479   : > { %8285 = vmatpush1.bf16.msra.mxu0 %v12478_v29  ;;  %8532 = vmatprep.subr.bf16.mxu1 %v12489_v1  ;;  %v12529_v29 = vcombine.high %v4124_v56, %v4128_v52  ;;  %v4132_v1 = vld [vmem:[#allocation7 + $0x1608] sm:$0xff] }
 0x47a   : > { %8286 = vmatprep.subr.bf16.mxu0 %v12487_v59  ;;  %v4135_v59 = vld [vmem:[#allocation7 + $0x1620] sm:$0xff]  ;;  %v12536_v16 = vcombine.low %v4132_v1, %v4136_v2 }
 0x47b   : > { %v12535_v6 = vcombine.high %v4131_v61, %v4135_v59  ;;  %v12534_v15 = vcombine.low %v4131_v61, %v4135_v59  ;;  %v4176_v61 = vld [vmem:[#allocation7 + $0x1768] sm:$0xff] }
 0x47c   : > { %8533 = vmatpush1.bf16.msra.mxu1 %v12488_v10  ;;  %v4139_v10 = vld [vmem:[#allocation7 + $0x1640] sm:$0xff] }
 0x47d   : > { %8287 = vmatpush1.bf16.msra.mxu0 %v12486_v8  ;;  %8534 = vmatprep.subr.bf16.mxu1 %v12497_v13  ;;  %v12537_v8 = vcombine.high %v4132_v1, %v4136_v2  ;;  %v4140_v13 = vld [vmem:[#allocation7 + $0x1648] sm:$0xff] }
 0x47e   : > { %8288 = vmatprep.subr.bf16.mxu0 %v12495_v11  ;;  %v4143_v11 = vld [vmem:[#allocation7 + $0x1660] sm:$0xff]  ;;  %v12544_v27 = vcombine.low %v4140_v13, %v4144_v14 }
 0x47f   : > { %v12543_v25 = vcombine.high %v4139_v10, %v4143_v11  ;;  %v12542_v23 = vcombine.low %v4139_v10, %v4143_v11  ;;  %v4184_v10 = vld [vmem:[#allocation7 + $0x17a8] sm:$0xff] }
 0x480   : > { %8535 = vmatpush1.bf16.msra.mxu1 %v12496_v19  ;;  %v4147_v19 = vld [vmem:[#allocation7 + $0x1680] sm:$0xff] }
 0x481   : > { %8289 = vmatpush1.bf16.msra.mxu0 %v12494_v18  ;;  %8536 = vmatprep.subr.bf16.mxu1 %v12505_v12  ;;  %v12545_v18 = vcombine.high %v4140_v13, %v4144_v14  ;;  %v4148_v12 = vld [vmem:[#allocation7 + $0x1688] sm:$0xff] }
 0x482   : > { %8290 = vmatprep.subr.bf16.mxu0 %v12503_v21  ;;  %v4151_v21 = vld [vmem:[#allocation7 + $0x16a0] sm:$0xff]  ;;  %v12552_v35 = vcombine.low %v4148_v12, %v4152_v22 }
 0x483   : > { %v12551_v28 = vcombine.high %v4147_v19, %v4151_v21  ;;  %v12550_v36 = vcombine.low %v4147_v19, %v4151_v21  ;;  %v4192_v19 = vld [vmem:[#allocation7 + $0x17e8] sm:$0xff] }
 0x484   : > { %8537 = vmatpush1.bf16.msra.mxu1 %v12504_v7  ;;  %v4155_v7 = vld [vmem:[#allocation7 + $0x16c0] sm:$0xff] }
 0x485   : > { %8291 = vmatpush1.bf16.msra.mxu0 %v12502_v31  ;;  %8538 = vmatprep.subr.bf16.mxu1 %v12513_v33  ;;  %v12553_v31 = vcombine.high %v4148_v12, %v4152_v22  ;;  %v4156_v33 = vld [vmem:[#allocation7 + $0x16c8] sm:$0xff] }
 0x486   : > { %8292 = vmatprep.subr.bf16.mxu0 %v12511_v32  ;;  %v4159_v32 = vld [vmem:[#allocation7 + $0x16e0] sm:$0xff]  ;;  %v12560_v56 = vcombine.low %v4156_v33, %v4160_v53 }
 0x487   : > { %v12559_v38 = vcombine.high %v4155_v7, %v4159_v32  ;;  %v12558_v47 = vcombine.low %v4155_v7, %v4159_v32  ;;  %v3434_v7 = vld [vmem:[#allocation7 + $0x38] sm:$0xff] }
 0x488   : > { %8539 = vmatpush1.bf16.msra.mxu1 %v12512_v43  ;;  %v4163_v43 = vld [vmem:[#allocation7 + $0x1700] sm:$0xff] }
 0x489   : > { %8293 = vmatpush1.bf16.msra.mxu0 %v12510_v41  ;;  %8540 = vmatprep.subr.bf16.mxu1 %v12521_v9  ;;  %v12561_v41 = vcombine.high %v4156_v33, %v4160_v53  ;;  %v4164_v9 = vld [vmem:[#allocation7 + $0x1708] sm:$0xff] }
 0x48a   : > { %8294 = vmatprep.subr.bf16.mxu0 %v12519_v44  ;;  %v4167_v44 = vld [vmem:[#allocation7 + $0x1720] sm:$0xff]  ;;  %v12568_v1 = vcombine.low %v4164_v9, %v4168_v46 }
 0x48b   : > { %v12567_v52 = vcombine.high %v4163_v43, %v4167_v44  ;;  %v12566_v59 = vcombine.low %v4163_v43, %v4167_v44  ;;  %v3438_v43 = vld [vmem:[#allocation7 + $0x58] sm:$0xff] }
 0x48c   : > { %8541 = vmatpush1.bf16.msra.mxu1 %v12520_v58  ;;  %v4171_v58 = vld [vmem:[#allocation7 + $0x1740] sm:$0xff]  ;;  %v3442_v44 = vld [vmem:[#allocation7 + $0x78] sm:$0xff] }
 0x48d   : > { %8295 = vmatpush1.bf16.msra.mxu0 %v12518_v57  ;;  %8542 = vmatprep.subr.bf16.mxu1 %v12529_v29  ;;  %v12569_v57 = vcombine.high %v4164_v9, %v4168_v46  ;;  %v4172_v29 = vld [vmem:[#allocation7 + $0x1748] sm:$0xff] }
 0x48e   : > { %8296 = vmatprep.subr.bf16.mxu0 %v12527_v60  ;;  %v4175_v60 = vld [vmem:[#allocation7 + $0x1760] sm:$0xff]  ;;  %v12576_v13 = vcombine.low %v4172_v29, %v4176_v61 }
 0x48f   : > { %v12575_v2 = vcombine.high %v4171_v58, %v4175_v60  ;;  %v12574_v11 = vcombine.low %v4171_v58, %v4175_v60  ;;  %v3446_v58 = vld [vmem:[#allocation7 + $0x98] sm:$0xff] }
 0x490   : > { %8543 = vmatpush1.bf16.msra.mxu1 %v12528_v4  ;;  %v4179_v4 = vld [vmem:[#allocation7 + $0x1780] sm:$0xff]  ;;  %v3450_v60 = vld [vmem:[#allocation7 + $0xb8] sm:$0xff] }
 0x491   : > { %8297 = vmatpush1.bf16.msra.mxu0 %v12526_v3  ;;  %8544 = vmatprep.subr.bf16.mxu1 %v12537_v8  ;;  %v12577_v3 = vcombine.high %v4172_v29, %v4176_v61  ;;  %v4180_v8 = vld [vmem:[#allocation7 + $0x1788] sm:$0xff]  ;;  %v11844_v29 = vcombine.low %v3438_v43, %v3442_v44 }
 0x492   : > { %8298 = vmatprep.subr.bf16.mxu0 %v12535_v6  ;;  %v4183_v6 = vld [vmem:[#allocation7 + $0x17a0] sm:$0xff]  ;;  %v12584_v12 = vcombine.low %v4180_v8, %v4184_v10 }
 0x493   : > { %v12583_v14 = vcombine.high %v4179_v4, %v4183_v6  ;;  %v12582_v21 = vcombine.low %v4179_v4, %v4183_v6  ;;  %v3458_v4 = vld [vmem:[#allocation7 + $0xf8] sm:$0xff] }
 0x494   : > { %8545 = vmatpush1.bf16.msra.mxu1 %v12536_v16  ;;  %v4187_v16 = vld [vmem:[#allocation7 + $0x17c0] sm:$0xff] }
 0x495   : > { %8299 = vmatpush1.bf16.msra.mxu0 %v12534_v15  ;;  %8546 = vmatprep.subr.bf16.mxu1 %v12545_v18  ;;  %v12585_v15 = vcombine.high %v4180_v8, %v4184_v10  ;;  %v4188_v18 = vld [vmem:[#allocation7 + $0x17c8] sm:$0xff]  ;;  %v11852_v8 = vcombine.low %v3446_v58, %v3450_v60 }
 0x496   : > { %8300 = vmatprep.subr.bf16.mxu0 %v12543_v25  ;;  %v4191_v25 = vld [vmem:[#allocation7 + $0x17e0] sm:$0xff]  ;;  %v12592_v33 = vcombine.low %v4188_v18, %v4192_v19 }
 0x497   : > { %v12591_v22 = vcombine.high %v4187_v16, %v4191_v25  ;;  %v12590_v32 = vcombine.low %v4187_v16, %v4191_v25  ;;  %v3466_v16 = vld [vmem:[#allocation7 + $0x138] sm:$0xff] }
 0x498   : > { %8547 = vmatpush1.bf16.msra.mxu1 %v12544_v27  ;;  %v3429_v27 = vld [vmem:[#allocation7 + $0x10] sm:$0xff] }
 0x499   : > { %8301 = vmatpush1.bf16.msra.mxu0 %v12542_v23  ;;  %8548 = vmatprep.subr.bf16.mxu1 %v12553_v31  ;;  %v12593_v23 = vcombine.high %v4188_v18, %v4192_v19  ;;  %v3430_v31 = vld [vmem:[#allocation7 + $0x18] sm:$0xff] }
 0x49a   : > { %8302 = vmatprep.subr.bf16.mxu0 %v12551_v28  ;;  %v3433_v28 = vld [vmem:[#allocation7 + $0x30] sm:$0xff]  ;;  %v11836_v46 = vcombine.low %v3430_v31, %v3434_v7 }
 0x49b   : > { %v11835_v53 = vcombine.high %v3429_v27, %v3433_v28  ;;  %v11834_v9 = vcombine.low %v3429_v27, %v3433_v28 }
 0x49c   : > { %8549 = vmatpush1.bf16.msra.mxu1 %v12552_v35  ;;  %v3437_v35 = vld [vmem:[#allocation7 + $0x50] sm:$0xff] }
 0x49d   : > { %8303 = vmatpush1.bf16.msra.mxu0 %v12550_v36  ;;  %8550 = vmatprep.subr.bf16.mxu1 %v12561_v41  ;;  %v11837_v36 = vcombine.high %v3430_v31, %v3434_v7  ;;  %v15379_v41 = vpack.c.bf16 %v15363_v30, %v15363_v30 }
 0x49e   : > { %8304 = vmatprep.subr.bf16.mxu0 %v12559_v38  ;;  %v3441_v38 = vld [vmem:[#allocation7 + $0x70] sm:$0xff] }
 0x49f   : > { %v11842_v30 = vcombine.low %v3437_v35, %v3441_v38 }
 0x4a0   : > { %8551 = vmatpush1.bf16.msra.mxu1 %v12560_v56  ;;  %v11845_v56 = vcombine.high %v3438_v43, %v3442_v44 }
 0x4a1   : > { %8305 = vmatpush1.bf16.msra.mxu0 %v12558_v47  ;;  %8552 = vmatprep.subr.bf16.mxu1 %v12569_v57  ;;  %v11843_v47 = vcombine.high %v3437_v35, %v3441_v38  ;;  %v3449_v57 = vld [vmem:[#allocation7 + $0xb0] sm:$0xff] }
 0x4a2   : > { %8306 = vmatprep.subr.bf16.mxu0 %v12567_v52  ;;  %v3445_v52 = vld [vmem:[#allocation7 + $0x90] sm:$0xff] }
 0x4a3   : > { %v11851_v61 = vcombine.high %v3445_v52, %v3449_v57  ;;  %v11850_v6 = vcombine.low %v3445_v52, %v3449_v57 }
 0x4a4   : > { %8553 = vmatpush1.bf16.msra.mxu1 %v12568_v1  ;;  %v3453_v1 = vld [vmem:[#allocation7 + $0xd0] sm:$0xff] }
 0x4a5   : > { %8307 = vmatpush1.bf16.msra.mxu0 %v12566_v59  ;;  %8554 = vmatprep.subr.bf16.mxu1 %v12577_v3  ;;  %v11853_v59 = vcombine.high %v3446_v58, %v3450_v60  ;;  %v3454_v3 = vld [vmem:[#allocation7 + $0xd8] sm:$0xff] }
 0x4a6   : > { %8308 = vmatprep.subr.bf16.mxu0 %v12575_v2  ;;  %v3457_v2 = vld [vmem:[#allocation7 + $0xf0] sm:$0xff]  ;;  %v11860_v18 = vcombine.low %v3454_v3, %v3458_v4 }
 0x4a7   : > { %v11859_v10 = vcombine.high %v3453_v1, %v3457_v2  ;;  %v11858_v25 = vcombine.low %v3453_v1, %v3457_v2 }
 0x4a8   : > { %8555 = vmatpush1.bf16.msra.mxu1 %v12576_v13  ;;  %v3461_v13 = vld [vmem:[#allocation7 + $0x110] sm:$0xff] }
 0x4a9   : > { %8309 = vmatpush1.bf16.msra.mxu0 %v12574_v11  ;;  %8556 = vmatprep.subr.bf16.mxu1 %v12585_v15  ;;  %v11861_v11 = vcombine.high %v3454_v3, %v3458_v4  ;;  %v3462_v15 = vld [vmem:[#allocation7 + $0x118] sm:$0xff] }
 0x4aa   : > { %8310 = vmatprep.subr.bf16.mxu0 %v12583_v14  ;;  %v3465_v14 = vld [vmem:[#allocation7 + $0x130] sm:$0xff]  ;;  %v11868_v28 = vcombine.low %v3462_v15, %v3466_v16 }
 0x4ab   : > { %v11867_v19 = vcombine.high %v3461_v13, %v3465_v14  ;;  %v11866_v27 = vcombine.low %v3461_v13, %v3465_v14 }
 0x4ac   : > { %8557 = vmatpush1.bf16.msra.mxu1 %v12584_v12  ;;  %v3473_v12 = vld [vmem:[#allocation7 + $0x170] sm:$0xff] }
 0x4ad   : > { %8311 = vmatpush1.bf16.msra.mxu0 %v12582_v21  ;;  %8558 = vmatprep.subr.bf16.mxu1 %v12593_v23  ;;  %v3469_v21 = vld [vmem:[#allocation7 + $0x150] sm:$0xff]  ;;  %v3474_v23 = vld [vmem:[#allocation7 + $0x178] sm:$0xff] }
 0x4ae   : > { %8312 = vmatprep.subr.bf16.mxu0 %v12591_v22  ;;  %v3470_v22 = vld [vmem:[#allocation7 + $0x158] sm:$0xff]  ;;  %v11875_v31 = vcombine.high %v3469_v21, %v3473_v12  ;;  %v11874_v35 = vcombine.low %v3469_v21, %v3473_v12 }
 0x4af   : > { %v11877_v7 = vcombine.high %v3470_v22, %v3474_v23  ;;  %v11876_v38 = vcombine.low %v3470_v22, %v3474_v23 }
 0x4b0   : > { %8559 = vmatpush1.bf16.msra.mxu1 %v12592_v33  ;;  %v3481_v33 = vld [vmem:[#allocation7 + $0x1b0] sm:$0xff] }
 0x4b1   : > { %8313 = vmatpush1.bf16.msra.mxu0 %v12590_v32  ;;  %8815 = vmatprep.subr.bf16.mxu1 %v11837_v36  ;;  %v3477_v32 = vld [vmem:[#allocation7 + $0x190] sm:$0xff]  ;;  %v3482_v36 = vld [vmem:[#allocation7 + $0x1b8] sm:$0xff] }
 0x4b2   : > { %8569 = vmatprep.subr.bf16.mxu0 %v11835_v53  ;;  %v3478_v53 = vld [vmem:[#allocation7 + $0x198] sm:$0xff]  ;;  %v11883_v43 = vcombine.high %v3477_v32, %v3481_v33  ;;  %v11882_v52 = vcombine.low %v3477_v32, %v3481_v33 }
 0x4b3   : > { %8561 = vmatmul.mubr.bf16.vlgmr.msra.gmra.mrb[0].mxu1 %v15379_v41  ;;  %v11885_v44 = vcombine.high %v3478_v53, %v3482_v36  ;;  %v11884_v57 = vcombine.low %v3478_v53, %v3482_v36 }
 0x4b4   : > { %8315 = vmatmul.mubr.bf16.vlgmr.msra.gmra.mrb[0].mxu0 %v15379_v41  ;;  %8816 = vmatpush1.bf16.msra.mxu1 %v11836_v46  ;;  %v3489_v46 = vld [vmem:[#allocation7 + $0x1f0] sm:$0xff] }
 0x4b5   : > { %8570 = vmatpush1.bf16.msra.mxu0 %v11834_v9  ;;  %8817 = vmatprep.subr.bf16.mxu1 %v11845_v56  ;;  %v3485_v9 = vld [vmem:[#allocation7 + $0x1d0] sm:$0xff]  ;;  %v3490_v56 = vld [vmem:[#allocation7 + $0x1f8] sm:$0xff] }
 0x4b6   : > { %8571 = vmatprep.subr.bf16.mxu0 %v11843_v47  ;;  %8601 = vmatprep.mubr.bf16.mxu0 %v15269_v20  ;;  %v3486_v47 = vld [vmem:[#allocation7 + $0x1d8] sm:$0xff]  ;;  %v11891_v58 = vcombine.high %v3485_v9, %v3489_v46  ;;  %v11890_v1 = vcombine.low %v3485_v9, %v3489_v46 }
 0x4b7   : > { %8847 = vmatprep.mubr.bf16.mxu1 %v15269_v20  ;;  %v11869_v20 = vcombine.high %v3462_v15, %v3466_v16  ;;  %v11893_v60 = vcombine.high %v3486_v47, %v3490_v56  ;;  %v11892_v2 = vcombine.low %v3486_v47, %v3490_v56 }
 0x4b8   : > { %8818 = vmatpush1.bf16.msra.mxu1 %v11844_v29  ;;  %v3497_v29 = vld [vmem:[#allocation7 + $0x230] sm:$0xff] }
 0x4b9   : > { %8572 = vmatpush1.bf16.msra.mxu0 %v11842_v30  ;;  %8819 = vmatprep.subr.bf16.mxu1 %v11853_v59  ;;  %v3493_v30 = vld [vmem:[#allocation7 + $0x210] sm:$0xff]  ;;  %v3498_v59 = vld [vmem:[#allocation7 + $0x238] sm:$0xff] }
 0x4ba   : > { %8573 = vmatprep.subr.bf16.mxu0 %v11851_v61  ;;  %v3494_v61 = vld [vmem:[#allocation7 + $0x218] sm:$0xff]  ;;  %v11899_v3 = vcombine.high %v3493_v30, %v3497_v29  ;;  %v11898_v13 = vcombine.low %v3493_v30, %v3497_v29 }
 0x4bb   : > { %v11901_v4 = vcombine.high %v3494_v61, %v3498_v59  ;;  %v11900_v14 = vcombine.low %v3494_v61, %v3498_v59 }
 0x4bc   : > { %8820 = vmatpush1.bf16.msra.mxu1 %v11852_v8  ;;  %v3505_v8 = vld [vmem:[#allocation7 + $0x270] sm:$0xff] }
 0x4bd   : > { %8574 = vmatpush1.bf16.msra.mxu0 %v11850_v6  ;;  %8821 = vmatprep.subr.bf16.mxu1 %v11861_v11  ;;  %v3501_v6 = vld [vmem:[#allocation7 + $0x250] sm:$0xff]  ;;  %v3506_v11 = vld [vmem:[#allocation7 + $0x278] sm:$0xff] }
 0x4be   : > { %8575 = vmatprep.subr.bf16.mxu0 %v11859_v10  ;;  %v3502_v10 = vld [vmem:[#allocation7 + $0x258] sm:$0xff]  ;;  %v11907_v15 = vcombine.high %v3501_v6, %v3505_v8  ;;  %v11906_v21 = vcombine.low %v3501_v6, %v3505_v8 }
 0x4bf   : > { %v11909_v16 = vcombine.high %v3502_v10, %v3506_v11  ;;  %v11908_v12 = vcombine.low %v3502_v10, %v3506_v11 }
 0x4c0   : > { %8822 = vmatpush1.bf16.msra.mxu1 %v11860_v18  ;;  %v3513_v18 = vld [vmem:[#allocation7 + $0x2b0] sm:$0xff] }
 0x4c1   : > { %8576 = vmatpush1.bf16.msra.mxu0 %v11858_v25  ;;  %8823 = vmatprep.subr.bf16.mxu1 %v11869_v20  ;;  %v3509_v25 = vld [vmem:[#allocation7 + $0x290] sm:$0xff]  ;;  %v3514_v20 = vld [vmem:[#allocation7 + $0x2b8] sm:$0xff] }
 0x4c2   : > { %8577 = vmatprep.subr.bf16.mxu0 %v11867_v19  ;;  %v3510_v19 = vld [vmem:[#allocation7 + $0x298] sm:$0xff]  ;;  %v11915_v22 = vcombine.high %v3509_v25, %v3513_v18  ;;  %v11914_v32 = vcombine.low %v3509_v25, %v3513_v18 }
 0x4c3   : > { %v11917_v23 = vcombine.high %v3510_v19, %v3514_v20  ;;  %v11916_v33 = vcombine.low %v3510_v19, %v3514_v20 }
 0x4c4   : > { %8824 = vmatpush1.bf16.msra.mxu1 %v11868_v28  ;;  %v3521_v28 = vld [vmem:[#allocation7 + $0x2f0] sm:$0xff] }
 0x4c5   : > { %8578 = vmatpush1.bf16.msra.mxu0 %v11866_v27  ;;  %8825 = vmatprep.subr.bf16.mxu1 %v11877_v7  ;;  %v3517_v27 = vld [vmem:[#allocation7 + $0x2d0] sm:$0xff]  ;;  %v3522_v7 = vld [vmem:[#allocation7 + $0x2f8] sm:$0xff] }
 0x4c6   : > { %8579 = vmatprep.subr.bf16.mxu0 %v11875_v31  ;;  %v3518_v31 = vld [vmem:[#allocation7 + $0x2d8] sm:$0xff]  ;;  %v11923_v53 = vcombine.high %v3517_v27, %v3521_v28  ;;  %v11922_v9 = vcombine.low %v3517_v27, %v3521_v28 }
 0x4c7   : > { %v11925_v36 = vcombine.high %v3518_v31, %v3522_v7  ;;  %v11924_v46 = vcombine.low %v3518_v31, %v3522_v7 }
 0x4c8   : > { %8826 = vmatpush1.bf16.msra.mxu1 %v11876_v38  ;;  %v3529_v38 = vld [vmem:[#allocation7 + $0x330] sm:$0xff] }
 0x4c9   : > { %8580 = vmatpush1.bf16.msra.mxu0 %v11874_v35  ;;  %8827 = vmatprep.subr.bf16.mxu1 %v11885_v44  ;;  %v3525_v35 = vld [vmem:[#allocation7 + $0x310] sm:$0xff]  ;;  %v3530_v44 = vld [vmem:[#allocation7 + $0x338] sm:$0xff] }
 0x4ca   : > { %8581 = vmatprep.subr.bf16.mxu0 %v11883_v43  ;;  %v3526_v43 = vld [vmem:[#allocation7 + $0x318] sm:$0xff]  ;;  %v11931_v47 = vcombine.high %v3525_v35, %v3529_v38  ;;  %v11930_v30 = vcombine.low %v3525_v35, %v3529_v38 }
 0x4cb   : > { %v11933_v56 = vcombine.high %v3526_v43, %v3530_v44  ;;  %v11932_v29 = vcombine.low %v3526_v43, %v3530_v44 }
 0x4cc   : > { %8828 = vmatpush1.bf16.msra.mxu1 %v11884_v57  ;;  %v3537_v57 = vld [vmem:[#allocation7 + $0x370] sm:$0xff] }
 0x4cd   : > { %8582 = vmatpush1.bf16.msra.mxu0 %v11882_v52  ;;  %8829 = vmatprep.subr.bf16.mxu1 %v11893_v60  ;;  %v3533_v52 = vld [vmem:[#allocation7 + $0x350] sm:$0xff]  ;;  %v3538_v60 = vld [vmem:[#allocation7 + $0x378] sm:$0xff] }
 0x4ce   : > { %8583 = vmatprep.subr.bf16.mxu0 %v11891_v58  ;;  %v3534_v58 = vld [vmem:[#allocation7 + $0x358] sm:$0xff]  ;;  %v11939_v61 = vcombine.high %v3533_v52, %v3537_v57  ;;  %v11938_v6 = vcombine.low %v3533_v52, %v3537_v57 }
 0x4cf   : > { %v11941_v59 = vcombine.high %v3534_v58, %v3538_v60  ;;  %v11940_v8 = vcombine.low %v3534_v58, %v3538_v60 }
 0x4d0   : > { %8830 = vmatpush1.bf16.msra.mxu1 %v11892_v2  ;;  %v3545_v2 = vld [vmem:[#allocation7 + $0x3b0] sm:$0xff] }
 0x4d1   : > { %8584 = vmatpush1.bf16.msra.mxu0 %v11890_v1  ;;  %8831 = vmatprep.subr.bf16.mxu1 %v11901_v4  ;;  %v3541_v1 = vld [vmem:[#allocation7 + $0x390] sm:$0xff]  ;;  %v3546_v4 = vld [vmem:[#allocation7 + $0x3b8] sm:$0xff] }
 0x4d2   : > { %8585 = vmatprep.subr.bf16.mxu0 %v11899_v3  ;;  %v3542_v3 = vld [vmem:[#allocation7 + $0x398] sm:$0xff]  ;;  %v11947_v10 = vcombine.high %v3541_v1, %v3545_v2  ;;  %v11946_v25 = vcombine.low %v3541_v1, %v3545_v2 }
 0x4d3   : > { %v11949_v11 = vcombine.high %v3542_v3, %v3546_v4  ;;  %v11948_v18 = vcombine.low %v3542_v3, %v3546_v4  ;;  %v3589_v4 = vld [vmem:[#allocation7 + $0x510] sm:$0xff] }
 0x4d4   : > { %8832 = vmatpush1.bf16.msra.mxu1 %v11900_v14  ;;  %v3553_v14 = vld [vmem:[#allocation7 + $0x3f0] sm:$0xff] }
 0x4d5   : > { %8586 = vmatpush1.bf16.msra.mxu0 %v11898_v13  ;;  %8833 = vmatprep.subr.bf16.mxu1 %v11909_v16  ;;  %v3549_v13 = vld [vmem:[#allocation7 + $0x3d0] sm:$0xff]  ;;  %v3554_v16 = vld [vmem:[#allocation7 + $0x3f8] sm:$0xff] }
 0x4d6   : > { %8587 = vmatprep.subr.bf16.mxu0 %v11907_v15  ;;  %v3550_v15 = vld [vmem:[#allocation7 + $0x3d8] sm:$0xff]  ;;  %v11955_v19 = vcombine.high %v3549_v13, %v3553_v14  ;;  %v11954_v27 = vcombine.low %v3549_v13, %v3553_v14 }
 0x4d7   : > { %v11957_v20 = vcombine.high %v3550_v15, %v3554_v16  ;;  %v11956_v28 = vcombine.low %v3550_v15, %v3554_v16  ;;  %v3597_v15 = vld [vmem:[#allocation7 + $0x550] sm:$0xff] }
 0x4d8   : > { %8834 = vmatpush1.bf16.msra.mxu1 %v11908_v12  ;;  %v3561_v12 = vld [vmem:[#allocation7 + $0x430] sm:$0xff] }
 0x4d9   : > { %8588 = vmatpush1.bf16.msra.mxu0 %v11906_v21  ;;  %8835 = vmatprep.subr.bf16.mxu1 %v11917_v23  ;;  %v3557_v21 = vld [vmem:[#allocation7 + $0x410] sm:$0xff]  ;;  %v3562_v23 = vld [vmem:[#allocation7 + $0x438] sm:$0xff] }
 0x4da   : > { %8589 = vmatprep.subr.bf16.mxu0 %v11915_v22  ;;  %v3558_v22 = vld [vmem:[#allocation7 + $0x418] sm:$0xff]  ;;  %v11963_v31 = vcombine.high %v3557_v21, %v3561_v12  ;;  %v11962_v35 = vcombine.low %v3557_v21, %v3561_v12  ;;  %v3601_v16 = vld [vmem:[#allocation7 + $0x570] sm:$0xff] }
 0x4db   : > { %v11965_v7 = vcombine.high %v3558_v22, %v3562_v23  ;;  %v11964_v38 = vcombine.low %v3558_v22, %v3562_v23  ;;  %v12003_v21 = vcombine.high %v3597_v15, %v3601_v16  ;;  %v3605_v22 = vld [vmem:[#allocation7 + $0x590] sm:$0xff] }
 0x4dc   : > { %8836 = vmatpush1.bf16.msra.mxu1 %v11916_v33  ;;  %v3569_v33 = vld [vmem:[#allocation7 + $0x470] sm:$0xff] }
 0x4dd   : > { %8590 = vmatpush1.bf16.msra.mxu0 %v11914_v32  ;;  %8837 = vmatprep.subr.bf16.mxu1 %v11925_v36  ;;  %v3565_v32 = vld [vmem:[#allocation7 + $0x450] sm:$0xff]  ;;  %v3570_v36 = vld [vmem:[#allocation7 + $0x478] sm:$0xff] }
 0x4de   : > { %8591 = vmatprep.subr.bf16.mxu0 %v11923_v53  ;;  %v3566_v53 = vld [vmem:[#allocation7 + $0x458] sm:$0xff]  ;;  %v11971_v43 = vcombine.high %v3565_v32, %v3569_v33  ;;  %v11970_v52 = vcombine.low %v3565_v32, %v3569_v33  ;;  %v3609_v23 = vld [vmem:[#allocation7 + $0x5b0] sm:$0xff] }
 0x4df   : > { %v11973_v44 = vcombine.high %v3566_v53, %v3570_v36  ;;  %v11972_v57 = vcombine.low %v3566_v53, %v3570_v36  ;;  %v12011_v32 = vcombine.high %v3605_v22, %v3609_v23  ;;  %v3613_v53 = vld [vmem:[#allocation7 + $0x5d0] sm:$0xff] }
 0x4e0   : > { %8838 = vmatpush1.bf16.msra.mxu1 %v11924_v46  ;;  %v3577_v46 = vld [vmem:[#allocation7 + $0x4b0] sm:$0xff] }
 0x4e1   : > { %8592 = vmatpush1.bf16.msra.mxu0 %v11922_v9  ;;  %8839 = vmatprep.subr.bf16.mxu1 %v11933_v56  ;;  %v3573_v9 = vld [vmem:[#allocation7 + $0x490] sm:$0xff]  ;;  %v3578_v56 = vld [vmem:[#allocation7 + $0x4b8] sm:$0xff] }
 0x4e2   : > { %8593 = vmatprep.subr.bf16.mxu0 %v11931_v47  ;;  %v3574_v47 = vld [vmem:[#allocation7 + $0x498] sm:$0xff]  ;;  %v11979_v58 = vcombine.high %v3573_v9, %v3577_v46  ;;  %v11978_v1 = vcombine.low %v3573_v9, %v3577_v46  ;;  %v3617_v36 = vld [vmem:[#allocation7 + $0x5f0] sm:$0xff] }
 0x4e3   : > { %v11981_v60 = vcombine.high %v3574_v47, %v3578_v56  ;;  %v12019_v9 = vcombine.high %v3613_v53, %v3617_v36 }
 0x4e4   : > { %8840 = vmatpush1.bf16.msra.mxu1 %v11932_v29  ;;  %v3585_v29 = vld [vmem:[#allocation7 + $0x4f0] sm:$0xff] }
 0x4e5   : > { %8594 = vmatpush1.bf16.msra.mxu0 %v11930_v30  ;;  %8841 = vmatprep.subr.bf16.mxu1 %v11941_v59  ;;  %v3581_v30 = vld [vmem:[#allocation7 + $0x4d0] sm:$0xff]  ;;  %v3586_v59 = vld [vmem:[#allocation7 + $0x4f8] sm:$0xff] }
 0x4e6   : > { %8595 = vmatprep.subr.bf16.mxu0 %v11939_v61  ;;  %v3582_v61 = vld [vmem:[#allocation7 + $0x4d8] sm:$0xff]  ;;  %v11987_v2 = vcombine.high %v3581_v30, %v3585_v29 }
 0x4e7   : > { %v11989_v3 = vcombine.high %v3582_v61, %v3586_v59  ;;  %v11988_v13 = vcombine.low %v3582_v61, %v3586_v59  ;;  %v3629_v61 = vld [vmem:[#allocation7 + $0x650] sm:$0xff] }
 0x4e8   : > { %8842 = vmatpush1.bf16.msra.mxu1 %v11940_v8  ;;  %v3590_v8 = vld [vmem:[#allocation7 + $0x518] sm:$0xff]  ;;  %v3633_v59 = vld [vmem:[#allocation7 + $0x670] sm:$0xff] }
 0x4e9   : > { %8596 = vmatpush1.bf16.msra.mxu0 %v11938_v6  ;;  %8843 = vmatprep.subr.bf16.mxu1 %v11949_v11  ;;  %v3593_v6 = vld [vmem:[#allocation7 + $0x530] sm:$0xff]  ;;  %v11986_v11 = vcombine.low %v3581_v30, %v3585_v29 }
 0x4ea   : > { %8597 = vmatprep.subr.bf16.mxu0 %v11947_v10  ;;  %v3594_v10 = vld [vmem:[#allocation7 + $0x538] sm:$0xff]  ;;  %v11995_v14 = vcombine.high %v3589_v4, %v3593_v6 }
 0x4ec   : > { %8844 = vmatpush1.bf16.msra.mxu1 %v11948_v18  ;;  %v3602_v18 = vld [vmem:[#allocation7 + $0x578] sm:$0xff] }
 0x4ed   : > { %8598 = vmatpush1.bf16.msra.mxu0 %v11946_v25  ;;  %8845 = vmatprep.subr.bf16.mxu1 %v11957_v20  ;;  %v3598_v25 = vld [vmem:[#allocation7 + $0x558] sm:$0xff]  ;;  %v11996_v20 = vcombine.low %v3590_v8, %v3594_v10 }
 0x4ee   : > { %8599 = vmatprep.subr.bf16.mxu0 %v11955_v19  ;;  %v11994_v19 = vcombine.low %v3589_v4, %v3593_v6  ;;  %v12005_v12 = vcombine.high %v3598_v25, %v3602_v18  ;;  %v12035_v4 = vcombine.high %v3629_v61, %v3633_v59 }
 0x4f0   : > { %8846 = vmatpush1.bf16.msra.mxu1 %v11956_v28  ;;  %v3610_v28 = vld [vmem:[#allocation7 + $0x5b8] sm:$0xff] }
 0x4f1   : > { %8600 = vmatpush1.bf16.msra.mxu0 %v11954_v27  ;;  %8856 = vmatprep.subr.bf16.mxu1 %v11965_v7  ;;  %v3606_v27 = vld [vmem:[#allocation7 + $0x598] sm:$0xff]  ;;  %v12004_v7 = vcombine.low %v3598_v25, %v3602_v18  ;;  %v3645_v25 = vld [vmem:[#allocation7 + $0x6d0] sm:$0xff] }
 0x4f2   : > { %8610 = vmatprep.subr.bf16.mxu0 %v11963_v31  ;;  %v12002_v31 = vcombine.low %v3597_v15, %v3601_v16  ;;  %v12013_v33 = vcombine.high %v3606_v27, %v3610_v28  ;;  %v3649_v18 = vld [vmem:[#allocation7 + $0x6f0] sm:$0xff] }
 0x4f3   : > { %8848 = vmatmul.mubr.bf16.vlgmr.msra.gmra.mrb[4].mxu1 %v15289_v34 }
 0x4f4   : > { %8602 = vmatmul.mubr.bf16.vlgmr.msra.gmra.mrb[4].mxu0 %v15289_v34  ;;  %8857 = vmatpush1.bf16.msra.mxu1 %v11964_v38  ;;  %v11980_v34 = vcombine.low %v3574_v47, %v3578_v56  ;;  %v3618_v38 = vld [vmem:[#allocation7 + $0x5f8] sm:$0xff]  ;;  %v3621_v47 = vld [vmem:[#allocation7 + $0x610] sm:$0xff] }
 0x4f5   : > { %8611 = vmatpush1.bf16.msra.mxu0 %v11962_v35  ;;  %8858 = vmatprep.subr.bf16.mxu1 %v11973_v44  ;;  %v3614_v35 = vld [vmem:[#allocation7 + $0x5d8] sm:$0xff]  ;;  %v12012_v44 = vcombine.low %v3606_v27, %v3610_v28  ;;  %v3625_v56 = vld [vmem:[#allocation7 + $0x630] sm:$0xff] }
 0x4f6   : > { %8612 = vmatprep.subr.bf16.mxu0 %v11971_v43  ;;  %8642 = vmatprep.mubr.bf16.mxu0 %v15291_v45  ;;  %v12010_v43 = vcombine.low %v3605_v22, %v3609_v23  ;;  %v12021_v46 = vcombine.high %v3614_v35, %v3618_v38  ;;  %v12027_v30 = vcombine.high %v3621_v47, %v3625_v56  ;;  %v3653_v27 = vld [vmem:[#allocation7 + $0x710] sm:$0xff] }
 0x4f7   : > { %8888 = vmatprep.mubr.bf16.mxu1 %v15291_v45  ;;  %v11997_v45 = vcombine.high %v3590_v8, %v3594_v10  ;;  %v3637_v8 = vld [vmem:[#allocation7 + $0x690] sm:$0xff]  ;;  %v12051_v22 = vcombine.high %v3645_v25, %v3649_v18 }
 0x4f8   : > { %8859 = vmatpush1.bf16.msra.mxu1 %v11972_v57  ;;  %v3626_v57 = vld [vmem:[#allocation7 + $0x638] sm:$0xff]  ;;  %v3641_v10 = vld [vmem:[#allocation7 + $0x6b0] sm:$0xff] }
 0x4f9   : > { %8613 = vmatpush1.bf16.msra.mxu0 %v11970_v52  ;;  %8860 = vmatprep.subr.bf16.mxu1 %v11981_v60  ;;  %v3622_v52 = vld [vmem:[#allocation7 + $0x618] sm:$0xff]  ;;  %v12020_v60 = vcombine.low %v3614_v35, %v3618_v38  ;;  %v12043_v15 = vcombine.high %v3637_v8, %v3641_v10  ;;  %v3657_v28 = vld [vmem:[#allocation7 + $0x730] sm:$0xff] }
 0x4fa   : > { %8614 = vmatprep.subr.bf16.mxu0 %v11979_v58  ;;  %v12018_v58 = vcombine.low %v3613_v53, %v3617_v36  ;;  %v12029_v29 = vcombine.high %v3622_v52, %v3626_v57  ;;  %v12059_v53 = vcombine.high %v3653_v27, %v3657_v28  ;;  %v3661_v35 = vld [vmem:[#allocation7 + $0x750] sm:$0xff] }
 0x4fb   : > { %v3665_v38 = vld [vmem:[#allocation7 + $0x770] sm:$0xff] }
 0x4fc   : > { %8861 = vmatpush1.bf16.msra.mxu1 %v11980_v34  ;;  %v3634_v34 = vld [vmem:[#allocation7 + $0x678] sm:$0xff] }
 0x4fd   : > { %8615 = vmatpush1.bf16.msra.mxu0 %v11978_v1  ;;  %8862 = vmatprep.subr.bf16.mxu1 %v11989_v3  ;;  %v3630_v1 = vld [vmem:[#allocation7 + $0x658] sm:$0xff]  ;;  %v12028_v3 = vcombine.low %v3622_v52, %v3626_v57  ;;  %v3669_v52 = vld [vmem:[#allocation7 + $0x790] sm:$0xff] }
 0x4fe   : > { %8616 = vmatprep.subr.bf16.mxu0 %v11987_v2  ;;  %v12026_v2 = vcombine.low %v3621_v47, %v3625_v56  ;;  %v12037_v6 = vcombine.high %v3630_v1, %v3634_v34  ;;  %v12067_v47 = vcombine.high %v3661_v35, %v3665_v38  ;;  %v3673_v57 = vld [vmem:[#allocation7 + $0x7b0] sm:$0xff] }
 0x500   : > { %8863 = vmatpush1.bf16.msra.mxu1 %v11988_v13  ;;  %v3642_v13 = vld [vmem:[#allocation7 + $0x6b8] sm:$0xff] }
 0x501   : > { %8617 = vmatpush1.bf16.msra.mxu0 %v11986_v11  ;;  %8864 = vmatprep.subr.bf16.mxu1 %v11997_v45  ;;  %v3638_v11 = vld [vmem:[#allocation7 + $0x698] sm:$0xff]  ;;  %v12036_v45 = vcombine.low %v3630_v1, %v3634_v34  ;;  %v3677_v1 = vld [vmem:[#allocation7 + $0x7d0] sm:$0xff] }
 0x502   : > { %8618 = vmatprep.subr.bf16.mxu0 %v11995_v14  ;;  %v12034_v14 = vcombine.low %v3629_v61, %v3633_v59  ;;  %v12045_v16 = vcombine.high %v3638_v11, %v3642_v13  ;;  %v12075_v61 = vcombine.high %v3669_v52, %v3673_v57  ;;  %v3681_v34 = vld [vmem:[#allocation7 + $0x7f0] sm:$0xff] }
 0x504   : > { %8865 = vmatpush1.bf16.msra.mxu1 %v11996_v20  ;;  %v3650_v20 = vld [vmem:[#allocation7 + $0x6f8] sm:$0xff] }
 0x505   : > { %8619 = vmatpush1.bf16.msra.mxu0 %v11994_v19  ;;  %8866 = vmatprep.subr.bf16.mxu1 %v12005_v12  ;;  %v3646_v19 = vld [vmem:[#allocation7 + $0x6d8] sm:$0xff]  ;;  %v12044_v12 = vcombine.low %v3638_v11, %v3642_v13  ;;  %v3685_v11 = vld [vmem:[#allocation7 + $0x810] sm:$0xff] }
 0x506   : > { %8620 = vmatprep.subr.bf16.mxu0 %v12003_v21  ;;  %v12042_v21 = vcombine.low %v3637_v8, %v3641_v10  ;;  %v12053_v23 = vcombine.high %v3646_v19, %v3650_v20  ;;  %v12083_v8 = vcombine.high %v3677_v1, %v3681_v34  ;;  %v3689_v13 = vld [vmem:[#allocation7 + $0x830] sm:$0xff] }
 0x508   : > { %8867 = vmatpush1.bf16.msra.mxu1 %v12004_v7  ;;  %v3658_v7 = vld [vmem:[#allocation7 + $0x738] sm:$0xff] }
 0x509   : > { %8621 = vmatpush1.bf16.msra.mxu0 %v12002_v31  ;;  %8868 = vmatprep.subr.bf16.mxu1 %v12013_v33  ;;  %v3654_v31 = vld [vmem:[#allocation7 + $0x718] sm:$0xff]  ;;  %v12052_v33 = vcombine.low %v3646_v19, %v3650_v20  ;;  %v3693_v19 = vld [vmem:[#allocation7 + $0x850] sm:$0xff] }
 0x50a   : > { %8622 = vmatprep.subr.bf16.mxu0 %v12011_v32  ;;  %v12050_v32 = vcombine.low %v3645_v25, %v3649_v18  ;;  %v12061_v36 = vcombine.high %v3654_v31, %v3658_v7  ;;  %v12091_v25 = vcombine.high %v3685_v11, %v3689_v13  ;;  %v3697_v20 = vld [vmem:[#allocation7 + $0x870] sm:$0xff] }
 0x50c   : > { %8869 = vmatpush1.bf16.msra.mxu1 %v12012_v44  ;;  %v3666_v44 = vld [vmem:[#allocation7 + $0x778] sm:$0xff] }
 0x50d   : > { %8623 = vmatpush1.bf16.msra.mxu0 %v12010_v43  ;;  %8870 = vmatprep.subr.bf16.mxu1 %v12021_v46  ;;  %v3662_v43 = vld [vmem:[#allocation7 + $0x758] sm:$0xff]  ;;  %v12060_v46 = vcombine.low %v3654_v31, %v3658_v7  ;;  %v3701_v31 = vld [vmem:[#allocation7 + $0x890] sm:$0xff] }
 0x50e   : > { %8624 = vmatprep.subr.bf16.mxu0 %v12019_v9  ;;  %v12058_v9 = vcombine.low %v3653_v27, %v3657_v28  ;;  %v12069_v56 = vcombine.high %v3662_v43, %v3666_v44  ;;  %v12099_v27 = vcombine.high %v3693_v19, %v3697_v20  ;;  %v3705_v7 = vld [vmem:[#allocation7 + $0x8b0] sm:$0xff] }
 0x510   : > { %8871 = vmatpush1.bf16.msra.mxu1 %v12020_v60  ;;  %v3674_v60 = vld [vmem:[#allocation7 + $0x7b8] sm:$0xff] }
 0x511   : > { %8625 = vmatpush1.bf16.msra.mxu0 %v12018_v58  ;;  %8872 = vmatprep.subr.bf16.mxu1 %v12029_v29  ;;  %v3670_v58 = vld [vmem:[#allocation7 + $0x798] sm:$0xff]  ;;  %v12068_v29 = vcombine.low %v3662_v43, %v3666_v44  ;;  %v3709_v43 = vld [vmem:[#allocation7 + $0x8d0] sm:$0xff] }
 0x512   : > { %8626 = vmatprep.subr.bf16.mxu0 %v12027_v30  ;;  %v12066_v30 = vcombine.low %v3661_v35, %v3665_v38  ;;  %v12077_v59 = vcombine.high %v3670_v58, %v3674_v60  ;;  %v12107_v35 = vcombine.high %v3701_v31, %v3705_v7  ;;  %v3713_v44 = vld [vmem:[#allocation7 + $0x8f0] sm:$0xff] }
 0x514   : > { %8873 = vmatpush1.bf16.msra.mxu1 %v12028_v3  ;;  %v3682_v3 = vld [vmem:[#allocation7 + $0x7f8] sm:$0xff] }
 0x515   : > { %8627 = vmatpush1.bf16.msra.mxu0 %v12026_v2  ;;  %8874 = vmatprep.subr.bf16.mxu1 %v12037_v6  ;;  %v3678_v2 = vld [vmem:[#allocation7 + $0x7d8] sm:$0xff]  ;;  %v12076_v6 = vcombine.low %v3670_v58, %v3674_v60  ;;  %v3721_v58 = vld [vmem:[#allocation7 + $0x930] sm:$0xff] }
 0x516   : > { %8628 = vmatprep.subr.bf16.mxu0 %v12035_v4  ;;  %v12074_v4 = vcombine.low %v3669_v52, %v3673_v57  ;;  %v12085_v10 = vcombine.high %v3678_v2, %v3682_v3  ;;  %v3717_v57 = vld [vmem:[#allocation7 + $0x910] sm:$0xff]  ;;  %v3718_v60 = vld [vmem:[#allocation7 + $0x918] sm:$0xff] }
 0x518   : > { %8875 = vmatpush1.bf16.msra.mxu1 %v12036_v45  ;;  %v3690_v45 = vld [vmem:[#allocation7 + $0x838] sm:$0xff] }
 0x519   : > { %8629 = vmatpush1.bf16.msra.mxu0 %v12034_v14  ;;  %8876 = vmatprep.subr.bf16.mxu1 %v12045_v16  ;;  %v3686_v14 = vld [vmem:[#allocation7 + $0x818] sm:$0xff]  ;;  %v12084_v16 = vcombine.low %v3678_v2, %v3682_v3 }
 0x51a   : > { %8630 = vmatprep.subr.bf16.mxu0 %v12043_v15  ;;  %v12082_v15 = vcombine.low %v3677_v1, %v3681_v34  ;;  %v12093_v18 = vcombine.high %v3686_v14, %v3690_v45  ;;  %v3725_v1 = vld [vmem:[#allocation7 + $0x950] sm:$0xff]  ;;  %v3726_v2 = vld [vmem:[#allocation7 + $0x958] sm:$0xff] }
 0x51b   : > { %v3729_v34 = vld [vmem:[#allocation7 + $0x970] sm:$0xff]  ;;  %v3730_v3 = vld [vmem:[#allocation7 + $0x978] sm:$0xff] }
 0x51c   : > { %8877 = vmatpush1.bf16.msra.mxu1 %v12044_v12  ;;  %v3698_v12 = vld [vmem:[#allocation7 + $0x878] sm:$0xff] }
 0x51d   : > { %8631 = vmatpush1.bf16.msra.mxu0 %v12042_v21  ;;  %8878 = vmatprep.subr.bf16.mxu1 %v12053_v23  ;;  %v3694_v21 = vld [vmem:[#allocation7 + $0x858] sm:$0xff]  ;;  %v12092_v23 = vcombine.low %v3686_v14, %v3690_v45 }
 0x51e   : > { %8632 = vmatprep.subr.bf16.mxu0 %v12051_v22  ;;  %v12090_v22 = vcombine.low %v3685_v11, %v3689_v13  ;;  %v12101_v28 = vcombine.high %v3694_v21, %v3698_v12  ;;  %v3733_v11 = vld [vmem:[#allocation7 + $0x990] sm:$0xff]  ;;  %v3734_v14 = vld [vmem:[#allocation7 + $0x998] sm:$0xff] }
 0x51f   : > { %v3737_v13 = vld [vmem:[#allocation7 + $0x9b0] sm:$0xff]  ;;  %v3738_v45 = vld [vmem:[#allocation7 + $0x9b8] sm:$0xff] }
 0x520   : > { %8879 = vmatpush1.bf16.msra.mxu1 %v12052_v33  ;;  %v3706_v33 = vld [vmem:[#allocation7 + $0x8b8] sm:$0xff] }
 0x521   : > { %8633 = vmatpush1.bf16.msra.mxu0 %v12050_v32  ;;  %8880 = vmatprep.subr.bf16.mxu1 %v12061_v36  ;;  %v3702_v32 = vld [vmem:[#allocation7 + $0x898] sm:$0xff]  ;;  %v12100_v36 = vcombine.low %v3694_v21, %v3698_v12 }
 0x522   : > { %8634 = vmatprep.subr.bf16.mxu0 %v12059_v53  ;;  %v12098_v53 = vcombine.low %v3693_v19, %v3697_v20  ;;  %v12109_v38 = vcombine.high %v3702_v32, %v3706_v33  ;;  %v3741_v19 = vld [vmem:[#allocation7 + $0x9d0] sm:$0xff]  ;;  %v3742_v21 = vld [vmem:[#allocation7 + $0x9d8] sm:$0xff] }
 0x523   : > { %v3745_v20 = vld [vmem:[#allocation7 + $0x9f0] sm:$0xff]  ;;  %v3746_v12 = vld [vmem:[#allocation7 + $0x9f8] sm:$0xff] }
 0x524   : > { %8881 = vmatpush1.bf16.msra.mxu1 %v12060_v46  ;;  %v3714_v46 = vld [vmem:[#allocation7 + $0x8f8] sm:$0xff] }
 0x525   : > { %8635 = vmatpush1.bf16.msra.mxu0 %v12058_v9  ;;  %8882 = vmatprep.subr.bf16.mxu1 %v12069_v56  ;;  %v3710_v9 = vld [vmem:[#allocation7 + $0x8d8] sm:$0xff]  ;;  %v12115_v56 = vcombine.high %v3709_v43, %v3713_v44 }
 0x526   : > { %8636 = vmatprep.subr.bf16.mxu0 %v12067_v47  ;;  %v12106_v47 = vcombine.low %v3701_v31, %v3705_v7  ;;  %v12117_v52 = vcombine.high %v3710_v9, %v3714_v46  ;;  %v3749_v31 = vld [vmem:[#allocation7 + $0xa10] sm:$0xff] }
 0x527   : > { %v3753_v7 = vld [vmem:[#allocation7 + $0xa30] sm:$0xff] }
 0x528   : > { %8883 = vmatpush1.bf16.msra.mxu1 %v12068_v29  ;;  %v12114_v29 = vcombine.low %v3709_v43, %v3713_v44  ;;  %v3757_v43 = vld [vmem:[#allocation7 + $0xa50] sm:$0xff] }
 0x529   : > { %8637 = vmatpush1.bf16.msra.mxu0 %v12066_v30  ;;  %8884 = vmatprep.subr.bf16.mxu1 %v12077_v59  ;;  %v3722_v30 = vld [vmem:[#allocation7 + $0x938] sm:$0xff]  ;;  %v12123_v59 = vcombine.high %v3717_v57, %v3721_v58  ;;  %v3761_v44 = vld [vmem:[#allocation7 + $0xa70] sm:$0xff] }
 0x52a   : > { %8638 = vmatprep.subr.bf16.mxu0 %v12075_v61  ;;  %v12116_v61 = vcombine.low %v3710_v9, %v3714_v46  ;;  %v3758_v9 = vld [vmem:[#allocation7 + $0xa58] sm:$0xff] }
 0x52b   : > { %v3762_v46 = vld [vmem:[#allocation7 + $0xa78] sm:$0xff] }
 0x52c   : > { %8885 = vmatpush1.bf16.msra.mxu1 %v12076_v6  ;;  %v12124_v6 = vcombine.low %v3718_v60, %v3722_v30 }
 0x52d   : > { %8639 = vmatpush1.bf16.msra.mxu0 %v12074_v4  ;;  %8886 = vmatprep.subr.bf16.mxu1 %v12085_v10  ;;  %v12122_v4 = vcombine.low %v3717_v57, %v3721_v58  ;;  %v12133_v10 = vcombine.high %v3726_v2, %v3730_v3  ;;  %v3765_v57 = vld [vmem:[#allocation7 + $0xa90] sm:$0xff] }
 0x52e   : > { %8640 = vmatprep.subr.bf16.mxu0 %v12083_v8  ;;  %v12131_v8 = vcombine.high %v3725_v1, %v3729_v34  ;;  %v3769_v58 = vld [vmem:[#allocation7 + $0xab0] sm:$0xff] }
 0x530   : > { %8887 = vmatpush1.bf16.msra.mxu1 %v12084_v16  ;;  %v12132_v16 = vcombine.low %v3726_v2, %v3730_v3  ;;  %v3774_v2 = vld [vmem:[#allocation7 + $0xad8] sm:$0xff] }
 0x531   : > { %8641 = vmatpush1.bf16.msra.mxu0 %v12082_v15  ;;  %8897 = vmatprep.subr.bf16.mxu1 %v12093_v18  ;;  %v12130_v15 = vcombine.low %v3725_v1, %v3729_v34  ;;  %v12141_v18 = vcombine.high %v3734_v14, %v3738_v45  ;;  %v3773_v1 = vld [vmem:[#allocation7 + $0xad0] sm:$0xff]  ;;  %v3778_v3 = vld [vmem:[#allocation7 + $0xaf8] sm:$0xff] }
 0x532   : > { %8651 = vmatprep.subr.bf16.mxu0 %v12091_v25  ;;  %v12139_v25 = vcombine.high %v3733_v11, %v3737_v13  ;;  %v3777_v34 = vld [vmem:[#allocation7 + $0xaf0] sm:$0xff] }
 0x533   : > { %8889 = vmatmul.mubr.bf16.vlgmr.msra.gmra.mrb[4].mxu1 %v15311_v5 }
 0x534   : > { %8643 = vmatmul.mubr.bf16.vlgmr.msra.gmra.mrb[4].mxu0 %v15311_v5  ;;  %8898 = vmatpush1.bf16.msra.mxu1 %v12092_v23  ;;  %v12108_v5 = vcombine.low %v3702_v32, %v3706_v33  ;;  %v12140_v23 = vcombine.low %v3734_v14, %v3738_v45  ;;  %v3750_v32 = vld [vmem:[#allocation7 + $0xa18] sm:$0xff] }
 0x535   : > { %8652 = vmatpush1.bf16.msra.mxu0 %v12090_v22  ;;  %8899 = vmatprep.subr.bf16.mxu1 %v12101_v28  ;;  %v12138_v22 = vcombine.low %v3733_v11, %v3737_v13  ;;  %v12149_v28 = vcombine.high %v3742_v21, %v3746_v12  ;;  %v3754_v33 = vld [vmem:[#allocation7 + $0xa38] sm:$0xff]  ;;  %v3781_v11 = vld [vmem:[#allocation7 + $0xb10] sm:$0xff] }
 0x536   : > { %8653 = vmatprep.subr.bf16.mxu0 %v12099_v27  ;;  %8683 = vmatprep.mubr.bf16.mxu0 %v15313_v17  ;;  %v12147_v27 = vcombine.high %v3741_v19, %v3745_v20  ;;  %v3785_v13 = vld [vmem:[#allocation7 + $0xb30] sm:$0xff]  ;;  %v3782_v14 = vld [vmem:[#allocation7 + $0xb18] sm:$0xff] }
 0x537   : > { %8929 = vmatprep.mubr.bf16.mxu1 %v15313_v17  ;;  %v12125_v17 = vcombine.high %v3718_v60, %v3722_v30  ;;  %v3766_v60 = vld [vmem:[#allocation7 + $0xa98] sm:$0xff] }
 0x538   : > { %8900 = vmatpush1.bf16.msra.mxu1 %v12100_v36  ;;  %v12148_v36 = vcombine.low %v3742_v21, %v3746_v12  ;;  %v3770_v30 = vld [vmem:[#allocation7 + $0xab8] sm:$0xff] }
 0x539   : > { %8654 = vmatpush1.bf16.msra.mxu0 %v12098_v53  ;;  %8901 = vmatprep.subr.bf16.mxu1 %v12109_v38  ;;  %v12146_v53 = vcombine.low %v3741_v19, %v3745_v20  ;;  %v12157_v38 = vcombine.high %v3750_v32, %v3754_v33  ;;  %v3786_v45 = vld [vmem:[#allocation7 + $0xb38] sm:$0xff]  ;;  %v3789_v19 = vld [vmem:[#allocation7 + $0xb50] sm:$0xff] }
 0x53a   : > { %8655 = vmatprep.subr.bf16.mxu0 %v12107_v35  ;;  %v12155_v35 = vcombine.high %v3749_v31, %v3753_v7  ;;  %v3793_v20 = vld [vmem:[#allocation7 + $0xb70] sm:$0xff]  ;;  %v3790_v21 = vld [vmem:[#allocation7 + $0xb58] sm:$0xff] }
 0x53b   : > { %v3794_v12 = vld [vmem:[#allocation7 + $0xb78] sm:$0xff] }
 0x53c   : > { %8902 = vmatpush1.bf16.msra.mxu1 %v12108_v5  ;;  %v12156_v5 = vcombine.low %v3750_v32, %v3754_v33  ;;  %v3798_v32 = vld [vmem:[#allocation7 + $0xb98] sm:$0xff] }
 0x53d   : > { %8656 = vmatpush1.bf16.msra.mxu0 %v12106_v47  ;;  %8903 = vmatprep.subr.bf16.mxu1 %v12117_v52  ;;  %v12154_v47 = vcombine.low %v3749_v31, %v3753_v7  ;;  %v12165_v52 = vcombine.high %v3758_v9, %v3762_v46  ;;  %v3797_v31 = vld [vmem:[#allocation7 + $0xb90] sm:$0xff]  ;;  %v3802_v33 = vld [vmem:[#allocation7 + $0xbb8] sm:$0xff] }
 0x53e   : > { %8657 = vmatprep.subr.bf16.mxu0 %v12115_v56  ;;  %v12163_v56 = vcombine.high %v3757_v43, %v3761_v44  ;;  %v3801_v7 = vld [vmem:[#allocation7 + $0xbb0] sm:$0xff] }
 0x540   : > { %8904 = vmatpush1.bf16.msra.mxu1 %v12116_v61  ;;  %v12164_v61 = vcombine.low %v3758_v9, %v3762_v46  ;;  %v3806_v9 = vld [vmem:[#allocation7 + $0xbd8] sm:$0xff] }
 0x541   : > { %8658 = vmatpush1.bf16.msra.mxu0 %v12114_v29  ;;  %8905 = vmatprep.subr.bf16.mxu1 %v12125_v17  ;;  %v12162_v29 = vcombine.low %v3757_v43, %v3761_v44  ;;  %v12173_v17 = vcombine.high %v3766_v60, %v3770_v30  ;;  %v3805_v43 = vld [vmem:[#allocation7 + $0xbd0] sm:$0xff]  ;;  %v3810_v46 = vld [vmem:[#allocation7 + $0xbf8] sm:$0xff] }
 0x542   : > { %8659 = vmatprep.subr.bf16.mxu0 %v12123_v59  ;;  %v12171_v59 = vcombine.high %v3765_v57, %v3769_v58  ;;  %v3809_v44 = vld [vmem:[#allocation7 + $0xbf0] sm:$0xff] }
 0x544   : > { %8906 = vmatpush1.bf16.msra.mxu1 %v12124_v6  ;;  %v12172_v6 = vcombine.low %v3766_v60, %v3770_v30  ;;  %v3814_v60 = vld [vmem:[#allocation7 + $0xc18] sm:$0xff] }
 0x545   : > { %8660 = vmatpush1.bf16.msra.mxu0 %v12122_v4  ;;  %8907 = vmatprep.subr.bf16.mxu1 %v12133_v10  ;;  %v12170_v4 = vcombine.low %v3765_v57, %v3769_v58  ;;  %v12181_v10 = vcombine.high %v3774_v2, %v3778_v3  ;;  %v3813_v57 = vld [vmem:[#allocation7 + $0xc10] sm:$0xff]  ;;  %v3818_v30 = vld [vmem:[#allocation7 + $0xc38] sm:$0xff] }
 0x546   : > { %8661 = vmatprep.subr.bf16.mxu0 %v12131_v8  ;;  %v12179_v8 = vcombine.high %v3773_v1, %v3777_v34  ;;  %v3817_v58 = vld [vmem:[#allocation7 + $0xc30] sm:$0xff] }
 0x548   : > { %8908 = vmatpush1.bf16.msra.mxu1 %v12132_v16  ;;  %v12180_v16 = vcombine.low %v3774_v2, %v3778_v3  ;;  %v3822_v2 = vld [vmem:[#allocation7 + $0xc58] sm:$0xff] }
 0x549   : > { %8662 = vmatpush1.bf16.msra.mxu0 %v12130_v15  ;;  %8909 = vmatprep.subr.bf16.mxu1 %v12141_v18  ;;  %v12178_v15 = vcombine.low %v3773_v1, %v3777_v34  ;;  %v12189_v18 = vcombine.high %v3782_v14, %v3786_v45  ;;  %v3821_v1 = vld [vmem:[#allocation7 + $0xc50] sm:$0xff]  ;;  %v3826_v3 = vld [vmem:[#allocation7 + $0xc78] sm:$0xff] }
 0x54a   : > { %8663 = vmatprep.subr.bf16.mxu0 %v12139_v25  ;;  %v12187_v25 = vcombine.high %v3781_v11, %v3785_v13  ;;  %v3825_v34 = vld [vmem:[#allocation7 + $0xc70] sm:$0xff] }
 0x54c   : > { %8910 = vmatpush1.bf16.msra.mxu1 %v12140_v23  ;;  %v12188_v23 = vcombine.low %v3782_v14, %v3786_v45  ;;  %v3830_v14 = vld [vmem:[#allocation7 + $0xc98] sm:$0xff] }
 0x54d   : > { %8664 = vmatpush1.bf16.msra.mxu0 %v12138_v22  ;;  %8911 = vmatprep.subr.bf16.mxu1 %v12149_v28  ;;  %v12186_v22 = vcombine.low %v3781_v11, %v3785_v13  ;;  %v12197_v28 = vcombine.high %v3790_v21, %v3794_v12  ;;  %v3829_v11 = vld [vmem:[#allocation7 + $0xc90] sm:$0xff]  ;;  %v3834_v45 = vld [vmem:[#allocation7 + $0xcb8] sm:$0xff] }
 0x54e   : > { %8665 = vmatprep.subr.bf16.mxu0 %v12147_v27  ;;  %v12195_v27 = vcombine.high %v3789_v19, %v3793_v20  ;;  %v3833_v13 = vld [vmem:[#allocation7 + $0xcb0] sm:$0xff] }
 0x550   : > { %8912 = vmatpush1.bf16.msra.mxu1 %v12148_v36  ;;  %v12196_v36 = vcombine.low %v3790_v21, %v3794_v12  ;;  %v3838_v21 = vld [vmem:[#allocation7 + $0xcd8] sm:$0xff] }
 0x551   : > { %8666 = vmatpush1.bf16.msra.mxu0 %v12146_v53  ;;  %8913 = vmatprep.subr.bf16.mxu1 %v12157_v38  ;;  %v12194_v53 = vcombine.low %v3789_v19, %v3793_v20  ;;  %v12205_v38 = vcombine.high %v3798_v32, %v3802_v33  ;;  %v3837_v19 = vld [vmem:[#allocation7 + $0xcd0] sm:$0xff]  ;;  %v3842_v12 = vld [vmem:[#allocation7 + $0xcf8] sm:$0xff] }
 0x552   : > { %8667 = vmatprep.subr.bf16.mxu0 %v12155_v35  ;;  %v12203_v35 = vcombine.high %v3797_v31, %v3801_v7  ;;  %v3841_v20 = vld [vmem:[#allocation7 + $0xcf0] sm:$0xff] }
 0x554   : > { %8914 = vmatpush1.bf16.msra.mxu1 %v12156_v5  ;;  %v12204_v5 = vcombine.low %v3798_v32, %v3802_v33  ;;  %v3850_v32 = vld [vmem:[#allocation7 + $0xd38] sm:$0xff]  ;;  %v12242_v33 = vcombine.low %v3837_v19, %v3841_v20 }
 0x555   : > { %8668 = vmatpush1.bf16.msra.mxu0 %v12154_v47  ;;  %8915 = vmatprep.subr.bf16.mxu1 %v12165_v52  ;;  %v12202_v47 = vcombine.low %v3797_v31, %v3801_v7  ;;  %v12213_v52 = vcombine.high %v3806_v9, %v3810_v46  ;;  %v3849_v31 = vld [vmem:[#allocation7 + $0xd30] sm:$0xff]  ;;  %v3846_v7 = vld [vmem:[#allocation7 + $0xd18] sm:$0xff] }
 0x556   : > { %8669 = vmatprep.subr.bf16.mxu0 %v12163_v56  ;;  %v12211_v56 = vcombine.high %v3805_v43, %v3809_v44 }
 0x558   : > { %8916 = vmatpush1.bf16.msra.mxu1 %v12164_v61  ;;  %v12212_v61 = vcombine.low %v3806_v9, %v3810_v46  ;;  %v12252_v46 = vcombine.low %v3846_v7, %v3850_v32 }
 0x559   : > { %8670 = vmatpush1.bf16.msra.mxu0 %v12162_v29  ;;  %8917 = vmatprep.subr.bf16.mxu1 %v12173_v17  ;;  %v12210_v29 = vcombine.low %v3805_v43, %v3809_v44  ;;  %v12221_v17 = vcombine.high %v3814_v60, %v3818_v30  ;;  %v3854_v43 = vld [vmem:[#allocation7 + $0xd58] sm:$0xff] }
 0x55a   : > { %8671 = vmatprep.subr.bf16.mxu0 %v12171_v59  ;;  %v12219_v59 = vcombine.high %v3813_v57, %v3817_v58  ;;  %v3858_v44 = vld [vmem:[#allocation7 + $0xd78] sm:$0xff] }
 0x55c   : > { %8918 = vmatpush1.bf16.msra.mxu1 %v12172_v6  ;;  %v12220_v6 = vcombine.low %v3814_v60, %v3818_v30  ;;  %v12260_v30 = vcombine.low %v3854_v43, %v3858_v44 }
 0x55d   : > { %8672 = vmatpush1.bf16.msra.mxu0 %v12170_v4  ;;  %8919 = vmatprep.subr.bf16.mxu1 %v12181_v10  ;;  %v12218_v4 = vcombine.low %v3813_v57, %v3817_v58  ;;  %v12229_v10 = vcombine.high %v3822_v2, %v3826_v3  ;;  %v3862_v57 = vld [vmem:[#allocation7 + $0xd98] sm:$0xff] }
 0x55e   : > { %8673 = vmatprep.subr.bf16.mxu0 %v12179_v8  ;;  %v12227_v8 = vcombine.high %v3821_v1, %v3825_v34  ;;  %v3866_v58 = vld [vmem:[#allocation7 + $0xdb8] sm:$0xff] }
 0x560   : > { %8920 = vmatpush1.bf16.msra.mxu1 %v12180_v16  ;;  %v12228_v16 = vcombine.low %v3822_v2, %v3826_v3  ;;  %v3870_v3 = vld [vmem:[#allocation7 + $0xdd8] sm:$0xff] }
 0x561   : > { %8674 = vmatpush1.bf16.msra.mxu0 %v12178_v15  ;;  %8921 = vmatprep.subr.bf16.mxu1 %v12189_v18  ;;  %v12226_v15 = vcombine.low %v3821_v1, %v3825_v34  ;;  %v12237_v18 = vcombine.high %v3830_v14, %v3834_v45  ;;  %v3873_v1 = vld [vmem:[#allocation7 + $0xdf0] sm:$0xff] }
 0x562   : > { %8675 = vmatprep.subr.bf16.mxu0 %v12187_v25  ;;  %v12235_v25 = vcombine.high %v3829_v11, %v3833_v13 }
 0x564   : > { %8922 = vmatpush1.bf16.msra.mxu1 %v12188_v23  ;;  %v12243_v23 = vcombine.high %v3837_v19, %v3841_v20  ;;  %v3878_v19 = vld [vmem:[#allocation7 + $0xe18] sm:$0xff] }
 0x565   : > { %8676 = vmatpush1.bf16.msra.mxu0 %v12186_v22  ;;  %8923 = vmatprep.subr.bf16.mxu1 %v12197_v28  ;;  %v12234_v22 = vcombine.low %v3829_v11, %v3833_v13  ;;  %v3845_v28 = vld [vmem:[#allocation7 + $0xd10] sm:$0xff]  ;;  %v3882_v20 = vld [vmem:[#allocation7 + $0xe38] sm:$0xff] }
 0x566   : > { %8677 = vmatprep.subr.bf16.mxu0 %v12195_v27  ;;  %v12245_v27 = vcombine.high %v3838_v21, %v3842_v12  ;;  %v12250_v9 = vcombine.low %v3845_v28, %v3849_v31 }
 0x568   : > { %8924 = vmatpush1.bf16.msra.mxu1 %v12196_v36  ;;  %v12251_v36 = vcombine.high %v3845_v28, %v3849_v31  ;;  %v3886_v28 = vld [vmem:[#allocation7 + $0xe58] sm:$0xff] }
 0x569   : > { %8678 = vmatpush1.bf16.msra.mxu0 %v12194_v53  ;;  %8925 = vmatprep.subr.bf16.mxu1 %v12205_v38  ;;  %v12244_v53 = vcombine.low %v3838_v21, %v3842_v12  ;;  %v3857_v38 = vld [vmem:[#allocation7 + $0xd70] sm:$0xff]  ;;  %v3890_v31 = vld [vmem:[#allocation7 + $0xe78] sm:$0xff] }
 0x56a   : > { %8679 = vmatprep.subr.bf16.mxu0 %v12203_v35  ;;  %v3853_v35 = vld [vmem:[#allocation7 + $0xd50] sm:$0xff] }
 0x56b   : > { %v12258_v60 = vcombine.low %v3853_v35, %v3857_v38 }
 0x56c   : > { %8926 = vmatpush1.bf16.msra.mxu1 %v12204_v5  ;;  %v12261_v5 = vcombine.high %v3854_v43, %v3858_v44  ;;  %v12292_v44 = vcombine.low %v3886_v28, %v3890_v31 }
 0x56d   : > { %8680 = vmatpush1.bf16.msra.mxu0 %v12202_v47  ;;  %8927 = vmatprep.subr.bf16.mxu1 %v12213_v52  ;;  %v12259_v47 = vcombine.high %v3853_v35, %v3857_v38  ;;  %v3865_v52 = vld [vmem:[#allocation7 + $0xdb0] sm:$0xff]  ;;  %v3894_v35 = vld [vmem:[#allocation7 + $0xe98] sm:$0xff] }
 0x56e   : > { %8681 = vmatprep.subr.bf16.mxu0 %v12211_v56  ;;  %v3861_v56 = vld [vmem:[#allocation7 + $0xd90] sm:$0xff]  ;;  %v3898_v38 = vld [vmem:[#allocation7 + $0xeb8] sm:$0xff] }
 0x570   : > { %8928 = vmatpush1.bf16.msra.mxu1 %v12212_v61 }
 0x571   : > { %8682 = vmatpush1.bf16.msra.mxu0 %v12210_v29  ;;  %8938 = vmatprep.subr.bf16.mxu1 %v12221_v17  ;;  %v12267_v29 = vcombine.high %v3861_v56, %v3865_v52  ;;  %v3869_v17 = vld [vmem:[#allocation7 + $0xdd0] sm:$0xff] }
 0x572   : > { %8692 = vmatprep.subr.bf16.mxu0 %v12219_v59  ;;  %v12269_v59 = vcombine.high %v3862_v57, %v3866_v58  ;;  %v12274_v21 = vcombine.low %v3869_v17, %v3873_v1 }
 0x573   : > { %8930 = vmatmul.mubr.bf16.vlgmr.msra.gmra.mrb[4].mxu1 %v15331_v48 }
 0x574   : > { %8684 = vmatmul.mubr.bf16.vlgmr.msra.gmra.mrb[4].mxu0 %v15331_v48  ;;  %8939 = vmatpush1.bf16.msra.mxu1 %v12220_v6  ;;  %v12236_v48 = vcombine.low %v3830_v14, %v3834_v45  ;;  %v12268_v14 = vcombine.low %v3862_v57, %v3866_v58  ;;  %v12275_v45 = vcombine.high %v3869_v17, %v3873_v1  ;;  %v3910_v17 = vld [vmem:[#allocation7 + $0xf18] sm:$0xff] }
 0x575   : > { %8693 = vmatpush1.bf16.msra.mxu0 %v12218_v4  ;;  %8940 = vmatprep.subr.bf16.mxu1 %v12229_v10  ;;  %v3874_v4 = vld [vmem:[#allocation7 + $0xdf8] sm:$0xff]  ;;  %v12266_v10 = vcombine.low %v3861_v56, %v3865_v52  ;;  %v12300_v58 = vcombine.low %v3894_v35, %v3898_v38 }
 0x576   : > { %8694 = vmatprep.subr.bf16.mxu0 %v12227_v8  ;;  %8724 = vmatprep.mubr.bf16.mxu0 %v15333_v62  ;;  %v12276_v12 = vcombine.low %v3870_v3, %v3874_v4  ;;  %v3902_v56 = vld [vmem:[#allocation7 + $0xed8] sm:$0xff] }
 0x577   : > { %8970 = vmatprep.mubr.bf16.mxu1 %v15333_v62  ;;  %v12253_v62 = vcombine.high %v3846_v7, %v3850_v32  ;;  %v12284_v32 = vcombine.low %v3878_v19, %v3882_v20  ;;  %v3906_v52 = vld [vmem:[#allocation7 + $0xef8] sm:$0xff] }
 0x578   : > { %8941 = vmatpush1.bf16.msra.mxu1 %v12228_v16  ;;  %v12277_v16 = vcombine.high %v3870_v3, %v3874_v4  ;;  %v3914_v1 = vld [vmem:[#allocation7 + $0xf38] sm:$0xff]  ;;  %v12308_v4 = vcombine.low %v3902_v56, %v3906_v52 }
 0x579   : > { %8695 = vmatpush1.bf16.msra.mxu0 %v12226_v15  ;;  %8942 = vmatprep.subr.bf16.mxu1 %v12237_v18  ;;  %v3881_v18 = vld [vmem:[#allocation7 + $0xe30] sm:$0xff] }
 0x57a   : > { %8696 = vmatprep.subr.bf16.mxu0 %v12235_v25  ;;  %v3877_v25 = vld [vmem:[#allocation7 + $0xe10] sm:$0xff] }
 0x57b   : > { %v12282_v7 = vcombine.low %v3877_v25, %v3881_v18 }
 0x57c   : > { %8943 = vmatpush1.bf16.msra.mxu1 %v12236_v48  ;;  %v12285_v48 = vcombine.high %v3878_v19, %v3882_v20  ;;  %v3925_v19 = vld [vmem:[#allocation7 + $0xf90] sm:$0xff] }
 0x57d   : > { %8697 = vmatpush1.bf16.msra.mxu0 %v12234_v22  ;;  %8944 = vmatprep.subr.bf16.mxu1 %v12245_v27  ;;  %v12283_v22 = vcombine.high %v3877_v25, %v3881_v18  ;;  %v3889_v27 = vld [vmem:[#allocation7 + $0xe70] sm:$0xff] }
 0x57e   : > { %8698 = vmatprep.subr.bf16.mxu0 %v12243_v23  ;;  %v3885_v23 = vld [vmem:[#allocation7 + $0xe50] sm:$0xff] }
 0x57f   : > { %v12290_v43 = vcombine.low %v3885_v23, %v3889_v27  ;;  %v3929_v20 = vld [vmem:[#allocation7 + $0xfb0] sm:$0xff] }
 0x580   : > { %8945 = vmatpush1.bf16.msra.mxu1 %v12244_v53  ;;  %v12293_v53 = vcombine.high %v3886_v28, %v3890_v31  ;;  %v3933_v28 = vld [vmem:[#allocation7 + $0xfd0] sm:$0xff] }
 0x581   : > { %8699 = vmatpush1.bf16.msra.mxu0 %v12242_v33  ;;  %8946 = vmatprep.subr.bf16.mxu1 %v12253_v62  ;;  %v12291_v33 = vcombine.high %v3885_v23, %v3889_v27  ;;  %v3897_v62 = vld [vmem:[#allocation7 + $0xeb0] sm:$0xff]  ;;  %v12331_v23 = vcombine.high %v3925_v19, %v3929_v20 }
 0x582   : > { %8700 = vmatprep.subr.bf16.mxu0 %v12251_v36  ;;  %v3893_v36 = vld [vmem:[#allocation7 + $0xe90] sm:$0xff] }
 0x583   : > { %v12298_v57 = vcombine.low %v3893_v36, %v3897_v62  ;;  %v3937_v31 = vld [vmem:[#allocation7 + $0xff0] sm:$0xff] }
 0x584   : > { %8947 = vmatpush1.bf16.msra.mxu1 %v12252_v46  ;;  %v12301_v46 = vcombine.high %v3894_v35, %v3898_v38  ;;  %v3941_v35 = vld [vmem:[#allocation7 + $0x1010] sm:$0xff] }
 0x585   : > { %8701 = vmatpush1.bf16.msra.mxu0 %v12250_v9  ;;  %8948 = vmatprep.subr.bf16.mxu1 %v12261_v5  ;;  %v12299_v9 = vcombine.high %v3893_v36, %v3897_v62  ;;  %v3905_v5 = vld [vmem:[#allocation7 + $0xef0] sm:$0xff]  ;;  %v12339_v36 = vcombine.high %v3933_v28, %v3937_v31 }
 0x586   : > { %8702 = vmatprep.subr.bf16.mxu0 %v12259_v47  ;;  %v15399_v34 = vpop.f32.mrb[0].mxu1  ;;  %v3901_v47 = vld [vmem:[#allocation7 + $0xed0] sm:$0xff] }
 0x587   : > { %v15397_v61 = vpop.f32.mrb[0].mxu0  ;;  %v15403_v6 = vpop.f32.mrb[1].mxu1  ;;  %v12306_v3 = vcombine.low %v3901_v47, %v3905_v5  ;;  %v3945_v38 = vld [vmem:[#allocation7 + $0x1030] sm:$0xff] }
 0x588   : > { %v15401_v2 = vpop.f32.mrb[1].mxu0  ;;  %v8566_v11 = vpop.f32.mrb[2].mxu1  ;;  %8949 = vmatpush1.bf16.msra.mxu1 %v12260_v30  ;;  %v12309_v30 = vcombine.high %v3902_v56, %v3906_v52  ;;  %v3949_v56 = vld [vmem:[#allocation7 + $0x1050] sm:$0xff] }
 0x589   : > { %v8320_v8 = vpop.f32.mrb[2].mxu0  ;;  %8703 = vmatpush1.bf16.msra.mxu0 %v12258_v60  ;;  %v8567_v15 = vpop.f32.mrb[3].mxu1  ;;  %8950 = vmatprep.subr.bf16.mxu1 %v12269_v59  ;;  %v12307_v60 = vcombine.high %v3901_v47, %v3905_v5  ;;  %v3913_v59 = vld [vmem:[#allocation7 + $0xf30] sm:$0xff]  ;;  %v12347_v47 = vcombine.high %v3941_v35, %v3945_v38 }
 0x58a   : > { %v8321_v13 = vpop.f32.mrb[3].mxu0  ;;  %8704 = vmatprep.subr.bf16.mxu0 %v12267_v29  ;;  %v3909_v29 = vld [vmem:[#allocation7 + $0xf10] sm:$0xff] }
 0x58b   : > { %v12315_v8 = vcombine.high %v3909_v29, %v3913_v59  ;;  %v3917_v11 = vld [vmem:[#allocation7 + $0xf50] sm:$0xff]  ;;  %v12314_v15 = vcombine.low %v3909_v29, %v3913_v59 }
 0x58c   : > { %8951 = vmatpush1.bf16.msra.mxu1 %v12268_v14  ;;  %v3921_v13 = vld [vmem:[#allocation7 + $0xf70] sm:$0xff]  ;;  %v3918_v14 = vld [vmem:[#allocation7 + $0xf58] sm:$0xff] }
 0x58d   : > { %8705 = vmatpush1.bf16.msra.mxu0 %v12266_v10  ;;  %8952 = vmatprep.subr.bf16.mxu1 %v12277_v16  ;;  %v12317_v10 = vcombine.high %v3910_v17, %v3914_v1  ;;  %v12316_v16 = vcombine.low %v3910_v17, %v3914_v1  ;;  %v12323_v25 = vcombine.high %v3917_v11, %v3921_v13  ;;  %v3953_v52 = vld [vmem:[#allocation7 + $0x1070] sm:$0xff] }
 0x58e   : > { %8706 = vmatprep.subr.bf16.mxu0 %v12275_v45  ;;  %v3922_v45 = vld [vmem:[#allocation7 + $0xf78] sm:$0xff]  ;;  %v12355_v29 = vcombine.high %v3949_v56, %v3953_v52  ;;  %v3957_v17 = vld [vmem:[#allocation7 + $0x1090] sm:$0xff] }
 0x58f   : > { %v12325_v18 = vcombine.high %v3918_v14, %v3922_v45  ;;  %v3961_v1 = vld [vmem:[#allocation7 + $0x10b0] sm:$0xff] }
 0x590   : > { %8953 = vmatpush1.bf16.msra.mxu1 %v12276_v12  ;;  %v3930_v12 = vld [vmem:[#allocation7 + $0xfb8] sm:$0xff] }
 0x591   : > { %8707 = vmatpush1.bf16.msra.mxu0 %v12274_v21  ;;  %8954 = vmatprep.subr.bf16.mxu1 %v12285_v48  ;;  %v3926_v21 = vld [vmem:[#allocation7 + $0xf98] sm:$0xff]  ;;  %v12324_v48 = vcombine.low %v3918_v14, %v3922_v45  ;;  %v3965_v14 = vld [vmem:[#allocation7 + $0x10d0] sm:$0xff] }
 0x592   : > { %8708 = vmatprep.subr.bf16.mxu0 %v12283_v22  ;;  %v12322_v22 = vcombine.low %v3917_v11, %v3921_v13  ;;  %v12333_v27 = vcombine.high %v3926_v21, %v3930_v12  ;;  %v12363_v11 = vcombine.high %v3957_v17, %v3961_v1  ;;  %v3969_v45 = vld [vmem:[#allocation7 + $0x10f0] sm:$0xff] }
 0x594   : > { %8955 = vmatpush1.bf16.msra.mxu1 %v12284_v32  ;;  %v3938_v32 = vld [vmem:[#allocation7 + $0xff8] sm:$0xff] }
 0x595   : > { %8709 = vmatpush1.bf16.msra.mxu0 %v12282_v7  ;;  %8956 = vmatprep.subr.bf16.mxu1 %v12293_v53  ;;  %v3934_v7 = vld [vmem:[#allocation7 + $0xfd8] sm:$0xff]  ;;  %v12332_v53 = vcombine.low %v3926_v21, %v3930_v12  ;;  %v3977_v21 = vld [vmem:[#allocation7 + $0x1130] sm:$0xff] }
 0x596   : > { %8710 = vmatprep.subr.bf16.mxu0 %v12291_v33  ;;  %v12330_v33 = vcombine.low %v3925_v19, %v3929_v20  ;;  %v12341_v62 = vcombine.high %v3934_v7, %v3938_v32  ;;  %v3973_v20 = vld [vmem:[#allocation7 + $0x1110] sm:$0xff]  ;;  %v3974_v12 = vld [vmem:[#allocation7 + $0x1118] sm:$0xff] }
 0x598   : > { %8957 = vmatpush1.bf16.msra.mxu1 %v12292_v44  ;;  %v3946_v44 = vld [vmem:[#allocation7 + $0x1038] sm:$0xff] }
 0x599   : > { %8711 = vmatpush1.bf16.msra.mxu0 %v12290_v43  ;;  %8958 = vmatprep.subr.bf16.mxu1 %v12301_v46  ;;  %v3942_v43 = vld [vmem:[#allocation7 + $0x1018] sm:$0xff]  ;;  %v12340_v46 = vcombine.low %v3934_v7, %v3938_v32 }
 0x59a   : > { %8712 = vmatprep.subr.bf16.mxu0 %v12299_v9  ;;  %v12338_v9 = vcombine.low %v3933_v28, %v3937_v31  ;;  %v12349_v5 = vcombine.high %v3942_v43, %v3946_v44  ;;  %v3981_v28 = vld [vmem:[#allocation7 + $0x1150] sm:$0xff]  ;;  %v3982_v7 = vld [vmem:[#allocation7 + $0x1158] sm:$0xff] }
 0x59b   : > { %v3985_v31 = vld [vmem:[#allocation7 + $0x1170] sm:$0xff]  ;;  %v3986_v32 = vld [vmem:[#allocation7 + $0x1178] sm:$0xff] }
 0x59c   : > { %8959 = vmatpush1.bf16.msra.mxu1 %v12300_v58  ;;  %v3954_v58 = vld [vmem:[#allocation7 + $0x1078] sm:$0xff] }
 0x59d   : > { %8713 = vmatpush1.bf16.msra.mxu0 %v12298_v57  ;;  %8960 = vmatprep.subr.bf16.mxu1 %v12309_v30  ;;  %v3950_v57 = vld [vmem:[#allocation7 + $0x1058] sm:$0xff]  ;;  %v12348_v30 = vcombine.low %v3942_v43, %v3946_v44 }
 0x59e   : > { %8714 = vmatprep.subr.bf16.mxu0 %v12307_v60  ;;  %v12346_v60 = vcombine.low %v3941_v35, %v3945_v38  ;;  %v12357_v59 = vcombine.high %v3950_v57, %v3954_v58  ;;  %v3989_v35 = vld [vmem:[#allocation7 + $0x1190] sm:$0xff]  ;;  %v3990_v43 = vld [vmem:[#allocation7 + $0x1198] sm:$0xff] }
 0x59f   : > { %v3993_v38 = vld [vmem:[#allocation7 + $0x11b0] sm:$0xff]  ;;  %v3994_v44 = vld [vmem:[#allocation7 + $0x11b8] sm:$0xff] }
 0x5a0   : > { %8961 = vmatpush1.bf16.msra.mxu1 %v12308_v4  ;;  %v3962_v4 = vld [vmem:[#allocation7 + $0x10b8] sm:$0xff] }
 0x5a1   : > { %8715 = vmatpush1.bf16.msra.mxu0 %v12306_v3  ;;  %8962 = vmatprep.subr.bf16.mxu1 %v12317_v10  ;;  %v3958_v3 = vld [vmem:[#allocation7 + $0x1098] sm:$0xff]  ;;  %v12356_v10 = vcombine.low %v3950_v57, %v3954_v58 }
 0x5a2   : > { %8716 = vmatprep.subr.bf16.mxu0 %v12315_v8  ;;  %v12354_v8 = vcombine.low %v3949_v56, %v3953_v52  ;;  %v12365_v13 = vcombine.high %v3958_v3, %v3962_v4  ;;  %v3997_v56 = vld [vmem:[#allocation7 + $0x11d0] sm:$0xff]  ;;  %v3998_v57 = vld [vmem:[#allocation7 + $0x11d8] sm:$0xff] }
 0x5a3   : > { %v4001_v52 = vld [vmem:[#allocation7 + $0x11f0] sm:$0xff]  ;;  %v4002_v58 = vld [vmem:[#allocation7 + $0x11f8] sm:$0xff] }
 0x5a4   : > { %8963 = vmatpush1.bf16.msra.mxu1 %v12316_v16  ;;  %v3970_v16 = vld [vmem:[#allocation7 + $0x10f8] sm:$0xff] }
 0x5a5   : > { %8717 = vmatpush1.bf16.msra.mxu0 %v12314_v15  ;;  %8964 = vmatprep.subr.bf16.mxu1 %v12325_v18  ;;  %v3966_v15 = vld [vmem:[#allocation7 + $0x10d8] sm:$0xff]  ;;  %v12371_v18 = vcombine.high %v3965_v14, %v3969_v45 }
 0x5a6   : > { %8718 = vmatprep.subr.bf16.mxu0 %v12323_v25  ;;  %v12362_v25 = vcombine.low %v3957_v17, %v3961_v1  ;;  %v12373_v19 = vcombine.high %v3966_v15, %v3970_v16  ;;  %v4005_v17 = vld [vmem:[#allocation7 + $0x1210] sm:$0xff] }
 0x5a7   : > { %v4009_v1 = vld [vmem:[#allocation7 + $0x1230] sm:$0xff] }
 0x5a8   : > { %8965 = vmatpush1.bf16.msra.mxu1 %v12324_v48  ;;  %v12370_v48 = vcombine.low %v3965_v14, %v3969_v45  ;;  %v4013_v14 = vld [vmem:[#allocation7 + $0x1250] sm:$0xff] }
 0x5a9   : > { %8719 = vmatpush1.bf16.msra.mxu0 %v12322_v22  ;;  %8966 = vmatprep.subr.bf16.mxu1 %v12333_v27  ;;  %v3978_v22 = vld [vmem:[#allocation7 + $0x1138] sm:$0xff]  ;;  %v12379_v27 = vcombine.high %v3973_v20, %v3977_v21  ;;  %v4017_v45 = vld [vmem:[#allocation7 + $0x1270] sm:$0xff] }
 0x5aa   : > { %8720 = vmatprep.subr.bf16.mxu0 %v12331_v23  ;;  %v12372_v23 = vcombine.low %v3966_v15, %v3970_v16  ;;  %v4014_v15 = vld [vmem:[#allocation7 + $0x1258] sm:$0xff] }
 0x5ab   : > { %v4018_v16 = vld [vmem:[#allocation7 + $0x1278] sm:$0xff] }
 0x5ac   : > { %8967 = vmatpush1.bf16.msra.mxu1 %v12332_v53  ;;  %v12380_v53 = vcombine.low %v3974_v12, %v3978_v22 }
 0x5ad   : > { %8721 = vmatpush1.bf16.msra.mxu0 %v12330_v33  ;;  %8968 = vmatprep.subr.bf16.mxu1 %v12341_v62  ;;  %v12378_v33 = vcombine.low %v3973_v20, %v3977_v21  ;;  %v12389_v62 = vcombine.high %v3982_v7, %v3986_v32  ;;  %v4021_v20 = vld [vmem:[#allocation7 + $0x1290] sm:$0xff] }
 0x5ae   : > { %8722 = vmatprep.subr.bf16.mxu0 %v12339_v36  ;;  %v12387_v36 = vcombine.high %v3981_v28, %v3985_v31  ;;  %v4025_v21 = vld [vmem:[#allocation7 + $0x12b0] sm:$0xff] }
 0x5b0   : > { %8969 = vmatpush1.bf16.msra.mxu1 %v12340_v46  ;;  %v12388_v46 = vcombine.low %v3982_v7, %v3986_v32  ;;  %v4030_v7 = vld [vmem:[#allocation7 + $0x12d8] sm:$0xff] }
 0x5b1   : > { %8723 = vmatpush1.bf16.msra.mxu0 %v12338_v9  ;;  %8979 = vmatprep.subr.bf16.mxu1 %v12349_v5  ;;  %v12386_v9 = vcombine.low %v3981_v28, %v3985_v31  ;;  %v12397_v5 = vcombine.high %v3990_v43, %v3994_v44  ;;  %v4029_v28 = vld [vmem:[#allocation7 + $0x12d0] sm:$0xff]  ;;  %v4034_v32 = vld [vmem:[#allocation7 + $0x12f8] sm:$0xff] }
 0x5b2   : > { %8733 = vmatprep.subr.bf16.mxu0 %v12347_v47  ;;  %v12395_v47 = vcombine.high %v3989_v35, %v3993_v38  ;;  %v4033_v31 = vld [vmem:[#allocation7 + $0x12f0] sm:$0xff] }
 0x5b3   : > { %8971 = vmatmul.mubr.bf16.vlgmr.msra.gmra.mrb[4].mxu1 %v15351_v39 }
 0x5b4   : > { %8725 = vmatmul.mubr.bf16.vlgmr.msra.gmra.mrb[4].mxu0 %v15351_v39  ;;  %8980 = vmatpush1.bf16.msra.mxu1 %v12348_v30  ;;  %v12364_v39 = vcombine.low %v3958_v3, %v3962_v4  ;;  %v12396_v30 = vcombine.low %v3990_v43, %v3994_v44  ;;  %v4006_v3 = vld [vmem:[#allocation7 + $0x1218] sm:$0xff] }
 0x5b5   : > { %8734 = vmatpush1.bf16.msra.mxu0 %v12346_v60  ;;  %8981 = vmatprep.subr.bf16.mxu1 %v12357_v59  ;;  %v12394_v60 = vcombine.low %v3989_v35, %v3993_v38  ;;  %v12405_v59 = vcombine.high %v3998_v57, %v4002_v58  ;;  %v4010_v4 = vld [vmem:[#allocation7 + $0x1238] sm:$0xff]  ;;  %v4037_v35 = vld [vmem:[#allocation7 + $0x1310] sm:$0xff] }
 0x5b6   : > { %8735 = vmatprep.subr.bf16.mxu0 %v12355_v29  ;;  %8765 = vmatprep.mubr.bf16.mxu0 %v15353_v51  ;;  %v12403_v29 = vcombine.high %v3997_v56, %v4001_v52  ;;  %v4041_v38 = vld [vmem:[#allocation7 + $0x1330] sm:$0xff]  ;;  %v4038_v43 = vld [vmem:[#allocation7 + $0x1318] sm:$0xff] }
 0x5b7   : > { %9011 = vmatprep.mubr.bf16.mxu1 %v15353_v51  ;;  %v12381_v51 = vcombine.high %v3974_v12, %v3978_v22  ;;  %v4022_v12 = vld [vmem:[#allocation7 + $0x1298] sm:$0xff] }
 0x5b8   : > { %8982 = vmatpush1.bf16.msra.mxu1 %v12356_v10  ;;  %v12404_v10 = vcombine.low %v3998_v57, %v4002_v58  ;;  %v4026_v22 = vld [vmem:[#allocation7 + $0x12b8] sm:$0xff] }
 0x5b9   : > { %8736 = vmatpush1.bf16.msra.mxu0 %v12354_v8  ;;  %8983 = vmatprep.subr.bf16.mxu1 %v12365_v13  ;;  %v12402_v8 = vcombine.low %v3997_v56, %v4001_v52  ;;  %v12413_v13 = vcombine.high %v4006_v3, %v4010_v4  ;;  %v4042_v44 = vld [vmem:[#allocation7 + $0x1338] sm:$0xff]  ;;  %v4045_v56 = vld [vmem:[#allocation7 + $0x1350] sm:$0xff] }
 0x5ba   : > { %8737 = vmatprep.subr.bf16.mxu0 %v12363_v11  ;;  %v12411_v11 = vcombine.high %v4005_v17, %v4009_v1  ;;  %v4049_v52 = vld [vmem:[#allocation7 + $0x1370] sm:$0xff]  ;;  %v4046_v57 = vld [vmem:[#allocation7 + $0x1358] sm:$0xff] }
 0x5bb   : > { %v4050_v58 = vld [vmem:[#allocation7 + $0x1378] sm:$0xff] }
 0x5bc   : > { %8984 = vmatpush1.bf16.msra.mxu1 %v12364_v39  ;;  %v12412_v39 = vcombine.low %v4006_v3, %v4010_v4  ;;  %v4054_v3 = vld [vmem:[#allocation7 + $0x1398] sm:$0xff] }
 0x5bd   : > { %8738 = vmatpush1.bf16.msra.mxu0 %v12362_v25  ;;  %8985 = vmatprep.subr.bf16.mxu1 %v12373_v19  ;;  %v12410_v25 = vcombine.low %v4005_v17, %v4009_v1  ;;  %v12421_v19 = vcombine.high %v4014_v15, %v4018_v16  ;;  %v4053_v17 = vld [vmem:[#allocation7 + $0x1390] sm:$0xff]  ;;  %v4058_v4 = vld [vmem:[#allocation7 + $0x13b8] sm:$0xff] }
 0x5be   : > { %8739 = vmatprep.subr.bf16.mxu0 %v12371_v18  ;;  %v12419_v18 = vcombine.high %v4013_v14, %v4017_v45  ;;  %v4057_v1 = vld [vmem:[#allocation7 + $0x13b0] sm:$0xff] }
 0x5c0   : > { %8986 = vmatpush1.bf16.msra.mxu1 %v12372_v23  ;;  %v12420_v23 = vcombine.low %v4014_v15, %v4018_v16  ;;  %v4062_v15 = vld [vmem:[#allocation7 + $0x13d8] sm:$0xff] }
 0x5c1   : > { %8740 = vmatpush1.bf16.msra.mxu0 %v12370_v48  ;;  %8987 = vmatprep.subr.bf16.mxu1 %v12381_v51  ;;  %v12418_v48 = vcombine.low %v4013_v14, %v4017_v45  ;;  %v12429_v51 = vcombine.high %v4022_v12, %v4026_v22  ;;  %v4061_v14 = vld [vmem:[#allocation7 + $0x13d0] sm:$0xff]  ;;  %v4066_v16 = vld [vmem:[#allocation7 + $0x13f8] sm:$0xff] }
 0x5c2   : > { %8741 = vmatprep.subr.bf16.mxu0 %v12379_v27  ;;  %v12427_v27 = vcombine.high %v4021_v20, %v4025_v21  ;;  %v4065_v45 = vld [vmem:[#allocation7 + $0x13f0] sm:$0xff] }
 0x5c4   : > { %8988 = vmatpush1.bf16.msra.mxu1 %v12380_v53  ;;  %v12428_v53 = vcombine.low %v4022_v12, %v4026_v22  ;;  %v4070_v12 = vld [vmem:[#allocation7 + $0x1418] sm:$0xff] }
 0x5c5   : > { %8742 = vmatpush1.bf16.msra.mxu0 %v12378_v33  ;;  %8989 = vmatprep.subr.bf16.mxu1 %v12389_v62  ;;  %v12426_v33 = vcombine.low %v4021_v20, %v4025_v21  ;;  %v12437_v62 = vcombine.high %v4030_v7, %v4034_v32  ;;  %v4069_v20 = vld [vmem:[#allocation7 + $0x1410] sm:$0xff]  ;;  %v4074_v22 = vld [vmem:[#allocation7 + $0x1438] sm:$0xff] }
 0x5c6   : > { %8743 = vmatprep.subr.bf16.mxu0 %v12387_v36  ;;  %v12435_v36 = vcombine.high %v4029_v28, %v4033_v31  ;;  %v4073_v21 = vld [vmem:[#allocation7 + $0x1430] sm:$0xff] }
 0x5c8   : > { %8990 = vmatpush1.bf16.msra.mxu1 %v12388_v46  ;;  %v12436_v46 = vcombine.low %v4030_v7, %v4034_v32  ;;  %v4078_v7 = vld [vmem:[#allocation7 + $0x1458] sm:$0xff] }
 0x5c9   : > { %8744 = vmatpush1.bf16.msra.mxu0 %v12386_v9  ;;  %8991 = vmatprep.subr.bf16.mxu1 %v12397_v5  ;;  %v12434_v9 = vcombine.low %v4029_v28, %v4033_v31  ;;  %v12445_v5 = vcombine.high %v4038_v43, %v4042_v44  ;;  %v4077_v28 = vld [vmem:[#allocation7 + $0x1450] sm:$0xff]  ;;  %v4082_v32 = vld [vmem:[#allocation7 + $0x1478] sm:$0xff] }
 0x5ca   : > { %8745 = vmatprep.subr.bf16.mxu0 %v12395_v47  ;;  %v12443_v47 = vcombine.high %v4037_v35, %v4041_v38  ;;  %v4081_v31 = vld [vmem:[#allocation7 + $0x1470] sm:$0xff] }
 0x5cc   : > { %8992 = vmatpush1.bf16.msra.mxu1 %v12396_v30  ;;  %v12444_v30 = vcombine.low %v4038_v43, %v4042_v44  ;;  %v4086_v43 = vld [vmem:[#allocation7 + $0x1498] sm:$0xff] }
 0x5cd   : > { %8746 = vmatpush1.bf16.msra.mxu0 %v12394_v60  ;;  %8993 = vmatprep.subr.bf16.mxu1 %v12405_v59  ;;  %v12442_v60 = vcombine.low %v4037_v35, %v4041_v38  ;;  %v12453_v59 = vcombine.high %v4046_v57, %v4050_v58  ;;  %v4085_v35 = vld [vmem:[#allocation7 + $0x1490] sm:$0xff]  ;;  %v4090_v44 = vld [vmem:[#allocation7 + $0x14b8] sm:$0xff] }
 0x5ce   : > { %8747 = vmatprep.subr.bf16.mxu0 %v12403_v29  ;;  %v12451_v29 = vcombine.high %v4045_v56, %v4049_v52  ;;  %v4089_v38 = vld [vmem:[#allocation7 + $0x14b0] sm:$0xff] }
 0x5d0   : > { %8994 = vmatpush1.bf16.msra.mxu1 %v12404_v10  ;;  %v12452_v10 = vcombine.low %v4046_v57, %v4050_v58  ;;  %v4094_v57 = vld [vmem:[#allocation7 + $0x14d8] sm:$0xff] }
 0x5d1   : > { %8748 = vmatpush1.bf16.msra.mxu0 %v12402_v8  ;;  %8995 = vmatprep.subr.bf16.mxu1 %v12413_v13  ;;  %v12450_v8 = vcombine.low %v4045_v56, %v4049_v52  ;;  %v12461_v13 = vcombine.high %v4054_v3, %v4058_v4  ;;  %v4093_v56 = vld [vmem:[#allocation7 + $0x14d0] sm:$0xff]  ;;  %v4098_v58 = vld [vmem:[#allocation7 + $0x14f8] sm:$0xff] }
 0x5d2   : > { %8749 = vmatprep.subr.bf16.mxu0 %v12411_v11  ;;  %v12459_v11 = vcombine.high %v4053_v17, %v4057_v1  ;;  %v4097_v52 = vld [vmem:[#allocation7 + $0x14f0] sm:$0xff] }
 0x5d4   : > { %8996 = vmatpush1.bf16.msra.mxu1 %v12412_v39  ;;  %v12460_v39 = vcombine.low %v4054_v3, %v4058_v4  ;;  %v4106_v3 = vld [vmem:[#allocation7 + $0x1538] sm:$0xff]  ;;  %v12498_v4 = vcombine.low %v4093_v56, %v4097_v52 }
 0x5d5   : > { %8750 = vmatpush1.bf16.msra.mxu0 %v12410_v25  ;;  %8997 = vmatprep.subr.bf16.mxu1 %v12421_v19  ;;  %v12458_v25 = vcombine.low %v4053_v17, %v4057_v1  ;;  %v12469_v19 = vcombine.high %v4062_v15, %v4066_v16  ;;  %v4105_v17 = vld [vmem:[#allocation7 + $0x1530] sm:$0xff]  ;;  %v4102_v1 = vld [vmem:[#allocation7 + $0x1518] sm:$0xff] }
 0x5d6   : > { %8751 = vmatprep.subr.bf16.mxu0 %v12419_v18  ;;  %v12467_v18 = vcombine.high %v4061_v14, %v4065_v45 }
 0x5d8   : > { %8998 = vmatpush1.bf16.msra.mxu1 %v12420_v23  ;;  %v12468_v23 = vcombine.low %v4062_v15, %v4066_v16  ;;  %v12508_v16 = vcombine.low %v4102_v1, %v4106_v3 }
 0x5d9   : > { %8752 = vmatpush1.bf16.msra.mxu0 %v12418_v48  ;;  %8999 = vmatprep.subr.bf16.mxu1 %v12429_v51  ;;  %v12466_v48 = vcombine.low %v4061_v14, %v4065_v45  ;;  %v12477_v51 = vcombine.high %v4070_v12, %v4074_v22  ;;  %v4110_v14 = vld [vmem:[#allocation7 + $0x1558] sm:$0xff] }
 0x5da   : > { %8753 = vmatprep.subr.bf16.mxu0 %v12427_v27  ;;  %v12475_v27 = vcombine.high %v4069_v20, %v4073_v21  ;;  %v4114_v45 = vld [vmem:[#allocation7 + $0x1578] sm:$0xff] }
 0x5dc   : > { %9000 = vmatpush1.bf16.msra.mxu1 %v12428_v53  ;;  %v12476_v53 = vcombine.low %v4070_v12, %v4074_v22  ;;  %v12516_v22 = vcombine.low %v4110_v14, %v4114_v45 }
 0x5dd   : > { %8754 = vmatpush1.bf16.msra.mxu0 %v12426_v33  ;;  %9001 = vmatprep.subr.bf16.mxu1 %v12437_v62  ;;  %v12474_v33 = vcombine.low %v4069_v20, %v4073_v21  ;;  %v12485_v62 = vcombine.high %v4078_v7, %v4082_v32  ;;  %v4118_v20 = vld [vmem:[#allocation7 + $0x1598] sm:$0xff] }
 0x5de   : > { %8755 = vmatprep.subr.bf16.mxu0 %v12435_v36  ;;  %v12483_v36 = vcombine.high %v4077_v28, %v4081_v31  ;;  %v4122_v21 = vld [vmem:[#allocation7 + $0x15b8] sm:$0xff] }
 0x5e0   : > { %9002 = vmatpush1.bf16.msra.mxu1 %v12436_v46  ;;  %v12484_v46 = vcombine.low %v4078_v7, %v4082_v32  ;;  %v12524_v32 = vcombine.low %v4118_v20, %v4122_v21 }
 0x5e1   : > { %8756 = vmatpush1.bf16.msra.mxu0 %v12434_v9  ;;  %9003 = vmatprep.subr.bf16.mxu1 %v12445_v5  ;;  %v12482_v9 = vcombine.low %v4077_v28, %v4081_v31  ;;  %v12493_v5 = vcombine.high %v4086_v43, %v4090_v44  ;;  %v4126_v28 = vld [vmem:[#allocation7 + $0x15d8] sm:$0xff] }
 0x5e2   : > { %8757 = vmatprep.subr.bf16.mxu0 %v12443_v47  ;;  %v12491_v47 = vcombine.high %v4085_v35, %v4089_v38  ;;  %v4130_v31 = vld [vmem:[#allocation7 + $0x15f8] sm:$0xff] }
 0x5e4   : > { %9004 = vmatpush1.bf16.msra.mxu1 %v12444_v30  ;;  %v12499_v30 = vcombine.high %v4093_v56, %v4097_v52  ;;  %v4142_v56 = vld [vmem:[#allocation7 + $0x1658] sm:$0xff] }
 0x5e5   : > { %8758 = vmatpush1.bf16.msra.mxu0 %v12442_v60  ;;  %9005 = vmatprep.subr.bf16.mxu1 %v12453_v59  ;;  %v12490_v60 = vcombine.low %v4085_v35, %v4089_v38  ;;  %v4101_v59 = vld [vmem:[#allocation7 + $0x1510] sm:$0xff]  ;;  %v4134_v35 = vld [vmem:[#allocation7 + $0x1618] sm:$0xff] }
 0x5e6   : > { %8759 = vmatprep.subr.bf16.mxu0 %v12451_v29  ;;  %v12501_v29 = vcombine.high %v4094_v57, %v4098_v58  ;;  %v12506_v15 = vcombine.low %v4101_v59, %v4105_v17  ;;  %v4138_v38 = vld [vmem:[#allocation7 + $0x1638] sm:$0xff] }
 0x5e7   : > { %v4146_v52 = vld [vmem:[#allocation7 + $0x1678] sm:$0xff] }
 0x5e8   : > { %9006 = vmatpush1.bf16.msra.mxu1 %v12452_v10  ;;  %v12507_v10 = vcombine.high %v4101_v59, %v4105_v17  ;;  %v4150_v59 = vld [vmem:[#allocation7 + $0x1698] sm:$0xff] }
 0x5e9   : > { %8760 = vmatpush1.bf16.msra.mxu0 %v12450_v8  ;;  %9007 = vmatprep.subr.bf16.mxu1 %v12461_v13  ;;  %v12500_v8 = vcombine.low %v4094_v57, %v4098_v58  ;;  %v4113_v13 = vld [vmem:[#allocation7 + $0x1570] sm:$0xff]  ;;  %v12540_v58 = vcombine.low %v4134_v35, %v4138_v38  ;;  %v4154_v17 = vld [vmem:[#allocation7 + $0x16b8] sm:$0xff] }
 0x5ea   : > { %8761 = vmatprep.subr.bf16.mxu0 %v12459_v11  ;;  %v4109_v11 = vld [vmem:[#allocation7 + $0x1550] sm:$0xff] }
 0x5eb   : > { %v12514_v12 = vcombine.low %v4109_v11, %v4113_v13 }
 0x5ec   : > { %9008 = vmatpush1.bf16.msra.mxu1 %v12460_v39  ;;  %v12517_v39 = vcombine.high %v4110_v14, %v4114_v45  ;;  %v12556_v45 = vcombine.low %v4150_v59, %v4154_v17 }
 0x5ed   : > { %8762 = vmatpush1.bf16.msra.mxu0 %v12458_v25  ;;  %9009 = vmatprep.subr.bf16.mxu1 %v12469_v19  ;;  %v12515_v25 = vcombine.high %v4109_v11, %v4113_v13  ;;  %v4121_v19 = vld [vmem:[#allocation7 + $0x15b0] sm:$0xff]  ;;  %v4158_v11 = vld [vmem:[#allocation7 + $0x16d8] sm:$0xff] }
 0x5ee   : > { %8763 = vmatprep.subr.bf16.mxu0 %v12467_v18  ;;  %v4117_v18 = vld [vmem:[#allocation7 + $0x1590] sm:$0xff]  ;;  %v4162_v13 = vld [vmem:[#allocation7 + $0x16f8] sm:$0xff] }
 0x5ef   : > { %v12522_v7 = vcombine.low %v4117_v18, %v4121_v19 }
 0x5f0   : > { %9010 = vmatpush1.bf16.msra.mxu1 %v12468_v23  ;;  %v12525_v23 = vcombine.high %v4118_v20, %v4122_v21  ;;  %v12564_v21 = vcombine.low %v4158_v11, %v4162_v13 }
 0x5f1   : > { %8764 = vmatpush1.bf16.msra.mxu0 %v12466_v48  ;;  %9020 = vmatprep.subr.bf16.mxu1 %v12477_v51  ;;  %v12523_v48 = vcombine.high %v4117_v18, %v4121_v19  ;;  %v4129_v51 = vld [vmem:[#allocation7 + $0x15f0] sm:$0xff]  ;;  %v4166_v18 = vld [vmem:[#allocation7 + $0x1718] sm:$0xff] }
 0x5f2   : > { %8774 = vmatprep.subr.bf16.mxu0 %v12475_v27  ;;  %v4125_v27 = vld [vmem:[#allocation7 + $0x15d0] sm:$0xff]  ;;  %v4170_v19 = vld [vmem:[#allocation7 + $0x1738] sm:$0xff] }
 0x5f3   : > { %9012 = vmatmul.mubr.bf16.vlgmr.msra.gmra.mrb[4].mxu1 %v15369_v42 }
 0x5f4   : > { %8766 = vmatmul.mubr.bf16.vlgmr.msra.gmra.mrb[4].mxu0 %v15369_v42  ;;  %9021 = vmatpush1.bf16.msra.mxu1 %v12476_v53  ;;  %v12492_v42 = vcombine.low %v4086_v43, %v4090_v44  ;;  %v12533_v53 = vcombine.high %v4126_v28, %v4130_v31  ;;  %v12530_v43 = vcombine.low %v4125_v27, %v4129_v51 }
 0x5f5   : > { %8775 = vmatpush1.bf16.msra.mxu0 %v12474_v33  ;;  %9022 = vmatprep.subr.bf16.mxu1 %v12485_v62  ;;  %v12531_v33 = vcombine.high %v4125_v27, %v4129_v51  ;;  %v4137_v62 = vld [vmem:[#allocation7 + $0x1630] sm:$0xff]  ;;  %v12532_v44 = vcombine.low %v4126_v28, %v4130_v31  ;;  %v4174_v27 = vld [vmem:[#allocation7 + $0x1758] sm:$0xff]  ;;  %v12572_v31 = vcombine.low %v4166_v18, %v4170_v19 }
 0x5f6   : > { %8776 = vmatprep.subr.bf16.mxu0 %v12483_v36  ;;  %8806 = vmatprep.mubr.bf16.mxu0 %v15371_v37  ;;  %v4133_v36 = vld [vmem:[#allocation7 + $0x1610] sm:$0xff]  ;;  %v4178_v51 = vld [vmem:[#allocation7 + $0x1778] sm:$0xff] }
 0x5f7   : > { %9052 = vmatprep.mubr.bf16.mxu1 %v15371_v37  ;;  %v12509_v37 = vcombine.high %v4102_v1, %v4106_v3  ;;  %v12538_v57 = vcombine.low %v4133_v36, %v4137_v62  ;;  %v12548_v3 = vcombine.low %v4142_v56, %v4146_v52 }
 0x5f8   : > { %9023 = vmatpush1.bf16.msra.mxu1 %v12484_v46  ;;  %v12541_v46 = vcombine.high %v4134_v35, %v4138_v38  ;;  %v12580_v38 = vcombine.low %v4174_v27, %v4178_v51 }
 0x5f9   : > { %8777 = vmatpush1.bf16.msra.mxu0 %v12482_v9  ;;  %9024 = vmatprep.subr.bf16.mxu1 %v12493_v5  ;;  %v12539_v9 = vcombine.high %v4133_v36, %v4137_v62  ;;  %v4145_v5 = vld [vmem:[#allocation7 + $0x1670] sm:$0xff]  ;;  %v4182_v36 = vld [vmem:[#allocation7 + $0x1798] sm:$0xff] }
 0x5fa   : > { %8778 = vmatprep.subr.bf16.mxu0 %v12491_v47  ;;  %v4141_v47 = vld [vmem:[#allocation7 + $0x1650] sm:$0xff]  ;;  %v4186_v62 = vld [vmem:[#allocation7 + $0x17b8] sm:$0xff] }
 0x5fb   : > { %v12546_v1 = vcombine.low %v4141_v47, %v4145_v5 }
 0x5fc   : > { %9025 = vmatpush1.bf16.msra.mxu1 %v12492_v42  ;;  %v12549_v42 = vcombine.high %v4142_v56, %v4146_v52  ;;  %v15413_v56 = vld [vmem:[#allocation8] sm:$0xff] }
 0x5fd   : > { %8779 = vmatpush1.bf16.msra.mxu0 %v12490_v60  ;;  %9026 = vmatprep.subr.bf16.mxu1 %v12501_v29  ;;  %v12547_v60 = vcombine.high %v4141_v47, %v4145_v5  ;;  %v4153_v29 = vld [vmem:[#allocation7 + $0x16b0] sm:$0xff]  ;;  %v4190_v47 = vld [vmem:[#allocation7 + $0x17d8] sm:$0xff] }
 0x5fe   : > { %8780 = vmatprep.subr.bf16.mxu0 %v12499_v30  ;;  %v4149_v30 = vld [vmem:[#allocation7 + $0x1690] sm:$0xff]  ;;  %v4194_v5 = vld [vmem:[#allocation7 + $0x17f8] sm:$0xff] }
 0x5ff   : > { %v12554_v14 = vcombine.low %v4149_v30, %v4153_v29 }
 0x600   : > { %9027 = vmatpush1.bf16.msra.mxu1 %v12500_v8  ;;  %v12557_v8 = vcombine.high %v4150_v59, %v4154_v17  ;;  %v13775_v59 = vld [vmem:[#allocation10 + $0x4] ss:$16 sps:$4 sm:$0xff]   ;;  %v13778_v17 = vld [vmem:[#allocation10 + $0xc] ss:$16 sps:$4 sm:$0xff]  }
 0x601   : > { %8781 = vmatpush1.bf16.msra.mxu0 %v12498_v4  ;;  %9028 = vmatprep.subr.bf16.mxu1 %v12509_v37  ;;  %v12555_v4 = vcombine.high %v4149_v30, %v4153_v29  ;;  %v4161_v37 = vld [vmem:[#allocation7 + $0x16f0] sm:$0xff]  ;;  %v12596_v29 = vcombine.low %v4190_v47, %v4194_v5 }
 0x602   : > { %8782 = vmatprep.subr.bf16.mxu0 %v12507_v10  ;;  %v4157_v10 = vld [vmem:[#allocation7 + $0x16d0] sm:$0xff] }
 0x603   : > { %v12562_v20 = vcombine.low %v4157_v10, %v4161_v37 }
 0x604   : > { %9029 = vmatpush1.bf16.msra.mxu1 %v12508_v16  ;;  %v12565_v16 = vcombine.high %v4158_v11, %v4162_v13  ;;  %v13779_v11 = vld [vmem:[#allocation10 + $0x20] ss:$16 sps:$4 sm:$0xff]   ;;  %v13782_v13 = vld [vmem:[#allocation10 + $0x28] ss:$16 sps:$4 sm:$0xff]  }
 0x605   : > { %8783 = vmatpush1.bf16.msra.mxu0 %v12506_v15  ;;  %9030 = vmatprep.subr.bf16.mxu1 %v12517_v39  ;;  %v12563_v15 = vcombine.high %v4157_v10, %v4161_v37  ;;  %v4169_v39 = vld [vmem:[#allocation7 + $0x1730] sm:$0xff] }
 0x606   : > { %8784 = vmatprep.subr.bf16.mxu0 %v12515_v25  ;;  %v4165_v25 = vld [vmem:[#allocation7 + $0x1710] sm:$0xff] }
 0x607   : > { %v12570_v28 = vcombine.low %v4165_v25, %v4169_v39  ;;  %v13784_v37 = vld [vmem:[#allocation10 + $0x2c] ss:$16 sps:$4 sm:$0xff]  }
 0x608   : > { %9031 = vmatpush1.bf16.msra.mxu1 %v12516_v22  ;;  %v12573_v22 = vcombine.high %v4166_v18, %v4170_v19  ;;  %v13799_v18 = vld [vmem:[#allocation10 + $0x84] ss:$16 sps:$4 sm:$0xff]   ;;  %v13802_v19 = vld [vmem:[#allocation10 + $0x8c] ss:$16 sps:$4 sm:$0xff]  }
 0x609   : > { %8785 = vmatpush1.bf16.msra.mxu0 %v12514_v12  ;;  %9032 = vmatprep.subr.bf16.mxu1 %v12525_v23  ;;  %v12571_v12 = vcombine.high %v4165_v25, %v4169_v39  ;;  %v4177_v23 = vld [vmem:[#allocation7 + $0x1770] sm:$0xff] }
 0x60a   : > { %8786 = vmatprep.subr.bf16.mxu0 %v12523_v48  ;;  %v4173_v48 = vld [vmem:[#allocation7 + $0x1750] sm:$0xff] }
 0x60b   : > { %v12578_v35 = vcombine.low %v4173_v48, %v4177_v23  ;;  %v13796_v25 = vld [vmem:[#allocation10 + $0x6c] ss:$16 sps:$4 sm:$0xff]   ;;  %v13794_v39 = vld [vmem:[#allocation10 + $0x68] ss:$16 sps:$4 sm:$0xff]  }
 0x60c   : > { %9033 = vmatpush1.bf16.msra.mxu1 %v12524_v32  ;;  %v12581_v32 = vcombine.high %v4174_v27, %v4178_v51  ;;  %v13811_v27 = vld [vmem:[#allocation10 + $0xc4] ss:$16 sps:$4 sm:$0xff]   ;;  %v13814_v51 = vld [vmem:[#allocation10 + $0xcc] ss:$16 sps:$4 sm:$0xff]  }
 0x60d   : > { %8787 = vmatpush1.bf16.msra.mxu0 %v12522_v7  ;;  %9034 = vmatprep.subr.bf16.mxu1 %v12533_v53  ;;  %v12579_v7 = vcombine.high %v4173_v48, %v4177_v23  ;;  %v4185_v53 = vld [vmem:[#allocation7 + $0x17b0] sm:$0xff]  ;;  %v13803_v48 = vld [vmem:[#allocation10 + $0xa0] ss:$16 sps:$4 sm:$0xff]  }
 0x60e   : > { %8788 = vmatprep.subr.bf16.mxu0 %v12531_v33  ;;  %v4181_v33 = vld [vmem:[#allocation7 + $0x1790] sm:$0xff] }
 0x60f   : > { %v12586_v52 = vcombine.low %v4181_v33, %v4185_v53  ;;  %v13806_v23 = vld [vmem:[#allocation10 + $0xa8] ss:$16 sps:$4 sm:$0xff]  }
 0x610   : > { %9035 = vmatpush1.bf16.msra.mxu1 %v12532_v44  ;;  %v12589_v44 = vcombine.high %v4182_v36, %v4186_v62 }
 0x611   : > { %8789 = vmatpush1.bf16.msra.mxu0 %v12530_v43  ;;  %9036 = vmatprep.subr.bf16.mxu1 %v12541_v46  ;;  %v12587_v43 = vcombine.high %v4181_v33, %v4185_v53  ;;  %v4193_v46 = vld [vmem:[#allocation7 + $0x17f0] sm:$0xff]  ;;  %v13815_v33 = vld [vmem:[#allocation10 + $0xe0] ss:$16 sps:$4 sm:$0xff]  }
 0x612   : > { %8790 = vmatprep.subr.bf16.mxu0 %v12539_v9  ;;  %v4189_v9 = vld [vmem:[#allocation7 + $0x17d0] sm:$0xff] }
 0x613   : > { %v12594_v30 = vcombine.low %v4189_v9, %v4193_v46  ;;  %v13818_v53 = vld [vmem:[#allocation10 + $0xe8] ss:$16 sps:$4 sm:$0xff]  }
 0x614   : > { %9037 = vmatpush1.bf16.msra.mxu1 %v12540_v58  ;;  %v12595_v58 = vcombine.high %v4189_v9, %v4193_v46  ;;  %v13827_v9 = vld [vmem:[#allocation10 + $0x120] ss:$16 sps:$4 sm:$0xff]   ;;  %v13830_v46 = vld [vmem:[#allocation10 + $0x128] ss:$16 sps:$4 sm:$0xff]  }
 0x615   : > { %8791 = vmatpush1.bf16.msra.mxu0 %v12538_v57  ;;  %9038 = vmatprep.subr.bf16.mxu1 %v12549_v42  ;;  %v12588_v57 = vcombine.low %v4182_v36, %v4186_v62  ;;  %v4204_v42 = vrot.slane %v15413_v56, %v15257_v50  ;;  %v13823_v36 = vld [vmem:[#allocation10 + $0x104] ss:$16 sps:$4 sm:$0xff]   ;;  %v13826_v62 = vld [vmem:[#allocation10 + $0x10c] ss:$16 sps:$4 sm:$0xff]  }
 0x616   : > { %8792 = vmatprep.subr.bf16.mxu0 %v12547_v60  ;;  %v12597_v60 = vcombine.high %v4190_v47, %v4194_v5  ;;  %v13835_v47 = vld [vmem:[#allocation10 + $0x144] ss:$16 sps:$4 sm:$0xff]   ;;  %v13838_v5 = vld [vmem:[#allocation10 + $0x14c] ss:$16 sps:$4 sm:$0xff]  }
 0x618   : > { %9039 = vmatpush1.bf16.msra.mxu1 %v12548_v3  ;;  %v13773_v3 = vld [vmem:[#allocation10] ss:$16 sps:$4 sm:$0xff]  }
 0x619   : > { %8793 = vmatpush1.bf16.msra.mxu0 %v12546_v1  ;;  %9040 = vmatprep.subr.bf16.mxu1 %v12557_v8  ;;  %v12958_v1 = vadd.f32 %v15401_v2, %v4204_v42  ;;  %v13781_v8 = vld [vmem:[#allocation10 + $0x24] ss:$16 sps:$4 sm:$0xff]   ;;  %v13790_v2 = vld [vmem:[#allocation10 + $0x4c] ss:$16 sps:$4 sm:$0xff]   ;;  %v13839_v42 = vld [vmem:[#allocation10 + $0x160] ss:$16 sps:$4 sm:$0xff]  }
 0x61a   : > { %8794 = vmatprep.subr.bf16.mxu0 %v12555_v4  ;;  %v13776_v4 = vld [vmem:[#allocation10 + $0x8] ss:$16 sps:$4 sm:$0xff]  }
 0x61b   : > { %v9062_v10 = vpack.c.bf16 %v12958_v1, %v12958_v1  ;;  %v13848_v1 = vld [vmem:[#allocation10 + $0x188] ss:$16 sps:$4 sm:$0xff]  }
 0x61c   : > { %9041 = vmatpush1.bf16.msra.mxu1 %v12556_v45  ;;  %v13785_v45 = vld [vmem:[#allocation10 + $0x40] ss:$16 sps:$4 sm:$0xff]  }
 0x61d   : > { %8795 = vmatpush1.bf16.msra.mxu0 %v12554_v14  ;;  %9042 = vmatprep.subr.bf16.mxu1 %v12565_v16  ;;  %v13787_v14 = vld [vmem:[#allocation10 + $0x44] ss:$16 sps:$4 sm:$0xff]  }
 0x61e   : > { %8796 = vmatprep.subr.bf16.mxu0 %v12563_v15  ;;  %v13788_v15 = vld [vmem:[#allocation10 + $0x48] ss:$16 sps:$4 sm:$0xff]   ;;  %v13793_v16 = vld [vmem:[#allocation10 + $0x64] ss:$16 sps:$4 sm:$0xff]  }
 0x620   : > { %9043 = vmatpush1.bf16.msra.mxu1 %v12564_v21  ;;  %v13800_v21 = vld [vmem:[#allocation10 + $0x88] ss:$16 sps:$4 sm:$0xff]  }
 0x621   : > { %8797 = vmatpush1.bf16.msra.mxu0 %v12562_v20  ;;  %9044 = vmatprep.subr.bf16.mxu1 %v12573_v22  ;;  %v13797_v20 = vld [vmem:[#allocation10 + $0x80] ss:$16 sps:$4 sm:$0xff]   ;;  %v13808_v22 = vld [vmem:[#allocation10 + $0xac] ss:$16 sps:$4 sm:$0xff]  }
 0x622   : > { %8798 = vmatprep.subr.bf16.mxu0 %v12571_v12  ;;  %v13805_v12 = vld [vmem:[#allocation10 + $0xa4] ss:$16 sps:$4 sm:$0xff]  }
 0x624   : > { %9045 = vmatpush1.bf16.msra.mxu1 %v12572_v31  ;;  %v13812_v31 = vld [vmem:[#allocation10 + $0xc8] ss:$16 sps:$4 sm:$0xff]  }
 0x625   : > { %8799 = vmatpush1.bf16.msra.mxu0 %v12570_v28  ;;  %9046 = vmatprep.subr.bf16.mxu1 %v12581_v32  ;;  %v13809_v28 = vld [vmem:[#allocation10 + $0xc0] ss:$16 sps:$4 sm:$0xff]   ;;  %v13820_v32 = vld [vmem:[#allocation10 + $0xec] ss:$16 sps:$4 sm:$0xff]  }
 0x626   : > { %8800 = vmatprep.subr.bf16.mxu0 %v12579_v7  ;;  %v13817_v7 = vld [vmem:[#allocation10 + $0xe4] ss:$16 sps:$4 sm:$0xff]  }
 0x628   : > { %9047 = vmatpush1.bf16.msra.mxu1 %v12580_v38  ;;  %v13824_v38 = vld [vmem:[#allocation10 + $0x108] ss:$16 sps:$4 sm:$0xff]  }
 0x629   : > { %8801 = vmatpush1.bf16.msra.mxu0 %v12578_v35  ;;  %9048 = vmatprep.subr.bf16.mxu1 %v12589_v44  ;;  %v13821_v35 = vld [vmem:[#allocation10 + $0x100] ss:$16 sps:$4 sm:$0xff]   ;;  %v13832_v44 = vld [vmem:[#allocation10 + $0x12c] ss:$16 sps:$4 sm:$0xff]  }
 0x62a   : > { %8802 = vmatprep.subr.bf16.mxu0 %v12587_v43  ;;  %v13829_v43 = vld [vmem:[#allocation10 + $0x124] ss:$16 sps:$4 sm:$0xff]  }
 0x62c   : > { %9049 = vmatpush1.bf16.msra.mxu1 %v12588_v57  ;;  %v13836_v57 = vld [vmem:[#allocation10 + $0x148] ss:$16 sps:$4 sm:$0xff]  }
 0x62d   : > { %8803 = vmatpush1.bf16.msra.mxu0 %v12586_v52  ;;  %9050 = vmatprep.subr.bf16.mxu1 %v12597_v60  ;;  %v13833_v52 = vld [vmem:[#allocation10 + $0x140] ss:$16 sps:$4 sm:$0xff]   ;;  %v13844_v60 = vld [vmem:[#allocation10 + $0x16c] ss:$16 sps:$4 sm:$0xff]  }
 0x62e   : > { %8804 = vmatprep.subr.bf16.mxu0 %v12595_v58  ;;  %v13841_v58 = vld [vmem:[#allocation10 + $0x164] ss:$16 sps:$4 sm:$0xff]  }
 0x630   : > { %9051 = vmatpush1.bf16.msra.mxu1 %v12596_v29  ;;  %v13847_v29 = vld [vmem:[#allocation10 + $0x184] ss:$16 sps:$4 sm:$0xff]  }
 0x631   : > { %8805 = vmatpush1.bf16.msra.mxu0 %v12594_v30  ;;  %10791 = vmatprep.subr.bf16.mxu1 %v13778_v17  ;;  %v13842_v30 = vld [vmem:[#allocation10 + $0x168] ss:$16 sps:$4 sm:$0xff]   ;;  %v13845_v17 = vld [vmem:[#allocation10 + $0x180] ss:$16 sps:$4 sm:$0xff]  }
 0x632   : > { %10627 = vmatprep.subr.bf16.mxu0 %v13775_v59  ;;  %v13850_v59 = vld [vmem:[#allocation10 + $0x18c] ss:$16 sps:$4 sm:$0xff]  }
 0x633   : > { %9053 = vmatmul.mubr.bf16.vlgmr.msra.gmra.mrb[4].mxu1 %v15379_v41 }
 0x634   : > { %8807 = vmatmul.mubr.bf16.vlgmr.msra.gmra.mrb[4].mxu0 %v15379_v41  ;;  %10792 = vmatpush1.bf16.msra.mxu1 %v13776_v4  ;;  %v13791_v41 = vld [vmem:[#allocation10 + $0x60] ss:$16 sps:$4 sm:$0xff]   ;;  %v13856_v4 = vld [vmem:[#allocation10 + $0x1ac] ss:$16 sps:$4 sm:$0xff]  }
 0x635   : > { %10628 = vmatpush1.bf16.msra.mxu0 %v13773_v3  ;;  %10659 = vmatprep.mubr.bf16.mxu0 %v9062_v10  ;;  %v13853_v3 = vld [vmem:[#allocation10 + $0x1a4] ss:$16 sps:$4 sm:$0xff]  }
 0x636   : > { %10823 = vmatprep.mubr.bf16.mxu1 %v9062_v10  ;;  %10629 = vmatprep.subr.bf16.mxu0 %v13781_v8  ;;  %v13851_v8 = vld [vmem:[#allocation10 + $0x1a0] ss:$16 sps:$4 sm:$0xff]   ;;  %v13854_v10 = vld [vmem:[#allocation10 + $0x1a8] ss:$16 sps:$4 sm:$0xff]  }
 0x637   : > { %10793 = vmatprep.subr.bf16.mxu1 %v13784_v37  ;;  %v13859_v37 = vld [vmem:[#allocation10 + $0x1c4] ss:$16 sps:$4 sm:$0xff]  }
 0x638   : > { %10794 = vmatpush1.bf16.msra.mxu1 %v13782_v13  ;;  %v13857_v13 = vld [vmem:[#allocation10 + $0x1c0] ss:$16 sps:$4 sm:$0xff]  }
 0x639   : > { %10630 = vmatpush1.bf16.msra.mxu0 %v13779_v11  ;;  %10795 = vmatprep.subr.bf16.mxu1 %v13790_v2  ;;  %v13862_v11 = vld [vmem:[#allocation10 + $0x1cc] ss:$16 sps:$4 sm:$0xff]   ;;  %v13860_v2 = vld [vmem:[#allocation10 + $0x1c8] ss:$16 sps:$4 sm:$0xff]  }
 0x63a   : > { %10631 = vmatprep.subr.bf16.mxu0 %v13787_v14  ;;  %v4200_v14 = vrot.slane %v15413_v56, %v15254_v49 }
 0x63c   : > { %10796 = vmatpush1.bf16.msra.mxu1 %v13788_v15  ;;  %v13868_v15 = vld [vmem:[#allocation10 + $0x1ec] ss:$16 sps:$4 sm:$0xff]  }
 0x63d   : > { %10632 = vmatpush1.bf16.msra.mxu0 %v13785_v45  ;;  %10797 = vmatprep.subr.bf16.mxu1 %v13796_v25  ;;  %v13865_v45 = vld [vmem:[#allocation10 + $0x1e4] ss:$16 sps:$4 sm:$0xff]   ;;  %v13863_v25 = vld [vmem:[#allocation10 + $0x1e0] ss:$16 sps:$4 sm:$0xff]  }
 0x63e   : > { %10633 = vmatprep.subr.bf16.mxu0 %v13793_v16  ;;  %v4212_v16 = vrot.slane %v15413_v56, %v15277_v55 }
 0x640   : > { %10798 = vmatpush1.bf16.msra.mxu1 %v13794_v39  ;;  %v13866_v39 = vld [vmem:[#allocation10 + $0x1e8] ss:$16 sps:$4 sm:$0xff]  }
 0x641   : > { %10634 = vmatpush1.bf16.msra.mxu0 %v13791_v41  ;;  %10799 = vmatprep.subr.bf16.mxu1 %v13802_v19  ;;  %v12957_v41 = vadd.f32 %v15397_v61, %v4200_v14  ;;  %v13874_v19 = vld [vmem:[#allocation10 + $0x20c] ss:$16 sps:$4 sm:$0xff]   ;;  %v13875_v61 = vld [vmem:[#allocation10 + $0x220] ss:$16 sps:$4 sm:$0xff]  }
 0x642   : > { %10635 = vmatprep.subr.bf16.mxu0 %v13799_v18  ;;  %v13871_v18 = vld [vmem:[#allocation10 + $0x204] ss:$16 sps:$4 sm:$0xff]   ;;  %v13929_v14 = vld [vmem:[#allocation10 + $0x340] ss:$16 sps:$4 sm:$0xff]  }
 0x644   : > { %10800 = vmatpush1.bf16.msra.mxu1 %v13800_v21  ;;  %v13869_v21 = vld [vmem:[#allocation10 + $0x200] ss:$16 sps:$4 sm:$0xff]  }
 0x645   : > { %10636 = vmatpush1.bf16.msra.mxu0 %v13797_v20  ;;  %10801 = vmatprep.subr.bf16.mxu1 %v13808_v22  ;;  %v12960_v20 = vadd.f32 %v15403_v6, %v4212_v16  ;;  %v13872_v22 = vld [vmem:[#allocation10 + $0x208] ss:$16 sps:$4 sm:$0xff]   ;;  %v13886_v6 = vld [vmem:[#allocation10 + $0x24c] ss:$16 sps:$4 sm:$0xff]   ;;  %v13935_v16 = vld [vmem:[#allocation10 + $0x360] ss:$16 sps:$4 sm:$0xff]  }
 0x646   : > { %10637 = vmatprep.subr.bf16.mxu0 %v13805_v12  ;;  %v9061_v12 = vpack.c.bf16 %v12957_v41, %v12957_v41  ;;  %v13943_v41 = vld [vmem:[#allocation10 + $0x384] ss:$16 sps:$4 sm:$0xff]  }
 0x648   : > { %10802 = vmatpush1.bf16.msra.mxu1 %v13806_v23  ;;  %v9064_v23 = vpack.c.bf16 %v12960_v20, %v12960_v20  ;;  %v13949_v20 = vld [vmem:[#allocation10 + $0x3a4] ss:$16 sps:$4 sm:$0xff]  }
 0x649   : > { %10638 = vmatpush1.bf16.msra.mxu0 %v13803_v48  ;;  %10803 = vmatprep.subr.bf16.mxu1 %v13814_v51  ;;  %v13877_v48 = vld [vmem:[#allocation10 + $0x224] ss:$16 sps:$4 sm:$0xff]   ;;  %v13878_v51 = vld [vmem:[#allocation10 + $0x228] ss:$16 sps:$4 sm:$0xff]  }
 0x64a   : > { %10639 = vmatprep.subr.bf16.mxu0 %v13811_v27  ;;  %v13880_v27 = vld [vmem:[#allocation10 + $0x22c] ss:$16 sps:$4 sm:$0xff]  }
 0x64c   : > { %10804 = vmatpush1.bf16.msra.mxu1 %v13812_v31  ;;  %v13881_v31 = vld [vmem:[#allocation10 + $0x240] ss:$16 sps:$4 sm:$0xff]  }
 0x64d   : > { %10640 = vmatpush1.bf16.msra.mxu0 %v13809_v28  ;;  %10805 = vmatprep.subr.bf16.mxu1 %v13820_v32  ;;  %v13883_v28 = vld [vmem:[#allocation10 + $0x244] ss:$16 sps:$4 sm:$0xff]  }
 0x64e   : > { %10641 = vmatprep.subr.bf16.mxu0 %v13817_v7  ;;  %v13884_v7 = vld [vmem:[#allocation10 + $0x248] ss:$16 sps:$4 sm:$0xff]   ;;  %v13889_v32 = vld [vmem:[#allocation10 + $0x264] ss:$16 sps:$4 sm:$0xff]  }
 0x650   : > { %10806 = vmatpush1.bf16.msra.mxu1 %v13818_v53  ;;  %v13887_v53 = vld [vmem:[#allocation10 + $0x260] ss:$16 sps:$4 sm:$0xff]  }
 0x651   : > { %10642 = vmatpush1.bf16.msra.mxu0 %v13815_v33  ;;  %10807 = vmatprep.subr.bf16.mxu1 %v13826_v62  ;;  %v13892_v33 = vld [vmem:[#allocation10 + $0x26c] ss:$16 sps:$4 sm:$0xff]   ;;  %v13895_v62 = vld [vmem:[#allocation10 + $0x284] ss:$16 sps:$4 sm:$0xff]  }
 0x652   : > { %10643 = vmatprep.subr.bf16.mxu0 %v13823_v36  ;;  %v13890_v36 = vld [vmem:[#allocation10 + $0x268] ss:$16 sps:$4 sm:$0xff]  }
 0x654   : > { %10808 = vmatpush1.bf16.msra.mxu1 %v13824_v38  ;;  %v13893_v38 = vld [vmem:[#allocation10 + $0x280] ss:$16 sps:$4 sm:$0xff]  }
 0x655   : > { %10644 = vmatpush1.bf16.msra.mxu0 %v13821_v35  ;;  %10809 = vmatprep.subr.bf16.mxu1 %v13832_v44  ;;  %v13898_v35 = vld [vmem:[#allocation10 + $0x28c] ss:$16 sps:$4 sm:$0xff]   ;;  %v13901_v44 = vld [vmem:[#allocation10 + $0x2a4] ss:$16 sps:$4 sm:$0xff]  }
 0x656   : > { %10645 = vmatprep.subr.bf16.mxu0 %v13829_v43  ;;  %v13896_v43 = vld [vmem:[#allocation10 + $0x288] ss:$16 sps:$4 sm:$0xff]  }
 0x658   : > { %10810 = vmatpush1.bf16.msra.mxu1 %v13830_v46  ;;  %v13899_v46 = vld [vmem:[#allocation10 + $0x2a0] ss:$16 sps:$4 sm:$0xff]  }
 0x659   : > { %10646 = vmatpush1.bf16.msra.mxu0 %v13827_v9  ;;  %10811 = vmatprep.subr.bf16.mxu1 %v13838_v5  ;;  %v13904_v9 = vld [vmem:[#allocation10 + $0x2ac] ss:$16 sps:$4 sm:$0xff]   ;;  %v13907_v5 = vld [vmem:[#allocation10 + $0x2c4] ss:$16 sps:$4 sm:$0xff]  }
 0x65a   : > { %10647 = vmatprep.subr.bf16.mxu0 %v13835_v47  ;;  %v13902_v47 = vld [vmem:[#allocation10 + $0x2a8] ss:$16 sps:$4 sm:$0xff]  }
 0x65c   : > { %10812 = vmatpush1.bf16.msra.mxu1 %v13836_v57  ;;  %v13905_v57 = vld [vmem:[#allocation10 + $0x2c0] ss:$16 sps:$4 sm:$0xff]  }
 0x65d   : > { %10648 = vmatpush1.bf16.msra.mxu0 %v13833_v52  ;;  %10813 = vmatprep.subr.bf16.mxu1 %v13844_v60  ;;  %v13910_v52 = vld [vmem:[#allocation10 + $0x2cc] ss:$16 sps:$4 sm:$0xff]   ;;  %v13913_v60 = vld [vmem:[#allocation10 + $0x2e4] ss:$16 sps:$4 sm:$0xff]  }
 0x65e   : > { %10649 = vmatprep.subr.bf16.mxu0 %v13841_v58  ;;  %v13908_v58 = vld [vmem:[#allocation10 + $0x2c8] ss:$16 sps:$4 sm:$0xff]  }
 0x660   : > { %10814 = vmatpush1.bf16.msra.mxu1 %v13842_v30  ;;  %v13911_v30 = vld [vmem:[#allocation10 + $0x2e0] ss:$16 sps:$4 sm:$0xff]  }
 0x661   : > { %10650 = vmatpush1.bf16.msra.mxu0 %v13839_v42  ;;  %10815 = vmatprep.subr.bf16.mxu1 %v13850_v59  ;;  %v13916_v42 = vld [vmem:[#allocation10 + $0x2ec] ss:$16 sps:$4 sm:$0xff]   ;;  %v13919_v59 = vld [vmem:[#allocation10 + $0x304] ss:$16 sps:$4 sm:$0xff]  }
 0x662   : > { %10651 = vmatprep.subr.bf16.mxu0 %v13847_v29  ;;  %v13914_v29 = vld [vmem:[#allocation10 + $0x2e8] ss:$16 sps:$4 sm:$0xff]  }
 0x664   : > { %10816 = vmatpush1.bf16.msra.mxu1 %v13848_v1  ;;  %v13917_v1 = vld [vmem:[#allocation10 + $0x300] ss:$16 sps:$4 sm:$0xff]  }
 0x665   : > { %10652 = vmatpush1.bf16.msra.mxu0 %v13845_v17  ;;  %10817 = vmatprep.subr.bf16.mxu1 %v13856_v4  ;;  %v13922_v17 = vld [vmem:[#allocation10 + $0x30c] ss:$16 sps:$4 sm:$0xff]   ;;  %v13925_v4 = vld [vmem:[#allocation10 + $0x324] ss:$16 sps:$4 sm:$0xff]  }
 0x666   : > { %10653 = vmatprep.subr.bf16.mxu0 %v13853_v3  ;;  %v13920_v3 = vld [vmem:[#allocation10 + $0x308] ss:$16 sps:$4 sm:$0xff]  }
 0x668   : > { %10818 = vmatpush1.bf16.msra.mxu1 %v13854_v10  ;;  %v13923_v10 = vld [vmem:[#allocation10 + $0x320] ss:$16 sps:$4 sm:$0xff]  }
 0x669   : > { %10654 = vmatpush1.bf16.msra.mxu0 %v13851_v8  ;;  %10819 = vmatprep.subr.bf16.mxu1 %v13862_v11  ;;  %v13928_v8 = vld [vmem:[#allocation10 + $0x32c] ss:$16 sps:$4 sm:$0xff]   ;;  %v13931_v11 = vld [vmem:[#allocation10 + $0x344] ss:$16 sps:$4 sm:$0xff]  }
 0x66a   : > { %10655 = vmatprep.subr.bf16.mxu0 %v13859_v37  ;;  %v13926_v37 = vld [vmem:[#allocation10 + $0x328] ss:$16 sps:$4 sm:$0xff]  }
 0x66c   : > { %10820 = vmatpush1.bf16.msra.mxu1 %v13860_v2  ;;  %v13932_v2 = vld [vmem:[#allocation10 + $0x348] ss:$16 sps:$4 sm:$0xff]  }
 0x66d   : > { %10656 = vmatpush1.bf16.msra.mxu0 %v13857_v13  ;;  %10821 = vmatprep.subr.bf16.mxu1 %v13868_v15  ;;  %v13934_v13 = vld [vmem:[#allocation10 + $0x34c] ss:$16 sps:$4 sm:$0xff]  }
 0x66e   : > { %10657 = vmatprep.subr.bf16.mxu0 %v13865_v45  ;;  %v13937_v45 = vld [vmem:[#allocation10 + $0x364] ss:$16 sps:$4 sm:$0xff]   ;;  %v13940_v15 = vld [vmem:[#allocation10 + $0x36c] ss:$16 sps:$4 sm:$0xff]  }
 0x670   : > { %10822 = vmatpush1.bf16.msra.mxu1 %v13866_v39  ;;  %v13946_v39 = vld [vmem:[#allocation10 + $0x38c] ss:$16 sps:$4 sm:$0xff]  }
 0x671   : > { %10658 = vmatpush1.bf16.msra.mxu0 %v13863_v25  ;;  %10832 = vmatprep.subr.bf16.mxu1 %v13874_v19  ;;  %v13938_v25 = vld [vmem:[#allocation10 + $0x368] ss:$16 sps:$4 sm:$0xff]  }
 0x672   : > { %10668 = vmatprep.subr.bf16.mxu0 %v13871_v18  ;;  %v13941_v18 = vld [vmem:[#allocation10 + $0x380] ss:$16 sps:$4 sm:$0xff]   ;;  %v13944_v19 = vld [vmem:[#allocation10 + $0x388] ss:$16 sps:$4 sm:$0xff]  }
 0x673   : > { %10824 = vmatmul.mubr.bf16.vlgmr.msra.gmra.mrb[8].mxu1 %v9061_v12 }
 0x674   : > { %10660 = vmatmul.mubr.bf16.vlgmr.msra.gmra.mrb[8].mxu0 %v9061_v12  ;;  %10833 = vmatpush1.bf16.msra.mxu1 %v13872_v22  ;;  %v13947_v12 = vld [vmem:[#allocation10 + $0x3a0] ss:$16 sps:$4 sm:$0xff]   ;;  %v13950_v22 = vld [vmem:[#allocation10 + $0x3a8] ss:$16 sps:$4 sm:$0xff]  }
 0x675   : > { %10669 = vmatpush1.bf16.msra.mxu0 %v13869_v21  ;;  %10700 = vmatprep.mubr.bf16.mxu0 %v9064_v23  ;;  %v13952_v21 = vld [vmem:[#allocation10 + $0x3ac] ss:$16 sps:$4 sm:$0xff]  }
 0x676   : > { %10864 = vmatprep.mubr.bf16.mxu1 %v9064_v23  ;;  %10670 = vmatprep.subr.bf16.mxu0 %v13877_v48  ;;  %v13955_v48 = vld [vmem:[#allocation10 + $0x3c4] ss:$16 sps:$4 sm:$0xff]   ;;  %v13958_v23 = vld [vmem:[#allocation10 + $0x3cc] ss:$16 sps:$4 sm:$0xff]  }
 0x677   : > { %10834 = vmatprep.subr.bf16.mxu1 %v13880_v27  ;;  %v13953_v27 = vld [vmem:[#allocation10 + $0x3c0] ss:$16 sps:$4 sm:$0xff]  }
 0x678   : > { %10835 = vmatpush1.bf16.msra.mxu1 %v13878_v51  ;;  %v13956_v51 = vld [vmem:[#allocation10 + $0x3c8] ss:$16 sps:$4 sm:$0xff]  }
 0x679   : > { %10671 = vmatpush1.bf16.msra.mxu0 %v13875_v61  ;;  %10836 = vmatprep.subr.bf16.mxu1 %v13886_v6  ;;  %v4208_v61 = vrot.slane %v15413_v56, %v15274_v54  ;;  %v13964_v6 = vld [vmem:[#allocation10 + $0x3ec] ss:$16 sps:$4 sm:$0xff]  }
 0x67a   : > { %10672 = vmatprep.subr.bf16.mxu0 %v13883_v28  ;;  %v13961_v28 = vld [vmem:[#allocation10 + $0x3e4] ss:$16 sps:$4 sm:$0xff]  }
 0x67c   : > { %10837 = vmatpush1.bf16.msra.mxu1 %v13884_v7  ;;  %v12959_v7 = vadd.f32 %v15399_v34, %v4208_v61  ;;  %v13974_v34 = vld [vmem:[#allocation10 + $0x428] ss:$16 sps:$4 sm:$0xff]   ;;  %v14031_v61 = vld [vmem:[#allocation10 + $0x560] ss:$16 sps:$4 sm:$0xff]  }
 0x67d   : > { %10673 = vmatpush1.bf16.msra.mxu0 %v13881_v31  ;;  %10838 = vmatprep.subr.bf16.mxu1 %v13892_v33  ;;  %v13959_v31 = vld [vmem:[#allocation10 + $0x3e0] ss:$16 sps:$4 sm:$0xff]   ;;  %v13967_v33 = vld [vmem:[#allocation10 + $0x404] ss:$16 sps:$4 sm:$0xff]  }
 0x67e   : > { %10674 = vmatprep.subr.bf16.mxu0 %v13889_v32  ;;  %v13962_v32 = vld [vmem:[#allocation10 + $0x3e8] ss:$16 sps:$4 sm:$0xff]  }
 0x680   : > { %10839 = vmatpush1.bf16.msra.mxu1 %v13890_v36  ;;  %v13965_v36 = vld [vmem:[#allocation10 + $0x400] ss:$16 sps:$4 sm:$0xff]  }
 0x681   : > { %10675 = vmatpush1.bf16.msra.mxu0 %v13887_v53  ;;  %10840 = vmatprep.subr.bf16.mxu1 %v13898_v35  ;;  %v13970_v53 = vld [vmem:[#allocation10 + $0x40c] ss:$16 sps:$4 sm:$0xff]   ;;  %v13968_v35 = vld [vmem:[#allocation10 + $0x408] ss:$16 sps:$4 sm:$0xff]  }
 0x682   : > { %10676 = vmatprep.subr.bf16.mxu0 %v13895_v62  ;;  %v9063_v62 = vpack.c.bf16 %v12959_v7, %v12959_v7  ;;  %v14040_v7 = vld [vmem:[#allocation10 + $0x588] ss:$16 sps:$4 sm:$0xff]  }
 0x684   : > { %10841 = vmatpush1.bf16.msra.mxu1 %v13896_v43  ;;  %v13976_v43 = vld [vmem:[#allocation10 + $0x42c] ss:$16 sps:$4 sm:$0xff]  }
 0x685   : > { %10677 = vmatpush1.bf16.msra.mxu0 %v13893_v38  ;;  %10842 = vmatprep.subr.bf16.mxu1 %v13904_v9  ;;  %v13973_v38 = vld [vmem:[#allocation10 + $0x424] ss:$16 sps:$4 sm:$0xff]  }
 0x686   : > { %10678 = vmatprep.subr.bf16.mxu0 %v13901_v44  ;;  %v13971_v44 = vld [vmem:[#allocation10 + $0x420] ss:$16 sps:$4 sm:$0xff]   ;;  %v13979_v9 = vld [vmem:[#allocation10 + $0x444] ss:$16 sps:$4 sm:$0xff]  }
 0x688   : > { %10843 = vmatpush1.bf16.msra.mxu1 %v13902_v47  ;;  %v13977_v47 = vld [vmem:[#allocation10 + $0x440] ss:$16 sps:$4 sm:$0xff]  }
 0x689   : > { %10679 = vmatpush1.bf16.msra.mxu0 %v13899_v46  ;;  %10844 = vmatprep.subr.bf16.mxu1 %v13910_v52  ;;  %v13982_v46 = vld [vmem:[#allocation10 + $0x44c] ss:$16 sps:$4 sm:$0xff]   ;;  %v13985_v52 = vld [vmem:[#allocation10 + $0x464] ss:$16 sps:$4 sm:$0xff]  }
 0x68a   : > { %10680 = vmatprep.subr.bf16.mxu0 %v13907_v5  ;;  %v13980_v5 = vld [vmem:[#allocation10 + $0x448] ss:$16 sps:$4 sm:$0xff]  }
 0x68c   : > { %10845 = vmatpush1.bf16.msra.mxu1 %v13908_v58  ;;  %v13983_v58 = vld [vmem:[#allocation10 + $0x460] ss:$16 sps:$4 sm:$0xff]  }
 0x68d   : > { %10681 = vmatpush1.bf16.msra.mxu0 %v13905_v57  ;;  %10846 = vmatprep.subr.bf16.mxu1 %v13916_v42  ;;  %v13988_v57 = vld [vmem:[#allocation10 + $0x46c] ss:$16 sps:$4 sm:$0xff]   ;;  %v13991_v42 = vld [vmem:[#allocation10 + $0x484] ss:$16 sps:$4 sm:$0xff]  }
 0x68e   : > { %10682 = vmatprep.subr.bf16.mxu0 %v13913_v60  ;;  %v13986_v60 = vld [vmem:[#allocation10 + $0x468] ss:$16 sps:$4 sm:$0xff]  }
 0x690   : > { %10847 = vmatpush1.bf16.msra.mxu1 %v13914_v29  ;;  %v13989_v29 = vld [vmem:[#allocation10 + $0x480] ss:$16 sps:$4 sm:$0xff]  }
 0x691   : > { %10683 = vmatpush1.bf16.msra.mxu0 %v13911_v30  ;;  %10848 = vmatprep.subr.bf16.mxu1 %v13922_v17  ;;  %v13994_v30 = vld [vmem:[#allocation10 + $0x48c] ss:$16 sps:$4 sm:$0xff]   ;;  %v13997_v17 = vld [vmem:[#allocation10 + $0x4a4] ss:$16 sps:$4 sm:$0xff]  }
 0x692   : > { %10684 = vmatprep.subr.bf16.mxu0 %v13919_v59  ;;  %v13992_v59 = vld [vmem:[#allocation10 + $0x488] ss:$16 sps:$4 sm:$0xff]  }
 0x694   : > { %10849 = vmatpush1.bf16.msra.mxu1 %v13920_v3  ;;  %v13995_v3 = vld [vmem:[#allocation10 + $0x4a0] ss:$16 sps:$4 sm:$0xff]  }
 0x695   : > { %10685 = vmatpush1.bf16.msra.mxu0 %v13917_v1  ;;  %10850 = vmatprep.subr.bf16.mxu1 %v13928_v8  ;;  %v14000_v1 = vld [vmem:[#allocation10 + $0x4ac] ss:$16 sps:$4 sm:$0xff]   ;;  %v14003_v8 = vld [vmem:[#allocation10 + $0x4c4] ss:$16 sps:$4 sm:$0xff]  }
 0x696   : > { %10686 = vmatprep.subr.bf16.mxu0 %v13925_v4  ;;  %v13998_v4 = vld [vmem:[#allocation10 + $0x4a8] ss:$16 sps:$4 sm:$0xff]  }
 0x698   : > { %10851 = vmatpush1.bf16.msra.mxu1 %v13926_v37  ;;  %v14001_v37 = vld [vmem:[#allocation10 + $0x4c0] ss:$16 sps:$4 sm:$0xff]  }
 0x699   : > { %10687 = vmatpush1.bf16.msra.mxu0 %v13923_v10  ;;  %10852 = vmatprep.subr.bf16.mxu1 %v13934_v13  ;;  %v14006_v10 = vld [vmem:[#allocation10 + $0x4cc] ss:$16 sps:$4 sm:$0xff]   ;;  %v14009_v13 = vld [vmem:[#allocation10 + $0x4e4] ss:$16 sps:$4 sm:$0xff]  }
 0x69a   : > { %10688 = vmatprep.subr.bf16.mxu0 %v13931_v11  ;;  %v14004_v11 = vld [vmem:[#allocation10 + $0x4c8] ss:$16 sps:$4 sm:$0xff]  }
 0x69c   : > { %10853 = vmatpush1.bf16.msra.mxu1 %v13932_v2  ;;  %v14007_v2 = vld [vmem:[#allocation10 + $0x4e0] ss:$16 sps:$4 sm:$0xff]  }
 0x69d   : > { %10689 = vmatpush1.bf16.msra.mxu0 %v13929_v14  ;;  %10854 = vmatprep.subr.bf16.mxu1 %v13940_v15  ;;  %v14012_v14 = vld [vmem:[#allocation10 + $0x4ec] ss:$16 sps:$4 sm:$0xff]   ;;  %v14015_v15 = vld [vmem:[#allocation10 + $0x504] ss:$16 sps:$4 sm:$0xff]  }
 0x69e   : > { %10690 = vmatprep.subr.bf16.mxu0 %v13937_v45  ;;  %v14010_v45 = vld [vmem:[#allocation10 + $0x4e8] ss:$16 sps:$4 sm:$0xff]  }
 0x6a0   : > { %10855 = vmatpush1.bf16.msra.mxu1 %v13938_v25  ;;  %v14013_v25 = vld [vmem:[#allocation10 + $0x500] ss:$16 sps:$4 sm:$0xff]  }
 0x6a1   : > { %10691 = vmatpush1.bf16.msra.mxu0 %v13935_v16  ;;  %10856 = vmatprep.subr.bf16.mxu1 %v13946_v39  ;;  %v14018_v16 = vld [vmem:[#allocation10 + $0x50c] ss:$16 sps:$4 sm:$0xff]   ;;  %v14021_v39 = vld [vmem:[#allocation10 + $0x524] ss:$16 sps:$4 sm:$0xff]  }
 0x6a2   : > { %10692 = vmatprep.subr.bf16.mxu0 %v13943_v41  ;;  %v14016_v41 = vld [vmem:[#allocation10 + $0x508] ss:$16 sps:$4 sm:$0xff]  }
 0x6a4   : > { %10857 = vmatpush1.bf16.msra.mxu1 %v13944_v19  ;;  %v14019_v19 = vld [vmem:[#allocation10 + $0x520] ss:$16 sps:$4 sm:$0xff]  }
 0x6a5   : > { %10693 = vmatpush1.bf16.msra.mxu0 %v13941_v18  ;;  %10858 = vmatprep.subr.bf16.mxu1 %v13952_v21  ;;  %v14024_v18 = vld [vmem:[#allocation10 + $0x52c] ss:$16 sps:$4 sm:$0xff]   ;;  %v14027_v21 = vld [vmem:[#allocation10 + $0x544] ss:$16 sps:$4 sm:$0xff]  }
 0x6a6   : > { %10694 = vmatprep.subr.bf16.mxu0 %v13949_v20  ;;  %v14022_v20 = vld [vmem:[#allocation10 + $0x528] ss:$16 sps:$4 sm:$0xff]  }
 0x6a8   : > { %10859 = vmatpush1.bf16.msra.mxu1 %v13950_v22  ;;  %v14025_v22 = vld [vmem:[#allocation10 + $0x540] ss:$16 sps:$4 sm:$0xff]  }
 0x6a9   : > { %10695 = vmatpush1.bf16.msra.mxu0 %v13947_v12  ;;  %10860 = vmatprep.subr.bf16.mxu1 %v13958_v23  ;;  %v14030_v12 = vld [vmem:[#allocation10 + $0x54c] ss:$16 sps:$4 sm:$0xff]   ;;  %v14033_v23 = vld [vmem:[#allocation10 + $0x564] ss:$16 sps:$4 sm:$0xff]  }
 0x6aa   : > { %10696 = vmatprep.subr.bf16.mxu0 %v13955_v48  ;;  %v14028_v48 = vld [vmem:[#allocation10 + $0x548] ss:$16 sps:$4 sm:$0xff]  }
 0x6ac   : > { %10861 = vmatpush1.bf16.msra.mxu1 %v13956_v51  ;;  %v14034_v51 = vld [vmem:[#allocation10 + $0x568] ss:$16 sps:$4 sm:$0xff]  }
 0x6ad   : > { %10697 = vmatpush1.bf16.msra.mxu0 %v13953_v27  ;;  %10862 = vmatprep.subr.bf16.mxu1 %v13964_v6  ;;  %v14036_v27 = vld [vmem:[#allocation10 + $0x56c] ss:$16 sps:$4 sm:$0xff]  }
 0x6ae   : > { %10698 = vmatprep.subr.bf16.mxu0 %v13961_v28  ;;  %v14039_v28 = vld [vmem:[#allocation10 + $0x584] ss:$16 sps:$4 sm:$0xff]   ;;  %v14042_v6 = vld [vmem:[#allocation10 + $0x58c] ss:$16 sps:$4 sm:$0xff]  }
 0x6b0   : > { %10863 = vmatpush1.bf16.msra.mxu1 %v13962_v32  ;;  %v14045_v32 = vld [vmem:[#allocation10 + $0x5a4] ss:$16 sps:$4 sm:$0xff]  }
 0x6b1   : > { %10699 = vmatpush1.bf16.msra.mxu0 %v13959_v31  ;;  %10873 = vmatprep.subr.bf16.mxu1 %v13970_v53  ;;  %v14037_v31 = vld [vmem:[#allocation10 + $0x580] ss:$16 sps:$4 sm:$0xff]  }
 0x6b2   : > { %10709 = vmatprep.subr.bf16.mxu0 %v13967_v33  ;;  %v14048_v33 = vld [vmem:[#allocation10 + $0x5ac] ss:$16 sps:$4 sm:$0xff]   ;;  %v14043_v53 = vld [vmem:[#allocation10 + $0x5a0] ss:$16 sps:$4 sm:$0xff]  }
 0x6b3   : > { %10865 = vmatmul.mubr.bf16.vlgmr.msra.gmra.mrb[8].mxu1 %v9063_v62 }
 0x6b4   : > { %10701 = vmatmul.mubr.bf16.vlgmr.msra.gmra.mrb[8].mxu0 %v9063_v62  ;;  %10874 = vmatpush1.bf16.msra.mxu1 %v13968_v35  ;;  %v14051_v62 = vld [vmem:[#allocation10 + $0x5c4] ss:$16 sps:$4 sm:$0xff]   ;;  %v14054_v35 = vld [vmem:[#allocation10 + $0x5cc] ss:$16 sps:$4 sm:$0xff]  }
 0x6b5   : > { %10710 = vmatpush1.bf16.msra.mxu0 %v13965_v36  ;;  %10875 = vmatprep.subr.bf16.mxu1 %v13976_v43  ;;  %v14046_v36 = vld [vmem:[#allocation10 + $0x5a8] ss:$16 sps:$4 sm:$0xff]  }
 0x6b6   : > { %10711 = vmatprep.subr.bf16.mxu0 %v13973_v38  ;;  %v14049_v38 = vld [vmem:[#allocation10 + $0x5c0] ss:$16 sps:$4 sm:$0xff]   ;;  %v14052_v43 = vld [vmem:[#allocation10 + $0x5c8] ss:$16 sps:$4 sm:$0xff]  }
 0x6b8   : > { %10876 = vmatpush1.bf16.msra.mxu1 %v13974_v34  ;;  %v14060_v34 = vld [vmem:[#allocation10 + $0x5ec] ss:$16 sps:$4 sm:$0xff]  }
 0x6b9   : > { %10712 = vmatpush1.bf16.msra.mxu0 %v13971_v44  ;;  %10877 = vmatprep.subr.bf16.mxu1 %v13982_v46  ;;  %v14057_v44 = vld [vmem:[#allocation10 + $0x5e4] ss:$16 sps:$4 sm:$0xff]   ;;  %v14058_v46 = vld [vmem:[#allocation10 + $0x5e8] ss:$16 sps:$4 sm:$0xff]  }
 0x6ba   : > { %10713 = vmatprep.subr.bf16.mxu0 %v13979_v9  ;;  %v14055_v9 = vld [vmem:[#allocation10 + $0x5e0] ss:$16 sps:$4 sm:$0xff]  }
 0x6bc   : > { %10878 = vmatpush1.bf16.msra.mxu1 %v13980_v5  ;;  %v14066_v5 = vld [vmem:[#allocation10 + $0x60c] ss:$16 sps:$4 sm:$0xff]  }
 0x6bd   : > { %10714 = vmatpush1.bf16.msra.mxu0 %v13977_v47  ;;  %10879 = vmatprep.subr.bf16.mxu1 %v13988_v57  ;;  %v14063_v47 = vld [vmem:[#allocation10 + $0x604] ss:$16 sps:$4 sm:$0xff]   ;;  %v4220_v57 = vrot.slane %v15413_v56, %v3353_v26 }
 0x6be   : > { %10715 = vmatprep.subr.bf16.mxu0 %v13985_v52  ;;  %v4216_v52 = vrot.slane %v15413_v56, %v3349_v24 }
 0x6c0   : > { %10880 = vmatpush1.bf16.msra.mxu1 %v13986_v60 }
 0x6c1   : > { %10716 = vmatpush1.bf16.msra.mxu0 %v13983_v58  ;;  %10881 = vmatprep.subr.bf16.mxu1 %v13994_v30  ;;  %v4228_v58 = vrot.slane %v15413_v56, %v3361_v0  ;;  %v14072_v0 = vld [vmem:[#allocation10 + $0x62c] ss:$16 sps:$4 sm:$0xff]  }
 0x6c2   : > { %10717 = vmatprep.subr.bf16.mxu0 %v13991_v42 }
 0x6c4   : > { %10882 = vmatpush1.bf16.msra.mxu1 %v13992_v59 }
 0x6c5   : > { %10718 = vmatpush1.bf16.msra.mxu0 %v13989_v29  ;;  %10883 = vmatprep.subr.bf16.mxu1 %v14000_v1 }
 0x6c6   : > { %10719 = vmatprep.subr.bf16.mxu0 %v13997_v17 }
 0x6c8   : > { %10884 = vmatpush1.bf16.msra.mxu1 %v13998_v4 }
 0x6c9   : > { %10720 = vmatpush1.bf16.msra.mxu0 %v13995_v3  ;;  %10885 = vmatprep.subr.bf16.mxu1 %v14006_v10 }
 0x6ca   : > { %10721 = vmatprep.subr.bf16.mxu0 %v14003_v8 }
 0x6cc   : > { %10886 = vmatpush1.bf16.msra.mxu1 %v14004_v11  ;;  %v14064_v11 = vld [vmem:[#allocation10 + $0x608] ss:$16 sps:$4 sm:$0xff]  }
 0x6cd   : > { %10722 = vmatpush1.bf16.msra.mxu0 %v14001_v37  ;;  %10887 = vmatprep.subr.bf16.mxu1 %v14012_v14  ;;  %v14061_v37 = vld [vmem:[#allocation10 + $0x600] ss:$16 sps:$4 sm:$0xff]  }
 0x6ce   : > { %10723 = vmatprep.subr.bf16.mxu0 %v14009_v13  ;;  %v14069_v13 = vld [vmem:[#allocation10 + $0x624] ss:$16 sps:$4 sm:$0xff]   ;;  %v14067_v14 = vld [vmem:[#allocation10 + $0x620] ss:$16 sps:$4 sm:$0xff]  }
 0x6d0   : > { %10888 = vmatpush1.bf16.msra.mxu1 %v14010_v45  ;;  %v14075_v45 = vld [vmem:[#allocation10 + $0x644] ss:$16 sps:$4 sm:$0xff]  }
 0x6d1   : > { %10724 = vmatpush1.bf16.msra.mxu0 %v14007_v2  ;;  %10889 = vmatprep.subr.bf16.mxu1 %v14018_v16  ;;  %v14070_v2 = vld [vmem:[#allocation10 + $0x628] ss:$16 sps:$4 sm:$0xff]   ;;  %v14073_v16 = vld [vmem:[#allocation10 + $0x640] ss:$16 sps:$4 sm:$0xff]  }
 0x6d2   : > { %10725 = vmatprep.subr.bf16.mxu0 %v14015_v15  ;;  %v14078_v15 = vld [vmem:[#allocation10 + $0x64c] ss:$16 sps:$4 sm:$0xff]  }
 0x6d4   : > { %10890 = vmatpush1.bf16.msra.mxu1 %v14016_v41  ;;  %v14081_v41 = vld [vmem:[#allocation10 + $0x664] ss:$16 sps:$4 sm:$0xff]  }
 0x6d5   : > { %10726 = vmatpush1.bf16.msra.mxu0 %v14013_v25  ;;  %10891 = vmatprep.subr.bf16.mxu1 %v14024_v18  ;;  %v14076_v25 = vld [vmem:[#allocation10 + $0x648] ss:$16 sps:$4 sm:$0xff]   ;;  %v14079_v18 = vld [vmem:[#allocation10 + $0x660] ss:$16 sps:$4 sm:$0xff]  }
 0x6d6   : > { %10727 = vmatprep.subr.bf16.mxu0 %v14021_v39  ;;  %v14084_v39 = vld [vmem:[#allocation10 + $0x66c] ss:$16 sps:$4 sm:$0xff]  }
 0x6d8   : > { %10892 = vmatpush1.bf16.msra.mxu1 %v14022_v20  ;;  %v14087_v20 = vld [vmem:[#allocation10 + $0x684] ss:$16 sps:$4 sm:$0xff]  }
 0x6d9   : > { %10728 = vmatpush1.bf16.msra.mxu0 %v14019_v19  ;;  %10893 = vmatprep.subr.bf16.mxu1 %v14030_v12  ;;  %v14082_v19 = vld [vmem:[#allocation10 + $0x668] ss:$16 sps:$4 sm:$0xff]   ;;  %v14085_v12 = vld [vmem:[#allocation10 + $0x680] ss:$16 sps:$4 sm:$0xff]  }
 0x6da   : > { %10729 = vmatprep.subr.bf16.mxu0 %v14027_v21  ;;  %v14090_v21 = vld [vmem:[#allocation10 + $0x68c] ss:$16 sps:$4 sm:$0xff]  }
 0x6dc   : > { %10894 = vmatpush1.bf16.msra.mxu1 %v14028_v48  ;;  %v14093_v48 = vld [vmem:[#allocation10 + $0x6a4] ss:$16 sps:$4 sm:$0xff]  }
 0x6dd   : > { %10730 = vmatpush1.bf16.msra.mxu0 %v14025_v22  ;;  %10895 = vmatprep.subr.bf16.mxu1 %v14036_v27  ;;  %v14088_v22 = vld [vmem:[#allocation10 + $0x688] ss:$16 sps:$4 sm:$0xff]   ;;  %v14091_v27 = vld [vmem:[#allocation10 + $0x6a0] ss:$16 sps:$4 sm:$0xff]  }
 0x6de   : > { %10731 = vmatprep.subr.bf16.mxu0 %v14033_v23  ;;  %v14096_v23 = vld [vmem:[#allocation10 + $0x6ac] ss:$16 sps:$4 sm:$0xff]  }
 0x6e0   : > { %10896 = vmatpush1.bf16.msra.mxu1 %v14034_v51  ;;  %v14099_v51 = vld [vmem:[#allocation10 + $0x6c4] ss:$16 sps:$4 sm:$0xff]  }
 0x6e1   : > { %10732 = vmatpush1.bf16.msra.mxu0 %v14031_v61  ;;  %10897 = vmatprep.subr.bf16.mxu1 %v14042_v6  ;;  %v14094_v61 = vld [vmem:[#allocation10 + $0x6a8] ss:$16 sps:$4 sm:$0xff]   ;;  %v14097_v6 = vld [vmem:[#allocation10 + $0x6c0] ss:$16 sps:$4 sm:$0xff]  }
 0x6e2   : > { %10733 = vmatprep.subr.bf16.mxu0 %v14039_v28  ;;  %v14102_v28 = vld [vmem:[#allocation10 + $0x6cc] ss:$16 sps:$4 sm:$0xff]  }
 0x6e4   : > { %10898 = vmatpush1.bf16.msra.mxu1 %v14040_v7  ;;  %v14105_v7 = vld [vmem:[#allocation10 + $0x6e4] ss:$16 sps:$4 sm:$0xff]  }
 0x6e5   : > { %10734 = vmatpush1.bf16.msra.mxu0 %v14037_v31  ;;  %10899 = vmatprep.subr.bf16.mxu1 %v14048_v33  ;;  %v14100_v31 = vld [vmem:[#allocation10 + $0x6c8] ss:$16 sps:$4 sm:$0xff]   ;;  %v14103_v33 = vld [vmem:[#allocation10 + $0x6e0] ss:$16 sps:$4 sm:$0xff]  }
 0x6e6   : > { %10735 = vmatprep.subr.bf16.mxu0 %v14045_v32  ;;  %v14108_v32 = vld [vmem:[#allocation10 + $0x6ec] ss:$16 sps:$4 sm:$0xff]  }
 0x6e8   : > { %10900 = vmatpush1.bf16.msra.mxu1 %v14046_v36  ;;  %v14111_v36 = vld [vmem:[#allocation10 + $0x704] ss:$16 sps:$4 sm:$0xff]  }
 0x6e9   : > { %10736 = vmatpush1.bf16.msra.mxu0 %v14043_v53  ;;  %10901 = vmatprep.subr.bf16.mxu1 %v14054_v35  ;;  %v14106_v53 = vld [vmem:[#allocation10 + $0x6e8] ss:$16 sps:$4 sm:$0xff]   ;;  %v14109_v35 = vld [vmem:[#allocation10 + $0x700] ss:$16 sps:$4 sm:$0xff]  }
 0x6ea   : > { %10737 = vmatprep.subr.bf16.mxu0 %v14051_v62  ;;  %v14114_v62 = vld [vmem:[#allocation10 + $0x70c] ss:$16 sps:$4 sm:$0xff]  }
 0x6ec   : > { %10902 = vmatpush1.bf16.msra.mxu1 %v14052_v43  ;;  %v14117_v43 = vld [vmem:[#allocation10 + $0x724] ss:$16 sps:$4 sm:$0xff]  }
 0x6ed   : > { %10738 = vmatpush1.bf16.msra.mxu0 %v14049_v38  ;;  %10903 = vmatprep.subr.bf16.mxu1 %v14060_v34  ;;  %v14112_v38 = vld [vmem:[#allocation10 + $0x708] ss:$16 sps:$4 sm:$0xff]   ;;  %v14115_v34 = vld [vmem:[#allocation10 + $0x720] ss:$16 sps:$4 sm:$0xff]  }
 0x6ee   : > { %10739 = vmatprep.subr.bf16.mxu0 %v14057_v44  ;;  %v14120_v44 = vld [vmem:[#allocation10 + $0x72c] ss:$16 sps:$4 sm:$0xff]  }
 0x6f0   : > { %10904 = vmatpush1.bf16.msra.mxu1 %v14058_v46  ;;  %v14123_v46 = vld [vmem:[#allocation10 + $0x744] ss:$16 sps:$4 sm:$0xff]  }
 0x6f1   : > { %10740 = vmatpush1.bf16.msra.mxu0 %v14055_v9  ;;  %10914 = vmatprep.subr.bf16.mxu1 %v14066_v5  ;;  %v14118_v9 = vld [vmem:[#allocation10 + $0x728] ss:$16 sps:$4 sm:$0xff]   ;;  %v14121_v5 = vld [vmem:[#allocation10 + $0x740] ss:$16 sps:$4 sm:$0xff]  }
 0x6f2   : > { %10750 = vmatprep.subr.bf16.mxu0 %v14063_v47  ;;  %v14126_v47 = vld [vmem:[#allocation10 + $0x74c] ss:$16 sps:$4 sm:$0xff]  }
 0x706   : > { %v15438_v30 = vpop.f32.mrb[4].mxu1 }
 0x707   : > { %v8808_v60 = vpop.f32.mrb[4].mxu0  ;;  %v9056_v17 = vpop.f32.mrb[5].mxu1 }
 0x708   : > { %v12961_v42 = vadd.f32 %v8808_v60, %v4216_v52  ;;  %v8810_v29 = vpop.f32.mrb[5].mxu0  ;;  %v12964_v3 = vadd.f32 %v9056_v17, %v4228_v58  ;;  %v9058_v4 = vpop.f32.mrb[6].mxu1  ;;  %v14124_v52 = vld [vmem:[#allocation10 + $0x748] ss:$16 sps:$4 sm:$0xff]   ;;  %v14132_v58 = vld [vmem:[#allocation10 + $0x76c] ss:$16 sps:$4 sm:$0xff]  }
 0x709   : > { %v12962_v59 = vadd.f32 %v8810_v29, %v4220_v57  ;;  %v8812_v1 = vpop.f32.mrb[6].mxu0  ;;  %v9059_v10 = vpop.f32.mrb[7].mxu1  ;;  %v14129_v57 = vld [vmem:[#allocation10 + $0x764] ss:$16 sps:$4 sm:$0xff]   ;;  %v14127_v60 = vld [vmem:[#allocation10 + $0x760] ss:$16 sps:$4 sm:$0xff]  }
 0x70a   : > { %v8813_v8 = vpop.f32.mrb[7].mxu0  ;;  %v9065_v26 = vpack.c.bf16 %v12961_v42, %v12961_v42  ;;  %v9068_v56 = vpack.c.bf16 %v12964_v3, %v12964_v3  ;;  %v14130_v42 = vld [vmem:[#allocation10 + $0x768] ss:$16 sps:$4 sm:$0xff]   ;;  %v14135_v29 = vld [vmem:[#allocation10 + $0x784] ss:$16 sps:$4 sm:$0xff]  }
 0x70b   : > { %v9066_v24 = vpack.c.bf16 %v12962_v59, %v12962_v59  ;;  %v14138_v59 = vld [vmem:[#allocation10 + $0x78c] ss:$16 sps:$4 sm:$0xff]   ;;  %v14133_v17 = vld [vmem:[#allocation10 + $0x780] ss:$16 sps:$4 sm:$0xff]   ;;  %v14136_v1 = vld [vmem:[#allocation10 + $0x788] ss:$16 sps:$4 sm:$0xff]  }
 0x70c   : > { %v14141_v3 = vld [vmem:[#allocation10 + $0x7a4] ss:$16 sps:$4 sm:$0xff]   ;;  %v14144_v4 = vld [vmem:[#allocation10 + $0x7ac] ss:$16 sps:$4 sm:$0xff]   ;;  %v14139_v8 = vld [vmem:[#allocation10 + $0x7a0] ss:$16 sps:$4 sm:$0xff]  }
 0x70d   : > { %10741 = vmatprep.mubr.bf16.mxu0 %v9066_v24  ;;  %10905 = vmatprep.mubr.bf16.mxu1 %v9066_v24  ;;  %v14142_v24 = vld [vmem:[#allocation10 + $0x7a8] ss:$16 sps:$4 sm:$0xff]   ;;  %v14147_v10 = vld [vmem:[#allocation10 + $0x7c4] ss:$16 sps:$4 sm:$0xff]  }
 0x70e   : > { %10742 = vmatmul.mubr.bf16.vlgmr.msra.gmra.mrb[8].mxu0 %v9065_v26  ;;  %10906 = vmatmul.mubr.bf16.vlgmr.msra.gmra.mrb[8].mxu1 %v9065_v26  ;;  %v14148_v26 = vld [vmem:[#allocation10 + $0x7c8] ss:$16 sps:$4 sm:$0xff]  }
 0x70f   : > { %10751 = vmatpush1.bf16.msra.mxu0 %v14061_v37  ;;  %10915 = vmatpush1.bf16.msra.mxu1 %v14064_v11  ;;  %v14150_v37 = vld [vmem:[#allocation10 + $0x7cc] ss:$16 sps:$4 sm:$0xff]   ;;  %v14145_v11 = vld [vmem:[#allocation10 + $0x7c0] ss:$16 sps:$4 sm:$0xff]  }
 0x710   : > { %10782 = vmatprep.mubr.bf16.mxu0 %v9068_v56  ;;  %10946 = vmatprep.mubr.bf16.mxu1 %v9068_v56  ;;  %v14153_v56 = vld [vmem:[#allocation10 + $0x7e4] ss:$16 sps:$4 sm:$0xff]  }
 0x711   : > { %10752 = vmatprep.subr.bf16.mxu0 %v14069_v13  ;;  %10916 = vmatprep.subr.bf16.mxu1 %v14072_v0  ;;  %v14190_v13 = vld [vmem:[#allocation8] sm:$0xff] }
 0x712   : > { %v4224_v0 = vrot.slane %v14190_v13, %v3357_v63  ;;  %v14161_v63 = vld [vmem:[#allocation13 + $0x48] sm:$0xff]  }
 0x713   : > { %10753 = vmatpush1.bf16.msra.mxu0 %v14067_v14  ;;  %10917 = vmatpush1.bf16.msra.mxu1 %v14070_v2  ;;  %v14156_v14 = vld [vmem:[#allocation10 + $0x7ec] ss:$16 sps:$4 sm:$0xff]   ;;  %v14151_v2 = vld [vmem:[#allocation10 + $0x7e0] ss:$16 sps:$4 sm:$0xff]  }
 0x714   : > { %10754 = vmatprep.subr.bf16.mxu0 %v14075_v45  ;;  %10918 = vmatprep.subr.bf16.mxu1 %v14078_v15  ;;  %v14154_v45 = vld [vmem:[#allocation10 + $0x7e8] ss:$16 sps:$4 sm:$0xff]   ;;  %v12963_v15 = vadd.f32 %v15438_v30, %v4224_v0 }
 0x715   : > { %v14165_v30 = vld [vmem:[#allocation13 + $0x50] sm:$0xff]  }
 0x716   : > { %v9067_v40 = vpack.c.bf16 %v12963_v15, %v12963_v15 }
 0x717   : > { %10755 = vmatpush1.bf16.msra.mxu0 %v14073_v16  ;;  %10919 = vmatpush1.bf16.msra.mxu1 %v14076_v25  ;;  %v14157_v16 = vld [vmem:[#allocation13 + $0x40] sm:$0xff]  }
 0x718   : > { %10756 = vmatprep.subr.bf16.mxu0 %v14081_v41  ;;  %10920 = vmatprep.subr.bf16.mxu1 %v14084_v39  ;;  %v14158_v25 = vld [vmem:[#allocation13 + $0xc0] sm:$0xff]  }
 0x719   : > { %v14159_v41 = vld [vmem:[#allocation13] sm:$0xff]  }
 0x71a   : > { %v14160_v39 = vld [vmem:[#allocation13 + $0x80] sm:$0xff]  }
 0x71b   : > { %10757 = vmatpush1.bf16.msra.mxu0 %v14079_v18  ;;  %10921 = vmatpush1.bf16.msra.mxu1 %v14082_v19  ;;  %v14162_v18 = vld [vmem:[#allocation13 + $0xc8] sm:$0xff]  }
 0x71c   : > { %10758 = vmatprep.subr.bf16.mxu0 %v14087_v20  ;;  %10922 = vmatprep.subr.bf16.mxu1 %v14090_v21  ;;  %v14163_v19 = vld [vmem:[#allocation13 + $0x8] sm:$0xff]   ;;  %v14166_v21 = vld [vmem:[#allocation13 + $0xd0] sm:$0xff]  }
 0x71d   : > { %v14164_v20 = vld [vmem:[#allocation13 + $0x88] sm:$0xff]  }
 0x71f   : > { %10759 = vmatpush1.bf16.msra.mxu0 %v14085_v12  ;;  %10923 = vmatpush1.bf16.msra.mxu1 %v14088_v22  ;;  %v14167_v12 = vld [vmem:[#allocation13 + $0x10] sm:$0xff]  }
 0x720   : > { %10760 = vmatprep.subr.bf16.mxu0 %v14093_v48  ;;  %10924 = vmatprep.subr.bf16.mxu1 %v14096_v23  ;;  %v14168_v22 = vld [vmem:[#allocation13 + $0x90] sm:$0xff]   ;;  %v14169_v48 = vld [vmem:[#allocation13 + $0x58] sm:$0xff]  }
 0x721   : > { %v14170_v23 = vld [vmem:[#allocation13 + $0xd8] sm:$0xff]  }
 0x723   : > { %10761 = vmatpush1.bf16.msra.mxu0 %v14091_v27  ;;  %10925 = vmatpush1.bf16.msra.mxu1 %v14094_v61  ;;  %v14171_v27 = vld [vmem:[#allocation13 + $0x18] sm:$0xff]  }
 0x724   : > { %10762 = vmatprep.subr.bf16.mxu0 %v14099_v51  ;;  %10926 = vmatprep.subr.bf16.mxu1 %v14102_v28  ;;  %v14172_v61 = vld [vmem:[#allocation13 + $0x98] sm:$0xff]   ;;  %v14173_v51 = vld [vmem:[#allocation13 + $0x60] sm:$0xff]  }
 0x725   : > { %v14174_v28 = vld [vmem:[#allocation13 + $0xe0] sm:$0xff]  }
 0x727   : > { %10763 = vmatpush1.bf16.msra.mxu0 %v14097_v6  ;;  %10927 = vmatpush1.bf16.msra.mxu1 %v14100_v31  ;;  %v14175_v6 = vld [vmem:[#allocation13 + $0x20] sm:$0xff]  }
 0x728   : > { %10764 = vmatprep.subr.bf16.mxu0 %v14105_v7  ;;  %10928 = vmatprep.subr.bf16.mxu1 %v14108_v32  ;;  %v14176_v31 = vld [vmem:[#allocation13 + $0xa0] sm:$0xff]   ;;  %v14177_v7 = vld [vmem:[#allocation13 + $0x68] sm:$0xff]  }
 0x729   : > { %v14178_v32 = vld [vmem:[#allocation13 + $0xe8] sm:$0xff]  }
 0x72b   : > { %10765 = vmatpush1.bf16.msra.mxu0 %v14103_v33  ;;  %10929 = vmatpush1.bf16.msra.mxu1 %v14106_v53  ;;  %v14179_v33 = vld [vmem:[#allocation13 + $0x28] sm:$0xff]  }
 0x72c   : > { %10766 = vmatprep.subr.bf16.mxu0 %v14111_v36  ;;  %10930 = vmatprep.subr.bf16.mxu1 %v14114_v62  ;;  %v14180_v53 = vld [vmem:[#allocation13 + $0xa8] sm:$0xff]   ;;  %v14181_v36 = vld [vmem:[#allocation13 + $0x70] sm:$0xff]  }
 0x72d   : > { %v14182_v62 = vld [vmem:[#allocation13 + $0xf0] sm:$0xff]  }
 0x72f   : > { %10767 = vmatpush1.bf16.msra.mxu0 %v14109_v35  ;;  %10931 = vmatpush1.bf16.msra.mxu1 %v14112_v38  ;;  %v14183_v35 = vld [vmem:[#allocation13 + $0x30] sm:$0xff]  }
 0x730   : > { %10768 = vmatprep.subr.bf16.mxu0 %v14117_v43  ;;  %10932 = vmatprep.subr.bf16.mxu1 %v14120_v44  ;;  %v14184_v38 = vld [vmem:[#allocation13 + $0xb0] sm:$0xff]   ;;  %v14185_v43 = vld [vmem:[#allocation13 + $0x78] sm:$0xff]  }
 0x731   : > { %v14186_v44 = vld [vmem:[#allocation13 + $0xf8] sm:$0xff]  }
 0x733   : > { %10769 = vmatpush1.bf16.msra.mxu0 %v14115_v34  ;;  %10933 = vmatpush1.bf16.msra.mxu1 %v14118_v9  ;;  %v14187_v34 = vld [vmem:[#allocation13 + $0x38] sm:$0xff]  }
 0x734   : > { %10770 = vmatprep.subr.bf16.mxu0 %v14123_v46  ;;  %10934 = vmatprep.subr.bf16.mxu1 %v14126_v47  ;;  %v14188_v9 = vld [vmem:[#allocation13 + $0xb8] sm:$0xff]  }
 0x735   : > { %v9325_v46 = vld [vmem:[#allocation11] sm:$0xf] }
 0x736   : > { %v9330_v47 = vrot.slane %v9325_v46, %v15254_v49 }
 0x737   : > { %10771 = vmatpush1.bf16.msra.mxu0 %v14121_v5  ;;  %10935 = vmatpush1.bf16.msra.mxu1 %v14124_v52  ;;  %v9338_v5 = vrot.slane %v9325_v46, %v15274_v54  ;;  %v9334_v52 = vrot.slane %v9325_v46, %v15257_v50 }
 0x738   : > { %10772 = vmatprep.subr.bf16.mxu0 %v14129_v57  ;;  %10936 = vmatprep.subr.bf16.mxu1 %v14132_v58  ;;  %v9342_v57 = vrot.slane %v9325_v46, %v15277_v55 }
 0x73b   : > { %10773 = vmatpush1.bf16.msra.mxu0 %v14127_v60  ;;  %10937 = vmatpush1.bf16.msra.mxu1 %v14130_v42 }
 0x73c   : > { %10774 = vmatprep.subr.bf16.mxu0 %v14135_v29  ;;  %10938 = vmatprep.subr.bf16.mxu1 %v14138_v59 }
 0x73f   : > { %10775 = vmatpush1.bf16.msra.mxu0 %v14133_v17  ;;  %10939 = vmatpush1.bf16.msra.mxu1 %v14136_v1 }
 0x740   : > { %10776 = vmatprep.subr.bf16.mxu0 %v14141_v3  ;;  %10940 = vmatprep.subr.bf16.mxu1 %v14144_v4 }
 0x743   : > { %10777 = vmatpush1.bf16.msra.mxu0 %v14139_v8  ;;  %10941 = vmatpush1.bf16.msra.mxu1 %v14142_v24 }
 0x744   : > { %10778 = vmatprep.subr.bf16.mxu0 %v14147_v10  ;;  %10942 = vmatprep.subr.bf16.mxu1 %v14150_v37 }
 0x747   : > { %10779 = vmatpush1.bf16.msra.mxu0 %v14145_v11  ;;  %10943 = vmatpush1.bf16.msra.mxu1 %v14148_v26  ;;  %v12854_v26 = vld [vmem:[#allocation14] ss:$0 sm:$0xff] }
 0x748   : > { %10780 = vmatprep.subr.bf16.mxu0 %v14153_v56  ;;  %10944 = vmatprep.subr.bf16.mxu1 %v14156_v14 }
 0x74b   : > { %10781 = vmatpush1.bf16.msra.mxu0 %v14151_v2  ;;  %10945 = vmatpush1.bf16.msra.mxu1 %v14154_v45 }
 0x74c   : > { %12889 = vmatprep.subr.bf16.mxu0 %v14157_v16  ;;  %12911 = vmatprep.subr.bf16.mxu1 %v14158_v25 }
 0x74e   : > { %10783 = vmatmul.mubr.bf16.vlgmr.msra.gmra.mrb[8].mxu0 %v9067_v40  ;;  %10947 = vmatmul.mubr.bf16.vlgmr.msra.gmra.mrb[8].mxu1 %v9067_v40 }
 0x74f   : > { %12890 = vmatpush3.bf16.msra.mxu0 %v14159_v41  ;;  %12912 = vmatpush3.bf16.msra.mxu1 %v14160_v39 }
 0x750   : > { %12891 = vmatprep.subr.bf16.mxu0 %v14161_v63  ;;  %12913 = vmatprep.subr.bf16.mxu1 %v14162_v18 }
 0x753   : > { %12892 = vmatpush3.bf16.msra.mxu0 %v14163_v19  ;;  %12914 = vmatpush3.bf16.msra.mxu1 %v14164_v20 }
 0x754   : > { %12893 = vmatprep.subr.bf16.mxu0 %v14165_v30  ;;  %12915 = vmatprep.subr.bf16.mxu1 %v14166_v21 }
 0x757   : > { %12894 = vmatpush3.bf16.msra.mxu0 %v14167_v12  ;;  %12916 = vmatpush3.bf16.msra.mxu1 %v14168_v22 }
 0x758   : > { %12895 = vmatprep.subr.bf16.mxu0 %v14169_v48  ;;  %12917 = vmatprep.subr.bf16.mxu1 %v14170_v23 }
 0x75b   : > { %12896 = vmatpush3.bf16.msra.mxu0 %v14171_v27  ;;  %12918 = vmatpush3.bf16.msra.mxu1 %v14172_v61 }
 0x75c   : > { %12897 = vmatprep.subr.bf16.mxu0 %v14173_v51  ;;  %12919 = vmatprep.subr.bf16.mxu1 %v14174_v28 }
 0x75f   : > { %12898 = vmatpush3.bf16.msra.mxu0 %v14175_v6  ;;  %12920 = vmatpush3.bf16.msra.mxu1 %v14176_v31 }
 0x760   : > { %12899 = vmatprep.subr.bf16.mxu0 %v14177_v7  ;;  %12921 = vmatprep.subr.bf16.mxu1 %v14178_v32 }
 0x763   : > { %12900 = vmatpush3.bf16.msra.mxu0 %v14179_v33  ;;  %12922 = vmatpush3.bf16.msra.mxu1 %v14180_v53 }
 0x764   : > { %12901 = vmatprep.subr.bf16.mxu0 %v14181_v36  ;;  %12923 = vmatprep.subr.bf16.mxu1 %v14182_v62 }
 0x767   : > { %12902 = vmatpush3.bf16.msra.mxu0 %v14183_v35  ;;  %12924 = vmatpush3.bf16.msra.mxu1 %v14184_v38 }
 0x768   : > { %12903 = vmatprep.subr.bf16.mxu0 %v14185_v43  ;;  %12925 = vmatprep.subr.bf16.mxu1 %v14186_v44 }
 0x76b   : > { %12904 = vmatpush3.bf16.msra.mxu0 %v14187_v34  ;;  %12926 = vmatpush3.bf16.msra.mxu1 %v14188_v9 }
 0x821   : > { %v10784_v58 = vpop.f32.mrb[8].mxu0  ;;  %v10948_v60 = vpop.f32.mrb[8].mxu1 }
 0x822   : > { %v12965_v42 = vadd.f32 %v10784_v58, %v9330_v47  ;;  %v12967_v29 = vadd.f32 %v10948_v60, %v9338_v5  ;;  %v10786_v59 = vpop.f32.mrb[9].mxu0  ;;  %v10950_v17 = vpop.f32.mrb[9].mxu1 }
 0x823   : > { %v12966_v1 = vadd.f32 %v10786_v59, %v9334_v52  ;;  %v12968_v3 = vadd.f32 %v10950_v17, %v9342_v57  ;;  %v10788_v4 = vpop.f32.mrb[10].mxu0  ;;  %v10952_v8 = vpop.f32.mrb[10].mxu1 }
 0x824   : > { %v10789_v24 = vpop.f32.mrb[11].mxu0  ;;  %v10953_v10 = vpop.f32.mrb[11].mxu1  ;;  %v10955_v11 = vpack.c.bf16 %v12965_v42, %v12965_v42  ;;  %v10957_v54 = vpack.c.bf16 %v12967_v29, %v12967_v29 }
 0x825   : > { %v10956_v37 = vpack.c.bf16 %v12966_v1, %v12966_v1  ;;  %v10958_v49 = vpack.c.bf16 %v12968_v3, %v12968_v3 }
 0x827   : > { %11254 = vmatprep.mubr.bf16.mxu0 %v10956_v37  ;;  %11294 = vmatprep.mubr.bf16.mxu1 %v10958_v49 }
 0x828   : > { %11255 = vmatmul.mubr.bf16.vlgmr.msra.gmra.mrb[12].mxu0 %v10955_v11  ;;  %11295 = vmatmul.mubr.bf16.vlgmr.msra.gmra.mrb[12].mxu1 %v10957_v54 }
 0x8fb   : > { %v12905_v50 = vpop.f32.mrb[12].mxu0  ;;  %v12927_v55 = vpop.f32.mrb[12].mxu1 }
 0x8fc   : > { %v12906_v13 = vpop.f32.mrb[13].mxu0  ;;  %v12928_v0 = vpop.f32.mrb[13].mxu1 }
 0x8fd   : > { %v12907_v56 = vadd.f32 %v12906_v13, %v12905_v50  ;;  %v12929_v14 = vadd.f32 %v12928_v0, %v12927_v55  ;;  %v12908_v2 = vpop.f32.mrb[14].mxu0  ;;  %v12930_v45 = vpop.f32.mrb[14].mxu1 }
 0x8fe   : > { %v12909_v15 = vpop.f32.mrb[15].mxu0  ;;  %v12931_v16 = vpop.f32.mrb[15].mxu1 }
 0x8ff   : > { %v11257_v25 = vadd.f32 %v12907_v56, %v12854_v26 }
 0x901   : > { %v11297_v41 = vadd.f32 %v12929_v14, %v11257_v25 }
 0x903   : > { %11302 = vst [vmem:[%s15472_s9] sm:$0xf] %v11297_v41 }
 0x904 PF: > { %p23_p8 = scmp.ge.s32.totalorder %s14732_s29, 6   ;;  %s15493_s30 = smov %s14459_s10 }
 0x905   : > { %s15494_s10 = smov %s14463_s11  ;;  %s15495_s11 = smov %s14743_s22 }
 0x906   : > { %s15496_s12 = smov %s14732_s29  ;;  %25 = sbr.rel (!%p23_p8) target bundleno = 9 (0x9), region = 131 }
 0x90d   :  { %11314 = vsyncpa [#allocation4], 1 }
 0x90e   :  { %11316 = vsyncpa [#allocation4 + $0x1], 1 }
 0x90f   :  { %11317 = vsyncpa [#allocation6], 1 }
 0x910   :  { %11318 = vsyncpa [#allocation9], 1 }
 0x911   :  { %11319 = vsyncpa [#allocation12], 1 }
 0x912   :  { %11320 = vsyncpa [#allocation15], 1 }

</bundles_post_ra>
